<compile_context>
chip_gen: v6e
topology: v6e:2x2x1
jax: 0.10.0
libtpu: 0.0.40
codegen_flags: <defaults>
</compile_context>

<pallas_src>
import numpy as np

import jax
import jax.numpy as jnp
from jax import lax
from jax.experimental import pallas as pl
from jax.experimental.pallas import tpu as pltpu

NUM_CLASSES = 10

HW0 = 768   # 27*27 = 729 flattened (h,w) of the input, padded to 6*128 lanes
HW1 = 256   # 12*12 = 144 flattened (h,w) after pool-1, padded to 2*128 lanes


# --------------------------------------------------------------------------
# Fused per-sample kernel
# --------------------------------------------------------------------------
def _region_cnn_kernel(x_ref, w1_ref, sh1_ref, g1_ref, w2_ref, sh2_ref,
                       w3_ref, b3_ref, o_ref, z1_ref):
    f32 = jnp.float32

    def shifted(v, s, width):
        # v[:, j] -> v[:, j + s]  (cyclic; wrapped lanes land on don't-care columns)
        if s == 0:
            return v
        return pltpu.roll(v, shift=width - s, axis=1)

    def pool_hw(v, stride, width):
        # max over the 2x2 (h, w) corners; result is valid at even (h, w) columns
        t = jnp.maximum(v, shifted(v, 1, width))
        return jnp.maximum(t, shifted(t, stride, width))

    # ---------------- Conv3d(1,32,3) + BN1 + ReLU, one depth slab at a time ----
    def conv1_slab(d):
        rows = []
        for kd in range(3):
            src = x_ref[d + kd]                               # (1, 768)
            for kh in range(3):
                for kw in range(3):
                    rows.append(shifted(src, kh * 27 + kw, HW0))
        patch = jnp.concatenate(rows, axis=0)                  # (27, 768) in VMEM
        y = jnp.dot(w1_ref[...], patch, preferred_element_type=f32)   # (32, 768)
        return jnp.maximum(y + sh1_ref[...], 0.0)

    # fused MaxPool3d(2): depth pairs via slab pairs, (h,w) via roll+max, then a
    # 0/1 selection matmul gathers the 12x12 even grid into a compact slab.
    def stage1_body(i, carry):
        a = pool_hw(conv1_slab(2 * i), 27, HW0)
        b = pool_hw(conv1_slab(2 * i + 1), 27, HW0)
        m = jnp.maximum(a, b)                                  # (32, 768)
        z1_ref[i] = jnp.dot(m, g1_ref[...], preferred_element_type=f32)  # (32, 256)
        return carry

    lax.fori_loop(0, 12, stage1_body, 0)

    # ---------------- Conv3d(32,64,3) + BN2 + ReLU, one depth slab at a time ---
    def conv2_slab(d):
        pieces = []
        for kd in range(3):
            src = z1_ref[d + kd]                               # (32, 256)
            for kh in range(3):
                for kw in range(3):
                    pieces.append(shifted(src, kh * 12 + kw, HW1))
        patch = jnp.concatenate(pieces, axis=0)                # (864, 256) in VMEM
        y = jnp.dot(w2_ref[...], patch, preferred_element_type=f32)     # (64, 256)
        return jnp.maximum(y + sh2_ref[...], 0.0)

    # fused MaxPool3d(2) + Conv3d(64,10,5) head: pool-2 gather is pre-folded
    # into the scattered head weights, so the head is 10 masked dot-products.
    def stage2_body(i, acc):
        a = pool_hw(conv2_slab(2 * i), 12, HW1)
        b = pool_hw(conv2_slab(2 * i + 1), 12, HW1)
        m = jnp.maximum(a, b)                                  # (64, 256)
        w3d = w3_ref[i]                                        # (10, 64, 256)
        parts = []
        for k in range(NUM_CLASSES):
            p = w3d[k] * m                                     # (64, 256)
            s = jnp.sum(p, axis=1, keepdims=True)              # (64, 1)
            parts.append(jnp.sum(s, axis=0, keepdims=True))    # (1, 1)
        return acc + jnp.concatenate(parts, axis=1)            # (1, 10)

    out = lax.fori_loop(0, 5, stage2_body,
                        jnp.zeros((1, NUM_CLASSES), f32))
    o_ref[...] = out + b3_ref[...]


# --------------------------------------------------------------------------
# Pallas wrapper
# --------------------------------------------------------------------------
def forward(x, params):
    b, r = x.shape[0], x.shape[1]
    n = b * r
    xk = x.reshape(n, 27, 1, 27 * 27).astype(jnp.float32)
    xk = jnp.pad(xk, ((0, 0), (0, 0), (0, 0), (0, HW0 - 729)))     # lane-pad to 768

    out = pl.pallas_call(
        _region_cnn_kernel,
        out_shape=jax.ShapeDtypeStruct((n, 1, NUM_CLASSES), jnp.float32),
        grid=(n,),
        in_specs=[
            pl.BlockSpec((None, 27, 1, HW0), lambda i: (i, 0, 0, 0)),      # x (per sample)
            pl.BlockSpec((32, 27), lambda i: (0, 0)),                       # conv1 w (BN folded)
            pl.BlockSpec((32, 1), lambda i: (0, 0)),                        # BN1 shift
            pl.BlockSpec((HW0, HW1), lambda i: (0, 0)),                     # pool-1 gather matrix
            pl.BlockSpec((64, 864), lambda i: (0, 0)),                      # conv2 w (BN folded)
            pl.BlockSpec((64, 1), lambda i: (0, 0)),                        # BN2 shift
            pl.BlockSpec((5, NUM_CLASSES, 64, HW1), lambda i: (0, 0, 0, 0)),  # scattered head w
            pl.BlockSpec((1, NUM_CLASSES), lambda i: (0, 0)),               # head bias
        ],
        out_specs=pl.BlockSpec((None, 1, NUM_CLASSES), lambda i: (i, 0, 0)),
        scratch_shapes=[pltpu.VMEM((12, 32, HW1), jnp.float32)],            # pooled-1 activations
        compiler_params=pltpu.CompilerParams(
            dimension_semantics=("parallel",),          # balanced across v7x's 2 TCs (N even)
            vmem_limit_bytes=32 * 1024 * 1024,          # headroom on v7x's 64 MiB VMEM
        ),
    )(xk, params["w1f"], params["shift1"], params["g1"],
      params["w2p"], params["shift2"], params["w3s"], params["b3"])
    return out.reshape(b, r, NUM_CLASSES)


# --------------------------------------------------------------------------
# Parameters
# --------------------------------------------------------------------------
def init_raw_params(key):
    ks = jax.random.split(key, 12)
    return {
        "w1": 0.10 * jax.random.normal(ks[0], (32, 1, 3, 3, 3), jnp.float32),
        "w2": 0.05 * jax.random.normal(ks[1], (64, 32, 3, 3, 3), jnp.float32),
        "w3": 0.02 * jax.random.normal(ks[2], (NUM_CLASSES, 64, 5, 5, 5), jnp.float32),
        "b3": 0.01 * jax.random.normal(ks[3], (NUM_CLASSES,), jnp.float32),
        "g1": 1.0 + 0.1 * jax.random.normal(ks[4], (32,), jnp.float32),
        "b1": 0.05 * jax.random.normal(ks[5], (32,), jnp.float32),
        "m1": 0.02 * jax.random.normal(ks[6], (32,), jnp.float32),
        "v1": 1.0 + 0.1 * jnp.abs(jax.random.normal(ks[7], (32,), jnp.float32)),
        "g2": 1.0 + 0.1 * jax.random.normal(ks[8], (64,), jnp.float32),
        "b2": 0.05 * jax.random.normal(ks[9], (64,), jnp.float32),
        "m2": 0.02 * jax.random.normal(ks[10], (64,), jnp.float32),
        "v2": 1.0 + 0.1 * jnp.abs(jax.random.normal(ks[11], (64,), jnp.float32)),
    }


def fold_params(raw, eps=1e-5):
    s1 = raw["g1"] / jnp.sqrt(raw["v1"] + eps)
    t1 = raw["b1"] - raw["m1"] * s1
    s2 = raw["g2"] / jnp.sqrt(raw["v2"] + eps)
    t2 = raw["b2"] - raw["m2"] * s2

    # BN scales folded into conv weights; conv2 columns ordered (kd,kh,kw,ci)
    # to match the in-kernel patch row order.
    w1f = raw["w1"].reshape(32, 27) * s1[:, None]
    w2p = raw["w2"].transpose(0, 2, 3, 4, 1).reshape(64, 27 * 32) * s2[:, None]

    # pool-1 gather: 0/1 selection matrix picking flat column 2h*27+2w -> h*12+w
    g1 = np.zeros((HW0, HW1), np.float32)
    for hh in range(12):
        for ww in range(12):
            g1[2 * hh * 27 + 2 * ww, hh * 12 + ww] = 1.0

    # head weights scattered onto the un-gathered pooled map:
    # w3s[d2, k, ci, 2h*12+2w] = w3[k, ci, d2, h, w]   (zeros elsewhere)
    w3 = np.asarray(raw["w3"])                                  # (10, 64, 5, 5, 5)
    w3t = w3.transpose(2, 0, 1, 3, 4)                           # (5, 10, 64, 5, 5)
    w3s = np.zeros((5, NUM_CLASSES, 64, HW1), np.float32)
    for hh in range(5):
        for ww in range(5):
            w3s[:, :, :, 2 * hh * 12 + 2 * ww] = w3t[:, :, :, hh, ww]

    return {
        "w1f": jnp.asarray(w1f, jnp.float32),
        "shift1": t1.reshape(32, 1).astype(jnp.float32),
        "g1": jnp.asarray(g1),
        "w2p": jnp.asarray(w2p, jnp.float32),
        "shift2": t2.reshape(64, 1).astype(jnp.float32),
        "w3s": jnp.asarray(w3s),
        "b3": raw["b3"].reshape(1, NUM_CLASSES).astype(jnp.float32),
    }


# --------------------------------------------------------------------------
# Pure-XLA reference (matches the PyTorch module in inference mode)
# --------------------------------------------------------------------------
def reference_forward(x, raw, eps=1e-5):
    b, r = x.shape[0], x.shape[1]
    n = b * r
    h = x.reshape(n, 1, 27, 27, 27).astype(jnp.float32)

    def conv3d(v, w):
        return jax.lax.conv_general_dilated(
            v, w, window_strides=(1, 1, 1), padding="VALID",
            dimension_numbers=("NCDHW", "OIDHW", "NCDHW"),
            precision=jax.lax.Precision.HIGHEST)

    def bn(v, g, bb, m, var):
        sh = (1, -1, 1, 1, 1)
        return (v - m.reshape(sh)) / jnp.sqrt(var.reshape(sh) + eps) * g.reshape(sh) + bb.reshape(sh)

    def mp(v):
        return jax.lax.reduce_window(
            v, -jnp.inf, jax.lax.max, (1, 1, 2, 2, 2), (1, 1, 2, 2, 2), "VALID")

    h = jax.nn.relu(bn(conv3d(h, raw["w1"]), raw["g1"], raw["b1"], raw["m1"], raw["v1"]))
    h = mp(h)
    h = jax.nn.relu(bn(conv3d(h, raw["w2"]), raw["g2"], raw["b2"], raw["m2"], raw["v2"]))
    h = mp(h)
    h = conv3d(h, raw["w3"]) + raw["b3"].reshape(1, -1, 1, 1, 1)
    return h.reshape(b, r, -1)


# --------------------------------------------------------------------------
if __name__ == "__main__":
    B, R = 2, 3  # batch_size=2, num_regions=3; each region is a 27^3 volume
    key = jax.random.PRNGKey(0)
    kx, kp = jax.random.split(key, 2)
    x = jax.random.normal(kx, (B, R, 27, 27, 27), jnp.float32)

    raw = init_raw_params(kp)
    params = fold_params(raw)

    out = jax.jit(forward)(x, params)
    out = jax.block_until_ready(out)
    assert out.shape == (B, R, NUM_CLASSES), out.shape

    ref = jax.block_until_ready(reference_forward(x, raw))
    err = float(jnp.max(jnp.abs(out - ref)))
    if err > 5e-2:
        raise AssertionError(f"Pallas output mismatch vs reference: max abs err = {err}")

    print("KERNEL_OK")
</pallas_src>

<mosaic_0001>
module attributes {stable_mosaic.version = 11 : i64} {
  func.func @_region_cnn_kernel(%arg0: i32, %arg1: memref<1x27x1x768xf32, #tpu.memory_space<vmem>>, %arg2: memref<32x27xf32, #tpu.memory_space<vmem>>, %arg3: memref<32x1xf32, #tpu.memory_space<vmem>>, %arg4: memref<768x256xf32, #tpu.memory_space<vmem>>, %arg5: memref<64x864xf32, #tpu.memory_space<vmem>>, %arg6: memref<64x1xf32, #tpu.memory_space<vmem>>, %arg7: memref<5x10x64x256xf32, #tpu.memory_space<vmem>>, %arg8: memref<1x10xf32, #tpu.memory_space<vmem>>, %arg9: memref<1x1x10xf32, #tpu.memory_space<vmem>>, %arg10: memref<12x32x256xf32, #tpu.memory_space<vmem>>) attributes {dimension_semantics = [#tpu.dimension_semantics<parallel>], iteration_bounds = array<i64: 6>, scalar_prefetch = 0 : i64, scratch_operands = 1 : i64, tpu.core_type = #tpu.core_type<tc>, window_params = [{transform_indices = @transform_0, window_bounds = array<i64: 1, 27, 1, 768>}, {pipeline_mode = #tpu.pipeline_mode<synchronous>, transform_indices = @transform_1, window_bounds = array<i64: 32, 27>}, {pipeline_mode = #tpu.pipeline_mode<synchronous>, transform_indices = @transform_2, window_bounds = array<i64: 32, 1>}, {pipeline_mode = #tpu.pipeline_mode<synchronous>, transform_indices = @transform_3, window_bounds = array<i64: 768, 256>}, {pipeline_mode = #tpu.pipeline_mode<synchronous>, transform_indices = @transform_4, window_bounds = array<i64: 64, 864>}, {pipeline_mode = #tpu.pipeline_mode<synchronous>, transform_indices = @transform_5, window_bounds = array<i64: 64, 1>}, {pipeline_mode = #tpu.pipeline_mode<synchronous>, transform_indices = @transform_6, window_bounds = array<i64: 5, 10, 64, 256>}, {pipeline_mode = #tpu.pipeline_mode<synchronous>, transform_indices = @transform_7, window_bounds = array<i64: 1, 10>}, {transform_indices = @transform_8, window_bounds = array<i64: 1, 1, 10>}]} {
    %c0_i32 = arith.constant 0 : i32
    %c12_i32 = arith.constant 12 : i32
    %0 = arith.addi %c0_i32, %c12_i32 : i32
    %c1_i32 = arith.constant 1 : i32
    scf.for %arg11 = %c0_i32 to %0 step %c1_i32  : i32 {
      %c2_i32 = arith.constant 2 : i32
      %9 = arith.muli %c2_i32, %arg11 : i32
      %c0_i32_8 = arith.constant 0 : i32
      %10 = arith.addi %9, %c0_i32_8 : i32
      %c0_9 = arith.constant 0 : index
      %11 = arith.index_cast %10 : i32 to index
      %c0_10 = arith.constant 0 : index
      %c0_11 = arith.constant 0 : index
      %12 = vector.load %arg1[%c0_9, %11, %c0_10, %c0_11] : memref<1x27x1x768xf32, #tpu.memory_space<vmem>>, vector<1x1x1x768xf32>
      %13 = vector.shape_cast %12 : vector<1x1x1x768xf32> to vector<1x768xf32>
      %c767_i32 = arith.constant 767 : i32
      %14 = tpu.dynamic_rotate %13 by %c767_i32 dim 1 : vector<1x768xf32>, i32 -> vector<1x768xf32>
      %c766_i32 = arith.constant 766 : i32
      %15 = tpu.dynamic_rotate %13 by %c766_i32 dim 1 : vector<1x768xf32>, i32 -> vector<1x768xf32>
      %c741_i32 = arith.constant 741 : i32
      %16 = tpu.dynamic_rotate %13 by %c741_i32 dim 1 : vector<1x768xf32>, i32 -> vector<1x768xf32>
      %c740_i32 = arith.constant 740 : i32
      %17 = tpu.dynamic_rotate %13 by %c740_i32 dim 1 : vector<1x768xf32>, i32 -> vector<1x768xf32>
      %c739_i32 = arith.constant 739 : i32
      %18 = tpu.dynamic_rotate %13 by %c739_i32 dim 1 : vector<1x768xf32>, i32 -> vector<1x768xf32>
      %c714_i32 = arith.constant 714 : i32
      %19 = tpu.dynamic_rotate %13 by %c714_i32 dim 1 : vector<1x768xf32>, i32 -> vector<1x768xf32>
      %c713_i32 = arith.constant 713 : i32
      %20 = tpu.dynamic_rotate %13 by %c713_i32 dim 1 : vector<1x768xf32>, i32 -> vector<1x768xf32>
      %c712_i32 = arith.constant 712 : i32
      %21 = tpu.dynamic_rotate %13 by %c712_i32 dim 1 : vector<1x768xf32>, i32 -> vector<1x768xf32>
      %c1_i32_12 = arith.constant 1 : i32
      %22 = arith.addi %9, %c1_i32_12 : i32
      %c0_13 = arith.constant 0 : index
      %23 = arith.index_cast %22 : i32 to index
      %c0_14 = arith.constant 0 : index
      %c0_15 = arith.constant 0 : index
      %24 = vector.load %arg1[%c0_13, %23, %c0_14, %c0_15] : memref<1x27x1x768xf32, #tpu.memory_space<vmem>>, vector<1x1x1x768xf32>
      %25 = vector.shape_cast %24 : vector<1x1x1x768xf32> to vector<1x768xf32>
      %c767_i32_16 = arith.constant 767 : i32
      %26 = tpu.dynamic_rotate %25 by %c767_i32_16 dim 1 : vector<1x768xf32>, i32 -> vector<1x768xf32>
      %c766_i32_17 = arith.constant 766 : i32
      %27 = tpu.dynamic_rotate %25 by %c766_i32_17 dim 1 : vector<1x768xf32>, i32 -> vector<1x768xf32>
      %c741_i32_18 = arith.constant 741 : i32
      %28 = tpu.dynamic_rotate %25 by %c741_i32_18 dim 1 : vector<1x768xf32>, i32 -> vector<1x768xf32>
      %c740_i32_19 = arith.constant 740 : i32
      %29 = tpu.dynamic_rotate %25 by %c740_i32_19 dim 1 : vector<1x768xf32>, i32 -> vector<1x768xf32>
      %c739_i32_20 = arith.constant 739 : i32
      %30 = tpu.dynamic_rotate %25 by %c739_i32_20 dim 1 : vector<1x768xf32>, i32 -> vector<1x768xf32>
      %c714_i32_21 = arith.constant 714 : i32
      %31 = tpu.dynamic_rotate %25 by %c714_i32_21 dim 1 : vector<1x768xf32>, i32 -> vector<1x768xf32>
      %c713_i32_22 = arith.constant 713 : i32
      %32 = tpu.dynamic_rotate %25 by %c713_i32_22 dim 1 : vector<1x768xf32>, i32 -> vector<1x768xf32>
      %c712_i32_23 = arith.constant 712 : i32
      %33 = tpu.dynamic_rotate %25 by %c712_i32_23 dim 1 : vector<1x768xf32>, i32 -> vector<1x768xf32>
      %c2_i32_24 = arith.constant 2 : i32
      %34 = arith.addi %9, %c2_i32_24 : i32
      %c0_25 = arith.constant 0 : index
      %35 = arith.index_cast %34 : i32 to index
      %c0_26 = arith.constant 0 : index
      %c0_27 = arith.constant 0 : index
      %36 = vector.load %arg1[%c0_25, %35, %c0_26, %c0_27] : memref<1x27x1x768xf32, #tpu.memory_space<vmem>>, vector<1x1x1x768xf32>
      %37 = vector.shape_cast %36 : vector<1x1x1x768xf32> to vector<1x768xf32>
      %c767_i32_28 = arith.constant 767 : i32
      %38 = tpu.dynamic_rotate %37 by %c767_i32_28 dim 1 : vector<1x768xf32>, i32 -> vector<1x768xf32>
      %c766_i32_29 = arith.constant 766 : i32
      %39 = tpu.dynamic_rotate %37 by %c766_i32_29 dim 1 : vector<1x768xf32>, i32 -> vector<1x768xf32>
      %c741_i32_30 = arith.constant 741 : i32
      %40 = tpu.dynamic_rotate %37 by %c741_i32_30 dim 1 : vector<1x768xf32>, i32 -> vector<1x768xf32>
      %c740_i32_31 = arith.constant 740 : i32
      %41 = tpu.dynamic_rotate %37 by %c740_i32_31 dim 1 : vector<1x768xf32>, i32 -> vector<1x768xf32>
      %c739_i32_32 = arith.constant 739 : i32
      %42 = tpu.dynamic_rotate %37 by %c739_i32_32 dim 1 : vector<1x768xf32>, i32 -> vector<1x768xf32>
      %c714_i32_33 = arith.constant 714 : i32
      %43 = tpu.dynamic_rotate %37 by %c714_i32_33 dim 1 : vector<1x768xf32>, i32 -> vector<1x768xf32>
      %c713_i32_34 = arith.constant 713 : i32
      %44 = tpu.dynamic_rotate %37 by %c713_i32_34 dim 1 : vector<1x768xf32>, i32 -> vector<1x768xf32>
      %c712_i32_35 = arith.constant 712 : i32
      %45 = tpu.dynamic_rotate %37 by %c712_i32_35 dim 1 : vector<1x768xf32>, i32 -> vector<1x768xf32>
      %46 = tpu.concatenate %13, %14, %15, %16, %17, %18, %19, %20, %21, %25, %26, %27, %28, %29, %30, %31 in 0 : vector<1x768xf32>, vector<1x768xf32>, vector<1x768xf32>, vector<1x768xf32>, vector<1x768xf32>, vector<1x768xf32>, vector<1x768xf32>, vector<1x768xf32>, vector<1x768xf32>, vector<1x768xf32>, vector<1x768xf32>, vector<1x768xf32>, vector<1x768xf32>, vector<1x768xf32>, vector<1x768xf32>, vector<1x768xf32> -> vector<16x768xf32>
      %47 = tpu.concatenate %32, %33, %37, %38, %39, %40, %41, %42, %43, %44, %45 in 0 : vector<1x768xf32>, vector<1x768xf32>, vector<1x768xf32>, vector<1x768xf32>, vector<1x768xf32>, vector<1x768xf32>, vector<1x768xf32>, vector<1x768xf32>, vector<1x768xf32>, vector<1x768xf32>, vector<1x768xf32> -> vector<11x768xf32>
      %48 = tpu.concatenate %46, %47 in 0 : vector<16x768xf32>, vector<11x768xf32> -> vector<27x768xf32>
      %c0_36 = arith.constant 0 : index
      %c0_37 = arith.constant 0 : index
      %49 = vector.load %arg2[%c0_36, %c0_37] : memref<32x27xf32, #tpu.memory_space<vmem>>, vector<32x27xf32>
      %cst_38 = arith.constant dense<0.000000e+00> : vector<32x768xf32>
      %50 = tpu.matmul %49, %48, %cst_38 {dimension_numbers = #tpu.dot_dimension_numbers<[1], [0], [0], [1], [0, 0, 1, 1], [], []>} : vector<32x27xf32>, vector<27x768xf32>, vector<32x768xf32> -> vector<32x768xf32>
      %c0_39 = arith.constant 0 : index
      %c0_40 = arith.constant 0 : index
      %51 = vector.load %arg3[%c0_39, %c0_40] : memref<32x1xf32, #tpu.memory_space<vmem>>, vector<32x1xf32>
      %52 = vector.broadcast %51 : vector<32x1xf32> to vector<32x768xf32>
      %53 = arith.addf %50, %52 : vector<32x768xf32>
      %cst_41 = arith.constant 0.000000e+00 : f32
      %54 = vector.broadcast %cst_41 : f32 to vector<32x768xf32>
      %55 = arith.maximumf %53, %54 : vector<32x768xf32>
      %c767_i32_42 = arith.constant 767 : i32
      %56 = tpu.dynamic_rotate %55 by %c767_i32_42 dim 1 : vector<32x768xf32>, i32 -> vector<32x768xf32>
      %57 = arith.maximumf %55, %56 : vector<32x768xf32>
      %c741_i32_43 = arith.constant 741 : i32
      %58 = tpu.dynamic_rotate %57 by %c741_i32_43 dim 1 : vector<32x768xf32>, i32 -> vector<32x768xf32>
      %59 = arith.maximumf %57, %58 : vector<32x768xf32>
      %c2_i32_44 = arith.constant 2 : i32
      %60 = arith.muli %c2_i32_44, %arg11 : i32
      %c1_i32_45 = arith.constant 1 : i32
      %61 = arith.addi %60, %c1_i32_45 : i32
      %c0_i32_46 = arith.constant 0 : i32
      %62 = arith.addi %61, %c0_i32_46 : i32
      %c0_47 = arith.constant 0 : index
      %63 = arith.index_cast %62 : i32 to index
      %c0_48 = arith.constant 0 : index
      %c0_49 = arith.constant 0 : index
      %64 = vector.load %arg1[%c0_47, %63, %c0_48, %c0_49] : memref<1x27x1x768xf32, #tpu.memory_space<vmem>>, vector<1x1x1x768xf32>
      %65 = vector.shape_cast %64 : vector<1x1x1x768xf32> to vector<1x768xf32>
      %c767_i32_50 = arith.constant 767 : i32
      %66 = tpu.dynamic_rotate %65 by %c767_i32_50 dim 1 : vector<1x768xf32>, i32 -> vector<1x768xf32>
      %c766_i32_51 = arith.constant 766 : i32
      %67 = tpu.dynamic_rotate %65 by %c766_i32_51 dim 1 : vector<1x768xf32>, i32 -> vector<1x768xf32>
      %c741_i32_52 = arith.constant 741 : i32
      %68 = tpu.dynamic_rotate %65 by %c741_i32_52 dim 1 : vector<1x768xf32>, i32 -> vector<1x768xf32>
      %c740_i32_53 = arith.constant 740 : i32
      %69 = tpu.dynamic_rotate %65 by %c740_i32_53 dim 1 : vector<1x768xf32>, i32 -> vector<1x768xf32>
      %c739_i32_54 = arith.constant 739 : i32
      %70 = tpu.dynamic_rotate %65 by %c739_i32_54 dim 1 : vector<1x768xf32>, i32 -> vector<1x768xf32>
      %c714_i32_55 = arith.constant 714 : i32
      %71 = tpu.dynamic_rotate %65 by %c714_i32_55 dim 1 : vector<1x768xf32>, i32 -> vector<1x768xf32>
      %c713_i32_56 = arith.constant 713 : i32
      %72 = tpu.dynamic_rotate %65 by %c713_i32_56 dim 1 : vector<1x768xf32>, i32 -> vector<1x768xf32>
      %c712_i32_57 = arith.constant 712 : i32
      %73 = tpu.dynamic_rotate %65 by %c712_i32_57 dim 1 : vector<1x768xf32>, i32 -> vector<1x768xf32>
      %c1_i32_58 = arith.constant 1 : i32
      %74 = arith.addi %61, %c1_i32_58 : i32
      %c0_59 = arith.constant 0 : index
      %75 = arith.index_cast %74 : i32 to index
      %c0_60 = arith.constant 0 : index
      %c0_61 = arith.constant 0 : index
      %76 = vector.load %arg1[%c0_59, %75, %c0_60, %c0_61] : memref<1x27x1x768xf32, #tpu.memory_space<vmem>>, vector<1x1x1x768xf32>
      %77 = vector.shape_cast %76 : vector<1x1x1x768xf32> to vector<1x768xf32>
      %c767_i32_62 = arith.constant 767 : i32
      %78 = tpu.dynamic_rotate %77 by %c767_i32_62 dim 1 : vector<1x768xf32>, i32 -> vector<1x768xf32>
      %c766_i32_63 = arith.constant 766 : i32
      %79 = tpu.dynamic_rotate %77 by %c766_i32_63 dim 1 : vector<1x768xf32>, i32 -> vector<1x768xf32>
      %c741_i32_64 = arith.constant 741 : i32
      %80 = tpu.dynamic_rotate %77 by %c741_i32_64 dim 1 : vector<1x768xf32>, i32 -> vector<1x768xf32>
      %c740_i32_65 = arith.constant 740 : i32
      %81 = tpu.dynamic_rotate %77 by %c740_i32_65 dim 1 : vector<1x768xf32>, i32 -> vector<1x768xf32>
      %c739_i32_66 = arith.constant 739 : i32
      %82 = tpu.dynamic_rotate %77 by %c739_i32_66 dim 1 : vector<1x768xf32>, i32 -> vector<1x768xf32>
      %c714_i32_67 = arith.constant 714 : i32
      %83 = tpu.dynamic_rotate %77 by %c714_i32_67 dim 1 : vector<1x768xf32>, i32 -> vector<1x768xf32>
      %c713_i32_68 = arith.constant 713 : i32
      %84 = tpu.dynamic_rotate %77 by %c713_i32_68 dim 1 : vector<1x768xf32>, i32 -> vector<1x768xf32>
      %c712_i32_69 = arith.constant 712 : i32
      %85 = tpu.dynamic_rotate %77 by %c712_i32_69 dim 1 : vector<1x768xf32>, i32 -> vector<1x768xf32>
      %c2_i32_70 = arith.constant 2 : i32
      %86 = arith.addi %61, %c2_i32_70 : i32
      %c0_71 = arith.constant 0 : index
      %87 = arith.index_cast %86 : i32 to index
      %c0_72 = arith.constant 0 : index
      %c0_73 = arith.constant 0 : index
      %88 = vector.load %arg1[%c0_71, %87, %c0_72, %c0_73] : memref<1x27x1x768xf32, #tpu.memory_space<vmem>>, vector<1x1x1x768xf32>
      %89 = vector.shape_cast %88 : vector<1x1x1x768xf32> to vector<1x768xf32>
      %c767_i32_74 = arith.constant 767 : i32
      %90 = tpu.dynamic_rotate %89 by %c767_i32_74 dim 1 : vector<1x768xf32>, i32 -> vector<1x768xf32>
      %c766_i32_75 = arith.constant 766 : i32
      %91 = tpu.dynamic_rotate %89 by %c766_i32_75 dim 1 : vector<1x768xf32>, i32 -> vector<1x768xf32>
      %c741_i32_76 = arith.constant 741 : i32
      %92 = tpu.dynamic_rotate %89 by %c741_i32_76 dim 1 : vector<1x768xf32>, i32 -> vector<1x768xf32>
      %c740_i32_77 = arith.constant 740 : i32
      %93 = tpu.dynamic_rotate %89 by %c740_i32_77 dim 1 : vector<1x768xf32>, i32 -> vector<1x768xf32>
      %c739_i32_78 = arith.constant 739 : i32
      %94 = tpu.dynamic_rotate %89 by %c739_i32_78 dim 1 : vector<1x768xf32>, i32 -> vector<1x768xf32>
      %c714_i32_79 = arith.constant 714 : i32
      %95 = tpu.dynamic_rotate %89 by %c714_i32_79 dim 1 : vector<1x768xf32>, i32 -> vector<1x768xf32>
      %c713_i32_80 = arith.constant 713 : i32
      %96 = tpu.dynamic_rotate %89 by %c713_i32_80 dim 1 : vector<1x768xf32>, i32 -> vector<1x768xf32>
      %c712_i32_81 = arith.constant 712 : i32
      %97 = tpu.dynamic_rotate %89 by %c712_i32_81 dim 1 : vector<1x768xf32>, i32 -> vector<1x768xf32>
      %98 = tpu.concatenate %65, %66, %67, %68, %69, %70, %71, %72, %73, %77, %78, %79, %80, %81, %82, %83 in 0 : vector<1x768xf32>, vector<1x768xf32>, vector<1x768xf32>, vector<1x768xf32>, vector<1x768xf32>, vector<1x768xf32>, vector<1x768xf32>, vector<1x768xf32>, vector<1x768xf32>, vector<1x768xf32>, vector<1x768xf32>, vector<1x768xf32>, vector<1x768xf32>, vector<1x768xf32>, vector<1x768xf32>, vector<1x768xf32> -> vector<16x768xf32>
      %99 = tpu.concatenate %84, %85, %89, %90, %91, %92, %93, %94, %95, %96, %97 in 0 : vector<1x768xf32>, vector<1x768xf32>, vector<1x768xf32>, vector<1x768xf32>, vector<1x768xf32>, vector<1x768xf32>, vector<1x768xf32>, vector<1x768xf32>, vector<1x768xf32>, vector<1x768xf32>, vector<1x768xf32> -> vector<11x768xf32>
      %100 = tpu.concatenate %98, %99 in 0 : vector<16x768xf32>, vector<11x768xf32> -> vector<27x768xf32>
      %c0_82 = arith.constant 0 : index
      %c0_83 = arith.constant 0 : index
      %101 = vector.load %arg2[%c0_82, %c0_83] : memref<32x27xf32, #tpu.memory_space<vmem>>, vector<32x27xf32>
      %cst_84 = arith.constant dense<0.000000e+00> : vector<32x768xf32>
      %102 = tpu.matmul %101, %100, %cst_84 {dimension_numbers = #tpu.dot_dimension_numbers<[1], [0], [0], [1], [0, 0, 1, 1], [], []>} : vector<32x27xf32>, vector<27x768xf32>, vector<32x768xf32> -> vector<32x768xf32>
      %c0_85 = arith.constant 0 : index
      %c0_86 = arith.constant 0 : index
      %103 = vector.load %arg3[%c0_85, %c0_86] : memref<32x1xf32, #tpu.memory_space<vmem>>, vector<32x1xf32>
      %104 = vector.broadcast %103 : vector<32x1xf32> to vector<32x768xf32>
      %105 = arith.addf %102, %104 : vector<32x768xf32>
      %cst_87 = arith.constant 0.000000e+00 : f32
      %106 = vector.broadcast %cst_87 : f32 to vector<32x768xf32>
      %107 = arith.maximumf %105, %106 : vector<32x768xf32>
      %c767_i32_88 = arith.constant 767 : i32
      %108 = tpu.dynamic_rotate %107 by %c767_i32_88 dim 1 : vector<32x768xf32>, i32 -> vector<32x768xf32>
      %109 = arith.maximumf %107, %108 : vector<32x768xf32>
      %c741_i32_89 = arith.constant 741 : i32
      %110 = tpu.dynamic_rotate %109 by %c741_i32_89 dim 1 : vector<32x768xf32>, i32 -> vector<32x768xf32>
      %111 = arith.maximumf %109, %110 : vector<32x768xf32>
      %112 = arith.maximumf %59, %111 : vector<32x768xf32>
      %c0_90 = arith.constant 0 : index
      %c0_91 = arith.constant 0 : index
      %113 = vector.load %arg4[%c0_90, %c0_91] : memref<768x256xf32, #tpu.memory_space<vmem>>, vector<768x256xf32>
      %cst_92 = arith.constant dense<0.000000e+00> : vector<32x256xf32>
      %114 = tpu.matmul %112, %113, %cst_92 {dimension_numbers = #tpu.dot_dimension_numbers<[1], [0], [0], [1], [0, 0, 1, 1], [], []>} : vector<32x768xf32>, vector<768x256xf32>, vector<32x256xf32> -> vector<32x256xf32>
      %115 = arith.index_cast %arg11 : i32 to index
      %c0_93 = arith.constant 0 : index
      %c0_94 = arith.constant 0 : index
      %116 = vector.load %arg10[%115, %c0_93, %c0_94] : memref<12x32x256xf32, #tpu.memory_space<vmem>>, vector<1x32x256xf32>
      %117 = vector.shape_cast %116 : vector<1x32x256xf32> to vector<32x256xf32>
      %118 = vector.shape_cast %114 : vector<32x256xf32> to vector<1x32x256xf32>
      tpu.vector_store %arg10[%115, %c0_93, %c0_94], %118 {strides = array<i32>} : memref<12x32x256xf32, #tpu.memory_space<vmem>>, vector<1x32x256xf32>,
    }
    %c12_i32_0 = arith.constant 12 : i32
    %cst = arith.constant 0.000000e+00 : f32
    %1 = vector.broadcast %cst : f32 to vector<1x10xf32>
    %c0_i32_1 = arith.constant 0 : i32
    %c5_i32 = arith.constant 5 : i32
    %2 = arith.addi %c0_i32_1, %c5_i32 : i32
    %c1_i32_2 = arith.constant 1 : i32
    %3 = scf.for %arg11 = %c0_i32_1 to %2 step %c1_i32_2 iter_args(%arg12 = %1) -> (vector<1x10xf32>)  : i32 {
      %c2_i32 = arith.constant 2 : i32
      %9 = arith.muli %c2_i32, %arg11 : i32
      %c0_i32_8 = arith.constant 0 : i32
      %10 = arith.addi %9, %c0_i32_8 : i32
      %11 = arith.index_cast %10 : i32 to index
      %c0_9 = arith.constant 0 : index
      %c0_10 = arith.constant 0 : index
      %12 = vector.load %arg10[%11, %c0_9, %c0_10] : memref<12x32x256xf32, #tpu.memory_space<vmem>>, vector<1x32x256xf32>
      %13 = vector.shape_cast %12 : vector<1x32x256xf32> to vector<32x256xf32>
      %c255_i32 = arith.constant 255 : i32
      %14 = tpu.dynamic_rotate %13 by %c255_i32 dim 1 : vector<32x256xf32>, i32 -> vector<32x256xf32>
      %c254_i32 = arith.constant 254 : i32
      %15 = tpu.dynamic_rotate %13 by %c254_i32 dim 1 : vector<32x256xf32>, i32 -> vector<32x256xf32>
      %c244_i32 = arith.constant 244 : i32
      %16 = tpu.dynamic_rotate %13 by %c244_i32 dim 1 : vector<32x256xf32>, i32 -> vector<32x256xf32>
      %c243_i32 = arith.constant 243 : i32
      %17 = tpu.dynamic_rotate %13 by %c243_i32 dim 1 : vector<32x256xf32>, i32 -> vector<32x256xf32>
      %c242_i32 = arith.constant 242 : i32
      %18 = tpu.dynamic_rotate %13 by %c242_i32 dim 1 : vector<32x256xf32>, i32 -> vector<32x256xf32>
      %c232_i32 = arith.constant 232 : i32
      %19 = tpu.dynamic_rotate %13 by %c232_i32 dim 1 : vector<32x256xf32>, i32 -> vector<32x256xf32>
      %c231_i32 = arith.constant 231 : i32
      %20 = tpu.dynamic_rotate %13 by %c231_i32 dim 1 : vector<32x256xf32>, i32 -> vector<32x256xf32>
      %c230_i32 = arith.constant 230 : i32
      %21 = tpu.dynamic_rotate %13 by %c230_i32 dim 1 : vector<32x256xf32>, i32 -> vector<32x256xf32>
      %c1_i32_11 = arith.constant 1 : i32
      %22 = arith.addi %9, %c1_i32_11 : i32
      %23 = arith.index_cast %22 : i32 to index
      %c0_12 = arith.constant 0 : index
      %c0_13 = arith.constant 0 : index
      %24 = vector.load %arg10[%23, %c0_12, %c0_13] : memref<12x32x256xf32, #tpu.memory_space<vmem>>, vector<1x32x256xf32>
      %25 = vector.shape_cast %24 : vector<1x32x256xf32> to vector<32x256xf32>
      %c255_i32_14 = arith.constant 255 : i32
      %26 = tpu.dynamic_rotate %25 by %c255_i32_14 dim 1 : vector<32x256xf32>, i32 -> vector<32x256xf32>
      %c254_i32_15 = arith.constant 254 : i32
      %27 = tpu.dynamic_rotate %25 by %c254_i32_15 dim 1 : vector<32x256xf32>, i32 -> vector<32x256xf32>
      %c244_i32_16 = arith.constant 244 : i32
      %28 = tpu.dynamic_rotate %25 by %c244_i32_16 dim 1 : vector<32x256xf32>, i32 -> vector<32x256xf32>
      %c243_i32_17 = arith.constant 243 : i32
      %29 = tpu.dynamic_rotate %25 by %c243_i32_17 dim 1 : vector<32x256xf32>, i32 -> vector<32x256xf32>
      %c242_i32_18 = arith.constant 242 : i32
      %30 = tpu.dynamic_rotate %25 by %c242_i32_18 dim 1 : vector<32x256xf32>, i32 -> vector<32x256xf32>
      %c232_i32_19 = arith.constant 232 : i32
      %31 = tpu.dynamic_rotate %25 by %c232_i32_19 dim 1 : vector<32x256xf32>, i32 -> vector<32x256xf32>
      %c231_i32_20 = arith.constant 231 : i32
      %32 = tpu.dynamic_rotate %25 by %c231_i32_20 dim 1 : vector<32x256xf32>, i32 -> vector<32x256xf32>
      %c230_i32_21 = arith.constant 230 : i32
      %33 = tpu.dynamic_rotate %25 by %c230_i32_21 dim 1 : vector<32x256xf32>, i32 -> vector<32x256xf32>
      %c2_i32_22 = arith.constant 2 : i32
      %34 = arith.addi %9, %c2_i32_22 : i32
      %35 = arith.index_cast %34 : i32 to index
      %c0_23 = arith.constant 0 : index
      %c0_24 = arith.constant 0 : index
      %36 = vector.load %arg10[%35, %c0_23, %c0_24] : memref<12x32x256xf32, #tpu.memory_space<vmem>>, vector<1x32x256xf32>
      %37 = vector.shape_cast %36 : vector<1x32x256xf32> to vector<32x256xf32>
      %c255_i32_25 = arith.constant 255 : i32
      %38 = tpu.dynamic_rotate %37 by %c255_i32_25 dim 1 : vector<32x256xf32>, i32 -> vector<32x256xf32>
      %c254_i32_26 = arith.constant 254 : i32
      %39 = tpu.dynamic_rotate %37 by %c254_i32_26 dim 1 : vector<32x256xf32>, i32 -> vector<32x256xf32>
      %c244_i32_27 = arith.constant 244 : i32
      %40 = tpu.dynamic_rotate %37 by %c244_i32_27 dim 1 : vector<32x256xf32>, i32 -> vector<32x256xf32>
      %c243_i32_28 = arith.constant 243 : i32
      %41 = tpu.dynamic_rotate %37 by %c243_i32_28 dim 1 : vector<32x256xf32>, i32 -> vector<32x256xf32>
      %c242_i32_29 = arith.constant 242 : i32
      %42 = tpu.dynamic_rotate %37 by %c242_i32_29 dim 1 : vector<32x256xf32>, i32 -> vector<32x256xf32>
      %c232_i32_30 = arith.constant 232 : i32
      %43 = tpu.dynamic_rotate %37 by %c232_i32_30 dim 1 : vector<32x256xf32>, i32 -> vector<32x256xf32>
      %c231_i32_31 = arith.constant 231 : i32
      %44 = tpu.dynamic_rotate %37 by %c231_i32_31 dim 1 : vector<32x256xf32>, i32 -> vector<32x256xf32>
      %c230_i32_32 = arith.constant 230 : i32
      %45 = tpu.dynamic_rotate %37 by %c230_i32_32 dim 1 : vector<32x256xf32>, i32 -> vector<32x256xf32>
      %46 = tpu.concatenate %13, %14, %15, %16, %17, %18, %19, %20, %21, %25, %26, %27, %28, %29, %30, %31 in 0 : vector<32x256xf32>, vector<32x256xf32>, vector<32x256xf32>, vector<32x256xf32>, vector<32x256xf32>, vector<32x256xf32>, vector<32x256xf32>, vector<32x256xf32>, vector<32x256xf32>, vector<32x256xf32>, vector<32x256xf32>, vector<32x256xf32>, vector<32x256xf32>, vector<32x256xf32>, vector<32x256xf32>, vector<32x256xf32> -> vector<512x256xf32>
      %47 = tpu.concatenate %32, %33, %37, %38, %39, %40, %41, %42, %43, %44, %45 in 0 : vector<32x256xf32>, vector<32x256xf32>, vector<32x256xf32>, vector<32x256xf32>, vector<32x256xf32>, vector<32x256xf32>, vector<32x256xf32>, vector<32x256xf32>, vector<32x256xf32>, vector<32x256xf32>, vector<32x256xf32> -> vector<352x256xf32>
      %48 = tpu.concatenate %46, %47 in 0 : vector<512x256xf32>, vector<352x256xf32> -> vector<864x256xf32>
      %c0_33 = arith.constant 0 : index
      %c0_34 = arith.constant 0 : index
      %49 = vector.load %arg5[%c0_33, %c0_34] : memref<64x864xf32, #tpu.memory_space<vmem>>, vector<64x864xf32>
      %cst_35 = arith.constant dense<0.000000e+00> : vector<64x256xf32>
      %50 = tpu.matmul %49, %48, %cst_35 {dimension_numbers = #tpu.dot_dimension_numbers<[1], [0], [0], [1], [0, 0, 1, 1], [], []>} : vector<64x864xf32>, vector<864x256xf32>, vector<64x256xf32> -> vector<64x256xf32>
      %c0_36 = arith.constant 0 : index
      %c0_37 = arith.constant 0 : index
      %51 = vector.load %arg6[%c0_36, %c0_37] : memref<64x1xf32, #tpu.memory_space<vmem>>, vector<64x1xf32>
      %52 = vector.broadcast %51 : vector<64x1xf32> to vector<64x256xf32>
      %53 = arith.addf %50, %52 : vector<64x256xf32>
      %cst_38 = arith.constant 0.000000e+00 : f32
      %54 = vector.broadcast %cst_38 : f32 to vector<64x256xf32>
      %55 = arith.maximumf %53, %54 : vector<64x256xf32>
      %c255_i32_39 = arith.constant 255 : i32
      %56 = tpu.dynamic_rotate %55 by %c255_i32_39 dim 1 : vector<64x256xf32>, i32 -> vector<64x256xf32>
      %57 = arith.maximumf %55, %56 : vector<64x256xf32>
      %c244_i32_40 = arith.constant 244 : i32
      %58 = tpu.dynamic_rotate %57 by %c244_i32_40 dim 1 : vector<64x256xf32>, i32 -> vector<64x256xf32>
      %59 = arith.maximumf %57, %58 : vector<64x256xf32>
      %c2_i32_41 = arith.constant 2 : i32
      %60 = arith.muli %c2_i32_41, %arg11 : i32
      %c1_i32_42 = arith.constant 1 : i32
      %61 = arith.addi %60, %c1_i32_42 : i32
      %c0_i32_43 = arith.constant 0 : i32
      %62 = arith.addi %61, %c0_i32_43 : i32
      %63 = arith.index_cast %62 : i32 to index
      %c0_44 = arith.constant 0 : index
      %c0_45 = arith.constant 0 : index
      %64 = vector.load %arg10[%63, %c0_44, %c0_45] : memref<12x32x256xf32, #tpu.memory_space<vmem>>, vector<1x32x256xf32>
      %65 = vector.shape_cast %64 : vector<1x32x256xf32> to vector<32x256xf32>
      %c255_i32_46 = arith.constant 255 : i32
      %66 = tpu.dynamic_rotate %65 by %c255_i32_46 dim 1 : vector<32x256xf32>, i32 -> vector<32x256xf32>
      %c254_i32_47 = arith.constant 254 : i32
      %67 = tpu.dynamic_rotate %65 by %c254_i32_47 dim 1 : vector<32x256xf32>, i32 -> vector<32x256xf32>
      %c244_i32_48 = arith.constant 244 : i32
      %68 = tpu.dynamic_rotate %65 by %c244_i32_48 dim 1 : vector<32x256xf32>, i32 -> vector<32x256xf32>
      %c243_i32_49 = arith.constant 243 : i32
      %69 = tpu.dynamic_rotate %65 by %c243_i32_49 dim 1 : vector<32x256xf32>, i32 -> vector<32x256xf32>
      %c242_i32_50 = arith.constant 242 : i32
      %70 = tpu.dynamic_rotate %65 by %c242_i32_50 dim 1 : vector<32x256xf32>, i32 -> vector<32x256xf32>
      %c232_i32_51 = arith.constant 232 : i32
      %71 = tpu.dynamic_rotate %65 by %c232_i32_51 dim 1 : vector<32x256xf32>, i32 -> vector<32x256xf32>
      %c231_i32_52 = arith.constant 231 : i32
      %72 = tpu.dynamic_rotate %65 by %c231_i32_52 dim 1 : vector<32x256xf32>, i32 -> vector<32x256xf32>
      %c230_i32_53 = arith.constant 230 : i32
      %73 = tpu.dynamic_rotate %65 by %c230_i32_53 dim 1 : vector<32x256xf32>, i32 -> vector<32x256xf32>
      %c1_i32_54 = arith.constant 1 : i32
      %74 = arith.addi %61, %c1_i32_54 : i32
      %75 = arith.index_cast %74 : i32 to index
      %c0_55 = arith.constant 0 : index
      %c0_56 = arith.constant 0 : index
      %76 = vector.load %arg10[%75, %c0_55, %c0_56] : memref<12x32x256xf32, #tpu.memory_space<vmem>>, vector<1x32x256xf32>
      %77 = vector.shape_cast %76 : vector<1x32x256xf32> to vector<32x256xf32>
      %c255_i32_57 = arith.constant 255 : i32
      %78 = tpu.dynamic_rotate %77 by %c255_i32_57 dim 1 : vector<32x256xf32>, i32 -> vector<32x256xf32>
      %c254_i32_58 = arith.constant 254 : i32
      %79 = tpu.dynamic_rotate %77 by %c254_i32_58 dim 1 : vector<32x256xf32>, i32 -> vector<32x256xf32>
      %c244_i32_59 = arith.constant 244 : i32
      %80 = tpu.dynamic_rotate %77 by %c244_i32_59 dim 1 : vector<32x256xf32>, i32 -> vector<32x256xf32>
      %c243_i32_60 = arith.constant 243 : i32
      %81 = tpu.dynamic_rotate %77 by %c243_i32_60 dim 1 : vector<32x256xf32>, i32 -> vector<32x256xf32>
      %c242_i32_61 = arith.constant 242 : i32
      %82 = tpu.dynamic_rotate %77 by %c242_i32_61 dim 1 : vector<32x256xf32>, i32 -> vector<32x256xf32>
      %c232_i32_62 = arith.constant 232 : i32
      %83 = tpu.dynamic_rotate %77 by %c232_i32_62 dim 1 : vector<32x256xf32>, i32 -> vector<32x256xf32>
      %c231_i32_63 = arith.constant 231 : i32
      %84 = tpu.dynamic_rotate %77 by %c231_i32_63 dim 1 : vector<32x256xf32>, i32 -> vector<32x256xf32>
      %c230_i32_64 = arith.constant 230 : i32
      %85 = tpu.dynamic_rotate %77 by %c230_i32_64 dim 1 : vector<32x256xf32>, i32 -> vector<32x256xf32>
      %c2_i32_65 = arith.constant 2 : i32
      %86 = arith.addi %61, %c2_i32_65 : i32
      %87 = arith.index_cast %86 : i32 to index
      %c0_66 = arith.constant 0 : index
      %c0_67 = arith.constant 0 : index
      %88 = vector.load %arg10[%87, %c0_66, %c0_67] : memref<12x32x256xf32, #tpu.memory_space<vmem>>, vector<1x32x256xf32>
      %89 = vector.shape_cast %88 : vector<1x32x256xf32> to vector<32x256xf32>
      %c255_i32_68 = arith.constant 255 : i32
      %90 = tpu.dynamic_rotate %89 by %c255_i32_68 dim 1 : vector<32x256xf32>, i32 -> vector<32x256xf32>
      %c254_i32_69 = arith.constant 254 : i32
      %91 = tpu.dynamic_rotate %89 by %c254_i32_69 dim 1 : vector<32x256xf32>, i32 -> vector<32x256xf32>
      %c244_i32_70 = arith.constant 244 : i32
      %92 = tpu.dynamic_rotate %89 by %c244_i32_70 dim 1 : vector<32x256xf32>, i32 -> vector<32x256xf32>
      %c243_i32_71 = arith.constant 243 : i32
      %93 = tpu.dynamic_rotate %89 by %c243_i32_71 dim 1 : vector<32x256xf32>, i32 -> vector<32x256xf32>
      %c242_i32_72 = arith.constant 242 : i32
      %94 = tpu.dynamic_rotate %89 by %c242_i32_72 dim 1 : vector<32x256xf32>, i32 -> vector<32x256xf32>
      %c232_i32_73 = arith.constant 232 : i32
      %95 = tpu.dynamic_rotate %89 by %c232_i32_73 dim 1 : vector<32x256xf32>, i32 -> vector<32x256xf32>
      %c231_i32_74 = arith.constant 231 : i32
      %96 = tpu.dynamic_rotate %89 by %c231_i32_74 dim 1 : vector<32x256xf32>, i32 -> vector<32x256xf32>
      %c230_i32_75 = arith.constant 230 : i32
      %97 = tpu.dynamic_rotate %89 by %c230_i32_75 dim 1 : vector<32x256xf32>, i32 -> vector<32x256xf32>
      %98 = tpu.concatenate %65, %66, %67, %68, %69, %70, %71, %72, %73, %77, %78, %79, %80, %81, %82, %83 in 0 : vector<32x256xf32>, vector<32x256xf32>, vector<32x256xf32>, vector<32x256xf32>, vector<32x256xf32>, vector<32x256xf32>, vector<32x256xf32>, vector<32x256xf32>, vector<32x256xf32>, vector<32x256xf32>, vector<32x256xf32>, vector<32x256xf32>, vector<32x256xf32>, vector<32x256xf32>, vector<32x256xf32>, vector<32x256xf32> -> vector<512x256xf32>
      %99 = tpu.concatenate %84, %85, %89, %90, %91, %92, %93, %94, %95, %96, %97 in 0 : vector<32x256xf32>, vector<32x256xf32>, vector<32x256xf32>, vector<32x256xf32>, vector<32x256xf32>, vector<32x256xf32>, vector<32x256xf32>, vector<32x256xf32>, vector<32x256xf32>, vector<32x256xf32>, vector<32x256xf32> -> vector<352x256xf32>
      %100 = tpu.concatenate %98, %99 in 0 : vector<512x256xf32>, vector<352x256xf32> -> vector<864x256xf32>
      %c0_76 = arith.constant 0 : index
      %c0_77 = arith.constant 0 : index
      %101 = vector.load %arg5[%c0_76, %c0_77] : memref<64x864xf32, #tpu.memory_space<vmem>>, vector<64x864xf32>
      %cst_78 = arith.constant dense<0.000000e+00> : vector<64x256xf32>
      %102 = tpu.matmul %101, %100, %cst_78 {dimension_numbers = #tpu.dot_dimension_numbers<[1], [0], [0], [1], [0, 0, 1, 1], [], []>} : vector<64x864xf32>, vector<864x256xf32>, vector<64x256xf32> -> vector<64x256xf32>
      %c0_79 = arith.constant 0 : index
      %c0_80 = arith.constant 0 : index
      %103 = vector.load %arg6[%c0_79, %c0_80] : memref<64x1xf32, #tpu.memory_space<vmem>>, vector<64x1xf32>
      %104 = vector.broadcast %103 : vector<64x1xf32> to vector<64x256xf32>
      %105 = arith.addf %102, %104 : vector<64x256xf32>
      %cst_81 = arith.constant 0.000000e+00 : f32
      %106 = vector.broadcast %cst_81 : f32 to vector<64x256xf32>
      %107 = arith.maximumf %105, %106 : vector<64x256xf32>
      %c255_i32_82 = arith.constant 255 : i32
      %108 = tpu.dynamic_rotate %107 by %c255_i32_82 dim 1 : vector<64x256xf32>, i32 -> vector<64x256xf32>
      %109 = arith.maximumf %107, %108 : vector<64x256xf32>
      %c244_i32_83 = arith.constant 244 : i32
      %110 = tpu.dynamic_rotate %109 by %c244_i32_83 dim 1 : vector<64x256xf32>, i32 -> vector<64x256xf32>
      %111 = arith.maximumf %109, %110 : vector<64x256xf32>
      %112 = arith.maximumf %59, %111 : vector<64x256xf32>
      %113 = arith.index_cast %arg11 : i32 to index
      %c0_84 = arith.constant 0 : index
      %c0_85 = arith.constant 0 : index
      %c0_86 = arith.constant 0 : index
      %114 = vector.load %arg7[%113, %c0_84, %c0_85, %c0_86] : memref<5x10x64x256xf32, #tpu.memory_space<vmem>>, vector<1x10x64x256xf32>
      %115 = vector.shape_cast %114 : vector<1x10x64x256xf32> to vector<10x64x256xf32>
      %116 = vector.extract_strided_slice %115 {offsets = [0, 0, 0], sizes = [1, 64, 256], strides = [1, 1, 1]} : vector<10x64x256xf32> to vector<1x64x256xf32>
      %117 = vector.shape_cast %116 : vector<1x64x256xf32> to vector<64x256xf32>
      %118 = arith.mulf %117, %112 : vector<64x256xf32>
      %cst_87 = arith.constant dense<0.000000e+00> : vector<64xf32>
      %119 = vector.multi_reduction <add>, %118, %cst_87 [1] : vector<64x256xf32> to vector<64xf32>
      %120 = vector.shape_cast %119 : vector<64xf32> to vector<64x1xf32>
      %cst_88 = arith.constant dense<0.000000e+00> : vector<1xf32>
      %121 = vector.multi_reduction <add>, %120, %cst_88 [0] : vector<64x1xf32> to vector<1xf32>
      %122 = vector.shape_cast %121 : vector<1xf32> to vector<1x1xf32>
      %123 = vector.extract_strided_slice %115 {offsets = [1, 0, 0], sizes = [1, 64, 256], strides = [1, 1, 1]} : vector<10x64x256xf32> to vector<1x64x256xf32>
      %124 = vector.shape_cast %123 : vector<1x64x256xf32> to vector<64x256xf32>
      %125 = arith.mulf %124, %112 : vector<64x256xf32>
      %cst_89 = arith.constant dense<0.000000e+00> : vector<64xf32>
      %126 = vector.multi_reduction <add>, %125, %cst_89 [1] : vector<64x256xf32> to vector<64xf32>
      %127 = vector.shape_cast %126 : vector<64xf32> to vector<64x1xf32>
      %cst_90 = arith.constant dense<0.000000e+00> : vector<1xf32>
      %128 = vector.multi_reduction <add>, %127, %cst_90 [0] : vector<64x1xf32> to vector<1xf32>
      %129 = vector.shape_cast %128 : vector<1xf32> to vector<1x1xf32>
      %130 = vector.extract_strided_slice %115 {offsets = [2, 0, 0], sizes = [1, 64, 256], strides = [1, 1, 1]} : vector<10x64x256xf32> to vector<1x64x256xf32>
      %131 = vector.shape_cast %130 : vector<1x64x256xf32> to vector<64x256xf32>
      %132 = arith.mulf %131, %112 : vector<64x256xf32>
      %cst_91 = arith.constant dense<0.000000e+00> : vector<64xf32>
      %133 = vector.multi_reduction <add>, %132, %cst_91 [1] : vector<64x256xf32> to vector<64xf32>
      %134 = vector.shape_cast %133 : vector<64xf32> to vector<64x1xf32>
      %cst_92 = arith.constant dense<0.000000e+00> : vector<1xf32>
      %135 = vector.multi_reduction <add>, %134, %cst_92 [0] : vector<64x1xf32> to vector<1xf32>
      %136 = vector.shape_cast %135 : vector<1xf32> to vector<1x1xf32>
      %137 = vector.extract_strided_slice %115 {offsets = [3, 0, 0], sizes = [1, 64, 256], strides = [1, 1, 1]} : vector<10x64x256xf32> to vector<1x64x256xf32>
      %138 = vector.shape_cast %137 : vector<1x64x256xf32> to vector<64x256xf32>
      %139 = arith.mulf %138, %112 : vector<64x256xf32>
      %cst_93 = arith.constant dense<0.000000e+00> : vector<64xf32>
      %140 = vector.multi_reduction <add>, %139, %cst_93 [1] : vector<64x256xf32> to vector<64xf32>
      %141 = vector.shape_cast %140 : vector<64xf32> to vector<64x1xf32>
      %cst_94 = arith.constant dense<0.000000e+00> : vector<1xf32>
      %142 = vector.multi_reduction <add>, %141, %cst_94 [0] : vector<64x1xf32> to vector<1xf32>
      %143 = vector.shape_cast %142 : vector<1xf32> to vector<1x1xf32>
      %144 = vector.extract_strided_slice %115 {offsets = [4, 0, 0], sizes = [1, 64, 256], strides = [1, 1, 1]} : vector<10x64x256xf32> to vector<1x64x256xf32>
      %145 = vector.shape_cast %144 : vector<1x64x256xf32> to vector<64x256xf32>
      %146 = arith.mulf %145, %112 : vector<64x256xf32>
      %cst_95 = arith.constant dense<0.000000e+00> : vector<64xf32>
      %147 = vector.multi_reduction <add>, %146, %cst_95 [1] : vector<64x256xf32> to vector<64xf32>
      %148 = vector.shape_cast %147 : vector<64xf32> to vector<64x1xf32>
      %cst_96 = arith.constant dense<0.000000e+00> : vector<1xf32>
      %149 = vector.multi_reduction <add>, %148, %cst_96 [0] : vector<64x1xf32> to vector<1xf32>
      %150 = vector.shape_cast %149 : vector<1xf32> to vector<1x1xf32>
      %151 = vector.extract_strided_slice %115 {offsets = [5, 0, 0], sizes = [1, 64, 256], strides = [1, 1, 1]} : vector<10x64x256xf32> to vector<1x64x256xf32>
      %152 = vector.shape_cast %151 : vector<1x64x256xf32> to vector<64x256xf32>
      %153 = arith.mulf %152, %112 : vector<64x256xf32>
      %cst_97 = arith.constant dense<0.000000e+00> : vector<64xf32>
      %154 = vector.multi_reduction <add>, %153, %cst_97 [1] : vector<64x256xf32> to vector<64xf32>
      %155 = vector.shape_cast %154 : vector<64xf32> to vector<64x1xf32>
      %cst_98 = arith.constant dense<0.000000e+00> : vector<1xf32>
      %156 = vector.multi_reduction <add>, %155, %cst_98 [0] : vector<64x1xf32> to vector<1xf32>
      %157 = vector.shape_cast %156 : vector<1xf32> to vector<1x1xf32>
      %158 = vector.extract_strided_slice %115 {offsets = [6, 0, 0], sizes = [1, 64, 256], strides = [1, 1, 1]} : vector<10x64x256xf32> to vector<1x64x256xf32>
      %159 = vector.shape_cast %158 : vector<1x64x256xf32> to vector<64x256xf32>
      %160 = arith.mulf %159, %112 : vector<64x256xf32>
      %cst_99 = arith.constant dense<0.000000e+00> : vector<64xf32>
      %161 = vector.multi_reduction <add>, %160, %cst_99 [1] : vector<64x256xf32> to vector<64xf32>
      %162 = vector.shape_cast %161 : vector<64xf32> to vector<64x1xf32>
      %cst_100 = arith.constant dense<0.000000e+00> : vector<1xf32>
      %163 = vector.multi_reduction <add>, %162, %cst_100 [0] : vector<64x1xf32> to vector<1xf32>
      %164 = vector.shape_cast %163 : vector<1xf32> to vector<1x1xf32>
      %165 = vector.extract_strided_slice %115 {offsets = [7, 0, 0], sizes = [1, 64, 256], strides = [1, 1, 1]} : vector<10x64x256xf32> to vector<1x64x256xf32>
      %166 = vector.shape_cast %165 : vector<1x64x256xf32> to vector<64x256xf32>
      %167 = arith.mulf %166, %112 : vector<64x256xf32>
      %cst_101 = arith.constant dense<0.000000e+00> : vector<64xf32>
      %168 = vector.multi_reduction <add>, %167, %cst_101 [1] : vector<64x256xf32> to vector<64xf32>
      %169 = vector.shape_cast %168 : vector<64xf32> to vector<64x1xf32>
      %cst_102 = arith.constant dense<0.000000e+00> : vector<1xf32>
      %170 = vector.multi_reduction <add>, %169, %cst_102 [0] : vector<64x1xf32> to vector<1xf32>
      %171 = vector.shape_cast %170 : vector<1xf32> to vector<1x1xf32>
      %172 = vector.extract_strided_slice %115 {offsets = [8, 0, 0], sizes = [1, 64, 256], strides = [1, 1, 1]} : vector<10x64x256xf32> to vector<1x64x256xf32>
      %173 = vector.shape_cast %172 : vector<1x64x256xf32> to vector<64x256xf32>
      %174 = arith.mulf %173, %112 : vector<64x256xf32>
      %cst_103 = arith.constant dense<0.000000e+00> : vector<64xf32>
      %175 = vector.multi_reduction <add>, %174, %cst_103 [1] : vector<64x256xf32> to vector<64xf32>
      %176 = vector.shape_cast %175 : vector<64xf32> to vector<64x1xf32>
      %cst_104 = arith.constant dense<0.000000e+00> : vector<1xf32>
      %177 = vector.multi_reduction <add>, %176, %cst_104 [0] : vector<64x1xf32> to vector<1xf32>
      %178 = vector.shape_cast %177 : vector<1xf32> to vector<1x1xf32>
      %179 = vector.extract_strided_slice %115 {offsets = [9, 0, 0], sizes = [1, 64, 256], strides = [1, 1, 1]} : vector<10x64x256xf32> to vector<1x64x256xf32>
      %180 = vector.shape_cast %179 : vector<1x64x256xf32> to vector<64x256xf32>
      %181 = arith.mulf %180, %112 : vector<64x256xf32>
      %cst_105 = arith.constant dense<0.000000e+00> : vector<64xf32>
      %182 = vector.multi_reduction <add>, %181, %cst_105 [1] : vector<64x256xf32> to vector<64xf32>
      %183 = vector.shape_cast %182 : vector<64xf32> to vector<64x1xf32>
      %cst_106 = arith.constant dense<0.000000e+00> : vector<1xf32>
      %184 = vector.multi_reduction <add>, %183, %cst_106 [0] : vector<64x1xf32> to vector<1xf32>
      %185 = vector.shape_cast %184 : vector<1xf32> to vector<1x1xf32>
      %186 = tpu.concatenate %122, %129, %136, %143, %150, %157, %164, %171, %178, %185 in 1 : vector<1x1xf32>, vector<1x1xf32>, vector<1x1xf32>, vector<1x1xf32>, vector<1x1xf32>, vector<1x1xf32>, vector<1x1xf32>, vector<1x1xf32>, vector<1x1xf32>, vector<1x1xf32> -> vector<1x10xf32>
      %187 = arith.addf %arg12, %186 : vector<1x10xf32>
      scf.yield %187 : vector<1x10xf32>
    }
    %c5_i32_3 = arith.constant 5 : i32
    %c0 = arith.constant 0 : index
    %c0_4 = arith.constant 0 : index
    %4 = vector.load %arg8[%c0, %c0_4] : memref<1x10xf32, #tpu.memory_space<vmem>>, vector<1x10xf32>
    %5 = arith.addf %3, %4 : vector<1x10xf32>
    %c0_5 = arith.constant 0 : index
    %c0_6 = arith.constant 0 : index
    %c0_7 = arith.constant 0 : index
    %6 = vector.load %arg9[%c0_5, %c0_6, %c0_7] : memref<1x1x10xf32, #tpu.memory_space<vmem>>, vector<1x1x10xf32>
    %7 = vector.shape_cast %6 : vector<1x1x10xf32> to vector<1x10xf32>
    %8 = vector.shape_cast %5 : vector<1x10xf32> to vector<1x1x10xf32>
    tpu.vector_store %arg9[%c0_5, %c0_6, %c0_7], %8 {strides = array<i32>} : memref<1x1x10xf32, #tpu.memory_space<vmem>>, vector<1x1x10xf32>,
    return
  }
  func.func @transform_0(%arg0: i32) -> (i32, i32, i32, i32) {
    %c0_i32 = arith.constant 0 : i32
    %c0_i32_0 = arith.constant 0 : i32
    %c0_i32_1 = arith.constant 0 : i32
    %c0_i32_2 = arith.constant 0 : i32
    return %arg0, %c0_i32, %c0_i32_0, %c0_i32_1 : i32, i32, i32, i32
  }
  func.func @transform_1(%arg0: i32) -> (i32, i32) {
    %c0_i32 = arith.constant 0 : i32
    %c0_i32_0 = arith.constant 0 : i32
    %c0_i32_1 = arith.constant 0 : i32
    return %c0_i32, %c0_i32_0 : i32, i32
  }
  func.func @transform_2(%arg0: i32) -> (i32, i32) {
    %c0_i32 = arith.constant 0 : i32
    %c0_i32_0 = arith.constant 0 : i32
    %c0_i32_1 = arith.constant 0 : i32
    return %c0_i32, %c0_i32_0 : i32, i32
  }
  func.func @transform_3(%arg0: i32) -> (i32, i32) {
    %c0_i32 = arith.constant 0 : i32
    %c0_i32_0 = arith.constant 0 : i32
    %c0_i32_1 = arith.constant 0 : i32
    return %c0_i32, %c0_i32_0 : i32, i32
  }
  func.func @transform_4(%arg0: i32) -> (i32, i32) {
    %c0_i32 = arith.constant 0 : i32
    %c0_i32_0 = arith.constant 0 : i32
    %c0_i32_1 = arith.constant 0 : i32
    return %c0_i32, %c0_i32_0 : i32, i32
  }
  func.func @transform_5(%arg0: i32) -> (i32, i32) {
    %c0_i32 = arith.constant 0 : i32
    %c0_i32_0 = arith.constant 0 : i32
    %c0_i32_1 = arith.constant 0 : i32
    return %c0_i32, %c0_i32_0 : i32, i32
  }
  func.func @transform_6(%arg0: i32) -> (i32, i32, i32, i32) {
    %c0_i32 = arith.constant 0 : i32
    %c0_i32_0 = arith.constant 0 : i32
    %c0_i32_1 = arith.constant 0 : i32
    %c0_i32_2 = arith.constant 0 : i32
    %c0_i32_3 = arith.constant 0 : i32
    return %c0_i32, %c0_i32_0, %c0_i32_1, %c0_i32_2 : i32, i32, i32, i32
  }
  func.func @transform_7(%arg0: i32) -> (i32, i32) {
    %c0_i32 = arith.constant 0 : i32
    %c0_i32_0 = arith.constant 0 : i32
    %c0_i32_1 = arith.constant 0 : i32
    return %c0_i32, %c0_i32_0 : i32, i32
  }
  func.func @transform_8(%arg0: i32) -> (i32, i32, i32) {
    %c0_i32 = arith.constant 0 : i32
    %c0_i32_0 = arith.constant 0 : i32
    %c0_i32_1 = arith.constant 0 : i32
    return %arg0, %c0_i32, %c0_i32_0 : i32, i32, i32
  }
}

</mosaic_0001>

<bundles_post_ra>
// kernel: forward.1
= control target key start
LH: loop header
LB: loop body
LE: loop exit
PB: predicated region body
PF: predicated region fallthrough
CT: control target
= control target key end

     0   :  { %s7060_s27 = smov 0   ;;  %s14655_s0 = inlined_call_operand.vmem [shape: f32[6,27,1,768], index: 0, kind: input, shape index: {}]   ;;  %s14656_s1 = inlined_call_operand.vmem [shape: f32[32,27], index: 1, kind: input, shape index: {}]   ;;  %s14657_s2 = inlined_call_operand.vmem [shape: f32[32,1], index: 2, kind: input, shape index: {}]   ;;  %s14658_s3 = inlined_call_operand.vmem [shape: f32[768,256], index: 3, kind: input, shape index: {}]   ;;  %s14659_s4 = inlined_call_operand.vmem [shape: f32[64,864], index: 4, kind: input, shape index: {}]   ;;  %s14660_s5 = inlined_call_operand.vmem [shape: f32[64,1], index: 5, kind: input, shape index: {}]   ;;  %s14661_s6 = inlined_call_operand.vmem [shape: f32[5,10,64,256], index: 6, kind: input, shape index: {}]   ;;  %s14662_s7 = inlined_call_operand.vmem [shape: f32[1,10], index: 7, kind: input, shape index: {}]   ;;  %s14663_s8 = inlined_call_operand.vmem [shape: f32[6,1,10], index: 8, kind: output, shape index: {}]  }
   0x1 LB: > { %s6513_s28 = sadd.s32 4294967295, %s6981_s27   ;;  %p6517_p0 = scmp.ge.s32.totalorder %s6981_s27, 1  ;;  %s6981_s27 = sphi %s7060_s27, %s18_s27  }
   0x2   : > { %p261_p1 = scmp.lt.s32.totalorder %s6981_s27, 7 }
   0x4   : > { %p262_p2 = pnand %p6517_p0, %p261_p1 }
   0x5   : > { %p292_p3 = scmp.lt.s32.totalorder (!%p262_p2), %s6513_s28, 5  ;;  %s7080_s14 = smov (!%p262_p2), 0  }
   0x6   : > { %265 = sbr.rel (%p262_p2) target bundleno = 2802 (0xaf2), region = 52 }
   0xb   : > { %s15473_s28 = smov (!%p292_p3, %s6513_s28), 5 }
   0xc   : > { %s6626_s29 = smul.u32 162, %s15473_s28  ;;  %s298_s10 = scalar_lea.vmem %s14663_s8, %s15473_s28 }
   0xe   : > { %s7078_s13 = scalar_lea.vmem %s14655_s0, %s6626_s29 }
   0xf LB: >> { %v310_v0 = vlaneseq  ;;  %s6519_s15 = smul.u32 12, %s6985_s14  ;;  %s6995_s17 = smov 72   ;;  %vm1086_vm2 = vcmask 1040384   ;;  %vm1093_vm3 = vcmask 1041408   ;;  %vm1100_vm5 = vcmask 1042432   ;;  %s6985_s14 = sphi %s7080_s14, %s304_s14  }
  0x10   : >> { %s6996_s18 = smov 73   ;;  %s6997_s19 = smov 127   ;;  %vm1107_vm7 = vcmask 1043456   ;;  %vm1114_vm11 = vcmask 1044480   ;;  %vm1121_vm13 = vcmask 1045504   ;;  %vm1128_vm14 = vcmask 1046528  }
  0x11   : >> { %v7087_v1 = vshrl.u32 %v310_v0, 7  ;;  %s7090_s16 = scalar_lea.vmem %s7078_s13, %s6519_s15  ;;  %s6998_s20 = smov 126   ;;  %v7275_v21 = vand.u32 127, %v310_v0  ;;  %vm1403_vm15 = vcmask 220160  }
  0x12   : >> { %v7096_v3 = vld [vmem:[%s7090_s16 + $0x6] sm:$0x3f]  ;;  %v7121_v9 = vld [vmem:[%s7090_s16 + $0xc] sm:$0x3f]  ;;  %v7156_v13 = vld [vmem:[%s7090_s16] sm:$0x3f] }
  0x13   : >> { %v7093_v2 = vsub.s32 1, %v7087_v1  ;;  %v7103_v5 = vsub.s32 0, %v7087_v1  ;;  %v7106_v6 = vsub.s32 2, %v7087_v1  ;;  %s6999_s21 = smov 101   ;;  %s7000_s22 = smov 100   ;;  %vm354_vm0 = vcmp.lt.s32.totalorder %v7275_v21, 127 }
  0x14   : >> { %s7001_s23 = smov 74   ;;  %s7002_s24 = smov 99   ;;  %vm487_vm1 = vcmp.lt.s32.totalorder %v7275_v21, 72  ;;  %vm373_vm4 = vcmp.lt.s32.totalorder %v7275_v21, 126  ;;  %v7335_v38 = vsub.s32 3, %v7087_v1  ;;  %v7346_v42 = vsub.s32 4, %v7087_v1 }
  0x15   : >> { %14952 = vst [vmem:[#allocation3_spill] sm:$0xff] %v7093_v2  ;;  %v7100_v4 = vrot.slane %v7096_v3, %v7093_v2  ;;  %14953 = vst [vmem:[#allocation4_spill] sm:$0xff] %v7103_v5  ;;  %v7112_v7 = vrot.slane %v7096_v3, %v7103_v5  ;;  %v7116_v8 = vrot.slane %v7096_v3, %v7106_v6  ;;  %vm392_vm6 = vcmp.lt.s32.totalorder %v7275_v21, 101 }
  0x16   : >> { %14954 = vst [vmem:[#allocation5_spill] sm:$0xff] %v7106_v6  ;;  %v7129_v10 = vrot.slane %v7121_v9, %v7093_v2  ;;  %v7135_v11 = vrot.slane %v7121_v9, %v7106_v6  ;;  %v7147_v12 = vrot.slane %v7121_v9, %v7103_v5  ;;  %v7164_v14 = vrot.slane %v7156_v13, %v7093_v2 }
  0x17   : >> { %657 = vrot.lane.b32.xlu0 %v7100_v4, %s6995_s17  ;;  %14955 = vst [vmem:[#allocation6_spill] sm:$0xff] %v7116_v8  ;;  %655 = vrot.lane.b32.xlu1 %v7112_v7, %s6995_s17  ;;  %v7170_v15 = vrot.slane %v7156_v13, %v7106_v6  ;;  %v7198_v16 = vrot.slane %v7156_v13, %v7103_v5  ;;  %14967 = vst [vmem:[#allocation18_spill] sm:$0xff] %v7335_v38  ;;  %vm468_vm8 = vcmp.lt.s32.totalorder %v7275_v21, 73 }
  0x18   : >> { %14956 = vst [vmem:[#allocation7_spill] sm:$0xff] %v7135_v11  ;;  %14957 = vst [vmem:[#allocation8_spill] sm:$0xff] %v7164_v14  ;;  %v7360_v46 = vrot.slane %v7096_v3, %v7335_v38  ;;  %v7369_v49 = vrot.slane %v7096_v3, %v7346_v42  ;;  %v7385_v53 = vrot.slane %v7121_v9, %v7335_v38  ;;  %vm411_vm9 = vcmp.lt.s32.totalorder %v7275_v21, 100 }
  0x19   : >> { %14958 = vst [vmem:[#allocation9_spill] sm:$0xff] %v7170_v15  ;;  %14959 = vst [vmem:[#allocation10_spill] sm:$0xff] %v7198_v16  ;;  %v7393_v55 = vrot.slane %v7121_v9, %v7346_v42  ;;  %vm449_vm10 = vcmp.lt.s32.totalorder %v7275_v21, 74  ;;  %vm430_vm12 = vcmp.lt.s32.totalorder %v7275_v21, 99 }
  0x1a   : >> { %14969 = vst [vmem:[#allocation20_spill] sm:$0xff] %v7346_v42  ;;  %14971 = vst [vmem:[#allocation22_spill] sm:$0xff] %v7369_v49 }
  0x1b   : >> { %659 = vrot.lane.b32.xlu0 %v7116_v8, %s6995_s17  ;;  %639 = vrot.lane.b32.xlu1 %v7100_v4, %s6996_s18  ;;  %14972 = vst [vmem:[#allocation23_spill] sm:$0xff] %v7393_v55 }
  0x1f   : >> { %641 = vrot.lane.b32.xlu0 %v7116_v8, %s6996_s18  ;;  %710 = vrot.lane.b32.xlu1 %v7129_v10, %s6997_s19 }
  0x23   : >> { %712 = vrot.lane.b32.xlu0 %v7135_v11, %s6997_s19  ;;  %531 = vrot.lane.b32.xlu1 %v7100_v4, %s6997_s19 }
  0x27   : >> { %533 = vrot.lane.b32.xlu0 %v7116_v8, %s6997_s19  ;;  %637 = vrot.lane.b32.xlu1 %v7112_v7, %s6996_s18 }
  0x2b   : >> { %708 = vrot.lane.b32.xlu0 %v7147_v12, %s6997_s19  ;;  %728 = vrot.lane.b32.xlu1 %v7129_v10, %s6998_s20 }
  0x2f   : >> { %730 = vrot.lane.b32.xlu0 %v7135_v11, %s6998_s20  ;;  %818 = vrot.lane.b32.xlu1 %v7129_v10, %s6996_s18 }
  0x33   : >> { %820 = vrot.lane.b32.xlu0 %v7135_v11, %s6996_s18  ;;  %342 = vrot.lane.b32.xlu1 %v7164_v14, %s6997_s19 }
  0x37   : >> { %344 = vrot.lane.b32.xlu0 %v7170_v15, %s6997_s19  ;;  %477 = vrot.lane.b32.xlu1 %v7164_v14, %s6995_s17 }
  0x3b   : >> { %479 = vrot.lane.b32.xlu0 %v7170_v15, %s6995_s17  ;;  %529 = vrot.lane.b32.xlu1 %v7112_v7, %s6997_s19 }
  0x3f   : >> { %549 = vrot.lane.b32.xlu0 %v7100_v4, %s6998_s20  ;;  %551 = vrot.lane.b32.xlu1 %v7116_v8, %s6998_s20 }
  0x43   : >> { %726 = vrot.lane.b32.xlu0 %v7147_v12, %s6998_s20  ;;  %746 = vrot.lane.b32.xlu1 %v7129_v10, %s6999_s21 }
  0x47   : >> { %748 = vrot.lane.b32.xlu0 %v7135_v11, %s6999_s21  ;;  %816 = vrot.lane.b32.xlu1 %v7147_v12, %s6996_s18 }
  0x4b   : >> { %836 = vrot.lane.b32.xlu0 %v7129_v10, %s6995_s17  ;;  %838 = vrot.lane.b32.xlu1 %v7135_v11, %s6995_s17 }
  0x4f   : >> { %340 = vrot.lane.b32.xlu0 %v7198_v16, %s6997_s19  ;;  %363 = vrot.lane.b32.xlu1 %v7164_v14, %s6998_s20 }
  0x53   : >> { %365 = vrot.lane.b32.xlu0 %v7170_v15, %s6998_s20  ;;  %475 = vrot.lane.b32.xlu1 %v7198_v16, %s6995_s17 }
  0x57   : >> { %547 = vrot.lane.b32.xlu0 %v7112_v7, %s6998_s20  ;;  %567 = vrot.lane.b32.xlu1 %v7100_v4, %s6999_s21 }
  0x5b   : >> { %569 = vrot.lane.b32.xlu0 %v7116_v8, %s6999_s21  ;;  %744 = vrot.lane.b32.xlu1 %v7147_v12, %s6999_s21 }
  0x5f   : >> { %764 = vrot.lane.b32.xlu0 %v7129_v10, %s7000_s22  ;;  %766 = vrot.lane.b32.xlu1 %v7135_v11, %s7000_s22 }
  0x63   : >> { %800 = vrot.lane.b32.xlu0 %v7129_v10, %s7001_s23  ;;  %802 = vrot.lane.b32.xlu1 %v7135_v11, %s7001_s23 }
  0x67   : >> { %834 = vrot.lane.b32.xlu0 %v7147_v12, %s6995_s17  ;;  %361 = vrot.lane.b32.xlu1 %v7198_v16, %s6998_s20 }
  0x6b   : >> { %382 = vrot.lane.b32.xlu0 %v7164_v14, %s6999_s21  ;;  %384 = vrot.lane.b32.xlu1 %v7170_v15, %s6999_s21 }
  0x6f   : >> { %565 = vrot.lane.b32.xlu0 %v7112_v7, %s6999_s21  ;;  %585 = vrot.lane.b32.xlu1 %v7100_v4, %s7000_s22 }
  0x73   : >> { %587 = vrot.lane.b32.xlu0 %v7116_v8, %s7000_s22  ;;  %762 = vrot.lane.b32.xlu1 %v7147_v12, %s7000_s22 }
  0x77   : >> { %782 = vrot.lane.b32.xlu0 %v7129_v10, %s7002_s24  ;;  %784 = vrot.lane.b32.xlu1 %v7135_v11, %s7002_s24 }
  0x7b   : >> { %798 = vrot.lane.b32.xlu0 %v7147_v12, %s7001_s23  ;;  %380 = vrot.lane.b32.xlu1 %v7198_v16, %s6999_s21 }
  0x7f   : >> { %401 = vrot.lane.b32.xlu0 %v7164_v14, %s7000_s22  ;;  %403 = vrot.lane.b32.xlu1 %v7170_v15, %s7000_s22 }
  0x83   : >> { %583 = vrot.lane.b32.xlu0 %v7112_v7, %s7000_s22  ;;  %603 = vrot.lane.b32.xlu1 %v7100_v4, %s7002_s24 }
  0x87   : >> { %605 = vrot.lane.b32.xlu0 %v7116_v8, %s7002_s24  ;;  %780 = vrot.lane.b32.xlu1 %v7147_v12, %s7002_s24 }
  0x89   : >> { %v658_v17 = vpop.permute.xlu0 %657  ;;  %v7262_v18 = vpop.permute.xlu1 %655 }
  0x8a   : >> { %14960 = vst [vmem:[#allocation11_spill] sm:$0xff] %v7262_v18  ;;  %v7319_v33 = vsel %vm487_vm1, %v7262_v18, %v658_v17 }
  0x8b   : >> { %399 = vrot.lane.b32.xlu0 %v7198_v16, %s7000_s22  ;;  %420 = vrot.lane.b32.xlu1 %v7164_v14, %s7002_s24  ;;  %v2306_v39 = vsel %vm1086_vm2, %v7319_v33, %v7147_v12 }
  0x8d   : >> { %v7268_v19 = vpop.permute.xlu0 %659  ;;  %v7270_v20 = vpop.permute.xlu1 %639 }
  0x8e   : >> { %14961 = vst [vmem:[#allocation12_spill] sm:$0xff] %v7268_v19  ;;  %v7288_v24 = vsel %vm487_vm1, %v658_v17, %v7268_v19 }
  0x8f   : >> { %422 = vrot.lane.b32.xlu0 %v7170_v15, %s7002_s24  ;;  %601 = vrot.lane.b32.xlu1 %v7112_v7, %s7002_s24  ;;  %v2307_v29 = vsel %vm1086_vm2, %v7288_v24, %v7129_v10 }
  0x91   : >> { %v7279_v22 = vpop.permute.xlu0 %641  ;;  %v711_v23 = vpop.permute.xlu1 %710 }
  0x92   : >> { %14962 = vst [vmem:[#allocation13_spill] sm:$0xff] %v7279_v22 }
  0x93   : >> { %621 = vrot.lane.b32.xlu0 %v7100_v4, %s7001_s23  ;;  %623 = vrot.lane.b32.xlu1 %v7116_v8, %s7001_s23 }
  0x95   : >> { %v7292_v25 = vpop.permute.xlu0 %712  ;;  %v7300_v28 = vpop.permute.xlu1 %531 }
  0x96   : >> { %14963 = vst [vmem:[#allocation14_spill] sm:$0xff] %v7292_v25  ;;  %v7297_v26 = vsel %vm354_vm0, %v711_v23, %v7292_v25 }
  0x97   : >> { %v2187_v27 = vrot.slane %v7297_v26, 6  ;;  %418 = vrot.lane.b32.xlu0 %v7198_v16, %s7002_s24  ;;  %439 = vrot.lane.b32.xlu1 %v7164_v14, %s7001_s23  ;;  %v1202_v25 = vrot.slane %v7297_v26, 5 }
  0x99   : >> { %v2313_v30 = vsel %vm1093_vm3, %v2307_v29, %v2187_v27  ;;  %v7310_v31 = vpop.permute.xlu0 %533  ;;  %v7312_v32 = vpop.permute.xlu1 %637 }
  0x9a   : >> { %14964 = vst [vmem:[#allocation15_spill] sm:$0xff] %v7310_v31  ;;  %14965 = vst [vmem:[#allocation16_spill] sm:$0xff] %v7312_v32  ;;  %v7399_v56 = vsel %vm354_vm0, %v7300_v28, %v7310_v31 }
  0x9b   : >> { %441 = vrot.lane.b32.xlu0 %v7170_v15, %s7001_s23  ;;  %619 = vrot.lane.b32.xlu1 %v7112_v7, %s7001_s23  ;;  %v2097_v59 = vrot.slane %v7399_v56, 7 }
  0x9d   : >> { %v7323_v34 = vpop.permute.xlu0 %708  ;;  %v729_v37 = vpop.permute.xlu1 %728  ;;  %v2265_v0 = vsel %vm1086_vm2, %v7100_v4, %v2097_v59 }
  0x9e   : >> { %14966 = vst [vmem:[#allocation17_spill] sm:$0xff] %v7323_v34  ;;  %v7328_v35 = vsel %vm354_vm0, %v7323_v34, %v711_v23 }
  0x9f   : >> { %v2186_v36 = vrot.slane %v7328_v35, 6  ;;  %437 = vrot.lane.b32.xlu0 %v7198_v16, %s7001_s23  ;;  %458 = vrot.lane.b32.xlu1 %v7164_v14, %s6996_s18 }
  0xa1   : >> { %v2312_v40 = vsel %vm1093_vm3, %v2306_v39, %v2186_v36  ;;  %v7343_v41 = vpop.permute.xlu0 %730  ;;  %v7354_v45 = vpop.permute.xlu1 %818 }
  0xa2   : >> { %14968 = vst [vmem:[#allocation19_spill] sm:$0xff] %v7343_v41  ;;  %v7351_v43 = vsel %vm373_vm4, %v729_v37, %v7343_v41 }
  0xa3   : >> { %v2199_v44 = vrot.slane %v7351_v43, 5  ;;  %460 = vrot.lane.b32.xlu0 %v7170_v15, %s6996_s18  ;;  %456 = vrot.lane.b32.xlu1 %v7198_v16, %s6996_s18 }
  0xa5   : >> { %v2319_v47 = vsel %vm1100_vm5, %v2313_v30, %v2199_v44  ;;  %v7365_v48 = vpop.permute.xlu0 %820  ;;  %v7371_v50 = vpop.permute.xlu1 %342 }
  0xa6   : >> { %14970 = vst [vmem:[#allocation21_spill] sm:$0xff] %v7365_v48 }
  0xa7   : >> { %661 = vrot.lane.b32.xlu0 %v7360_v46, %s6995_s17  ;;  %663 = vrot.lane.b32.xlu1 %v7369_v49, %s6995_s17 }
  0xa9   : >> { %v7377_v51 = vpop.permute.xlu0 %344  ;;  %v7379_v52 = vpop.permute.xlu1 %477 }
  0xab   : >> { %643 = vrot.lane.b32.xlu0 %v7360_v46, %s6996_s18  ;;  %645 = vrot.lane.b32.xlu1 %v7369_v49, %s6996_s18 }
  0xad   : >> { %v7389_v54 = vpop.permute.xlu0 %479  ;;  %v7401_v57 = vpop.permute.xlu1 %529 }
  0xae   : >> { %14973 = vst [vmem:[#allocation24_spill] sm:$0xff] %v7401_v57 }
  0xaf   : >> { %714 = vrot.lane.b32.xlu0 %v7385_v53, %s6997_s19  ;;  %716 = vrot.lane.b32.xlu1 %v7393_v55, %s6997_s19 }
  0xb1   : >> { %v550_v58 = vpop.permute.xlu0 %549  ;;  %v7408_v60 = vpop.permute.xlu1 %551 }
  0xb2   : >> { %14974 = vst [vmem:[#allocation25_spill] sm:$0xff] %v7408_v60  ;;  %v7415_v61 = vsel %vm373_vm4, %v550_v58, %v7408_v60 }
  0xb3   : >> { %535 = vrot.lane.b32.xlu0 %v7360_v46, %s6997_s19  ;;  %v2109_v62 = vrot.slane %v7415_v61, 6  ;;  %537 = vrot.lane.b32.xlu1 %v7369_v49, %s6997_s19 }
  0xb5   : >> { %v7420_v63 = vpop.permute.xlu0 %726  ;;  %v2271_v23 = vsel %vm1093_vm3, %v2265_v0, %v2109_v62  ;;  %v747_v29 = vpop.permute.xlu1 %746  ;;  %v7459_v62 = vrot.slane %v7156_v13, %v7346_v42 }
  0xb6   : >> { %14975 = vst [vmem:[#allocation26_spill] sm:$0xff] %v7420_v63  ;;  %v7427_v17 = vsel %vm373_vm4, %v7420_v63, %v729_v37 }
  0xb7   : >> { %v2198_v27 = vrot.slane %v7427_v17, 5  ;;  %732 = vrot.lane.b32.xlu0 %v7385_v53, %s6998_s20  ;;  %734 = vrot.lane.b32.xlu1 %v7393_v55, %s6998_s20  ;;  %14978 = vst [vmem:[#allocation29_spill] sm:$0xff] %v7459_v62 }
  0xb9   : >> { %v2318_v30 = vsel %vm1100_vm5, %v2312_v40, %v2198_v27  ;;  %v7437_v36 = vpop.permute.xlu0 %748  ;;  %v7445_v44 = vpop.permute.xlu1 %816  ;;  %v7451_v40 = vrot.slane %v7156_v13, %v7335_v38 }
  0xba   : >> { %14976 = vst [vmem:[#allocation27_spill] sm:$0xff] %v7437_v36  ;;  %v7442_v37 = vsel %vm392_vm6, %v747_v29, %v7437_v36  ;;  %14977 = vst [vmem:[#allocation28_spill] sm:$0xff] %v7445_v44 }
  0xbb   : >> { %v2211_v39 = vrot.slane %v7442_v37, 4  ;;  %822 = vrot.lane.b32.xlu0 %v7385_v53, %s6996_s18  ;;  %824 = vrot.lane.b32.xlu1 %v7393_v55, %s6996_s18 }
  0xbd   : >> { %v7455_v59 = vpop.permute.xlu0 %836  ;;  %v2325_v0 = vsel %vm1107_vm7, %v2319_v47, %v2211_v39  ;;  %v7462_v27 = vpop.permute.xlu1 %838  ;;  %v831_v47 = vsel %vm468_vm8, %v7354_v45, %v7365_v48 }
  0xbe   : >> { %14979 = vst [vmem:[#allocation30_spill] sm:$0xff] %v7462_v27  ;;  %v849_v63 = vsel %vm487_vm1, %v7455_v59, %v7462_v27  ;;  %v7490_v27 = vsel %vm354_vm0, %v7401_v57, %v7300_v28 }
  0xbf   : >> { %346 = vrot.lane.b32.xlu0 %v7451_v40, %s6997_s19  ;;  %v2349_v34 = vrot.slane %v849_v63, 7  ;;  %348 = vrot.lane.b32.xlu1 %v7459_v62, %s6997_s19  ;;  %v1310_v31 = vrot.slane %v849_v63, 6 }
  0xc1   : >> { %v7473_v18 = vpop.permute.xlu0 %340  ;;  %v7480_v39 = vsel %vm1086_vm2, %v831_v47, %v2349_v34  ;;  %v7482_v15 = vpop.permute.xlu1 %363  ;;  %v2096_v34 = vrot.slane %v7490_v27, 7 }
  0xc2   : >> { %14980 = vst [vmem:[#allocation31_spill] sm:$0xff] %v7473_v18  ;;  %14981 = vst [vmem:[#allocation32_spill] sm:$0xff] %v7480_v39 }
  0xc3   : >> { %481 = vrot.lane.b32.xlu0 %v7451_v40, %s6995_s17  ;;  %483 = vrot.lane.b32.xlu1 %v7459_v62, %s6995_s17  ;;  %v2264_v8 = vsel %vm1086_vm2, %v7112_v7, %v2096_v34 }
  0xc5   : >> { %v7494_v36 = vpop.permute.xlu0 %365  ;;  %v7496_v48 = vpop.permute.xlu1 %475 }
  0xc6   : >> { %14982 = vst [vmem:[#allocation33_spill] sm:$0xff] %v7496_v48 }
  0xc7   : >> { %553 = vrot.lane.b32.xlu0 %v7360_v46, %s6998_s20  ;;  %555 = vrot.lane.b32.xlu1 %v7369_v49, %s6998_s20 }
  0xc9   : >> { %v7503_v39 = vpop.permute.xlu0 %547  ;;  %v568_v57 = vpop.permute.xlu1 %567 }
  0xca   : >> { %14983 = vst [vmem:[#allocation34_spill] sm:$0xff] %v7503_v39  ;;  %v7508_v28 = vsel %vm373_vm4, %v7503_v39, %v550_v58 }
  0xcb   : >> { %v2108_v5 = vrot.slane %v7508_v28, 6  ;;  %750 = vrot.lane.b32.xlu0 %v7385_v53, %s6999_s21  ;;  %752 = vrot.lane.b32.xlu1 %v7393_v55, %s6999_s21 }
  0xcd   : >> { %v2270_v60 = vsel %vm1093_vm3, %v2264_v8, %v2108_v5  ;;  %v7518_v42 = vpop.permute.xlu0 %569  ;;  %v7525_v39 = vpop.permute.xlu1 %744 }
  0xce   : >> { %14984 = vst [vmem:[#allocation35_spill] sm:$0xff] %v7518_v42  ;;  %v7523_v58 = vsel %vm392_vm6, %v568_v57, %v7518_v42  ;;  %14985 = vst [vmem:[#allocation36_spill] sm:$0xff] %v7525_v39  ;;  %v7533_v5 = vsel %vm392_vm6, %v7525_v39, %v747_v29 }
  0xcf   : >> { %v2121_v38 = vrot.slane %v7523_v58, 5  ;;  %840 = vrot.lane.b32.xlu0 %v7385_v53, %s6995_s17  ;;  %v2210_v8 = vrot.slane %v7533_v5, 4  ;;  %842 = vrot.lane.b32.xlu1 %v7393_v55, %s6995_s17 }
  0xd1   : >> { %v2277_v34 = vsel %vm1100_vm5, %v2271_v23, %v2121_v38  ;;  %v765_v42 = vpop.permute.xlu0 %764  ;;  %v2324_v2 = vsel %vm1107_vm7, %v2318_v30, %v2210_v8  ;;  %v7541_v6 = vpop.permute.xlu1 %766  ;;  %v14686_v30 = vmov 0.0   ;;  %v1292_v8 = vrot.slane %v831_v47, 7 }
  0xd2   : >> { %14986 = vst [vmem:[#allocation37_spill] sm:$0xff] %v7541_v6  ;;  %v7548_v29 = vsel %vm411_vm9, %v765_v42, %v7541_v6  ;;  %1498 = vmatprep.mubr.f32.mxu1 %v14686_v30  ;;  %2711 = vmatprep.mubr.f32.mxu0 %v14686_v30 }
  0xd3   : >> { %367 = vrot.lane.b32.xlu0 %v7451_v40, %s6998_s20  ;;  %v2223_v38 = vrot.slane %v7548_v29, 3  ;;  %369 = vrot.lane.b32.xlu1 %v7459_v62, %s6998_s20 }
  0xd5   : >> { %v7554_v23 = vpop.permute.xlu0 %800  ;;  %v7558_v39 = vpop.permute.xlu1 %802  ;;  %v7563_v6 = vsel %vm1114_vm11, %v2325_v0, %v2223_v38 }
  0xd6   : >> { %14987 = vst [vmem:[#allocation38_spill] sm:$0xff] %v7558_v39  ;;  %v7569_v41 = vsel %vm449_vm10, %v7554_v23, %v7558_v39  ;;  %v1184_v39 = vrot.slane %v7288_v24, 7 }
  0xd7   : >> { %571 = vrot.lane.b32.xlu0 %v7360_v46, %s6999_s21  ;;  %573 = vrot.lane.b32.xlu1 %v7369_v49, %s6999_s21  ;;  %v1364_v47 = vsel %vm1086_vm2, %v7569_v41, %v1292_v8  ;;  %v832_v8 = vsel %vm468_vm8, %v7445_v44, %v7354_v45 }
  0xd8   : >> { %v1370_v11 = vsel %vm1093_vm3, %v1364_v47, %v1310_v31 }
  0xd9   : >> { %v7575_v30 = vpop.permute.xlu0 %834  ;;  %v7582_v0 = vpop.permute.xlu1 %361  ;;  %6526 = vmatprep.subr.msk.mxu1 %vm1100_vm5, %v1370_v11 }
  0xda   : >> { %14988 = vst [vmem:[#allocation39_spill] sm:$0xff] %v7575_v30  ;;  %v850_v63 = vsel %vm487_vm1, %v7575_v30, %v7455_v59  ;;  %14989 = vst [vmem:[#allocation40_spill] sm:$0xff] %v7582_v0 }
  0xdb   : >> { %v2348_v38 = vrot.slane %v850_v63, 7  ;;  %768 = vrot.lane.b32.xlu0 %v7385_v53, %s7000_s22  ;;  %770 = vrot.lane.b32.xlu1 %v7393_v55, %s7000_s22 }
  0xdd   : >> { %v7592_v31 = vsel %vm1086_vm2, %v832_v8, %v2348_v38  ;;  %v7596_v59 = vpop.permute.xlu0 %382  ;;  %v7598_v47 = vpop.permute.xlu1 %384 }
  0xde   : >> { %14990 = vst [vmem:[#allocation41_spill] sm:$0xff] %v7592_v31  ;;  %14991 = vst [vmem:[#allocation42_spill] sm:$0xff] %v7596_v59  ;;  %v1220_v59 = vrot.slane %v7351_v43, 4 }
  0xdf   : >> { %14992 = vst [vmem:[#allocation43_spill] sm:$0xff] %v7598_v47  ;;  %804 = vrot.lane.b32.xlu0 %v7385_v53, %s7001_s23  ;;  %806 = vrot.lane.b32.xlu1 %v7393_v55, %s7001_s23  ;;  %v1238_v47 = vrot.slane %v7442_v37, 3 }
  0xe1   : >> { %v7604_v11 = vpop.permute.xlu0 %565  ;;  %v586_v38 = vpop.permute.xlu1 %585 }
  0xe2   : >> { %14993 = vst [vmem:[#allocation44_spill] sm:$0xff] %v7604_v11  ;;  %v7609_v45 = vsel %vm392_vm6, %v7604_v11, %v568_v57  ;;  %v7625_v57 = vsel %vm468_vm8, %v7270_v20, %v7279_v22 }
  0xe3   : >> { %v2120_v31 = vrot.slane %v7609_v45, 5  ;;  %386 = vrot.lane.b32.xlu0 %v7451_v40, %s6999_s21  ;;  %388 = vrot.lane.b32.xlu1 %v7459_v62, %s6999_s21 }
  0xe5   : >> { %v7615_v30 = vsel %vm1100_vm5, %v2270_v60, %v2120_v31  ;;  %v7619_v44 = vpop.permute.xlu0 %587  ;;  %v7633_v60 = vpop.permute.xlu1 %762 }
  0xe6   : >> { %14994 = vst [vmem:[#allocation45_spill] sm:$0xff] %v7619_v44  ;;  %v7630_v11 = vsel %vm411_vm9, %v586_v38, %v7619_v44  ;;  %14995 = vst [vmem:[#allocation46_spill] sm:$0xff] %v7633_v60  ;;  %v7642_v22 = vsel %vm411_vm9, %v7633_v60, %v765_v42  ;;  %v1322_v44 = vsel %vm1086_vm2, %v7625_v57, %v1184_v39  ;;  %v1256_v60 = vrot.slane %v7548_v29, 2 }
  0xe7   : >> { %v2133_v31 = vrot.slane %v7630_v11, 4  ;;  %589 = vrot.lane.b32.xlu0 %v7360_v46, %s7000_s22  ;;  %v2222_v24 = vrot.slane %v7642_v22, 3  ;;  %591 = vrot.lane.b32.xlu1 %v7369_v49, %s7000_s22  ;;  %v1328_v39 = vsel %vm1093_vm3, %v1322_v44, %v7129_v10  ;;  %v1309_v10 = vrot.slane %v850_v63, 6 }
  0xe8   : >> { %v1334_v37 = vsel %vm1100_vm5, %v1328_v39, %v1202_v25 }
  0xe9   : >> { %v783_v19 = vpop.permute.xlu0 %782  ;;  %v7651_v16 = vsel %vm1107_vm7, %v2277_v34, %v2133_v31  ;;  %v7655_v42 = vpop.permute.xlu1 %784  ;;  %v7660_v26 = vsel %vm1114_vm11, %v2324_v2, %v2222_v24  ;;  %v1291_v34 = vrot.slane %v832_v8, 7  ;;  %v2253_v24 = vrot.slane %v7569_v41, 1 }
  0xea   : >> { %14996 = vst [vmem:[#allocation47_spill] sm:$0xff] %v7655_v42  ;;  %v795_v43 = vsel %vm430_vm12, %v783_v19, %v7655_v42  ;;  %v1340_v29 = vsel %vm1107_vm7, %v1334_v37, %v1220_v59 }
  0xeb   : >> { %786 = vrot.lane.b32.xlu0 %v7385_v53, %s7002_s24  ;;  %v1274_v31 = vrot.slane %v795_v43, 1  ;;  %v2235_v14 = vrot.slane %v795_v43, 2  ;;  %788 = vrot.lane.b32.xlu1 %v7393_v55, %s7002_s24  ;;  %v1346_v8 = vsel %vm1114_vm11, %v1340_v29, %v1238_v47 }
  0xec   : >> { %v1352_v39 = vsel %vm1121_vm13, %v1346_v8, %v1256_v60 }
  0xed   : >> { %v7671_v2 = vpop.permute.xlu0 %798  ;;  %v7679_v42 = vpop.permute.xlu1 %380  ;;  %v2337_v41 = vsel %vm1121_vm13, %v7563_v6, %v2235_v14  ;;  %v1358_v43 = vsel %vm1128_vm14, %v1352_v39, %v1274_v31  ;;  %v7706_v6 = vsel %vm468_vm8, %v7312_v32, %v7270_v20  ;;  %v1183_v14 = vrot.slane %v7319_v33, 7 }
  0xee   : >> { %14997 = vst [vmem:[#allocation48_spill] sm:$0xff] %v7671_v2  ;;  %v814_v44 = vsel %vm449_vm10, %v7671_v2, %v7554_v23  ;;  %14998 = vst [vmem:[#allocation49_spill] sm:$0xff] %v7679_v42  ;;  %v7690_v23 = vsel %vm1128_vm14, %v2337_v41, %v2253_v24  ;;  %v1201_v31 = vrot.slane %v7328_v35, 5  ;;  %v1219_v33 = vrot.slane %v7427_v17, 4  ;;  %v15041_v2 = vld [vmem:[#allocation25_spill] sm:$0xff] }
  0xef   : >> { %405 = vrot.lane.b32.xlu0 %v7451_v40, %s7000_s22  ;;  %v1363_v25 = vsel %vm1086_vm2, %v814_v44, %v1291_v34  ;;  %14999 = vst [vmem:[#allocation50_spill] sm:$0xff] %v7690_v23  ;;  %407 = vrot.lane.b32.xlu1 %v7459_v62, %s7000_s22  ;;  %v1321_v34 = vsel %vm1086_vm2, %v7706_v6, %v1183_v14  ;;  %v8065_v23 = vld [vmem:[%s7090_s16 + $0x12] sm:$0x3f] }
  0xf0   : >> { %v1369_v63 = vsel %vm1093_vm3, %v1363_v25, %v1309_v10  ;;  %v1237_v10 = vrot.slane %v7533_v5, 3  ;;  %v1327_v35 = vsel %vm1093_vm3, %v1321_v34, %v7147_v12  ;;  %v1255_v25 = vrot.slane %v7642_v22, 2  ;;  %15035 = vst [vmem:[#allocation69_spill] sm:$0xff] %v8065_v23 }
  0xf1   : >> { %6527 = vmatpush1.msk.msra.mxu1 %vm1100_vm5, %v1369_v63  ;;  %v7695_v59 = vpop.permute.xlu0 %401  ;;  %v7698_v47 = vpop.permute.xlu1 %403  ;;  %v1333_v17 = vsel %vm1100_vm5, %v1327_v35, %v1201_v31  ;;  %v2252_v34 = vrot.slane %v814_v44, 1 }
  0xf2   : >> { %1460 = vmatprep.subr.mxu1 %v1358_v43  ;;  %v1339_v12 = vsel %vm1107_vm7, %v1333_v17, %v1219_v33  ;;  %v7761_v33 = vsub.s32 5, %v7087_v1 }
  0xf3   : >> { %607 = vrot.lane.b32.xlu0 %v7360_v46, %s7002_s24  ;;  %609 = vrot.lane.b32.xlu1 %v7369_v49, %s7002_s24  ;;  %v1345_v43 = vsel %vm1114_vm11, %v1339_v12, %v1237_v10 }
  0xf4   : >> { %v1351_v31 = vsel %vm1121_vm13, %v1345_v43, %v1255_v25  ;;  %15003 = vst [vmem:[#allocation54_spill] sm:$0xff] %v7761_v33  ;;  %v1003_v25 = vrot.slane %v7415_v61, 5  ;;  %v7785_v17 = vrot.slane %v7096_v3, %v7761_v33  ;;  %v1039_v61 = vrot.slane %v7630_v11, 3 }
  0xf5   : >> { %v7711_v60 = vpop.permute.xlu0 %583  ;;  %v604_v24 = vpop.permute.xlu1 %603  ;;  %v7814_v11 = vrot.slane %v7121_v9, %v7761_v33 }
  0xf6   : >> { %15000 = vst [vmem:[#allocation51_spill] sm:$0xff] %v7711_v60  ;;  %v7716_v37 = vsel %vm411_vm9, %v7711_v60, %v586_v38  ;;  %15006 = vst [vmem:[#allocation57_spill] sm:$0xff] %v7785_v17  ;;  %v15040_v60 = vld [vmem:[#allocation20_spill] sm:$0xff] }
  0xf7   : >> { %v2132_v20 = vrot.slane %v7716_v37, 4  ;;  %424 = vrot.lane.b32.xlu0 %v7451_v40, %s7002_s24  ;;  %426 = vrot.lane.b32.xlu1 %v7459_v62, %s7002_s24  ;;  %15007 = vst [vmem:[#allocation58_spill] sm:$0xff] %v7814_v11 }
  0xf9   : >> { %v2282_v29 = vsel %vm1107_vm7, %v7615_v30, %v2132_v20  ;;  %v7730_v38 = vpop.permute.xlu0 %605  ;;  %v7739_v5 = vpop.permute.xlu1 %780 }
  0xfa   : >> { %v616_v8 = vsel %vm430_vm12, %v604_v24, %v7730_v38  ;;  %15001 = vst [vmem:[#allocation52_spill] sm:$0xff] %v7739_v5  ;;  %v796_v30 = vsel %vm430_vm12, %v7739_v5, %v783_v19 }
  0xfb   : >> { %v2145_v41 = vrot.slane %v616_v8, 3  ;;  %625 = vrot.lane.b32.xlu0 %v7360_v46, %s7001_s23  ;;  %v1273_v63 = vrot.slane %v796_v30, 1  ;;  %v2234_v22 = vrot.slane %v796_v30, 2  ;;  %627 = vrot.lane.b32.xlu1 %v7369_v49, %s7001_s23  ;;  %v1021_v30 = vrot.slane %v7523_v58, 4  ;;  %v15045_v49 = vld [vmem:[#allocation27_spill] sm:$0xff] }
  0xfc   : >> { %v1057_v58 = vrot.slane %v616_v8, 2  ;;  %v2175_v8 = vrot.slane %v7625_v57, 1  ;;  %v359_v57 = vsel %vm354_vm0, %v7473_v18, %v7371_v50 }
  0xfd   : >> { %v7749_v39 = vpop.permute.xlu0 %399  ;;  %v2289_v14 = vsel %vm1114_vm11, %v7651_v16, %v2145_v41  ;;  %v7755_v20 = vpop.permute.xlu1 %420  ;;  %v1357_v19 = vsel %vm1128_vm14, %v1351_v31, %v1273_v63  ;;  %v2336_v35 = vsel %vm1121_vm13, %v7660_v26, %v2234_v22  ;;  %v491_v16 = vsel %vm487_vm1, %v7379_v52, %v7389_v54 }
  0xfe   : >> { %15002 = vst [vmem:[#allocation53_spill] sm:$0xff] %v7749_v39  ;;  %1461 = vmatpush1.msra.mxu1 %v1357_v19  ;;  %v7770_v44 = vsel %vm1128_vm14, %v2336_v35, %v2252_v34  ;;  %v1136_v1 = vsel %vm1086_vm2, %v491_v16, %v7100_v4  ;;  %v985_v41 = vrot.slane %v7399_v56, 6  ;;  %v358_v4 = vsel %vm354_vm0, %v7371_v50, %v7377_v51 }
  0xff   : >> { %443 = vrot.lane.b32.xlu0 %v7451_v40, %s7001_s23  ;;  %15004 = vst [vmem:[#allocation55_spill] sm:$0xff] %v7770_v44  ;;  %445 = vrot.lane.b32.xlu1 %v7459_v62, %s7001_s23  ;;  %v859_v31 = vrot.slane %v358_v4, 7  ;;  %v984_v35 = vrot.slane %v7490_v27, 6  ;;  %v1020_v4 = vrot.slane %v7609_v45, 4 }
 0x100   : >> { %v1142_v56 = vsel %vm1093_vm3, %v1136_v1, %v985_v41  ;;  %v1002_v41 = vrot.slane %v7508_v28, 5  ;;  %v1038_v28 = vrot.slane %v7716_v37, 3  ;;  %v858_v37 = vrot.slane %v359_v57, 7 }
 0x101   : >> { %v7774_v10 = vpop.permute.xlu0 %422  ;;  %v7779_v26 = vpop.permute.xlu1 %601  ;;  %v1148_v22 = vsel %vm1100_vm5, %v1142_v56, %v1003_v25  ;;  %v7852_v56 = vrot.slane %v7156_v13, %v7761_v33 }
 0x102   : >> { %15005 = vst [vmem:[#allocation56_spill] sm:$0xff] %v7779_v26  ;;  %v7792_v12 = vsel %vm430_vm12, %v7779_v26, %v604_v24  ;;  %v492_v24 = vsel %vm487_vm1, %v7496_v48, %v7379_v52  ;;  %v1154_v52 = vsel %vm1107_vm7, %v1148_v22, %v1021_v30  ;;  %v377_v30 = vsel %vm373_vm4, %v7482_v15, %v7494_v36  ;;  %v15011_v22 = vld [vmem:[#allocation8_spill] sm:$0xff] }
 0x103   : >> { %462 = vrot.lane.b32.xlu0 %v7451_v40, %s6996_s18  ;;  %v2144_v63 = vrot.slane %v7792_v12, 3  ;;  %464 = vrot.lane.b32.xlu1 %v7459_v62, %s6996_s18  ;;  %v1135_v25 = vsel %vm1086_vm2, %v492_v24, %v7112_v7  ;;  %v378_v7 = vsel %vm373_vm4, %v7582_v0, %v7482_v15  ;;  %15009 = vst [vmem:[#allocation60_spill] sm:$0xff] %v7852_v56 }
 0x104   : >> { %v1141_v24 = vsel %vm1093_vm3, %v1135_v25, %v984_v35  ;;  %v415_v35 = vsel %vm411_vm9, %v7695_v59, %v7698_v47 }
 0x105   : >> { %v622_v3 = vpop.permute.xlu0 %621  ;;  %v7808_v43 = vpop.permute.xlu1 %623  ;;  %v2288_v34 = vsel %vm1114_vm11, %v2282_v29, %v2144_v63  ;;  %v1160_v29 = vsel %vm1114_vm11, %v1154_v52, %v1039_v61  ;;  %v15013_v52 = vld [vmem:[#allocation42_spill] sm:$0xff] }
 0x106   : >> { %v634_v19 = vsel %vm449_vm10, %v622_v3, %v7808_v43  ;;  %v1166_v27 = vsel %vm1121_vm13, %v1160_v29, %v1057_v58  ;;  %v2174_v58 = vrot.slane %v7706_v6, 1  ;;  %v1056_v6 = vrot.slane %v7792_v12, 2 }
 0x107   : >> { %665 = vrot.lane.b32.xlu0 %v7785_v17, %s6995_s17  ;;  %v1075_v16 = vrot.slane %v634_v19, 1  ;;  %v2157_v1 = vrot.slane %v634_v19, 2  ;;  %647 = vrot.lane.b32.xlu1 %v7785_v17, %s6996_s18  ;;  %v15012_v19 = vld [vmem:[#allocation43_spill] sm:$0xff]  ;;  %v434_v12 = vsel %vm430_vm12, %v7755_v20, %v7774_v10 }
 0x108   : >> { %v396_v15 = vsel %vm392_vm6, %v15013_v52, %v15012_v19 }
 0x109   : >> { %v7825_v9 = vpop.permute.xlu0 %418  ;;  %v440_v61 = vpop.permute.xlu1 %439  ;;  %v1172_v63 = vsel %vm1128_vm14, %v1166_v27, %v1075_v16  ;;  %v2295_v50 = vsel %vm1121_vm13, %v2289_v14, %v2157_v1  ;;  %v1088_v14 = vsel %vm1086_vm2, %v15011_v22, %v859_v31  ;;  %v1147_v16 = vsel %vm1100_vm5, %v1141_v24, %v1002_v41 }
 0x10a   : >> { %15008 = vst [vmem:[#allocation59_spill] sm:$0xff] %v7825_v9  ;;  %1462 = vmatprep.subr.mxu1 %v1172_v63  ;;  %v7855_v45 = vsel %vm1128_vm14, %v2295_v50, %v2175_v8  ;;  %v877_v8 = vrot.slane %v377_v30, 6  ;;  %v876_v1 = vrot.slane %v378_v7, 6  ;;  %v397_v31 = vsel %vm392_vm6, %v7679_v42, %v15013_v52 }
 0x10b   : >> { %718 = vrot.lane.b32.xlu0 %v7814_v11, %s6997_s19  ;;  %15010 = vst [vmem:[#allocation61_spill] sm:$0xff] %v7855_v45  ;;  %539 = vrot.lane.b32.xlu1 %v7785_v17, %s6997_s19  ;;  %v1153_v57 = vsel %vm1107_vm7, %v1147_v16, %v1020_v4  ;;  %v895_v25 = vrot.slane %v396_v15, 5  ;;  %v416_v30 = vsel %vm411_vm9, %v7749_v39, %v7695_v59  ;;  %v894_v22 = vrot.slane %v397_v31, 5  ;;  %v15039_v39 = vld [vmem:[#allocation18_spill] sm:$0xff] }
 0x10c   : >> { %v1159_v27 = vsel %vm1114_vm11, %v1153_v57, %v1038_v28  ;;  %v435_v28 = vsel %vm430_vm12, %v7825_v9, %v7755_v20  ;;  %v931_v24 = vrot.slane %v434_v12, 3  ;;  %v912_v57 = vrot.slane %v416_v30, 4 }
 0x10d   : >> { %v7867_v13 = vpop.permute.xlu0 %441  ;;  %v7879_v29 = vpop.permute.xlu1 %619  ;;  %v1165_v59 = vsel %vm1121_vm13, %v1159_v27, %v1056_v6  ;;  %v15017_v6 = vld [vmem:[#allocation10_spill] sm:$0xff]  ;;  %v930_v27 = vrot.slane %v435_v28, 3  ;;  %v8099_v5 = vrot.slane %v8065_v23, %v15039_v39  ;;  %v8106_v42 = vrot.slane %v8065_v23, %v15040_v60 }
 0x10e   : >> { %15014 = vst [vmem:[#allocation8_spill] sm:$0xff] %v7879_v29  ;;  %v635_v41 = vsel %vm449_vm10, %v7879_v29, %v622_v3  ;;  %v453_v4 = vsel %vm449_vm10, %v440_v61, %v7867_v13  ;;  %v913_v3 = vrot.slane %v415_v35, 4  ;;  %v1095_v35 = vsel %vm1093_vm3, %v1088_v14, %v877_v8  ;;  %v15038_v29 = vld [vmem:[#allocation3_spill] sm:$0xff] }
 0x10f   : >> { %736 = vrot.lane.b32.xlu0 %v7814_v11, %s6998_s20  ;;  %v1074_v63 = vrot.slane %v635_v41, 1  ;;  %v2156_v50 = vrot.slane %v635_v41, 2  ;;  %826 = vrot.lane.b32.xlu1 %v7814_v11, %s6996_s18  ;;  %v949_v41 = vrot.slane %v453_v4, 2  ;;  %v1087_v12 = vsel %vm1086_vm2, %v15017_v6, %v858_v37 }
 0x110   : >> { %v8086_v9 = vrot.slane %v8065_v23, %v15038_v29 }
 0x111   : >> { %v7901_v7 = vpop.permute.xlu0 %437  ;;  %v459_v52 = vpop.permute.xlu1 %458  ;;  %v1171_v16 = vsel %vm1128_vm14, %v1165_v59, %v1074_v63  ;;  %v2294_v31 = vsel %vm1121_vm13, %v2288_v34, %v2156_v50  ;;  %v1094_v34 = vsel %vm1093_vm3, %v1087_v12, %v876_v1  ;;  %v15025_v12 = vld [vmem:[#allocation12_spill] sm:$0xff] }
 0x112   : >> { %15015 = vst [vmem:[#allocation43_spill] sm:$0xff] %v7901_v7  ;;  %v454_v15 = vsel %vm449_vm10, %v7901_v7, %v440_v61  ;;  %1463 = vmatpush1.msra.mxu1 %v1171_v16  ;;  %v7917_v20 = vsel %vm1128_vm14, %v2294_v31, %v2174_v58  ;;  %v1102_v61 = vsel %vm1100_vm5, %v1095_v35, %v895_v25  ;;  %v7950_v16 = vld [vmem:[%s14656_s1] sm:$0xff] }
 0x113   : >> { %350 = vrot.lane.b32.xlu0 %v7852_v56, %s6997_s19  ;;  %15016 = vst [vmem:[#allocation42_spill] sm:$0xff] %v7917_v20  ;;  %485 = vrot.lane.b32.xlu1 %v7852_v56, %s6995_s17  ;;  %v1109_v14 = vsel %vm1107_vm7, %v1102_v61, %v913_v3  ;;  %v948_v8 = vrot.slane %v454_v15, 2  ;;  %v1101_v30 = vsel %vm1100_vm5, %v1094_v34, %v894_v22  ;;  %15020 = vst [vmem:[#allocation63_spill] sm:$0xff] %v7950_v16  ;;  %v15026_v34 = vld [vmem:[#allocation14_spill] sm:$0xff] }
 0x114   : >> { %v1116_v50 = vsel %vm1114_vm11, %v1109_v14, %v931_v24  ;;  %v1108_v4 = vsel %vm1107_vm7, %v1101_v30, %v912_v57  ;;  %v15022_v57 = vmov 0.0  }
 0x115   : >> { %v7924_v63 = vpop.permute.xlu0 %460  ;;  %v7932_v37 = vpop.permute.xlu1 %456  ;;  %v1123_v3 = vsel %vm1121_vm13, %v1116_v50, %v949_v41  ;;  %v1115_v15 = vsel %vm1114_vm11, %v1108_v4, %v930_v27  ;;  %v7967_v41 = vld [vmem:[%s14656_s1 + $0x8] sm:$0xff]  ;;  %v15029_v50 = vld [vmem:[#allocation7_spill] sm:$0xff] }
 0x116   : >> { %15018 = vst [vmem:[#allocation10_spill] sm:$0xff] %v7924_v63  ;;  %v472_v58 = vsel %vm468_vm8, %v459_v52, %v7924_v63  ;;  %15019 = vst [vmem:[#allocation62_spill] sm:$0xff] %v7932_v37  ;;  %v473_v1 = vsel %vm468_vm8, %v7932_v37, %v459_v52  ;;  %v1122_v24 = vsel %vm1121_vm13, %v1115_v15, %v948_v8  ;;  %v7991_v8 = vld [vmem:[%s14656_s1 + $0x10] sm:$0xff]  ;;  %v8024_v15 = vld [vmem:[%s14656_s1 + $0x18] sm:$0xff] }
 0x117   : >> { %v967_v25 = vrot.slane %v472_v58, 1  ;;  %557 = vrot.lane.b32.xlu0 %v7785_v17, %s6998_s20  ;;  %v966_v28 = vrot.slane %v473_v1, 1  ;;  %754 = vrot.lane.b32.xlu1 %v7814_v11, %s6999_s21  ;;  %15023 = vst [vmem:[#allocation65_spill] sm:$0xff] %v7967_v41  ;;  %15027 = vst [vmem:[#allocation12_spill] sm:$0xff] %v7991_v8 }
 0x118   : >> { %15030 = vst [vmem:[#allocation7_spill] sm:$0xff] %v8024_v15 }
 0x119   : >> { %v662_v22 = vpop.permute.xlu0 %661  ;;  %v1130_v59 = vsel %vm1128_vm14, %v1123_v3, %v967_v25  ;;  %v7952_v52 = vpop.permute.xlu1 %663  ;;  %v1129_v31 = vsel %vm1128_vm14, %v1122_v24, %v966_v28 }
 0x11a   : >> { %1464 = vmatprep.subr.mxu1 %v1130_v59  ;;  %15021 = vst [vmem:[#allocation64_spill] sm:$0xff] %v7952_v52  ;;  %v7976_v61 = vsel %vm487_vm1, %v15025_v12, %v662_v22  ;;  %v7996_v58 = vsel %vm487_vm1, %v662_v22, %v7952_v52 }
 0x11b   : >> { %844 = vrot.lane.b32.xlu0 %v7814_v11, %s6995_s17  ;;  %1465 = vmatpush1.msra.mxu1 %v1129_v31  ;;  %v2308_v4 = vsel %vm1086_vm2, %v7976_v61, %v15029_v50  ;;  %v2309_v59 = vsel %vm1086_vm2, %v7996_v58, %v7385_v53 }
 0x11c   : >> { %371 = vrot.lane.b32.xlu1 %v7852_v56, %s6998_s20  ;;  %6528 = vmatmul.mubr.msk.f32.vlgmr.msra.gmra.mxu1 %vm1403_vm15, %v7950_v16 }
 0x11d   : >> { %v7959_v35 = vpop.permute.xlu0 %643  ;;  %1504 = vmatprep.mubr.f32.mxu1 %v15022_v57  ;;  %v7969_v6 = vpop.permute.xlu1 %645 }
 0x11e   : >> { %15024 = vst [vmem:[#allocation66_spill] sm:$0xff] %v7969_v6 }
 0x11f   : >> { %575 = vrot.lane.b32.xlu0 %v7785_v17, %s6999_s21 }
 0x120   : >> { %772 = vrot.lane.b32.xlu1 %v7814_v11, %s7000_s22  ;;  %6529 = vmatmul.mubr.msk.f32.gmra.mxu1 %vm1403_vm15, %v7967_v41 }
 0x121   : >> { %v715_v27 = vpop.permute.xlu0 %714  ;;  %1510 = vmatprep.mubr.f32.mxu1 %v15022_v57  ;;  %v7998_v30 = vpop.permute.xlu1 %716 }
 0x122   : >> { %v7985_v14 = vsel %vm354_vm0, %v15026_v34, %v715_v27  ;;  %15028 = vst [vmem:[#allocation14_spill] sm:$0xff] %v7998_v30  ;;  %v8009_v1 = vsel %vm354_vm0, %v715_v27, %v7998_v30  ;;  %v15032_v27 = vld [vmem:[#allocation19_spill] sm:$0xff] }
 0x123   : >> { %v2188_v25 = vrot.slane %v7985_v14, 6  ;;  %808 = vrot.lane.b32.xlu0 %v7814_v11, %s7001_s23  ;;  %v2189_v3 = vrot.slane %v8009_v1, 6 }
 0x124   : >> { %390 = vrot.lane.b32.xlu1 %v7852_v56, %s6999_s21  ;;  %6530 = vmatmul.mubr.msk.f32.gmra.mxu1 %vm1403_vm15, %v7991_v8 }
 0x125   : >> { %v2314_v28 = vsel %vm1093_vm3, %v2308_v4, %v2188_v25  ;;  %v536_v22 = vpop.permute.xlu0 %535  ;;  %1516 = vmatprep.mubr.f32.mxu1 %v15022_v57  ;;  %v2315_v24 = vsel %vm1093_vm3, %v2309_v59, %v2189_v3  ;;  %v8027_v31 = vpop.permute.xlu1 %537 }
 0x126   : >> { %15031 = vst [vmem:[#allocation67_spill] sm:$0xff] %v8027_v31  ;;  %v8091_v26 = vsel %vm354_vm0, %v536_v22, %v8027_v31 }
 0x127   : >> { %593 = vrot.lane.b32.xlu0 %v7785_v17, %s7000_s22 }
 0x128   : >> { %790 = vrot.lane.b32.xlu1 %v7814_v11, %s7002_s24  ;;  %6531 = vmatmul.mubr.msk.f32.gmra.mxu1 %vm1403_vm15, %v8024_v15 }
 0x129   : >> { %v733_v12 = vpop.permute.xlu0 %732  ;;  %1587 = vmatprep.mubr.f32.mxu1 %v15022_v57  ;;  %v8041_v25 = vpop.permute.xlu1 %734 }
 0x12a   : >> { %v8038_v34 = vsel %vm373_vm4, %v15032_v27, %v733_v12  ;;  %15033 = vst [vmem:[#allocation19_spill] sm:$0xff] %v8041_v25  ;;  %v8049_v3 = vsel %vm373_vm4, %v733_v12, %v8041_v25 }
 0x12b   : >> { %v2200_v4 = vrot.slane %v8038_v34, 5  ;;  %409 = vrot.lane.b32.xlu0 %v7852_v56, %s7000_s22  ;;  %v2201_v59 = vrot.slane %v8049_v3, 5 }
 0x12c   : >> { %611 = vrot.lane.b32.xlu1 %v7785_v17, %s7002_s24 }
 0x12d   : >> { %v2320_v20 = vsel %vm1100_vm5, %v2314_v28, %v2200_v4  ;;  %v823_v27 = vpop.permute.xlu0 %822  ;;  %v2321_v45 = vsel %vm1100_vm5, %v2315_v24, %v2201_v59  ;;  %v8056_v44 = vpop.permute.xlu1 %824  ;;  %v15036_v28 = vld [vmem:[#allocation15_spill] sm:$0xff]  ;;  %v15037_v59 = vld [vmem:[#allocation5_spill] sm:$0xff] }
 0x12e   : >> { %15034 = vst [vmem:[#allocation68_spill] sm:$0xff] %v8056_v44  ;;  %v8074_v24 = vsel %vm354_vm0, %v15036_v28, %v536_v22  ;;  %v8082_v7 = vrot.slane %v8065_v23, %v15037_v59  ;;  %v2099_v22 = vrot.slane %v8091_v26, 7 }
 0x12f   : >> { %428 = vrot.lane.b32.xlu0 %v7852_v56, %s7002_s24  ;;  %v2098_v59 = vrot.slane %v8074_v24, 7 }
 0x130   : >> { %629 = vrot.lane.b32.xlu1 %v7785_v17, %s7001_s23  ;;  %v15044_v17 = vld [vmem:[#allocation4_spill] sm:$0xff] }
 0x131   : >> { %v8062_v12 = vpop.permute.xlu0 %346  ;;  %v8067_v37 = vpop.permute.xlu1 %348  ;;  %v8132_v18 = vrot.slane %v8065_v23, %v15044_v17 }
 0x133   : >> { %447 = vrot.lane.b32.xlu0 %v7852_v56, %s7001_s23 }
 0x134   : >> { %466 = vrot.lane.b32.xlu1 %v7852_v56, %s6996_s18  ;;  %v15043_v56 = vld [vmem:[#allocation6_spill] sm:$0xff] }
 0x135   : >> { %v8078_v4 = vpop.permute.xlu0 %481  ;;  %v8093_v28 = vpop.permute.xlu1 %483  ;;  %v2266_v62 = vsel %vm1086_vm2, %v15043_v56, %v2098_v59  ;;  %v2267_v59 = vsel %vm1086_vm2, %v7360_v46, %v2099_v22 }
 0x137   : >> { %1954 = vrot.lane.b32.xlu0 %v8086_v9, %s6997_s19 }
 0x138   : >> { %1956 = vrot.lane.b32.xlu1 %v8082_v7, %s6997_s19 }
 0x139   : >> { %v554_v29 = vpop.permute.xlu0 %553  ;;  %v8114_v15 = vpop.permute.xlu1 %555 }
 0x13a   : >> { %v8112_v0 = vsel %vm373_vm4, %v15041_v2, %v554_v29  ;;  %15042 = vst [vmem:[#allocation15_spill] sm:$0xff] %v8114_v15  ;;  %v8124_v60 = vsel %vm373_vm4, %v554_v29, %v8114_v15 }
 0x13b   : >> { %v2110_v39 = vrot.slane %v8112_v0, 6  ;;  %1958 = vrot.lane.b32.xlu0 %v8099_v5, %s6997_s19  ;;  %v2111_v8 = vrot.slane %v8124_v60, 6 }
 0x13c   : >> { %1960 = vrot.lane.b32.xlu1 %v8106_v42, %s6997_s19 }
 0x13d   : >> { %v2272_v2 = vsel %vm1093_vm3, %v2266_v62, %v2110_v39  ;;  %v751_v48 = vpop.permute.xlu0 %750  ;;  %v2273_v15 = vsel %vm1093_vm3, %v2267_v59, %v2111_v8  ;;  %v8142_v41 = vpop.permute.xlu1 %752  ;;  %v15047_v39 = vld [vmem:[#allocation30_spill] sm:$0xff]  ;;  %v7004_v59 = vmov 0  }
 0x13e   : >> { %v8139_v29 = vsel %vm392_vm6, %v15045_v49, %v751_v48  ;;  %15046 = vst [vmem:[#allocation5_spill] sm:$0xff] %v8142_v41  ;;  %v8150_v17 = vsel %vm392_vm6, %v751_v48, %v8142_v41  ;;  %6679 = vset.pattern.permute.xlu0 %v7004_v59  ;;  %6680 = vset.pattern.permute.xlu1 %v7004_v59  ;;  %v15049_v41 = vld [vmem:[#allocation21_spill] sm:$0xff] }
 0x13f   : >> { %v2212_v62 = vrot.slane %v8139_v29, 4  ;;  %1952 = vrot.lane.b32.xlu0 %v8132_v18, %s6997_s19  ;;  %v2213_v22 = vrot.slane %v8150_v17, 4  ;;  %v830_v57 = vsel %vm468_vm8, %v15049_v41, %v823_v27 }
 0x140   : >> { %1972 = vrot.lane.b32.xlu1 %v8086_v9, %s6998_s20 }
 0x141   : >> { %v841_v49 = vpop.permute.xlu0 %840  ;;  %v2326_v25 = vsel %vm1107_vm7, %v2320_v20, %v2212_v62  ;;  %v8159_v11 = vpop.permute.xlu1 %842  ;;  %v2327_v48 = vsel %vm1107_vm7, %v2321_v45, %v2213_v22  ;;  %v829_v45 = vsel %vm468_vm8, %v823_v27, %v8056_v44  ;;  %v15054_v44 = vld [vmem:[#allocation37_spill] sm:$0xff] }
 0x142   : >> { %v848_v8 = vsel %vm487_vm1, %v15047_v39, %v841_v49  ;;  %15048 = vst [vmem:[#allocation3_spill] sm:$0xff] %v8159_v11  ;;  %v847_v39 = vsel %vm487_vm1, %v841_v49, %v8159_v11  ;;  %v15052_v49 = vld [vmem:[#allocation35_spill] sm:$0xff]  ;;  %v1294_v32 = vrot.slane %v829_v45, 7 }
 0x143   : >> { %v2350_v55 = vrot.slane %v848_v8, 7  ;;  %1974 = vrot.lane.b32.xlu0 %v8082_v7, %s6998_s20  ;;  %v2351_v31 = vrot.slane %v847_v39, 7  ;;  %v1311_v52 = vrot.slane %v848_v8, 6 }
 0x144   : >> { %1976 = vrot.lane.b32.xlu1 %v8099_v5, %s6998_s20 }
 0x145   : >> { %v8171_v20 = vsel %vm1086_vm2, %v830_v57, %v2350_v55  ;;  %v8175_v62 = vpop.permute.xlu0 %367  ;;  %v8181_v22 = vsel %vm1086_vm2, %v829_v45, %v2351_v31  ;;  %v8183_v41 = vpop.permute.xlu1 %369  ;;  %v15058_v45 = vld [vmem:[#allocation13_spill] sm:$0xff] }
 0x146   : >> { %15050 = vst [vmem:[#allocation18_spill] sm:$0xff] %v8171_v20  ;;  %15051 = vst [vmem:[#allocation20_spill] sm:$0xff] %v8181_v22  ;;  %v8255_v8 = vsel %vm468_vm8, %v15058_v45, %v7959_v35  ;;  %v1186_v45 = vrot.slane %v7996_v58, 7  ;;  %v1204_v58 = vrot.slane %v8009_v1, 5 }
 0x147   : >> { %1978 = vrot.lane.b32.xlu0 %v8106_v42, %s6998_s20 }
 0x148   : >> { %2062 = vrot.lane.b32.xlu1 %v8086_v9, %s6996_s18 }
 0x149   : >> { %v572_v55 = vpop.permute.xlu0 %571  ;;  %v8194_v20 = vpop.permute.xlu1 %573 }
 0x14a   : >> { %v8192_v59 = vsel %vm392_vm6, %v15052_v49, %v572_v55  ;;  %15053 = vst [vmem:[#allocation25_spill] sm:$0xff] %v8194_v20  ;;  %v8202_v31 = vsel %vm392_vm6, %v572_v55, %v8194_v20 }
 0x14b   : >> { %v2122_v27 = vrot.slane %v8192_v59, 5  ;;  %2064 = vrot.lane.b32.xlu0 %v8082_v7, %s6996_s18  ;;  %v2123_v22 = vrot.slane %v8202_v31, 5 }
 0x14c   : >> { %2066 = vrot.lane.b32.xlu1 %v8099_v5, %s6996_s18 }
 0x14d   : >> { %v2278_v11 = vsel %vm1100_vm5, %v2272_v2, %v2122_v27  ;;  %v769_v49 = vpop.permute.xlu0 %768  ;;  %v8214_v33 = vsel %vm1100_vm5, %v2273_v15, %v2123_v22  ;;  %v8216_v16 = vpop.permute.xlu1 %770  ;;  %v1293_v27 = vrot.slane %v830_v57, 7  ;;  %v15056_v22 = vld [vmem:[#allocation38_spill] sm:$0xff] }
 0x14e   : >> { %v8211_v23 = vsel %vm411_vm9, %v15054_v44, %v769_v49  ;;  %15055 = vst [vmem:[#allocation6_spill] sm:$0xff] %v8216_v16  ;;  %v8224_v2 = vsel %vm411_vm9, %v769_v49, %v8216_v16 }
 0x14f   : >> { %v2224_v55 = vrot.slane %v8211_v23, 3  ;;  %2068 = vrot.lane.b32.xlu0 %v8106_v42, %s6996_s18  ;;  %v2225_v20 = vrot.slane %v8224_v2, 3 }
 0x150   : >> { %1970 = vrot.lane.b32.xlu1 %v8132_v18, %s6998_s20 }
 0x151   : >> { %v805_v44 = vpop.permute.xlu0 %804  ;;  %v8230_v15 = vsel %vm1114_vm11, %v2326_v25, %v2224_v55  ;;  %v8237_v63 = vpop.permute.xlu1 %806  ;;  %v8244_v49 = vsel %vm1114_vm11, %v2327_v48, %v2225_v20  ;;  %v1312_v25 = vrot.slane %v847_v39, 6  ;;  %v1185_v20 = vrot.slane %v7976_v61, 7 }
 0x152   : >> { %v8235_v30 = vsel %vm449_vm10, %v15056_v22, %v805_v44  ;;  %15057 = vst [vmem:[#allocation4_spill] sm:$0xff] %v8237_v63  ;;  %v8249_v55 = vsel %vm449_vm10, %v805_v44, %v8237_v63  ;;  %v8269_v44 = vsel %vm468_vm8, %v7959_v35, %v7969_v6  ;;  %v1203_v35 = vrot.slane %v7985_v14, 5 }
 0x153   : >> { %v1365_v57 = vsel %vm1086_vm2, %v8235_v30, %v1293_v27  ;;  %1990 = vrot.lane.b32.xlu0 %v8086_v9, %s6999_s21  ;;  %v1366_v27 = vsel %vm1086_vm2, %v8249_v55, %v1294_v32  ;;  %v1323_v32 = vsel %vm1086_vm2, %v8255_v8, %v1185_v20  ;;  %v1222_v20 = vrot.slane %v8049_v3, 4 }
 0x154   : >> { %1992 = vrot.lane.b32.xlu1 %v8082_v7, %s6999_s21  ;;  %v1371_v39 = vsel %vm1093_vm3, %v1365_v57, %v1311_v52  ;;  %v1372_v22 = vsel %vm1093_vm3, %v1366_v27, %v1312_v25  ;;  %v1324_v52 = vsel %vm1086_vm2, %v8269_v44, %v1186_v45  ;;  %v1221_v57 = vrot.slane %v8038_v34, 4  ;;  %v15059_v25 = vld [vmem:[#allocation45_spill] sm:$0xff] }
 0x155   : >> { %v8261_v48 = vpop.permute.xlu0 %386  ;;  %v8273_v63 = vpop.permute.xlu1 %388  ;;  %6532 = vmatprep.subr.msk.mxu1 %vm1100_vm5, %v1372_v22  ;;  %v1330_v1 = vsel %vm1093_vm3, %v1324_v52, %v7385_v53  ;;  %v1239_v34 = vrot.slane %v8139_v29, 3  ;;  %v1240_v45 = vrot.slane %v8150_v17, 3  ;;  %v1258_v52 = vrot.slane %v8224_v2, 2 }
 0x156   : >> { %6533 = vmatpush1.msk.msra.mxu1 %vm1100_vm5, %v1371_v39  ;;  %v1329_v39 = vsel %vm1093_vm3, %v1323_v32, %v15029_v50  ;;  %v1257_v32 = vrot.slane %v8211_v23, 2  ;;  %v1336_v29 = vsel %vm1100_vm5, %v1330_v1, %v1204_v58  ;;  %v2254_v58 = vrot.slane %v8235_v30, 1 }
 0x157   : >> { %1994 = vrot.lane.b32.xlu0 %v8099_v5, %s6999_s21  ;;  %v1335_v3 = vsel %vm1100_vm5, %v1329_v39, %v1203_v35  ;;  %v1342_v6 = vsel %vm1107_vm7, %v1336_v29, %v1222_v20  ;;  %v2255_v30 = vrot.slane %v8249_v55, 1  ;;  %v490_v55 = vsel %vm487_vm1, %v7389_v54, %v8078_v4 }
 0x158   : >> { %1996 = vrot.lane.b32.xlu1 %v8106_v42, %s6999_s21  ;;  %v1341_v17 = vsel %vm1107_vm7, %v1335_v3, %v1221_v57  ;;  %v1348_v57 = vsel %vm1114_vm11, %v1342_v6, %v1240_v45  ;;  %v2176_v29 = vrot.slane %v8255_v8, 1  ;;  %v986_v54 = vrot.slane %v8074_v24, 6 }
 0x159   : >> { %v590_v61 = vpop.permute.xlu0 %589  ;;  %v8296_v22 = vpop.permute.xlu1 %591 }
 0x15a   : >> { %v8291_v27 = vsel %vm411_vm9, %v15059_v25, %v590_v61  ;;  %15060 = vst [vmem:[#allocation27_spill] sm:$0xff] %v8296_v22  ;;  %v8308_v50 = vsel %vm411_vm9, %v590_v61, %v8296_v22  ;;  %v15061_v61 = vld [vmem:[#allocation47_spill] sm:$0xff] }
 0x15b   : >> { %v2134_v14 = vrot.slane %v8291_v27, 4  ;;  %2060 = vrot.lane.b32.xlu0 %v8132_v18, %s6996_s18  ;;  %v2135_v25 = vrot.slane %v8308_v50, 4 }
 0x15c   : >> { %2080 = vrot.lane.b32.xlu1 %v8086_v9, %s6995_s17 }
 0x15d   : >> { %v787_v16 = vpop.permute.xlu0 %786  ;;  %v2284_v53 = vsel %vm1107_vm7, %v2278_v11, %v2134_v14  ;;  %v8322_v39 = vpop.permute.xlu1 %788  ;;  %v2285_v11 = vsel %vm1107_vm7, %v8214_v33, %v2135_v25  ;;  %v1347_v14 = vsel %vm1114_vm11, %v1341_v17, %v1239_v34  ;;  %v2177_v17 = vrot.slane %v8269_v44, 1 }
 0x15e   : >> { %v794_v35 = vsel %vm430_vm12, %v15061_v61, %v787_v16  ;;  %v793_v2 = vsel %vm430_vm12, %v787_v16, %v8322_v39  ;;  %v1353_v20 = vsel %vm1121_vm13, %v1347_v14, %v1257_v32  ;;  %v1354_v16 = vsel %vm1121_vm13, %v1348_v57, %v1258_v52 }
 0x15f   : >> { %v1275_v23 = vrot.slane %v794_v35, 1  ;;  %v2236_v22 = vrot.slane %v794_v35, 2  ;;  %2082 = vrot.lane.b32.xlu0 %v8082_v7, %s6995_s17  ;;  %v1276_v1 = vrot.slane %v793_v2, 1  ;;  %v2237_v3 = vrot.slane %v793_v2, 2 }
 0x160   : >> { %2084 = vrot.lane.b32.xlu1 %v8099_v5, %s6995_s17  ;;  %v987_v35 = vrot.slane %v8091_v26, 6  ;;  %v1004_v57 = vrot.slane %v8112_v0, 5  ;;  %v1022_v14 = vrot.slane %v8192_v59, 4  ;;  %v1023_v59 = vrot.slane %v8202_v31, 4 }
 0x161   : >> { %v8337_v61 = vpop.permute.xlu0 %405  ;;  %v2338_v33 = vsel %vm1121_vm13, %v8230_v15, %v2236_v22  ;;  %v1359_v6 = vsel %vm1128_vm14, %v1353_v20, %v1275_v23  ;;  %v8348_v45 = vpop.permute.xlu1 %407  ;;  %v1360_v25 = vsel %vm1128_vm14, %v1354_v16, %v1276_v1  ;;  %v2339_v32 = vsel %vm1121_vm13, %v8244_v49, %v2237_v3 }
 0x162   : >> { %v8346_v34 = vsel %vm1128_vm14, %v2338_v33, %v2254_v58  ;;  %v8359_v15 = vsel %vm354_vm0, %v7377_v51, %v8062_v12  ;;  %1549 = vmatprep.subr.mxu1 %v1360_v25  ;;  %v8366_v22 = vsel %vm1128_vm14, %v2339_v32, %v2255_v30  ;;  %v489_v49 = vsel %vm487_vm1, %v8078_v4, %v8093_v28 }
 0x163   : >> { %2086 = vrot.lane.b32.xlu0 %v8106_v42, %s6995_s17  ;;  %1550 = vmatpush1.msra.mxu1 %v1359_v6  ;;  %v860_v23 = vrot.slane %v8359_v15, 7  ;;  %v1137_v4 = vsel %vm1086_vm2, %v490_v55, %v15043_v56  ;;  %v1138_v24 = vsel %vm1086_vm2, %v489_v49, %v7360_v46  ;;  %v8399_v56 = vsel %vm354_vm0, %v8062_v12, %v8067_v37 }
 0x164   : >> { %1988 = vrot.lane.b32.xlu1 %v8132_v18, %s6999_s21  ;;  %v8410_v3 = vsel %vm373_vm4, %v8175_v62, %v8183_v41  ;;  %v376_v12 = vsel %vm373_vm4, %v7494_v36, %v8175_v62  ;;  %v1144_v20 = vsel %vm1093_vm3, %v1138_v24, %v987_v35  ;;  %v1040_v33 = vrot.slane %v8291_v27, 3 }
 0x165   : >> { %v608_v51 = vpop.permute.xlu0 %607  ;;  %v8384_v58 = vpop.permute.xlu1 %609  ;;  %v861_v36 = vrot.slane %v8399_v56, 7  ;;  %v1041_v6 = vrot.slane %v8308_v50, 3  ;;  %v878_v25 = vrot.slane %v376_v12, 6  ;;  %v394_v50 = vsel %vm392_vm6, %v8261_v48, %v8273_v63 }
 0x166   : >> { %v615_v52 = vsel %vm430_vm12, %v7730_v38, %v608_v51  ;;  %v1005_v38 = vrot.slane %v8124_v60, 5  ;;  %v614_v26 = vsel %vm430_vm12, %v608_v51, %v8384_v58  ;;  %v1143_v60 = vsel %vm1093_vm3, %v1137_v4, %v986_v54 }
 0x167   : >> { %v2146_v2 = vrot.slane %v615_v52, 3  ;;  %2008 = vrot.lane.b32.xlu0 %v8086_v9, %s7000_s22  ;;  %v2147_v1 = vrot.slane %v614_v26, 3  ;;  %v1149_v62 = vsel %vm1100_vm5, %v1143_v60, %v1004_v57  ;;  %v1058_v32 = vrot.slane %v615_v52, 2 }
 0x168   : >> { %2010 = vrot.lane.b32.xlu1 %v8082_v7, %s7000_s22  ;;  %v1150_v31 = vsel %vm1100_vm5, %v1144_v20, %v1005_v38  ;;  %v1155_v27 = vsel %vm1107_vm7, %v1149_v62, %v1022_v14  ;;  %v1059_v49 = vrot.slane %v614_v26, 2  ;;  %v414_v24 = vsel %vm411_vm9, %v7698_v47, %v8337_v61 }
 0x169   : >> { %v425_v46 = vpop.permute.xlu0 %424  ;;  %v2290_v0 = vsel %vm1114_vm11, %v2284_v53, %v2146_v2  ;;  %v8422_v53 = vsel %vm392_vm6, %v15012_v19, %v8261_v48  ;;  %v8425_v30 = vpop.permute.xlu1 %426  ;;  %v2291_v16 = vsel %vm1114_vm11, %v2285_v11, %v2147_v1  ;;  %v879_v19 = vrot.slane %v8410_v3, 6 }
 0x16a   : >> { %v896_v11 = vrot.slane %v8422_v53, 5  ;;  %v1156_v54 = vsel %vm1107_vm7, %v1150_v31, %v1023_v59  ;;  %v1161_v2 = vsel %vm1114_vm11, %v1155_v27, %v1040_v33  ;;  %v433_v47 = vsel %vm430_vm12, %v7774_v10, %v425_v46 }
 0x16b   : >> { %2012 = vrot.lane.b32.xlu0 %v8099_v5, %s7000_s22  ;;  %v1162_v57 = vsel %vm1114_vm11, %v1156_v54, %v1041_v6  ;;  %v1167_v14 = vsel %vm1121_vm13, %v1161_v2, %v1058_v32  ;;  %v432_v12 = vsel %vm430_vm12, %v425_v46, %v8425_v30  ;;  %v897_v20 = vrot.slane %v394_v50, 5  ;;  %v15063_v32 = vld [vmem:[#allocation10_spill] sm:$0xff] }
 0x16c   : >> { %2014 = vrot.lane.b32.xlu1 %v8106_v42, %s7000_s22  ;;  %v932_v31 = vrot.slane %v433_v47, 3  ;;  %v933_v27 = vrot.slane %v432_v12, 3 }
 0x16d   : >> { %v626_v55 = vpop.permute.xlu0 %625  ;;  %v8447_v35 = vpop.permute.xlu1 %627 }
 0x16e   : >> { %v633_v51 = vsel %vm449_vm10, %v7808_v43, %v626_v55  ;;  %v413_v43 = vsel %vm411_vm9, %v8337_v61, %v8348_v45  ;;  %v632_v48 = vsel %vm449_vm10, %v626_v55, %v8447_v35  ;;  %v1168_v61 = vsel %vm1121_vm13, %v1162_v57, %v1059_v49 }
 0x16f   : >> { %v1076_v52 = vrot.slane %v633_v51, 1  ;;  %v2158_v4 = vrot.slane %v633_v51, 2  ;;  %2044 = vrot.lane.b32.xlu0 %v8086_v9, %s7001_s23  ;;  %v1077_v38 = vrot.slane %v632_v48, 1  ;;  %v2159_v26 = vrot.slane %v632_v48, 2 }
 0x170   : >> { %2046 = vrot.lane.b32.xlu1 %v8082_v7, %s7001_s23  ;;  %v915_v62 = vrot.slane %v413_v43, 4  ;;  %v15065_v43 = vld [vmem:[#allocation11_spill] sm:$0xff] }
 0x171   : >> { %v444_v56 = vpop.permute.xlu0 %443  ;;  %v2296_v1 = vsel %vm1121_vm13, %v2290_v0, %v2158_v4  ;;  %v1173_v60 = vsel %vm1128_vm14, %v1167_v14, %v1076_v52  ;;  %v8481_v59 = vpop.permute.xlu1 %445  ;;  %v1174_v10 = vsel %vm1128_vm14, %v1168_v61, %v1077_v38  ;;  %v2297_v8 = vsel %vm1121_vm13, %v2291_v16, %v2159_v26  ;;  %v15064_v4 = vld [vmem:[#allocation64_spill] sm:$0xff]  ;;  %v15066_v61 = vld [vmem:[#allocation66_spill] sm:$0xff] }
 0x172   : >> { %v8476_v3 = vsel %vm1128_vm14, %v2296_v1, %v2176_v29  ;;  %v452_v0 = vsel %vm449_vm10, %v7867_v13, %v444_v56  ;;  %v914_v29 = vrot.slane %v414_v24, 4  ;;  %v451_v53 = vsel %vm449_vm10, %v444_v56, %v8481_v59  ;;  %1551 = vmatprep.subr.mxu1 %v1174_v10  ;;  %v15062_v13 = vld [vmem:[#allocation9_spill] sm:$0xff] }
 0x173   : >> { %2048 = vrot.lane.b32.xlu0 %v8099_v5, %s7001_s23  ;;  %v8496_v46 = vsel %vm1128_vm14, %v2297_v8, %v2177_v17  ;;  %v1089_v33 = vsel %vm1086_vm2, %v15062_v13, %v860_v23  ;;  %v1090_v16 = vsel %vm1086_vm2, %v7451_v40, %v861_v36  ;;  %1552 = vmatpush1.msra.mxu1 %v1173_v60  ;;  %v950_v17 = vrot.slane %v452_v0, 2  ;;  %v15067_v0 = vld [vmem:[#allocation16_spill] sm:$0xff] }
 0x174   : >> { %2050 = vrot.lane.b32.xlu1 %v8106_v42, %s7001_s23  ;;  %v1096_v44 = vsel %vm1093_vm3, %v1089_v33, %v878_v25  ;;  %v1097_v23 = vsel %vm1093_vm3, %v1090_v16, %v879_v19  ;;  %v951_v40 = vrot.slane %v451_v53, 2  ;;  %v15069_v53 = vld [vmem:[#allocation17_spill] sm:$0xff]  ;;  %v15070_v16 = vld [vmem:[#allocation63_spill] sm:$0xff] }
 0x175   : >> { %v463_v6 = vpop.permute.xlu0 %462  ;;  %v1103_v55 = vsel %vm1100_vm5, %v1096_v44, %v896_v11  ;;  %v8512_v36 = vpop.permute.xlu1 %464  ;;  %v1104_v51 = vsel %vm1100_vm5, %v1097_v23, %v897_v20  ;;  %v15068_v20 = vld [vmem:[#allocation14_spill] sm:$0xff]  ;;  %v15074_v23 = vld [vmem:[#allocation24_spill] sm:$0xff] }
 0x176   : >> { %v471_v15 = vsel %vm468_vm8, %v15063_v32, %v463_v6  ;;  %v1110_v25 = vsel %vm1107_vm7, %v1103_v55, %v914_v29  ;;  %v470_v54 = vsel %vm468_vm8, %v463_v6, %v8512_v36  ;;  %v1111_v50 = vsel %vm1107_vm7, %v1104_v51, %v915_v62  ;;  %v15071_v44 = vld [vmem:[#allocation54_spill] sm:$0xff]  ;;  %v15073_v32 = vld [vmem:[#allocation67_spill] sm:$0xff] }
 0x177   : >> { %v968_v49 = vrot.slane %v471_v15, 1  ;;  %2078 = vrot.lane.b32.xlu0 %v8132_v18, %s6995_s17  ;;  %v969_v19 = vrot.slane %v470_v54, 1  ;;  %v1117_v52 = vsel %vm1114_vm11, %v1110_v25, %v932_v31  ;;  %v1118_v48 = vsel %vm1114_vm11, %v1111_v50, %v933_v27  ;;  %v15072_v27 = vld [vmem:[#allocation69_spill] sm:$0xff]  ;;  %v15076_v54 = vld [vmem:[#allocation23_spill] sm:$0xff] }
 0x178   : >> { %2006 = vrot.lane.b32.xlu1 %v8132_v18, %s7000_s22  ;;  %v1124_v57 = vsel %vm1121_vm13, %v1117_v52, %v950_v17  ;;  %v1125_v14 = vsel %vm1121_vm13, %v1118_v48, %v951_v40  ;;  %v8566_v17 = vrot.slane %v15072_v27, %v15071_v44  ;;  %v15075_v51 = vmov 0.0   ;;  %v15083_v44 = vld [vmem:[#allocation28_spill] sm:$0xff] }
 0x179   : >> { %v666_v11 = vpop.permute.xlu0 %665  ;;  %v648_v38 = vpop.permute.xlu1 %647  ;;  %v1131_v1 = vsel %vm1128_vm14, %v1124_v57, %v968_v49  ;;  %v1132_v47 = vsel %vm1128_vm14, %v1125_v14, %v969_v19  ;;  %v15077_v19 = vld [vmem:[#allocation58_spill] sm:$0xff] }
 0x17a   : >> { %v667_v2 = vsel %vm487_vm1, %v15064_v4, %v666_v11  ;;  %v672_v24 = vsel %vm487_vm1, %v666_v11, %v15065_v43  ;;  %v8541_v60 = vsel %vm468_vm8, %v15066_v61, %v648_v38  ;;  %1553 = vmatprep.subr.mxu1 %v1132_v47  ;;  %v8548_v10 = vsel %vm468_vm8, %v648_v38, %v15067_v0 }
 0x17b   : >> { %v1187_v26 = vrot.slane %v667_v2, 7  ;;  %v1188_v56 = vrot.slane %v672_v24, 7  ;;  %2026 = vrot.lane.b32.xlu0 %v8086_v9, %s7002_s24  ;;  %1554 = vmatpush1.msra.mxu1 %v1131_v1  ;;  %v2178_v25 = vrot.slane %v8541_v60, 1  ;;  %v2310_v50 = vsel %vm1086_vm2, %v667_v2, %v15076_v54  ;;  %v15079_v1 = vld [vmem:[#allocation26_spill] sm:$0xff] }
 0x17c   : >> { %2028 = vrot.lane.b32.xlu1 %v8082_v7, %s7002_s24  ;;  %6534 = vmatmul.mubr.msk.f32.vlgmr.msra.gmra.mxu1 %vm1403_vm15, %v15070_v16  ;;  %v2311_v11 = vsel %vm1086_vm2, %v672_v24, %v15077_v19 }
 0x17d   : >> { %v719_v12 = vpop.permute.xlu0 %718  ;;  %v1325_v8 = vsel %vm1086_vm2, %v8541_v60, %v1187_v26  ;;  %v1326_v33 = vsel %vm1086_vm2, %v8548_v10, %v1188_v56  ;;  %v540_v62 = vpop.permute.xlu1 %539  ;;  %1593 = vmatprep.mubr.f32.mxu1 %v15075_v51  ;;  %v15078_v56 = vld [vmem:[#allocation19_spill] sm:$0xff] }
 0x17e   : >> { %v720_v29 = vsel %vm354_vm0, %v15068_v20, %v719_v12  ;;  %v725_v13 = vsel %vm354_vm0, %v719_v12, %v15069_v53  ;;  %v8571_v15 = vsel %vm354_vm0, %v15073_v32, %v540_v62  ;;  %v8576_v55 = vsel %vm354_vm0, %v540_v62, %v15074_v23 }
 0x17f   : >> { %v2190_v31 = vrot.slane %v720_v29, 6  ;;  %v2191_v6 = vrot.slane %v725_v13, 6  ;;  %2030 = vrot.lane.b32.xlu0 %v8099_v5, %s7002_s24  ;;  %v1205_v40 = vrot.slane %v720_v29, 5  ;;  %v1206_v49 = vrot.slane %v725_v13, 5  ;;  %v15081_v29 = vld [vmem:[#allocation65_spill] sm:$0xff] }
 0x180   : >> { %v1331_v52 = vsel %vm1093_vm3, %v1325_v8, %v15076_v54  ;;  %2032 = vrot.lane.b32.xlu1 %v8106_v42, %s7002_s24  ;;  %v2100_v43 = vrot.slane %v8571_v15, 7  ;;  %v1332_v48 = vsel %vm1093_vm3, %v1326_v33, %v15077_v19  ;;  %v988_v2 = vrot.slane %v8571_v15, 6  ;;  %v15080_v8 = vld [vmem:[#allocation68_spill] sm:$0xff]  ;;  %6535 = vmatmul.mubr.msk.f32.gmra.mxu1 %vm1403_vm15, %v15081_v29  ;;  %v15084_v15 = vld [vmem:[#allocation31_spill] sm:$0xff] }
 0x181   : >> { %v737_v4 = vpop.permute.xlu0 %736  ;;  %v2316_v57 = vsel %vm1093_vm3, %v2310_v50, %v2190_v31  ;;  %v2317_v38 = vsel %vm1093_vm3, %v2311_v11, %v2191_v6  ;;  %v2101_v24 = vrot.slane %v8576_v55, 7  ;;  %v827_v26 = vpop.permute.xlu1 %826  ;;  %v989_v61 = vrot.slane %v8576_v55, 6  ;;  %1599 = vmatprep.mubr.f32.mxu1 %v15075_v51  ;;  %v15082_v31 = vld [vmem:[#allocation22_spill] sm:$0xff]  ;;  %v15085_v55 = vld [vmem:[#allocation57_spill] sm:$0xff] }
 0x182   : >> { %v738_v14 = vsel %vm373_vm4, %v15078_v56, %v737_v4  ;;  %v743_v47 = vsel %vm373_vm4, %v737_v4, %v15079_v1  ;;  %v1337_v12 = vsel %vm1100_vm5, %v1331_v52, %v1205_v40  ;;  %v1338_v0 = vsel %vm1100_vm5, %v1332_v48, %v1206_v49  ;;  %v15086_v52 = vld [vmem:[#allocation33_spill] sm:$0xff]  ;;  %v15087_v48 = vld [vmem:[#allocation12_spill] sm:$0xff] }
 0x183   : >> { %2042 = vrot.lane.b32.xlu0 %v8132_v18, %s7001_s23  ;;  %v8609_v20 = vsel %vm468_vm8, %v15080_v8, %v827_v26  ;;  %v1223_v53 = vrot.slane %v738_v14, 4  ;;  %v1224_v13 = vrot.slane %v743_v47, 4  ;;  %v2202_v33 = vrot.slane %v738_v14, 5  ;;  %v15088_v14 = vld [vmem:[#allocation29_spill] sm:$0xff] }
 0x184   : >> { %v2203_v16 = vrot.slane %v743_v47, 5  ;;  %2024 = vrot.lane.b32.xlu1 %v8132_v18, %s7002_s24  ;;  %v2268_v6 = vsel %vm1086_vm2, %v15082_v31, %v2100_v43  ;;  %v8621_v27 = vsel %vm468_vm8, %v827_v26, %v15083_v44  ;;  %v2269_v40 = vsel %vm1086_vm2, %v15085_v55, %v2101_v24  ;;  %6536 = vmatmul.mubr.msk.f32.gmra.mxu1 %vm1403_vm15, %v15087_v48  ;;  %v15089_v47 = vld [vmem:[#allocation15_spill] sm:$0xff] }
 0x185   : >> { %v351_v62 = vpop.permute.xlu0 %350  ;;  %v2322_v49 = vsel %vm1100_vm5, %v2316_v57, %v2202_v33  ;;  %v486_v50 = vpop.permute.xlu1 %485  ;;  %v1295_v11 = vrot.slane %v8609_v20, 7  ;;  %v1296_v57 = vrot.slane %v8621_v27, 7  ;;  %1605 = vmatprep.mubr.f32.mxu1 %v15075_v51 }
 0x186   : >> { %v355_v32 = vsel %vm354_vm0, %v8067_v37, %v351_v62  ;;  %v360_v23 = vsel %vm354_vm0, %v351_v62, %v15084_v15  ;;  %v2323_v54 = vsel %vm1100_vm5, %v2317_v38, %v2203_v16  ;;  %v488_v37 = vsel %vm487_vm1, %v8093_v28, %v486_v50 }
 0x187   : >> { %v862_v19 = vrot.slane %v355_v32, 7  ;;  %1962 = vrot.lane.b32.xlu0 %v8566_v17, %s6997_s19  ;;  %v493_v4 = vsel %vm487_vm1, %v486_v50, %v15086_v52  ;;  %v863_v43 = vrot.slane %v360_v23, 7  ;;  %v1343_v38 = vsel %vm1107_vm7, %v1337_v12, %v1223_v53  ;;  %v15090_v12 = vld [vmem:[#allocation34_spill] sm:$0xff]  ;;  %v15092_v32 = vld [vmem:[#allocation5_spill] sm:$0xff]  ;;  %v15093_v23 = vld [vmem:[#allocation36_spill] sm:$0xff] }
 0x188   : >> { %v1139_v24 = vsel %vm1086_vm2, %v488_v37, %v15082_v31  ;;  %1980 = vrot.lane.b32.xlu1 %v8566_v17, %s6998_s20  ;;  %v1344_v28 = vsel %vm1107_vm7, %v1338_v0, %v1224_v13  ;;  %v1140_v56 = vsel %vm1086_vm2, %v493_v4, %v15085_v55  ;;  %v15091_v31 = vld [vmem:[#allocation60_spill] sm:$0xff]  ;;  %v15094_v50 = vld [vmem:[#allocation7_spill] sm:$0xff] }
 0x189   : >> { %v558_v26 = vpop.permute.xlu0 %557  ;;  %v1091_v1 = vsel %vm1086_vm2, %v15088_v14, %v862_v19  ;;  %v755_v53 = vpop.permute.xlu1 %754  ;;  %v1145_v62 = vsel %vm1093_vm3, %v1139_v24, %v988_v2  ;;  %v1092_v44 = vsel %vm1086_vm2, %v15091_v31, %v863_v43  ;;  %6537 = vmatmul.mubr.msk.f32.gmra.mxu1 %vm1403_vm15, %v15094_v50  ;;  %v1146_v19 = vsel %vm1093_vm3, %v1140_v56, %v989_v61 }
 0x18a   : >> { %v559_v8 = vsel %vm373_vm4, %v15089_v47, %v558_v26  ;;  %v564_v29 = vsel %vm373_vm4, %v558_v26, %v15090_v12  ;;  %v756_v15 = vsel %vm392_vm6, %v15092_v32, %v755_v53  ;;  %v761_v55 = vsel %vm392_vm6, %v755_v53, %v15093_v23  ;;  %1676 = vmatprep.mubr.f32.mxu1 %v15075_v51  ;;  %v15095_v47 = vld [vmem:[#allocation3_spill] sm:$0xff]  ;;  %v15099_v23 = vld [vmem:[#allocation44_spill] sm:$0xff] }
 0x18b   : >> { %v1006_v33 = vrot.slane %v559_v8, 5  ;;  %v1007_v16 = vrot.slane %v564_v29, 5  ;;  %v2112_v0 = vrot.slane %v559_v8, 6  ;;  %v2113_v13 = vrot.slane %v564_v29, 6  ;;  %2070 = vrot.lane.b32.xlu0 %v8566_v17, %s6996_s18  ;;  %v15096_v12 = vld [vmem:[#allocation39_spill] sm:$0xff] }
 0x18c   : >> { %v1241_v37 = vrot.slane %v756_v15, 3  ;;  %v1242_v52 = vrot.slane %v761_v55, 3  ;;  %v2214_v4 = vrot.slane %v756_v15, 4  ;;  %1998 = vrot.lane.b32.xlu1 %v8566_v17, %s6999_s21  ;;  %v2215_v43 = vrot.slane %v761_v55, 4  ;;  %v15098_v15 = vld [vmem:[#allocation25_spill] sm:$0xff] }
 0x18d   : >> { %v845_v2 = vpop.permute.xlu0 %844  ;;  %v1151_v48 = vsel %vm1100_vm5, %v1145_v62, %v1006_v33  ;;  %v2274_v24 = vsel %vm1093_vm3, %v2268_v6, %v2112_v0  ;;  %v2275_v26 = vsel %vm1093_vm3, %v2269_v40, %v2113_v13  ;;  %v8686_v61 = vsel %vm1100_vm5, %v1146_v19, %v1007_v16  ;;  %v15097_v40 = vld [vmem:[#allocation40_spill] sm:$0xff] }
 0x18e   : >> { %v8683_v14 = vsel %vm1107_vm7, %v2322_v49, %v2214_v4  ;;  %v372_v56 = vpop.permute.xlu1 %371  ;;  %v846_v8 = vsel %vm487_vm1, %v15095_v47, %v845_v2  ;;  %v851_v29 = vsel %vm487_vm1, %v845_v2, %v15096_v12  ;;  %v1350_v33 = vsel %vm1114_vm11, %v1344_v28, %v1242_v52  ;;  %v1379_v12 = vld [vmem:[%s14657_s2] sm:$0xff] }
 0x18f   : >> { %2088 = vrot.lane.b32.xlu0 %v8566_v17, %s6995_s17  ;;  %v374_v6 = vsel %vm373_vm4, %v8183_v41, %v372_v56  ;;  %v379_v49 = vsel %vm373_vm4, %v372_v56, %v15097_v40  ;;  %v1313_v53 = vrot.slane %v846_v8, 6  ;;  %v2352_v13 = vrot.slane %v846_v8, 7 }
 0x190   : >> { %v880_v16 = vrot.slane %v374_v6, 6  ;;  %v881_v0 = vrot.slane %v379_v49, 6  ;;  %v2353_v62 = vrot.slane %v851_v29, 7  ;;  %2016 = vrot.lane.b32.xlu1 %v8566_v17, %s7000_s22  ;;  %v1314_v32 = vrot.slane %v851_v29, 6 }
 0x191   : >> { %v576_v31 = vpop.permute.xlu0 %575  ;;  %v8714_v28 = vsel %vm1107_vm7, %v2323_v54, %v2215_v43  ;;  %v8719_v19 = vsel %vm1086_vm2, %v8609_v20, %v2352_v13  ;;  %v1349_v2 = vsel %vm1114_vm11, %v1343_v38, %v1241_v37  ;;  %v15100_v54 = vld [vmem:[#allocation6_spill] sm:$0xff] }
 0x192   : >> { %v577_v41 = vsel %vm392_vm6, %v15098_v15, %v576_v31  ;;  %v8711_v55 = vsel %vm392_vm6, %v576_v31, %v15099_v23  ;;  %v1098_v50 = vsel %vm1093_vm3, %v1091_v1, %v880_v16  ;;  %v8723_v52 = vsel %vm1086_vm2, %v8621_v27, %v2353_v62  ;;  %v773_v4 = vpop.permute.xlu1 %772  ;;  %v15101_v43 = vld [vmem:[#allocation46_spill] sm:$0xff]  ;;  %v15103_v15 = vld [vmem:[#allocation48_spill] sm:$0xff] }
 0x193   : >> { %2052 = vrot.lane.b32.xlu0 %v8566_v17, %s7001_s23  ;;  %v1099_v56 = vsel %vm1093_vm3, %v1092_v44, %v881_v0  ;;  %v8732_v1 = vsel %vm411_vm9, %v15100_v54, %v773_v4  ;;  %v8737_v47 = vsel %vm411_vm9, %v773_v4, %v15101_v43  ;;  %v1024_v8 = vrot.slane %v577_v41, 4  ;;  %v15102_v0 = vld [vmem:[#allocation4_spill] sm:$0xff]  ;;  %v15104_v43 = vld [vmem:[#allocation49_spill] sm:$0xff]  ;;  %s6619_s23 = sshll.u32 %s6985_s14, 6  ;;  %s304_s14 = sadd.s32 1, %s6985_s14  }
 0x194   : >> { %v1259_v29 = vrot.slane %v8732_v1, 2  ;;  %v1260_v38 = vrot.slane %v8737_v47, 2  ;;  %v2226_v44 = vrot.slane %v8732_v1, 3  ;;  %v1025_v37 = vrot.slane %v8711_v55, 4  ;;  %2034 = vrot.lane.b32.xlu1 %v8566_v17, %s7002_s24  ;;  %s11078_s24 = scalar_lea.vmem [#allocation2], %s6619_s23  ;;  %p301_p4 = scmp.ge.s32.totalorder %s304_s14, 12  }
 0x195   : >> { %v809_v6 = vpop.permute.xlu0 %808  ;;  %v2227_v40 = vrot.slane %v8737_v47, 3  ;;  %v2124_v49 = vrot.slane %v577_v41, 5  ;;  %v2125_v16 = vrot.slane %v8711_v55, 5  ;;  %v1157_v62 = vsel %vm1107_vm7, %v1151_v48, %v1024_v8  ;;  %s11093_s25 = smov (%p301_p4), 0  }
 0x196   : >> { %v8753_v13 = vsel %vm449_vm10, %v15102_v0, %v809_v6  ;;  %v391_v31 = vpop.permute.xlu1 %390  ;;  %v8759_v23 = vsel %vm449_vm10, %v809_v6, %v15103_v15 }
 0x197   : >> { %v1367_v41 = vsel %vm1086_vm2, %v8753_v13, %v1295_v11  ;;  %v2256_v55 = vrot.slane %v8753_v13, 1  ;;  %1385 = vperm.xlu0 %6679, %v1379_v12   ;;  %v2280_v4 = vsel %vm1100_vm5, %v2274_v24, %v2124_v49  ;;  %v8768_v54 = vsel %vm1100_vm5, %v2275_v26, %v2125_v16  ;;  %v15105_v49 = vld [vmem:[#allocation27_spill] sm:$0xff] }
 0x198   : >> { %v393_v48 = vsel %vm392_vm6, %v8273_v63, %v391_v31  ;;  %v398_v8 = vsel %vm392_vm6, %v391_v31, %v15104_v43  ;;  %v1368_v11 = vsel %vm1086_vm2, %v8759_v23, %v1296_v57  ;;  %v1356_v24 = vsel %vm1121_vm13, %v1350_v33, %v1260_v38  ;;  %v15106_v16 = vld [vmem:[#allocation51_spill] sm:$0xff] }
 0x199   : >> { %v898_v20 = vrot.slane %v393_v48, 5  ;;  %v899_v6 = vrot.slane %v398_v8, 5  ;;  %v594_v12 = vpop.permute.xlu0 %593  ;;  %v1374_v26 = vsel %vm1093_vm3, %v1368_v11, %v1314_v32  ;;  %v1373_v31 = vsel %vm1093_vm3, %v1367_v41, %v1313_v53  ;;  %v15107_v48 = vld [vmem:[#allocation52_spill] sm:$0xff]  ;;  %v8935_v13 = vld [vmem:[%s14656_s1] sm:$0xff] }
 0x19a   : >> { %v595_v63 = vsel %vm411_vm9, %v15105_v49, %v594_v12  ;;  %v8788_v0 = vsel %vm411_vm9, %v594_v12, %v15106_v16  ;;  %v2257_v15 = vrot.slane %v8759_v23, 1  ;;  %v791_v33 = vpop.permute.xlu1 %790  ;;  %6538 = vmatprep.subr.msk.mxu1 %vm1100_vm5, %v1374_v26  ;;  %v15108_v12 = vld [vmem:[#allocation53_spill] sm:$0xff]  ;;  %v1355_v49 = vsel %vm1121_vm13, %v1349_v2, %v1259_v29  ;;  %v15109_v29 = vld [vmem:[#allocation56_spill] sm:$0xff] }
 0x19b   : >> { %v1105_v27 = vsel %vm1100_vm5, %v1098_v50, %v898_v20  ;;  %v1106_v57 = vsel %vm1100_vm5, %v1099_v56, %v899_v6  ;;  %v1042_v32 = vrot.slane %v595_v63, 3  ;;  %v8798_v38 = vsel %vm430_vm12, %v8322_v39, %v791_v33  ;;  %6539 = vmatpush1.msk.msra.mxu1 %vm1100_vm5, %v1373_v31 }
 0x19c   : >> { %v8803_v43 = vsel %vm430_vm12, %v791_v33, %v15107_v48  ;;  %v1043_v53 = vrot.slane %v8788_v0, 3  ;;  %v2136_v50 = vrot.slane %v595_v63, 4  ;;  %v1277_v56 = vrot.slane %v8798_v38, 1 }
 0x19d   : >> { %v1278_v41 = vrot.slane %v8803_v43, 1  ;;  %v2238_v8 = vrot.slane %v8798_v38, 2  ;;  %v2137_v20 = vrot.slane %v8788_v0, 4  ;;  %v410_v39 = vpop.permute.xlu0 %409 }
 0x19e   : >> { %v8812_v6 = vsel %vm1107_vm7, %v2280_v4, %v2136_v50  ;;  %v412_v11 = vsel %vm411_vm9, %v8348_v45, %v410_v39  ;;  %v417_v26 = vsel %vm411_vm9, %v410_v39, %v15108_v12  ;;  %v612_v63 = vpop.permute.xlu1 %611  ;;  %v1361_v48 = vsel %vm1128_vm14, %v1355_v49, %v1277_v56  ;;  %v1380_v4 = vld [vmem:[%s14657_s2 + $0x8] sm:$0xff]  ;;  %v1382_v45 = vld [vmem:[%s14657_s2 + $0x18] sm:$0xff] }
 0x19f   : >> { %v916_v16 = vrot.slane %v412_v11, 4  ;;  %v917_v31 = vrot.slane %v417_v26, 4  ;;  %v1362_v33 = vsel %vm1128_vm14, %v1356_v24, %v1278_v41  ;;  %v2239_v50 = vrot.slane %v8803_v43, 2  ;;  %1390 = vperm.xlu1 %6680, %v1380_v4   ;;  %1400 = vperm.xlu0 %6679, %v1382_v45  }
 0x1a0   : >> { %v613_v2 = vsel %vm430_vm12, %v8384_v58, %v612_v63  ;;  %v8836_v24 = vsel %vm430_vm12, %v612_v63, %v15109_v29  ;;  %1638 = vmatprep.subr.mxu1 %v1362_v33  ;;  %v1158_v56 = vsel %vm1107_vm7, %v8686_v61, %v1025_v37  ;;  %v1163_v43 = vsel %vm1114_vm11, %v1157_v62, %v1042_v32  ;;  %v15110_v63 = vld [vmem:[#allocation59_spill] sm:$0xff]  ;;  %v1381_v37 = vld [vmem:[%s14657_s2 + $0x10] sm:$0xff] }
 0x1a1   : >> { %v1060_v41 = vrot.slane %v613_v2, 2  ;;  %v1061_v39 = vrot.slane %v8836_v24, 2  ;;  %v2148_v11 = vrot.slane %v613_v2, 3  ;;  %1639 = vmatpush1.msra.mxu1 %v1361_v48  ;;  %v429_v12 = vpop.permute.xlu0 %428  ;;  %v2149_v58 = vrot.slane %v8836_v24, 3 }
 0x1a2   : >> { %v1112_v26 = vsel %vm1107_vm7, %v1105_v27, %v916_v16  ;;  %v431_v49 = vsel %vm430_vm12, %v8425_v30, %v429_v12  ;;  %v436_v61 = vsel %vm430_vm12, %v429_v12, %v15110_v63  ;;  %v1113_v62 = vsel %vm1107_vm7, %v1106_v57, %v917_v31  ;;  %v630_v32 = vpop.permute.xlu1 %629  ;;  %v15111_v16 = vld [vmem:[#allocation8_spill] sm:$0xff] }
 0x1a3   : >> { %v934_v33 = vrot.slane %v431_v49, 3  ;;  %v935_v48 = vrot.slane %v436_v61, 3  ;;  %v1164_v27 = vsel %vm1114_vm11, %v1158_v56, %v1043_v53  ;;  %v631_v30 = vsel %vm449_vm10, %v8447_v35, %v630_v32  ;;  %1395 = vperm.xlu1 %6680, %v1381_v37   ;;  %v15112_v56 = vld [vmem:[#allocation43_spill] sm:$0xff] }
 0x1a4   : >> { %v636_v4 = vsel %vm449_vm10, %v630_v32, %v15111_v16  ;;  %v1170_v2 = vsel %vm1121_vm13, %v1164_v27, %v1061_v39  ;;  %v1169_v29 = vsel %vm1121_vm13, %v1163_v43, %v1060_v41  ;;  %v1078_v45 = vrot.slane %v631_v30, 1 }
 0x1a5   : >> { %v1079_v24 = vrot.slane %v636_v4, 1  ;;  %v2160_v57 = vrot.slane %v631_v30, 2  ;;  %v2161_v31 = vrot.slane %v636_v4, 2  ;;  %v448_v12 = vpop.permute.xlu0 %447  ;;  %v1120_v49 = vsel %vm1114_vm11, %v1113_v62, %v935_v48 }
 0x1a6   : >> { %v450_v53 = vsel %vm449_vm10, %v8481_v59, %v448_v12  ;;  %v455_v35 = vsel %vm449_vm10, %v448_v12, %v15112_v56  ;;  %v1119_v39 = vsel %vm1114_vm11, %v1112_v26, %v934_v33  ;;  %v467_v63 = vpop.permute.xlu1 %466  ;;  %v1175_v32 = vsel %vm1128_vm14, %v1169_v29, %v1078_v45  ;;  %v15113_v59 = vld [vmem:[#allocation62_spill] sm:$0xff]  ;;  %v15115_v45 = vld [vmem:[#allocation20_spill] sm:$0xff] }
 0x1a7   : >> { %v952_v41 = vrot.slane %v450_v53, 2  ;;  %v953_v43 = vrot.slane %v455_v35, 2  ;;  %v1176_v61 = vsel %vm1128_vm14, %v1170_v2, %v1079_v24  ;;  %v469_v37 = vsel %vm468_vm8, %v8512_v36, %v467_v63  ;;  %v8973_v53 = vld [vmem:[%s14656_s1 + $0x10] sm:$0xff]  ;;  %v8983_v35 = vld [vmem:[%s14656_s1 + $0x18] sm:$0xff] }
 0x1a8   : >> { %v474_v27 = vsel %vm468_vm8, %v467_v63, %v15113_v59  ;;  %1640 = vmatprep.subr.mxu1 %v1176_v61  ;;  %v8882_v26 = vsel %vm1093_vm3, %v8723_v52, %v8566_v17  ;;  %v2335_v62 = vsel %vm1114_vm11, %v8714_v28, %v2227_v40  ;;  %v970_v33 = vrot.slane %v469_v37, 1  ;;  %v15116_v59 = vld [vmem:[#allocation41_spill] sm:$0xff] }
 0x1a9   : >> { %v971_v48 = vrot.slane %v474_v27, 1  ;;  %1641 = vmatpush1.msra.mxu1 %v1175_v32  ;;  %v8888_v30 = vpop.permute.xlu0 %1954  ;;  %v1127_v36 = vsel %vm1121_vm13, %v1120_v49, %v953_v43  ;;  %v1126_v16 = vsel %vm1121_vm13, %v1119_v39, %v952_v41  ;;  %v2341_v4 = vsel %vm1121_vm13, %v2335_v62, %v2239_v50 }
 0x1aa   : >> { %v2334_v17 = vsel %vm1114_vm11, %v8683_v14, %v2226_v44  ;;  %v2287_v28 = vsel %vm1107_vm7, %v8768_v54, %v2137_v20  ;;  %v2292_v52 = vsel %vm1114_vm11, %v8812_v6, %v2148_v11  ;;  %v8903_v47 = vpop.permute.xlu1 %1956  ;;  %v1133_v2 = vsel %vm1128_vm14, %v1126_v16, %v970_v33 }
 0x1ab   : >> { %v1134_v40 = vsel %vm1128_vm14, %v1127_v36, %v971_v48  ;;  %v8910_v1 = vsel %vm1128_vm14, %v2341_v4, %v2257_v15  ;;  %v2340_v14 = vsel %vm1121_vm13, %v2334_v17, %v2238_v8  ;;  %v2179_v44 = vrot.slane %v8548_v10, 1 }
 0x1ac   : >> { %1642 = vmatprep.subr.mxu1 %v1134_v40  ;;  %v8919_v54 = vsel %vm1128_vm14, %v2340_v14, %v2256_v55  ;;  %v2293_v0 = vsel %vm1114_vm11, %v2287_v28, %v2149_v58  ;;  %v2298_v20 = vsel %vm1121_vm13, %v2292_v52, %v2160_v57  ;;  %v2495_v24 = vsel %vm1093_vm3, %v15115_v45, %v8099_v5  ;;  %v8962_v57 = vld [vmem:[%s14656_s1 + $0x8] sm:$0xff] }
 0x1ad   : >> { %1643 = vmatpush1.msra.mxu1 %v1133_v2  ;;  %v1959_v23 = vpop.permute.xlu0 %1958  ;;  %v2299_v15 = vsel %vm1121_vm13, %v2293_v0, %v2161_v31  ;;  %v8927_v38 = vsel %vm1128_vm14, %v2298_v20, %v2178_v25  ;;  %v15114_v25 = vld [vmem:[#allocation18_spill] sm:$0xff]  ;;  %v2492_v27 = vsel %vm1093_vm3, %v15116_v59, %v8132_v18 }
 0x1ae   : >> { %v1966_v10 = vsel %vm354_vm0, %v8903_v47, %v1959_v23  ;;  %6540 = vmatmul.mubr.msk.f32.vlgmr.msra.gmra.mxu1 %vm1403_vm15, %v8935_v13  ;;  %v8940_v55 = vsel %vm1128_vm14, %v2299_v15, %v2179_v44  ;;  %v8942_v8 = vpop.permute.xlu1 %1960  ;;  %v2494_v6 = vsel %vm1093_vm3, %v15114_v25, %v8082_v7 }
 0x1af   : >> { %v2368_v60 = vrot.slane %v1966_v10, 5  ;;  %1682 = vmatprep.mubr.f32.mxu1 %v15075_v51  ;;  %v1965_v50 = vsel %vm354_vm0, %v1959_v23, %v8942_v8 }
 0x1b0   : >> { %v2369_v11 = vrot.slane %v1965_v50, 5 }
 0x1b1   : >> { %v8952_v58 = vsel %vm1100_vm5, %v2494_v6, %v2368_v60  ;;  %v8954_v29 = vpop.permute.xlu0 %1952 }
 0x1b2   : >> { %6541 = vmatmul.mubr.msk.f32.gmra.mxu1 %vm1403_vm15, %v8962_v57  ;;  %v8967_v7 = vsel %vm1100_vm5, %v2495_v24, %v2369_v11  ;;  %v1973_v31 = vpop.permute.xlu1 %1972  ;;  %v1968_v63 = vsel %vm354_vm0, %v8954_v29, %v8888_v30 }
 0x1b3   : >> { %1688 = vmatprep.mubr.f32.mxu1 %v15075_v51  ;;  %v2366_v61 = vrot.slane %v1968_v63, 5 }
 0x1b5   : >> { %v1975_v12 = vpop.permute.xlu0 %1974  ;;  %v2498_v48 = vsel %vm1100_vm5, %v2492_v27, %v2366_v61 }
 0x1b6   : >> { %6542 = vmatmul.mubr.msk.f32.gmra.mxu1 %vm1403_vm15, %v8973_v53  ;;  %v1977_v5 = vpop.permute.xlu1 %1976 }
 0x1b7   : >> { %1694 = vmatprep.mubr.f32.mxu1 %v15075_v51 }
 0x1b9   : >> { %v8978_v56 = vpop.permute.xlu0 %1978 }
 0x1ba   : >> { %6543 = vmatmul.mubr.msk.f32.gmra.mxu1 %vm1403_vm15, %v8983_v35  ;;  %v8987_v49 = vpop.permute.xlu1 %2062 }
 0x1bb   : >> { %2622 = vmatprep.mubr.f32.mxu1 %v15075_v51 }
 0x1bd   : >> { %v2065_v39 = vpop.permute.xlu0 %2064 }
 0x1be   : >> { %v2067_v41 = vpop.permute.xlu1 %2066  ;;  %v2075_v15 = vsel %vm468_vm8, %v8987_v49, %v2065_v39 }
 0x1bf   : >> { %v2074_v25 = vsel %vm468_vm8, %v2065_v39, %v2067_v41  ;;  %v2457_v6 = vrot.slane %v2075_v15, 7 }
 0x1c0   : >> { %v2458_v61 = vrot.slane %v2074_v25, 7 }
 0x1c1   : >> { %v8994_v43 = vpop.permute.xlu0 %2068 }
 0x1c2   : >> { %v8996_v32 = vpop.permute.xlu1 %1970  ;;  %v2073_v11 = vsel %vm468_vm8, %v2067_v41, %v8994_v43 }
 0x1c3   : >> { %v1986_v37 = vsel %vm373_vm4, %v8996_v32, %v1973_v31 }
 0x1c4   : >> { %v2384_v62 = vrot.slane %v1986_v37, 4 }
 0x1c5   : >> { %v9004_v33 = vpop.permute.xlu0 %1990 }
 0x1c6   : >> { %v9008_v36 = vsel %vm1107_vm7, %v2498_v48, %v2384_v62  ;;  %v1993_v16 = vpop.permute.xlu1 %1992  ;;  %v1967_v62 = vsel %vm354_vm0, %v8888_v30, %v8903_v47  ;;  %v2459_v48 = vrot.slane %v2073_v11, 7  ;;  %v1983_v30 = vsel %vm373_vm4, %v1977_v5, %v8978_v56 }
 0x1c9   : >> { %v1995_v4 = vpop.permute.xlu0 %1994 }
 0x1ca   : >> { %v9010_v17 = vpop.permute.xlu1 %1996 }
 0x1cd   : >> { %v9012_v28 = vpop.permute.xlu0 %2060 }
 0x1ce   : >> { %v9014_v52 = vpop.permute.xlu1 %2080 }
 0x1d1   : >> { %v2083_v40 = vpop.permute.xlu0 %2082 }
 0x1d2   : >> { %v2085_v2 = vpop.permute.xlu1 %2084  ;;  %v2093_v10 = vsel %vm487_vm1, %v9014_v52, %v2083_v40 }
 0x1d3   : >> { %v2092_v45 = vsel %vm487_vm1, %v2083_v40, %v2085_v2  ;;  %v2475_v24 = vrot.slane %v2093_v10, 6  ;;  %v1985_v10 = vsel %vm373_vm4, %v1973_v31, %v1975_v12 }
 0x1d4   : >> { %v2476_v40 = vrot.slane %v2092_v45, 6 }
 0x1d5   : >> { %v9016_v14 = vpop.permute.xlu0 %2086 }
 0x1d6   : >> { %v9018_v18 = vpop.permute.xlu1 %1988  ;;  %v2091_v37 = vsel %vm487_vm1, %v2085_v2, %v9016_v14 }
 0x1d7   : >> { %v2477_v25 = vrot.slane %v2091_v37, 6 }
 0x1d9   : >> { %v9020_v44 = vpop.permute.xlu0 %2008 }
 0x1da   : >> { %v2011_v0 = vpop.permute.xlu1 %2010 }
 0x1dd   : >> { %v2013_v20 = vpop.permute.xlu0 %2012 }
 0x1de   : >> { %v9022_v23 = vpop.permute.xlu1 %2014 }
 0x1e1   : >> { %v9030_v60 = vpop.permute.xlu0 %2044 }
 0x1e2   : >> { %v2047_v50 = vpop.permute.xlu1 %2046 }
 0x1e3   : >> { %v2057_v63 = vsel %vm449_vm10, %v9030_v60, %v2047_v50 }
 0x1e4   : >> { %v2529_v39 = vsel %vm1086_vm2, %v2057_v63, %v2457_v6  ;;  %v2385_v63 = vrot.slane %v1985_v10, 4 }
 0x1e5   : >> { %v2049_v59 = vpop.permute.xlu0 %2048  ;;  %v2535_v27 = vsel %vm1093_vm3, %v2529_v39, %v2475_v24  ;;  %v2367_v24 = vrot.slane %v1967_v62, 5  ;;  %v2387_v39 = vrot.slane %v1983_v30, 4  ;;  %v2076_v30 = vsel %vm468_vm8, %v9012_v28, %v8987_v49 }
 0x1e6   : >> { %v2056_v41 = vsel %vm449_vm10, %v2047_v50, %v2049_v59  ;;  %v9053_v15 = vpop.permute.xlu1 %2050  ;;  %6547 = vmatprep.subr.msk.mxu1 %vm1100_vm5, %v2535_v27  ;;  %v1984_v50 = vsel %vm373_vm4, %v1975_v12, %v1977_v5  ;;  %v15117_v5 = vld [vmem:[#allocation32_spill] sm:$0xff]  ;;  %v2001_v27 = vsel %vm392_vm6, %v1995_v4, %v9010_v17 }
 0x1e7   : >> { %v2530_v2 = vsel %vm1086_vm2, %v2056_v41, %v2458_v61  ;;  %v2055_v6 = vsel %vm449_vm10, %v2049_v59, %v9053_v15  ;;  %v2002_v61 = vsel %vm392_vm6, %v1993_v16, %v1995_v4  ;;  %v2386_v12 = vrot.slane %v1984_v50, 4 }
 0x1e8   : >> { %v2531_v47 = vsel %vm1086_vm2, %v2055_v6, %v2459_v48  ;;  %v2536_v45 = vsel %vm1093_vm3, %v2530_v2, %v2476_v40  ;;  %v2493_v59 = vsel %vm1093_vm3, %v15117_v5, %v8086_v9  ;;  %v2404_v48 = vrot.slane %v2002_v61, 3 }
 0x1e9   : >> { %v9068_v11 = vpop.permute.xlu0 %2078  ;;  %v2537_v31 = vsel %vm1093_vm3, %v2531_v47, %v2477_v25  ;;  %v2499_v62 = vsel %vm1100_vm5, %v2493_v59, %v2367_v24  ;;  %v2019_v40 = vsel %vm411_vm9, %v2013_v20, %v9022_v23  ;;  %v2020_v2 = vsel %vm411_vm9, %v2011_v0, %v2013_v20 }
 0x1ea   : >> { %v9074_v37 = vpop.permute.xlu1 %2006  ;;  %6553 = vmatprep.subr.msk.mxu0 %vm1100_vm5, %v2537_v31  ;;  %v2505_v10 = vsel %vm1107_vm7, %v2499_v62, %v2385_v63  ;;  %v2003_v9 = vsel %vm392_vm6, %v9004_v33, %v1993_v16  ;;  %v2506_v4 = vsel %vm1107_vm7, %v8952_v58, %v2386_v12  ;;  %v2507_v6 = vsel %vm1107_vm7, %v8967_v7, %v2387_v39 }
 0x1eb   : >> { %6554 = vmatpush1.msk.msra.mxu0 %vm1100_vm5, %v2536_v45  ;;  %v2405_v50 = vrot.slane %v2001_v27, 3  ;;  %v2004_v20 = vsel %vm392_vm6, %v9018_v18, %v9004_v33  ;;  %v2021_v16 = vsel %vm411_vm9, %v9020_v44, %v2011_v0  ;;  %v2422_v47 = vrot.slane %v2020_v2, 2 }
 0x1ec   : >> { %v2423_v58 = vrot.slane %v2019_v40, 2  ;;  %v2403_v24 = vrot.slane %v2003_v9, 3  ;;  %v2512_v49 = vsel %vm1114_vm11, %v2506_v4, %v2404_v48  ;;  %v2456_v63 = vrot.slane %v2076_v30, 7 }
 0x1ed   : >> { %v2027_v41 = vpop.permute.xlu0 %2026  ;;  %v2022_v33 = vsel %vm411_vm9, %v9074_v37, %v9020_v44  ;;  %v2094_v0 = vsel %vm487_vm1, %v9068_v11, %v9014_v52  ;;  %v2402_v39 = vrot.slane %v2004_v20, 3  ;;  %v2421_v5 = vrot.slane %v2021_v16, 2 }
 0x1ee   : >> { %v2029_v25 = vpop.permute.xlu1 %2028  ;;  %v2513_v27 = vsel %vm1114_vm11, %v2507_v6, %v2405_v50  ;;  %v2518_v2 = vsel %vm1121_vm13, %v2512_v49, %v2422_v47  ;;  %v2420_v52 = vrot.slane %v2022_v33, 2  ;;  %v2474_v9 = vrot.slane %v2094_v0, 6 }
 0x1ef   : >> { %v2039_v7 = vsel %vm430_vm12, %v2027_v41, %v2029_v25  ;;  %v2519_v44 = vsel %vm1121_vm13, %v2513_v27, %v2423_v58  ;;  %v2511_v20 = vsel %vm1114_vm11, %v2505_v10, %v2403_v24 }
 0x1f0   : >> { %v2439_v62 = vrot.slane %v2039_v7, 1  ;;  %v2517_v58 = vsel %vm1121_vm13, %v2511_v20, %v2421_v5 }
 0x1f1   : >> { %v2031_v45 = vpop.permute.xlu0 %2030 }
 0x1f2   : >> { %v2038_v31 = vsel %vm430_vm12, %v2029_v25, %v2031_v45  ;;  %v9122_v61 = vpop.permute.xlu1 %2032 }
 0x1f3   : >> { %v2440_v12 = vrot.slane %v2038_v31, 1  ;;  %v2037_v59 = vsel %vm430_vm12, %v2031_v45, %v9122_v61  ;;  %v2523_v31 = vsel %vm1128_vm14, %v2517_v58, %v2439_v62 }
 0x1f4   : >> { %v2441_v48 = vrot.slane %v2037_v59, 1 }
 0x1f5   : >> { %v9128_v40 = vpop.permute.xlu0 %2042  ;;  %v2524_v4 = vsel %vm1128_vm14, %v2518_v2, %v2440_v12  ;;  %v15120_v12 = vld [vmem:[#allocation61_spill] sm:$0xff] }
 0x1f6   : >> { %v2058_v25 = vsel %vm449_vm10, %v9128_v40, %v9030_v60  ;;  %v9137_v30 = vpop.permute.xlu1 %2024  ;;  %v2525_v50 = vsel %vm1128_vm14, %v2519_v44, %v2441_v48  ;;  %v2510_v60 = vsel %vm1114_vm11, %v9008_v36, %v2402_v39  ;;  %v15121_v39 = vld [vmem:[#allocation42_spill] sm:$0xff]  ;;  %v2496_v48 = vsel %vm1093_vm3, %v8719_v19, %v8106_v42 }
 0x1f7   : >> { %v2528_v6 = vsel %vm1086_vm2, %v2058_v25, %v2456_v63  ;;  %v2040_v16 = vsel %vm430_vm12, %v9137_v30, %v2027_v41  ;;  %2673 = vmatprep.subr.mxu0 %v2525_v50  ;;  %v2516_v10 = vsel %vm1121_vm13, %v2510_v60, %v2420_v52 }
 0x1f8   : >> { %v2534_v47 = vsel %vm1093_vm3, %v2528_v6, %v2474_v9  ;;  %v2438_v45 = vrot.slane %v2040_v16, 1  ;;  %2674 = vmatpush1.msra.mxu0 %v2524_v4 }
 0x1f9   : >> { %6548 = vmatpush1.msk.msra.mxu1 %vm1100_vm5, %v2534_v47  ;;  %v1963_v7 = vpop.permute.xlu0 %1962  ;;  %2675 = vmatprep.subr.mxu0 %v8366_v22 }
 0x1fa   : >> { %v1969_v41 = vsel %vm354_vm0, %v1963_v7, %v8954_v29  ;;  %2584 = vmatprep.subr.mxu1 %v2523_v31  ;;  %v1981_v24 = vpop.permute.xlu1 %1980  ;;  %2676 = vmatpush1.msra.mxu0 %v8346_v34  ;;  %v2522_v49 = vsel %vm1128_vm14, %v2516_v10, %v2438_v45  ;;  %v1964_v29 = vsel %vm354_vm0, %v8942_v8, %v1963_v7  ;;  %v15118_v34 = vld [vmem:[#allocation50_spill] sm:$0xff] }
 0x1fb   : >> { %v2371_v36 = vrot.slane %v1969_v41, 5  ;;  %v1987_v63 = vsel %vm373_vm4, %v1981_v24, %v8996_v32  ;;  %2677 = vmatprep.subr.mxu0 %v8496_v46  ;;  %2585 = vmatpush1.msra.mxu1 %v2522_v49  ;;  %v15119_v32 = vld [vmem:[#allocation55_spill] sm:$0xff] }
 0x1fc   : >> { %v2389_v22 = vrot.slane %v1987_v63, 4  ;;  %2678 = vmatpush1.msra.mxu0 %v8476_v3  ;;  %2586 = vmatprep.subr.mxu1 %v15118_v34  ;;  %v2370_v3 = vrot.slane %v1964_v29, 5 }
 0x1fd   : >> { %v2503_v33 = vsel %vm1100_vm5, %v8882_v26, %v2371_v36  ;;  %v2071_v0 = vpop.permute.xlu0 %2070  ;;  %6555 = vmatmul.mubr.msk.f32.vlgmr.msra.gmra.mxu0 %vm1403_vm15, %v8935_v13  ;;  %2587 = vmatpush1.msra.mxu1 %v15119_v32  ;;  %v1982_v26 = vsel %vm373_vm4, %v8978_v56, %v1981_v24 }
 0x1fe   : >> { %v1999_v46 = vpop.permute.xlu1 %1998  ;;  %2588 = vmatprep.subr.mxu1 %v15120_v12  ;;  %2717 = vmatprep.mubr.f32.mxu0 %v15075_v51  ;;  %v2509_v8 = vsel %vm1107_vm7, %v2503_v33, %v2389_v22  ;;  %v2072_v5 = vsel %vm468_vm8, %v8994_v43, %v2071_v0  ;;  %v2077_v62 = vsel %vm468_vm8, %v2071_v0, %v9012_v28  ;;  %v2388_v43 = vrot.slane %v1982_v26, 4 }
 0x1ff   : >> { %2589 = vmatpush1.msra.mxu1 %v15121_v39  ;;  %v2005_v27 = vsel %vm392_vm6, %v1999_v46, %v9018_v18  ;;  %v2502_v28 = vsel %vm1100_vm5, %v2496_v48, %v2370_v3  ;;  %v2460_v52 = vrot.slane %v2072_v5, 7  ;;  %v2461_v9 = vrot.slane %v2077_v62, 7 }
 0x200   : >> { %6549 = vmatmul.mubr.msk.f32.vlgmr.msra.gmra.mxu1 %vm1403_vm15, %v8935_v13  ;;  %v2407_v19 = vrot.slane %v2005_v27, 3  ;;  %v2508_v41 = vsel %vm1107_vm7, %v2502_v28, %v2388_v43 }
 0x201   : >> { %v2089_v59 = vpop.permute.xlu0 %2088  ;;  %6556 = vmatmul.mubr.msk.f32.gmra.mxu0 %vm1403_vm15, %v8962_v57  ;;  %2628 = vmatprep.mubr.f32.mxu1 %v15075_v51 }
 0x202   : >> { %v2090_v56 = vsel %vm487_vm1, %v9016_v14, %v2089_v59  ;;  %v2017_v44 = vpop.permute.xlu1 %2016  ;;  %v2095_v18 = vsel %vm487_vm1, %v2089_v59, %v9068_v11  ;;  %2723 = vmatprep.mubr.f32.mxu0 %v15075_v51  ;;  %v2000_v14 = vsel %vm392_vm6, %v9010_v17, %v1999_v46  ;;  %v2515_v31 = vsel %vm1114_vm11, %v2509_v8, %v2407_v19 }
 0x203   : >> { %v2018_v2 = vsel %vm411_vm9, %v9022_v23, %v2017_v44  ;;  %v2023_v42 = vsel %vm411_vm9, %v2017_v44, %v9074_v37  ;;  %v2478_v11 = vrot.slane %v2090_v56, 6  ;;  %v2479_v6 = vrot.slane %v2095_v18, 6 }
 0x204   : >> { %6550 = vmatmul.mubr.msk.f32.gmra.mxu1 %vm1403_vm15, %v8962_v57  ;;  %v2425_v4 = vrot.slane %v2023_v42, 2  ;;  %v2406_v37 = vrot.slane %v2000_v14, 3  ;;  %v2424_v50 = vrot.slane %v2018_v2, 2 }
 0x205   : >> { %v2053_v25 = vpop.permute.xlu0 %2052  ;;  %6557 = vmatmul.mubr.msk.f32.gmra.mxu0 %vm1403_vm15, %v8973_v53  ;;  %2634 = vmatprep.mubr.f32.mxu1 %v15075_v51 }
 0x206   : >> { %v2054_v17 = vsel %vm449_vm10, %v9053_v15, %v2053_v25  ;;  %v2059_v23 = vsel %vm449_vm10, %v2053_v25, %v9128_v40  ;;  %v2035_v20 = vpop.permute.xlu1 %2034  ;;  %2729 = vmatprep.mubr.f32.mxu0 %v15075_v51 }
 0x207   : >> { %v2532_v16 = vsel %vm1086_vm2, %v2054_v17, %v2460_v52  ;;  %v2533_v47 = vsel %vm1086_vm2, %v2059_v23, %v2461_v9  ;;  %v2036_v58 = vsel %vm430_vm12, %v9122_v61, %v2035_v20  ;;  %v2041_v15 = vsel %vm430_vm12, %v2035_v20, %v9137_v30 }
 0x208   : >> { %v2539_v40 = vsel %vm1093_vm3, %v2533_v47, %v2479_v6  ;;  %v2538_v60 = vsel %vm1093_vm3, %v2532_v16, %v2478_v11  ;;  %v2442_v45 = vrot.slane %v2036_v58, 1  ;;  %v2443_v7 = vrot.slane %v2041_v15, 1  ;;  %6551 = vmatmul.mubr.msk.f32.gmra.mxu1 %vm1403_vm15, %v8973_v53 }
 0x209   : >> { %6559 = vmatprep.subr.msk.mxu1 %vm1100_vm5, %v2539_v40  ;;  %6558 = vmatmul.mubr.msk.f32.gmra.mxu0 %vm1403_vm15, %v8983_v35  ;;  %v2521_v61 = vsel %vm1121_vm13, %v2515_v31, %v2425_v4  ;;  %v2514_v30 = vsel %vm1114_vm11, %v2508_v41, %v2406_v37 }
 0x20a   : >> { %6560 = vmatpush1.msk.msra.mxu1 %vm1100_vm5, %v2538_v60  ;;  %2640 = vmatprep.mubr.f32.mxu1 %v15075_v51  ;;  %v2527_v10 = vsel %vm1128_vm14, %v2521_v61, %v2443_v7  ;;  %v2520_v24 = vsel %vm1121_vm13, %v2514_v30, %v2424_v50 }
 0x20b   : >> { %2762 = vmatprep.subr.mxu1 %v2527_v10  ;;  %v2526_v36 = vsel %vm1128_vm14, %v2520_v24, %v2442_v45 }
 0x20c   : >> { %6552 = vmatmul.mubr.msk.f32.gmra.mxu1 %vm1403_vm15, %v8983_v35 }
 0x20d   : >> { %2763 = vmatpush1.msra.mxu1 %v2526_v36  ;;  %2800 = vmatprep.mubr.f32.mxu1 %v15075_v51 }
 0x20e   : >> { %2764 = vmatprep.subr.mxu1 %v8910_v1  ;;  %v1500_v1 = vpop.f32.mrf.mxu1 }
 0x20f   : >> { %2765 = vmatpush1.msra.mxu1 %v8919_v54 }
 0x210   : >> { %2766 = vmatprep.subr.mxu1 %v8940_v55  ;;  %v1502_v54 = vpop.f32.mrf.mxu1 }
 0x211   : >> { %2767 = vmatpush1.msra.mxu1 %v8927_v38 }
 0x212   : >> { %6561 = vmatmul.mubr.msk.f32.vlgmr.msra.gmra.mxu1 %vm1403_vm15, %v8935_v13  ;;  %v9267_v38 = vpop.f32.mrf.mxu1 }
 0x213   : >> { %2806 = vmatprep.mubr.f32.mxu1 %v15075_v51 }
 0x214   : >> { %v1508_v13 = vpop.f32.mrf.mxu1 }
 0x216   : >> { %6562 = vmatmul.mubr.msk.f32.gmra.mxu1 %vm1403_vm15, %v8962_v57  ;;  %v9269_v55 = vpop.f32.mrf.mxu1  ;;  %v9273_v57 = vpop.permute.xlu0 %1385 }
 0x217   : >> { %2812 = vmatprep.mubr.f32.mxu1 %v15075_v51  ;;  %v9353_v45 = vadd.f32 %v1500_v1, %v9273_v57 }
 0x218   : >> { %v1514_v49 = vpop.f32.mrf.mxu1 }
 0x21a   : >> { %6563 = vmatmul.mubr.msk.f32.gmra.mxu1 %vm1403_vm15, %v8973_v53  ;;  %v9271_v63 = vpop.f32.mrf.mxu1  ;;  %v9278_v53 = vadd.f32 %v1502_v54, %v9273_v57  ;;  %v9310_v48 = vpop.permute.xlu1 %1390 }
 0x21b   : >> { %2818 = vmatprep.mubr.f32.mxu1 %v15075_v51  ;;  %v9318_v2 = vadd.f32 %v1508_v13, %v9310_v48 }
 0x21c   : >> { %v9275_v22 = vpop.f32.mrf.mxu1  ;;  %v14784_v29 = vmax.f32 %v9278_v53, 0.0 }
 0x21d   : >> { %v14755_v20 = vmax.f32 %v9318_v2, 0.0 }
 0x21e   : >> { %6564 = vmatmul.mubr.msk.f32.gmra.mxu1 %vm1403_vm15, %v8983_v35  ;;  %v9350_v60 = vpop.permute.xlu1 %1395 }
 0x21f   : >> { %v9372_v54 = vadd.f32 %v1514_v49, %v9350_v60 }
 0x23c   : >> { %v1589_v51 = vpop.f32.mrf.mxu1 }
 0x23d   : >> { %v9281_v35 = vadd.f32 %v1589_v51, %v9273_v57 }
 0x23e   : >> { %v1591_v0 = vpop.f32.mrf.mxu1 }
 0x23f   : >> { %v14783_v33 = vmax.f32 %v9281_v35, 0.0  ;;  %v9328_v11 = vadd.f32 %v1591_v0, %v9273_v57  ;;  %v14772_v0 = vmax.f32 %v9353_v45, 0.0 }
 0x240   : >> { %v1595_v32 = vpop.f32.mrf.mxu1 }
 0x241   : >> { %v6681_v34 = vpack.i.bf16 %v14783_v33, %v14784_v29  ;;  %v9321_v42 = vadd.f32 %v1595_v32, %v9310_v48  ;;  %v14752_v40 = vmax.f32 %v9328_v11, 0.0 }
 0x242   : >> { %v1597_v46 = vpop.f32.mrf.mxu1 }
 0x243   : >> { %6682 = vrot.lane.b32.xlu1 %v6681_v34, %s6997_s19  ;;  %v14757_v16 = vmax.f32 %v9321_v42, 0.0  ;;  %v9378_v34 = vadd.f32 %v1597_v46, %v9310_v48 }
 0x244   : >> { %v1601_v12 = vpop.f32.mrf.mxu1 }
 0x245   : >> { %v6701_v1 = vpack.i.bf16 %v14757_v16, %v14755_v20  ;;  %v9375_v13 = vadd.f32 %v1601_v12, %v9350_v60 }
 0x246   : >> { %v9290_v8 = vpop.f32.mrf.mxu1 }
 0x249   : >> { %v9292_v26 = vpop.f32.mrf.mxu1 }
 0x24b   : >> { %v9294_v3 = vpop.f32.mrf.mxu1 }
 0x26e   : >> { %v9296_v39 = vpop.f32.mrf.mxu1 }
 0x270   : >> { %v9298_v5 = vpop.f32.mrf.mxu1 }
 0x272   : >> { %v9300_v59 = vpop.f32.mrf.mxu1 }
 0x274   : >> { %v9302_v27 = vpop.f32.mrf.mxu1 }
 0x276   : >> { %v9304_v62 = vpop.f32.mrf.mxu1 }
 0x278   : >> { %v9306_v56 = vpop.f32.mrf.mxu1 }
 0x27a   : >> { %v9308_v43 = vpop.f32.mrf.mxu1 }
 0x27c   : >> { %v9315_v28 = vpop.f32.mrf.mxu1 }
 0x2bd   : >> { %v2713_v44 = vpop.f32.mrf.mxu0 }
 0x2be   : >> { %v9313_v18 = vadd.f32 %v2713_v44, %v9273_v57 }
 0x2bf   : >> { %v2715_v14 = vpop.f32.mrf.mxu0 }
 0x2c0   : >> { %v14781_v19 = vmax.f32 %v9313_v18, 0.0  ;;  %v9325_v52 = vadd.f32 %v2715_v14, %v9273_v57  ;;  %v2624_v9 = vpop.f32.mrf.mxu1 }
 0x2c1   : >> { %v2719_v25 = vpop.f32.mrf.mxu0  ;;  %v9335_v23 = vadd.f32 %v2624_v9, %v9273_v57 }
 0x2c2   : >> { %v14750_v4 = vmax.f32 %v9325_v52, 0.0  ;;  %v9332_v6 = vadd.f32 %v2719_v25, %v9310_v48  ;;  %v2626_v17 = vpop.f32.mrf.mxu1 }
 0x2c3   : >> { %v9338_v37 = vadd.f32 %v2626_v17, %v9273_v57  ;;  %v2721_v50 = vpop.f32.mrf.mxu0  ;;  %v14767_v10 = vmax.f32 %v9335_v23, 0.0  ;;  %v14756_v17 = vmax.f32 %v9372_v54, 0.0 }
 0x2c4   : >> { %v6691_v47 = vpack.i.bf16 %v14750_v4, %v14781_v19  ;;  %v9347_v58 = vadd.f32 %v2721_v50, %v9310_v48  ;;  %v2630_v15 = vpop.f32.mrf.mxu1  ;;  %v14751_v41 = vmax.f32 %v9332_v6, 0.0  ;;  %v14766_v50 = vmax.f32 %v9375_v13, 0.0 }
 0x2c5   : >> { %v14782_v7 = vmax.f32 %v9338_v37, 0.0  ;;  %v2725_v31 = vpop.f32.mrf.mxu0  ;;  %v6696_v14 = vpack.i.bf16 %v14767_v10, %v14772_v0  ;;  %v9398_v9 = vadd.f32 %v2630_v15, %v9310_v48 }
 0x2c6   : >> { %15122 = vst [vmem:[#allocation30_spill] sm:$0xff] %v9347_v58  ;;  %v14749_v61 = vmax.f32 %v9347_v58, 0.0  ;;  %6692 = vrot.lane.b32.xlu1 %v6691_v47, %s6997_s19  ;;  %v2632_v30 = vpop.f32.mrf.mxu1  ;;  %v9387_v49 = vadd.f32 %v2725_v31, %v9350_v60  ;;  %v9403_v47 = vpop.permute.xlu0 %1400  ;;  %v14754_v31 = vmax.f32 %v9378_v34, 0.0 }
 0x2c7   : >> { %v6686_v24 = vpack.i.bf16 %v14782_v7, %v14752_v40  ;;  %v9365_v36 = vadd.f32 %v2632_v30, %v9310_v48  ;;  %v2727_v32 = vpop.f32.mrf.mxu0  ;;  %v9408_v30 = vadd.f32 %v9267_v38, %v9310_v48  ;;  %v9436_v40 = vadd.f32 %v9290_v8, %v9350_v60 }
 0x2c8   : >> { %v2636_v51 = vpop.f32.mrf.mxu1  ;;  %v6711_v44 = vpack.i.bf16 %v14749_v61, %v14751_v41  ;;  %v9390_v12 = vadd.f32 %v2727_v32, %v9350_v60  ;;  %v14759_v15 = vmax.f32 %v9387_v49, 0.0  ;;  %v14760_v61 = vmax.f32 %v9398_v9, 0.0 }
 0x2c9   : >> { %6687 = vrot.lane.b32.xlu0 %v6686_v24, %s6997_s19  ;;  %v14753_v25 = vmax.f32 %v9365_v36, 0.0  ;;  %v2731_v24 = vpop.f32.mrf.mxu0  ;;  %v9428_v41 = vadd.f32 %v9275_v22, %v9403_v47  ;;  %v9450_v8 = vadd.f32 %v2636_v51, %v9350_v60 }
 0x2ca   : >> { %15123 = vst [vmem:[#allocation21_spill] sm:$0xff] %v9390_v12  ;;  %6702 = vrot.lane.b32.xlu1 %v6701_v1, %s6997_s19  ;;  %v2638_v46 = vpop.f32.mrf.mxu1  ;;  %v14758_v32 = vmax.f32 %v9390_v12, 0.0  ;;  %v9465_v51 = vadd.f32 %v2731_v24, %v9403_v47  ;;  %v9482_v24 = vadd.f32 %v9298_v5, %v9273_v57 }
 0x2cb   : >> { %v6706_v4 = vpack.i.bf16 %v14753_v25, %v14754_v31  ;;  %v9420_v38 = vadd.f32 %v2638_v46, %v9350_v60  ;;  %v14761_v46 = vmax.f32 %v9408_v30, 0.0  ;;  %v2733_v25 = vpop.f32.mrf.mxu0 }
 0x2cc   : >> { %v2642_v1 = vpop.f32.mrf.mxu1  ;;  %v6731_v22 = vpack.i.bf16 %v14758_v32, %v14759_v15  ;;  %v14763_v32 = vmax.f32 %v9436_v40, 0.0  ;;  %15125 = vst [vmem:[#allocation37_spill] sm:$0xff] %v9465_v51  ;;  %15126 = vst [vmem:[#allocation38_spill] sm:$0xff] %v9482_v24 }
 0x2cd   : >> { %6697 = vrot.lane.b32.xlu0 %v6696_v14, %s6997_s19  ;;  %v6721_v14 = vpack.i.bf16 %v14766_v50, %v14756_v17  ;;  %v14762_v20 = vmax.f32 %v9420_v38, 0.0  ;;  %v9454_v17 = vadd.f32 %v2733_v25, %v9403_v47  ;;  %v14768_v25 = vmax.f32 %v9450_v8, 0.0 }
 0x2ce   : >> { %6712 = vrot.lane.b32.xlu1 %v6711_v44, %s6997_s19  ;;  %v9432_v44 = vadd.f32 %v9292_v26, %v9403_v47  ;;  %v2644_v31 = vpop.f32.mrf.mxu1  ;;  %v6716_v26 = vpack.i.bf16 %v14760_v61, %v14761_v46  ;;  %v14774_v50 = vmax.f32 %v9482_v24, 0.0 }
 0x2cf   : >> { %15124 = vst [vmem:[#allocation35_spill] sm:$0xff] %v9454_v17  ;;  %v6726_v61 = vpack.i.bf16 %v14762_v20, %v14763_v32  ;;  %v9474_v46 = vadd.f32 %v2644_v31, %v9403_v47  ;;  %v9491_v20 = vadd.f32 %v9294_v3, %v9403_v47 }
 0x2d0   : >> { %v14764_v16 = vmax.f32 %v9432_v44, 0.0 }
 0x2d1   : >> { %6707 = vrot.lane.b32.xlu0 %v6706_v4, %s6997_s19  ;;  %v14765_v4 = vmax.f32 %v9428_v41, 0.0  ;;  %15127 = vst [vmem:[#allocation13_spill] sm:$0xff] %v9491_v20  ;;  %v14777_v3 = vmax.f32 %v9474_v46, 0.0  ;;  %v14773_v10 = vmax.f32 %v9491_v20, 0.0  ;;  %v9746_v20 = vadd.f32 %v9302_v27, %v9310_v48  ;;  %v3102_v27 = vld [vmem:[%s14658_s3 + $0x128] sm:$0xff] }
 0x2d2   : >> { %6722 = vrot.lane.b32.xlu1 %v6721_v14, %s6997_s19  ;;  %v9461_v14 = vadd.f32 %v9269_v55, %v9350_v60  ;;  %v2802_v15 = vpop.f32.mrf.mxu1  ;;  %v9478_v55 = vadd.f32 %v9296_v39, %v9273_v57  ;;  %v14770_v39 = vmax.f32 %v9465_v51, 0.0 }
 0x2d3   : >> { %15130 = vst [vmem:[#allocation47_spill] sm:$0xff] %v9746_v20 }
 0x2d4   : >> { %v14771_v31 = vmax.f32 %v9461_v14, 0.0  ;;  %v2804_v32 = vpop.f32.mrf.mxu1 }
 0x2d5   : >> { %6717 = vrot.lane.b32.xlu0 %v6716_v26, %s6997_s19  ;;  %v6741_v26 = vpack.i.bf16 %v14764_v16, %v14765_v4  ;;  %v9502_v16 = vadd.f32 %v2642_v1, %v9403_v47  ;;  %v14780_v4 = vmax.f32 %v9478_v55, 0.0  ;;  %v9517_v1 = vadd.f32 %v9271_v63, %v9403_v47  ;;  %v3094_v63 = vld [vmem:[%s14658_s3 + $0xe8] sm:$0xff] }
 0x2d6   : >> { %6732 = vrot.lane.b32.xlu1 %v6731_v22, %s6997_s19  ;;  %v14769_v22 = vmax.f32 %v9454_v17, 0.0  ;;  %v6736_v5 = vpack.i.bf16 %v14768_v25, %v14771_v31  ;;  %v9521_v25 = vadd.f32 %v2802_v15, %v9273_v57  ;;  %v3093_v15 = vld [vmem:[%s14658_s3 + $0xe0] sm:$0xff]  ;;  %v3092_v31 = vld [vmem:[%s14658_s3 + $0xd8] sm:$0xff] }
 0x2d7   : >> { %v14779_v0 = vmax.f32 %v9517_v1, 0.0 }
 0x2d9   : >> { %6727 = vrot.lane.b32.xlu0 %v6726_v61, %s6997_s19  ;;  %v6751_v61 = vpack.i.bf16 %v14769_v22, %v14770_v39  ;;  %v3096_v22 = vld [vmem:[%s14658_s3 + $0xf8] sm:$0xff]  ;;  %v14778_v39 = vmax.f32 %v9502_v16, 0.0 }
 0x2da   : >> { %6742 = vrot.lane.b32.xlu1 %v6741_v26, %s6997_s19  ;;  %v9512_v26 = vadd.f32 %v2804_v32, %v9273_v57  ;;  %v3095_v32 = vld [vmem:[%s14658_s3 + $0xf0] sm:$0xff]  ;;  %v6746_v57 = vpack.i.bf16 %v14777_v3, %v14773_v10  ;;  %3257 = vmatprep.subr.mxu0 %v3096_v22  ;;  %v14776_v10 = vmax.f32 %v9521_v25, 0.0 }
 0x2db   : >> { %3258 = vmatpush1.msra.mxu0 %v3095_v32  ;;  %v3091_v22 = vld [vmem:[%s14658_s3 + $0xd0] sm:$0xff]  ;;  %v3090_v32 = vld [vmem:[%s14658_s3 + $0xc8] sm:$0xff] }
 0x2dc   : >> { %15128 = vst [vmem:[#allocation45_spill] sm:$0xff] %v9512_v26  ;;  %3259 = vmatprep.subr.mxu0 %v3094_v63  ;;  %v3089_v63 = vld [vmem:[%s14658_s3 + $0xc0] sm:$0xff] }
 0x2dd   : >> { %6737 = vrot.lane.b32.xlu0 %v6736_v5, %s6997_s19  ;;  %v6761_v5 = vpack.i.bf16 %v14774_v50, %v14780_v4  ;;  %3260 = vmatpush1.msra.mxu0 %v3093_v15  ;;  %v6756_v50 = vpack.i.bf16 %v14778_v39, %v14779_v0  ;;  %v3088_v15 = vld [vmem:[%s14658_s3 + $0xb8] sm:$0xff]  ;;  %v3107_v39 = vld [vmem:[%s14658_s3 + $0x150] sm:$0xff]  ;;  %v15129_v4 = vmax.f32 %v9278_v53, 0.0 }
 0x2de   : >> { %6752 = vrot.lane.b32.xlu1 %v6751_v61, %s6997_s19  ;;  %v14775_v61 = vmax.f32 %v9512_v26, 0.0  ;;  %3261 = vmatprep.subr.mxu0 %v3092_v31  ;;  %v3087_v31 = vld [vmem:[%s14658_s3 + $0xb0] sm:$0xff]  ;;  %v3101_v26 = vld [vmem:[%s14658_s3 + $0x120] sm:$0xff] }
 0x2df   : >> { %3262 = vmatpush1.msra.mxu0 %v3091_v22  ;;  %v3085_v22 = vld [vmem:[%s14658_s3 + $0xa0] sm:$0xff]  ;;  %v3103_v53 = vld [vmem:[%s14658_s3 + $0x130] sm:$0xff] }
 0x2e0   : >> { %3263 = vmatprep.subr.mxu0 %v3090_v32  ;;  %v3083_v32 = vld [vmem:[%s14658_s3 + $0x90] sm:$0xff] }
 0x2e1   : >> { %6747 = vrot.lane.b32.xlu0 %v6746_v57, %s6997_s19  ;;  %v6766_v57 = vpack.i.bf16 %v14775_v61, %v14776_v10  ;;  %3264 = vmatpush1.msra.mxu0 %v3089_v63  ;;  %v3082_v63 = vld [vmem:[%s14658_s3 + $0x88] sm:$0xff] }
 0x2e2   : >> { %6762 = vrot.lane.b32.xlu1 %v6761_v5, %s6997_s19  ;;  %v3086_v5 = vld [vmem:[%s14658_s3 + $0xa8] sm:$0xff]  ;;  %3265 = vmatprep.subr.mxu0 %v3088_v15  ;;  %v3080_v15 = vld [vmem:[%s14658_s3 + $0x78] sm:$0xff] }
 0x2e3   : >> { %3266 = vmatpush1.msra.mxu0 %v3087_v31  ;;  %v3079_v31 = vld [vmem:[%s14658_s3 + $0x70] sm:$0xff] }
 0x2e4   : >> { %3267 = vmatprep.subr.mxu0 %v3086_v5  ;;  %v3078_v5 = vld [vmem:[%s14658_s3 + $0x68] sm:$0xff] }
 0x2e5   : >> { %6757 = vrot.lane.b32.xlu0 %v6756_v50, %s6997_s19  ;;  %v3084_v50 = vld [vmem:[%s14658_s3 + $0x98] sm:$0xff]  ;;  %3268 = vmatpush1.msra.mxu0 %v3085_v22  ;;  %v3077_v22 = vld [vmem:[%s14658_s3 + $0x60] sm:$0xff] }
 0x2e6   : >> { %6767 = vrot.lane.b32.xlu1 %v6766_v57, %s6997_s19  ;;  %3269 = vmatprep.subr.mxu0 %v3084_v50  ;;  %v3081_v57 = vld [vmem:[%s14658_s3 + $0x80] sm:$0xff]  ;;  %v3076_v50 = vld [vmem:[%s14658_s3 + $0x58] sm:$0xff] }
 0x2e7   : >> { %3270 = vmatpush1.msra.mxu0 %v3083_v32  ;;  %v3075_v32 = vld [vmem:[%s14658_s3 + $0x50] sm:$0xff] }
 0x2e8   : >> { %3271 = vmatprep.subr.mxu0 %v3082_v63  ;;  %v3074_v63 = vld [vmem:[%s14658_s3 + $0x48] sm:$0xff] }
 0x2e9   : >> { %3272 = vmatpush1.msra.mxu0 %v3081_v57  ;;  %v3073_v57 = vld [vmem:[%s14658_s3 + $0x40] sm:$0xff] }
 0x2ea   : >> { %3273 = vmatprep.subr.mxu0 %v3080_v15  ;;  %v3072_v15 = vld [vmem:[%s14658_s3 + $0x38] sm:$0xff] }
 0x2eb   : >> { %3274 = vmatpush1.msra.mxu0 %v3079_v31  ;;  %v3071_v31 = vld [vmem:[%s14658_s3 + $0x30] sm:$0xff] }
 0x2ec   : >> { %3275 = vmatprep.subr.mxu0 %v3078_v5  ;;  %v3070_v5 = vld [vmem:[%s14658_s3 + $0x28] sm:$0xff] }
 0x2ed   : >> { %3276 = vmatpush1.msra.mxu0 %v3077_v22  ;;  %v3069_v22 = vld [vmem:[%s14658_s3 + $0x20] sm:$0xff] }
 0x2ee   : >> { %3277 = vmatprep.subr.mxu0 %v3076_v50  ;;  %v3068_v50 = vld [vmem:[%s14658_s3 + $0x18] sm:$0xff] }
 0x2ef   : >> { %3278 = vmatpush1.msra.mxu0 %v3075_v32  ;;  %v3067_v32 = vld [vmem:[%s14658_s3 + $0x10] sm:$0xff] }
 0x2f0   : >> { %3279 = vmatprep.subr.mxu0 %v3074_v63  ;;  %v3066_v63 = vld [vmem:[%s14658_s3 + $0x8] sm:$0xff] }
 0x2f1   : >> { %3280 = vmatpush1.msra.mxu0 %v3073_v57  ;;  %v3065_v57 = vld [vmem:[%s14658_s3] sm:$0xff] }
 0x2f2   : >> { %3281 = vmatprep.subr.mxu0 %v3072_v15  ;;  %v3128_v15 = vld [vmem:[%s14658_s3 + $0x1f8] sm:$0xff] }
 0x2f3   : >> { %3282 = vmatpush1.msra.mxu0 %v3071_v31  ;;  %v3127_v31 = vld [vmem:[%s14658_s3 + $0x1f0] sm:$0xff] }
 0x2f4   : >> { %3283 = vmatprep.subr.mxu0 %v3070_v5  ;;  %v3126_v5 = vld [vmem:[%s14658_s3 + $0x1e8] sm:$0xff] }
 0x2f5   : >> { %3284 = vmatpush1.msra.mxu0 %v3069_v22  ;;  %v3125_v22 = vld [vmem:[%s14658_s3 + $0x1e0] sm:$0xff] }
 0x2f6   : >> { %3285 = vmatprep.subr.mxu0 %v3068_v50  ;;  %v3124_v50 = vld [vmem:[%s14658_s3 + $0x1d8] sm:$0xff] }
 0x2f7   : >> { %3286 = vmatpush1.msra.mxu0 %v3067_v32  ;;  %v3123_v32 = vld [vmem:[%s14658_s3 + $0x1d0] sm:$0xff] }
 0x2f8   : >> { %3287 = vmatprep.subr.mxu0 %v3066_v63  ;;  %v3122_v63 = vld [vmem:[%s14658_s3 + $0x1c8] sm:$0xff] }
 0x2f9   : >> { %3288 = vmatpush1.msra.mxu0 %v3065_v57  ;;  %v3121_v57 = vld [vmem:[%s14658_s3 + $0x1c0] sm:$0xff] }
 0x2fa   : >> { %3289 = vmatprep.subr.mxu0 %v3128_v15  ;;  %v3120_v15 = vld [vmem:[%s14658_s3 + $0x1b8] sm:$0xff] }
 0x2fb   : >> { %3290 = vmatpush2.msra.mxu0 %v3127_v31  ;;  %v3119_v31 = vld [vmem:[%s14658_s3 + $0x1b0] sm:$0xff] }
 0x2fc   : >> { %3291 = vmatprep.subr.mxu0 %v3126_v5  ;;  %v3118_v5 = vld [vmem:[%s14658_s3 + $0x1a8] sm:$0xff] }
 0x2fd   : >> { %3292 = vmatpush2.msra.mxu0 %v3125_v22  ;;  %v3117_v22 = vld [vmem:[%s14658_s3 + $0x1a0] sm:$0xff] }
 0x2fe   : >> { %3293 = vmatprep.subr.mxu0 %v3124_v50  ;;  %v3116_v50 = vld [vmem:[%s14658_s3 + $0x198] sm:$0xff] }
 0x2ff   : >> { %3294 = vmatpush2.msra.mxu0 %v3123_v32  ;;  %v3115_v32 = vld [vmem:[%s14658_s3 + $0x190] sm:$0xff] }
 0x300   : >> { %3295 = vmatprep.subr.mxu0 %v3122_v63  ;;  %v3114_v63 = vld [vmem:[%s14658_s3 + $0x188] sm:$0xff] }
 0x301   : >> { %3296 = vmatpush2.msra.mxu0 %v3121_v57  ;;  %v3113_v57 = vld [vmem:[%s14658_s3 + $0x180] sm:$0xff] }
 0x302   : >> { %3297 = vmatprep.subr.mxu0 %v3120_v15  ;;  %v3112_v15 = vld [vmem:[%s14658_s3 + $0x178] sm:$0xff] }
 0x303   : >> { %3298 = vmatpush2.msra.mxu0 %v3119_v31  ;;  %v3111_v31 = vld [vmem:[%s14658_s3 + $0x170] sm:$0xff] }
 0x304   : >> { %3299 = vmatprep.subr.mxu0 %v3118_v5  ;;  %v3110_v5 = vld [vmem:[%s14658_s3 + $0x168] sm:$0xff] }
 0x305   : >> { %3300 = vmatpush2.msra.mxu0 %v3117_v22  ;;  %v3109_v22 = vld [vmem:[%s14658_s3 + $0x160] sm:$0xff] }
 0x306   : >> { %3301 = vmatprep.subr.mxu0 %v3116_v50  ;;  %v2808_v50 = vpop.f32.mrf.mxu1 }
 0x307   : >> { %3302 = vmatpush2.msra.mxu0 %v3115_v32  ;;  %v6683_v32 = vpop.permute.xlu1 %6682 }
 0x308   : >> { %3303 = vmatprep.subr.mxu0 %v3114_v63  ;;  %v2810_v63 = vpop.f32.mrf.mxu1  ;;  %v6685_v61 = vunpack.i.h.bf16 %v6683_v32  ;;  %v6684_v10 = vunpack.i.l.bf16 %v6683_v32 }
 0x309   : >> { %3304 = vmatpush2.msra.mxu0 %v3113_v57 }
 0x30a   : >> { %3305 = vmatprep.subr.mxu0 %v3112_v15  ;;  %v9704_v3 = vpop.f32.mrf.mxu1  ;;  %v3108_v15 = vld [vmem:[%s14658_s3 + $0x158] sm:$0xff] }
 0x30b   : >> { %3306 = vmatpush2.msra.mxu0 %v3111_v31  ;;  %v3106_v31 = vld [vmem:[%s14658_s3 + $0x148] sm:$0xff] }
 0x30c   : >> { %3307 = vmatprep.subr.mxu0 %v3110_v5  ;;  %v3105_v5 = vld [vmem:[%s14658_s3 + $0x140] sm:$0xff]  ;;  %v2816_v0 = vpop.f32.mrf.mxu1 }
 0x30d   : >> { %3308 = vmatpush2.msra.mxu0 %v3109_v22  ;;  %v1785_v22 = vsel %vm354_vm0, %v6684_v10, %v6685_v61 }
 0x30e   : >> { %3309 = vmatprep.subr.mxu0 %v3108_v15  ;;  %v9742_v17 = vmax.f32 %v15129_v4, %v1785_v22  ;;  %v9767_v4 = vadd.f32 %v2810_v63, %v9310_v48  ;;  %v15136_v63 = vmax.f32 %v9338_v37, 0.0  ;;  %v14798_v37 = vmax.f32 %v9746_v20, 0.0 }
 0x30f   : >> { %3310 = vmatpush2.msra.mxu0 %v3107_v39  ;;  %v9732_v39 = vadd.f32 %v9300_v59, %v9310_v48  ;;  %v15132_v59 = vmax.f32 %v9281_v35, 0.0  ;;  %v2820_v35 = vpop.f32.mrf.mxu1 }
 0x310   : >> { %3311 = vmatprep.subr.mxu0 %v3106_v31  ;;  %15134 = vst [vmem:[#allocation64_spill] sm:$0xff] %v9767_v4  ;;  %v9888_v20 = vadd.f32 %v2820_v35, %v9403_v47 }
 0x311   : >> { %3312 = vmatpush2.msra.mxu0 %v3105_v5  ;;  %v9749_v5 = vadd.f32 %v2808_v50, %v9310_v48 }
 0x312   : >> { %15149 = vst [vmem:[#allocation69_spill] sm:$0xff] %v9888_v20 }
 0x313   : >> { %15131 = vst [vmem:[#allocation9_spill] sm:$0xff] %v9749_v5 }
 0x338   : >> { %v9706_v57 = vpop.permute.xlu1 %6692 }
 0x339   : >> { %v6694_v19 = vunpack.i.l.bf16 %v9706_v57  ;;  %v15135_v50 = vunpack.i.h.bf16 %v9706_v57 }
 0x33b   : >> { %v9722_v32 = vpop.permute.xlu0 %6687  ;;  %v2905_v22 = vsel %vm354_vm0, %v6694_v19, %v15135_v50  ;;  %v9789_v50 = vadd.f32 %v9304_v62, %v9350_v60  ;;  %v15138_v62 = vmax.f32 %v9313_v18, 0.0  ;;  %v3099_v18 = vld [vmem:[%s14658_s3 + $0x110] sm:$0xff] }
 0x33c   : >> { %v9726_v7 = vpop.permute.xlu1 %6702  ;;  %v6690_v15 = vunpack.i.h.bf16 %v9722_v32  ;;  %v14789_v33 = vunpack.i.l.bf16 %v9722_v32 }
 0x33e   : >> { %v2909_v29 = vsel %vm354_vm0, %v6690_v15, %v6694_v19  ;;  %v1781_v31 = vsel %vm354_vm0, %v6685_v61, %v14789_v33  ;;  %v3104_v61 = vld [vmem:[%s14658_s3 + $0x138] sm:$0xff] }
 0x33f   : >> { %v9753_v58 = vmax.f32 %v15132_v59, %v1781_v31  ;;  %v9755_v12 = vpop.permute.xlu0 %6697  ;;  %3313 = vmatprep.subr.mxu0 %v3104_v61  ;;  %v9783_v24 = vmax.f32 %v15136_v63, %v2909_v29  ;;  %v9793_v61 = vadd.f32 %v9306_v56, %v9350_v60  ;;  %v15140_v56 = vmax.f32 %v9353_v45, 0.0  ;;  %v3098_v45 = vld [vmem:[%s14658_s3 + $0x108] sm:$0xff] }
 0x340   : >> { %v9773_v31 = vpop.permute.xlu1 %6712  ;;  %v14795_v59 = vunpack.i.h.bf16 %v9755_v12  ;;  %v14796_v33 = vunpack.i.l.bf16 %v9755_v12  ;;  %3314 = vmatpush2.msra.mxu0 %v3103_v53  ;;  %v9806_v53 = vmax.f32 %v15138_v62, %v2905_v22 }
 0x341   : >> { %15133 = vst [vmem:[#allocation10_spill] sm:$0xff] %v9753_v58  ;;  %v6771_v19 = vpack.i.bf16 %v9753_v58, %v9742_v17  ;;  %15137 = vst [vmem:[#allocation11_spill] sm:$0xff] %v9793_v61  ;;  %3315 = vmatprep.subr.mxu0 %v3102_v27  ;;  %v15141_v58 = vmax.f32 %v9335_v23, 0.0  ;;  %v14801_v23 = vmax.f32 %v9749_v5, 0.0  ;;  %v2822_v27 = vpop.f32.mrf.mxu1  ;;  %v14797_v22 = vunpack.i.l.bf16 %v9773_v31 }
 0x342   : >> { %v1789_v48 = vsel %vm354_vm0, %v14796_v33, %v6684_v10  ;;  %v2913_v29 = vsel %vm354_vm0, %v14795_v59, %v6690_v15  ;;  %15139 = vst [vmem:[#allocation66_spill] sm:$0xff] %v9806_v53  ;;  %3316 = vmatpush2.msra.mxu0 %v3101_v26  ;;  %v3100_v15 = vld [vmem:[%s14658_s3 + $0x118] sm:$0xff]  ;;  %v3097_v59 = vld [vmem:[%s14658_s3 + $0x100] sm:$0xff]  ;;  %v9867_v33 = vadd.f32 %v2822_v27, %v9403_v47  ;;  %v14808_v27 = vmax.f32 %v9793_v61, 0.0 }
 0x343   : >> { %v9810_v63 = vmax.f32 %v15140_v56, %v1789_v48  ;;  %v9814_v51 = vmax.f32 %v15141_v58, %v2913_v29  ;;  %v9816_v10 = vpop.permute.xlu0 %6707  ;;  %6772 = vrot.lane.b32.xlu0 %v6771_v19, %s6999_s21  ;;  %3317 = vmatprep.subr.mxu0 %v3100_v15  ;;  %v9836_v19 = vadd.f32 %v9704_v3, %v9350_v60 }
 0x344   : >> { %v9831_v26 = vpop.permute.xlu1 %6722  ;;  %v6710_v48 = vunpack.i.h.bf16 %v9816_v10  ;;  %v9839_v29 = vadd.f32 %v2816_v0, %v9350_v60  ;;  %v6776_v56 = vpack.i.bf16 %v9806_v53, %v9783_v24  ;;  %3318 = vmatpush2.msra.mxu0 %v3099_v18  ;;  %v9850_v15 = vadd.f32 %v9308_v43, %v9403_v47  ;;  %15146 = vst [vmem:[#allocation63_spill] sm:$0xff] %v9867_v33 }
 0x345   : >> { %v6786_v62 = vpack.i.bf16 %v9814_v51, %v9810_v63  ;;  %3319 = vmatprep.subr.mxu0 %v3098_v45  ;;  %v15144_v0 = vmax.f32 %v9732_v39, 0.0  ;;  %v9864_v18 = vadd.f32 %v9315_v28, %v9403_v47  ;;  %v6725_v53 = vunpack.i.h.bf16 %v9831_v26 }
 0x346   : >> { %15142 = vst [vmem:[#allocation16_spill] sm:$0xff] %v9839_v29  ;;  %15143 = vst [vmem:[#allocation14_spill] sm:$0xff] %v9850_v15  ;;  %v9856_v60 = vsel %vm354_vm0, %v6710_v48, %v14797_v22  ;;  %v6704_v22 = vunpack.i.l.bf16 %v9726_v7  ;;  %3320 = vmatpush2.msra.mxu0 %v3097_v59  ;;  %v15151_v5 = vmax.f32 %v9836_v19, 0.0 }
 0x347   : >> { %v6781_v3 = vpack.i.bf16 %v14798_v37, %v15144_v0  ;;  %15145 = vst [vmem:[#allocation17_spill] sm:$0xff] %v9864_v18  ;;  %v9869_v43 = vpop.permute.xlu0 %6717  ;;  %6787 = vrot.lane.b32.xlu1 %v6786_v62, %s6999_s21  ;;  %6777 = vrot.lane.b32.xlu0 %v6776_v56, %s6999_s21  ;;  %v15148_v37 = vmax.f32 %v9767_v4, 0.0  ;;  %v15155_v61 = vmax.f32 %v9864_v18, 0.0 }
 0x348   : >> { %15147 = vst [vmem:[#allocation54_spill] sm:$0xff] %v9869_v43  ;;  %v9875_v58 = vpop.permute.xlu1 %6732  ;;  %v14803_v0 = vunpack.i.h.bf16 %v9869_v43  ;;  %v14802_v28 = vunpack.i.l.bf16 %v9869_v43 }
 0x349   : >> { %v6791_v62 = vpack.i.bf16 %v15148_v37, %v14801_v23  ;;  %v15150_v23 = vmax.f32 %v9789_v50, 0.0  ;;  %v15153_v4 = vunpack.i.l.bf16 %v9875_v58 }
 0x34a   : >> { %v9894_v59 = vsel %vm354_vm0, %v14802_v28, %v6704_v22  ;;  %v9900_v37 = vsel %vm354_vm0, %v14803_v0, %v6710_v48  ;;  %v6724_v28 = vunpack.i.l.bf16 %v9831_v26  ;;  %v6705_v26 = vunpack.i.h.bf16 %v9726_v7 }
 0x34b   : >> { %v9906_v35 = vpop.permute.xlu0 %6727  ;;  %6792 = vrot.lane.b32.xlu1 %v6791_v62, %s6997_s19  ;;  %6782 = vrot.lane.b32.xlu0 %v6781_v3, %s6997_s19  ;;  %v6796_v47 = vpack.i.bf16 %v14808_v27, %v15150_v23  ;;  %v15152_v62 = vmax.f32 %v9839_v29, 0.0  ;;  %v15154_v27 = vmax.f32 %v9850_v15, 0.0  ;;  %v15156_v7 = vunpack.i.l.bf16 %v9816_v10 }
 0x34c   : >> { %v9912_v48 = vpop.permute.xlu1 %6742  ;;  %v6730_v0 = vunpack.i.h.bf16 %v9906_v35  ;;  %v14810_v45 = vunpack.i.l.bf16 %v9906_v35  ;;  %v1787_v18 = vsel %vm354_vm0, %v6724_v28, %v6725_v53  ;;  %v1786_v15 = vsel %vm354_vm0, %v6704_v22, %v6705_v26 }
 0x34d   : >> { %v6801_v3 = vpack.i.bf16 %v15152_v62, %v15151_v5  ;;  %v6806_v5 = vpack.i.bf16 %v15155_v61, %v15154_v27  ;;  %v1782_v62 = vsel %vm354_vm0, %v6705_v26, %v15156_v7 }
 0x34e   : >> { %v9930_v43 = vsel %vm354_vm0, %v6730_v0, %v15153_v4  ;;  %v1783_v23 = vsel %vm354_vm0, %v6725_v53, %v14810_v45  ;;  %v15157_v4 = vmax.f32 %v9888_v20, 0.0  ;;  %v15158_v45 = vmax.f32 %v9867_v33, 0.0 }
 0x34f   : >> { %v9944_v56 = vpop.permute.xlu0 %6737  ;;  %6802 = vrot.lane.b32.xlu1 %v6801_v3, %s6997_s19  ;;  %6797 = vrot.lane.b32.xlu0 %v6796_v47, %s6997_s19  ;;  %v6745_v3 = vunpack.i.h.bf16 %v9912_v48  ;;  %v14821_v47 = vunpack.i.l.bf16 %v9912_v48  ;;  %v15159_v20 = vmax.f32 %v9375_v13, 0.0  ;;  %v15163_v13 = vmax.f32 %v9372_v54, 0.0 }
 0x350   : >> { %v6811_v29 = vpack.i.bf16 %v15158_v45, %v15157_v4  ;;  %v9954_v61 = vpop.permute.xlu1 %6752  ;;  %v14817_v27 = vunpack.i.h.bf16 %v9944_v56  ;;  %v14816_v7 = vunpack.i.l.bf16 %v9944_v56  ;;  %v15161_v45 = vmax.f32 %v9321_v42, 0.0 }
 0x351   : >> { %v9964_v33 = vmax.f32 %v15159_v20, %v1783_v23  ;;  %v9984_v20 = vmax.f32 %v15163_v13, %v1787_v18  ;;  %v15164_v42 = vmax.f32 %v9318_v2, 0.0  ;;  %v14818_v23 = vunpack.i.l.bf16 %v9954_v61 }
 0x352   : >> { %v9968_v53 = vmax.f32 %v15161_v45, %v1782_v62  ;;  %v9974_v4 = vsel %vm354_vm0, %v14816_v7, %v6724_v28  ;;  %v9980_v22 = vsel %vm354_vm0, %v14817_v27, %v6730_v0  ;;  %v1788_v54 = vsel %vm354_vm0, %v14821_v47, %v6745_v3 }
 0x353   : >> { %15160 = vst [vmem:[#allocation67_spill] sm:$0xff] %v9964_v33  ;;  %v9986_v26 = vpop.permute.xlu0 %6747  ;;  %6812 = vrot.lane.b32.xlu1 %v6811_v29, %s6997_s19  ;;  %6807 = vrot.lane.b32.xlu0 %v6806_v5, %s6997_s19  ;;  %v9992_v28 = vmax.f32 %v15164_v42, %v1786_v15  ;;  %v6821_v5 = vpack.i.bf16 %v9964_v33, %v9984_v20  ;;  %v15166_v27 = vunpack.i.l.bf16 %v9755_v12 }
 0x354   : >> { %15162 = vst [vmem:[#allocation24_spill] sm:$0xff] %v9968_v53  ;;  %v6763_v62 = vpop.permute.xlu1 %6762  ;;  %v14820_v0 = vunpack.i.h.bf16 %v9986_v26  ;;  %v14819_v45 = vunpack.i.l.bf16 %v9986_v26 }
 0x355   : >> { %v6765_v18 = vunpack.i.h.bf16 %v6763_v62  ;;  %v6764_v29 = vunpack.i.l.bf16 %v6763_v62  ;;  %v6816_v13 = vpack.i.bf16 %v9968_v53, %v9992_v28  ;;  %v15165_v62 = vunpack.i.l.bf16 %v9722_v32 }
 0x356   : >> { %v10009_v2 = vsel %vm354_vm0, %v14820_v0, %v14818_v23  ;;  %v1784_v15 = vsel %vm354_vm0, %v6745_v3, %v14819_v45  ;;  %v15167_v3 = vmax.f32 %v9428_v41, 0.0  ;;  %v15168_v0 = vmax.f32 %v9328_v11, 0.0  ;;  %v3160_v11 = vld [vmem:[%s14658_s3 + $0x2f8] sm:$0xff] }
 0x357   : >> { %v1773_v42 = vsel %vm354_vm0, %v6764_v29, %v6765_v18  ;;  %v1777_v7 = vsel %vm354_vm0, %v15165_v62, %v6764_v29  ;;  %v10027_v23 = vsel %vm354_vm0, %v6765_v18, %v15166_v27  ;;  %6822 = vrot.lane.b32.xlu1 %v6821_v5, %s6999_s21  ;;  %v15169_v32 = vmax.f32 %v9478_v55, 0.0  ;;  %6817 = vrot.lane.b32.xlu0 %v6816_v13, %s6999_s21  ;;  %v3158_v55 = vld [vmem:[%s14658_s3 + $0x2e8] sm:$0xff]  ;;  %v3155_v18 = vld [vmem:[%s14658_s3 + $0x2d0] sm:$0xff] }
 0x358   : >> { %v10032_v45 = vmax.f32 %v15167_v3, %v1788_v54  ;;  %v10036_v47 = vmax.f32 %v15168_v0, %v1777_v7  ;;  %v15171_v29 = vmax.f32 %v9432_v44, 0.0  ;;  %v3159_v44 = vld [vmem:[%s14658_s3 + $0x2f0] sm:$0xff]  ;;  %3346 = vmatprep.subr.mxu1 %v3160_v11  ;;  %v3157_v7 = vld [vmem:[%s14658_s3 + $0x2e0] sm:$0xff]  ;;  %v3224_v0 = vld [vmem:[%s14658_s3 + $0x4f8] sm:$0xff] }
 0x359   : >> { %v10040_v33 = vmax.f32 %v15169_v32, %v1773_v42  ;;  %3347 = vmatpush1.msra.mxu1 %v3159_v44  ;;  %v3156_v54 = vld [vmem:[%s14658_s3 + $0x2d8] sm:$0xff]  ;;  %3435 = vmatprep.subr.mxu0 %v3224_v0  ;;  %v3154_v5 = vld [vmem:[%s14658_s3 + $0x2c8] sm:$0xff]  ;;  %v3151_v42 = vld [vmem:[%s14658_s3 + $0x2b0] sm:$0xff] }
 0x35a   : >> { %v10044_v62 = vmax.f32 %v15171_v29, %v1784_v15  ;;  %3348 = vmatprep.subr.mxu1 %v3158_v55  ;;  %v3153_v15 = vld [vmem:[%s14658_s3 + $0x2c0] sm:$0xff]  ;;  %v3152_v13 = vld [vmem:[%s14658_s3 + $0x2b8] sm:$0xff]  ;;  %v3150_v3 = vld [vmem:[%s14658_s3 + $0x2a8] sm:$0xff] }
 0x35b   : >> { %15170 = vst [vmem:[#allocation23_spill] sm:$0xff] %v10040_v33  ;;  %v6831_v41 = vpack.i.bf16 %v10040_v33, %v10036_v47  ;;  %3349 = vmatpush1.msra.mxu1 %v3157_v7  ;;  %v3149_v32 = vld [vmem:[%s14658_s3 + $0x2a0] sm:$0xff]  ;;  %v3148_v29 = vld [vmem:[%s14658_s3 + $0x298] sm:$0xff]  ;;  %v3143_v55 = vld [vmem:[%s14658_s3 + $0x270] sm:$0xff] }
 0x35c   : >> { %15172 = vst [vmem:[#allocation58_spill] sm:$0xff] %v10044_v62  ;;  %v6826_v27 = vpack.i.bf16 %v10044_v62, %v10032_v45  ;;  %3350 = vmatprep.subr.mxu1 %v3156_v54  ;;  %v3145_v11 = vld [vmem:[%s14658_s3 + $0x280] sm:$0xff]  ;;  %v3144_v44 = vld [vmem:[%s14658_s3 + $0x278] sm:$0xff]  ;;  %v3142_v7 = vld [vmem:[%s14658_s3 + $0x268] sm:$0xff] }
 0x35d   : >> { %6832 = vrot.lane.b32.xlu1 %v6831_v41, %s6999_s21  ;;  %3351 = vmatpush1.msra.mxu1 %v3155_v18  ;;  %v3146_v41 = vld [vmem:[%s14658_s3 + $0x288] sm:$0xff]  ;;  %v3141_v0 = vld [vmem:[%s14658_s3 + $0x260] sm:$0xff]  ;;  %v3140_v54 = vld [vmem:[%s14658_s3 + $0x258] sm:$0xff] }
 0x35e   : >> { %6827 = vrot.lane.b32.xlu0 %v6826_v27, %s6999_s21  ;;  %3352 = vmatprep.subr.mxu1 %v3154_v5  ;;  %v3147_v27 = vld [vmem:[%s14658_s3 + $0x290] sm:$0xff]  ;;  %v3138_v5 = vld [vmem:[%s14658_s3 + $0x248] sm:$0xff] }
 0x35f   : >> { %3353 = vmatpush1.msra.mxu1 %v3153_v15  ;;  %v3139_v18 = vld [vmem:[%s14658_s3 + $0x250] sm:$0xff]  ;;  %v3137_v15 = vld [vmem:[%s14658_s3 + $0x240] sm:$0xff] }
 0x360   : >> { %3354 = vmatprep.subr.mxu1 %v3152_v13  ;;  %v3136_v13 = vld [vmem:[%s14658_s3 + $0x238] sm:$0xff] }
 0x361   : >> { %3355 = vmatpush1.msra.mxu1 %v3151_v42  ;;  %v3135_v42 = vld [vmem:[%s14658_s3 + $0x230] sm:$0xff] }
 0x362   : >> { %3356 = vmatprep.subr.mxu1 %v3150_v3  ;;  %v3134_v3 = vld [vmem:[%s14658_s3 + $0x228] sm:$0xff] }
 0x363   : >> { %3357 = vmatpush1.msra.mxu1 %v3149_v32  ;;  %v3133_v32 = vld [vmem:[%s14658_s3 + $0x220] sm:$0xff] }
 0x364   : >> { %3358 = vmatprep.subr.mxu1 %v3148_v29  ;;  %v3132_v29 = vld [vmem:[%s14658_s3 + $0x218] sm:$0xff] }
 0x365   : >> { %3359 = vmatpush1.msra.mxu1 %v3147_v27  ;;  %v3131_v27 = vld [vmem:[%s14658_s3 + $0x210] sm:$0xff] }
 0x366   : >> { %3360 = vmatprep.subr.mxu1 %v3146_v41  ;;  %v3130_v41 = vld [vmem:[%s14658_s3 + $0x208] sm:$0xff] }
 0x367   : >> { %3361 = vmatpush1.msra.mxu1 %v3145_v11  ;;  %v3129_v11 = vld [vmem:[%s14658_s3 + $0x200] sm:$0xff] }
 0x368   : >> { %3362 = vmatprep.subr.mxu1 %v3144_v44  ;;  %v3192_v44 = vld [vmem:[%s14658_s3 + $0x3f8] sm:$0xff] }
 0x369   : >> { %3363 = vmatpush1.msra.mxu1 %v3143_v55  ;;  %v3191_v55 = vld [vmem:[%s14658_s3 + $0x3f0] sm:$0xff] }
 0x36a   : >> { %3364 = vmatprep.subr.mxu1 %v3142_v7  ;;  %v3190_v7 = vld [vmem:[%s14658_s3 + $0x3e8] sm:$0xff] }
 0x36b   : >> { %3365 = vmatpush1.msra.mxu1 %v3141_v0  ;;  %v3189_v0 = vld [vmem:[%s14658_s3 + $0x3e0] sm:$0xff] }
 0x36c   : >> { %3366 = vmatprep.subr.mxu1 %v3140_v54  ;;  %v3188_v54 = vld [vmem:[%s14658_s3 + $0x3d8] sm:$0xff] }
 0x36d   : >> { %3367 = vmatpush1.msra.mxu1 %v3139_v18  ;;  %v3187_v18 = vld [vmem:[%s14658_s3 + $0x3d0] sm:$0xff] }
 0x36e   : >> { %3368 = vmatprep.subr.mxu1 %v3138_v5  ;;  %v3186_v5 = vld [vmem:[%s14658_s3 + $0x3c8] sm:$0xff] }
 0x36f   : >> { %3369 = vmatpush1.msra.mxu1 %v3137_v15  ;;  %v3185_v15 = vld [vmem:[%s14658_s3 + $0x3c0] sm:$0xff] }
 0x370   : >> { %3370 = vmatprep.subr.mxu1 %v3136_v13  ;;  %v10176_v13 = vpop.permute.xlu0 %6757 }
 0x371   : >> { %3371 = vmatpush1.msra.mxu1 %v3135_v42  ;;  %v10178_v42 = vpop.permute.xlu1 %6767 }
 0x372   : >> { %3372 = vmatprep.subr.mxu1 %v3134_v3 }
 0x373   : >> { %3373 = vmatpush1.msra.mxu1 %v3133_v32 }
 0x374   : >> { %3374 = vmatprep.subr.mxu1 %v3132_v29 }
 0x375   : >> { %3375 = vmatpush1.msra.mxu1 %v3131_v27 }
 0x376   : >> { %3376 = vmatprep.subr.mxu1 %v3130_v41 }
 0x377   : >> { %3377 = vmatpush1.msra.mxu1 %v3129_v11 }
 0x378   : >> { %3378 = vmatprep.subr.mxu1 %v3192_v44 }
 0x379   : >> { %3379 = vmatpush2.msra.mxu1 %v3191_v55 }
 0x37a   : >> { %3380 = vmatprep.subr.mxu1 %v3190_v7 }
 0x37b   : >> { %3381 = vmatpush2.msra.mxu1 %v3189_v0 }
 0x37c   : >> { %3382 = vmatprep.subr.mxu1 %v3188_v54 }
 0x37d   : >> { %3383 = vmatpush2.msra.mxu1 %v3187_v18 }
 0x37e   : >> { %3384 = vmatprep.subr.mxu1 %v3186_v5 }
 0x37f   : >> { %3385 = vmatpush2.msra.mxu1 %v3185_v15 }
 0x3b5   : >> { %v10180_v3 = vpop.permute.xlu0 %6772 }
 0x3b6   : >> { %v14824_v32 = vunpack.i.h.bf16 %v10180_v3  ;;  %v6774_v29 = vunpack.i.l.bf16 %v10180_v3 }
 0x3b8   : >> { %v1881_v27 = vsel %vm392_vm6, %v6774_v29, %v14824_v32 }
 0x3b9   : >> { %v10188_v41 = vpop.permute.xlu1 %6787  ;;  %v10190_v11 = vpop.permute.xlu0 %6777  ;;  %v1894_v33 = vmax.f32 %v9742_v17, %v1881_v27  ;;  %v3183_v17 = vld [vmem:[%s14658_s3 + $0x3b0] sm:$0xff]  ;;  %v15174_v27 = vunpack.i.l.bf16 %v9816_v10  ;;  %v3220_v10 = vld [vmem:[%s14658_s3 + $0x4d8] sm:$0xff] }
 0x3ba   : >> { %15173 = vst [vmem:[#allocation19_spill] sm:$0xff] %v10190_v11  ;;  %v14832_v44 = vunpack.i.h.bf16 %v10188_v41  ;;  %v14827_v55 = vunpack.i.l.bf16 %v10188_v41  ;;  %v14829_v7 = vunpack.i.h.bf16 %v10190_v11  ;;  %v6779_v0 = vunpack.i.l.bf16 %v10190_v11 }
 0x3bc   : >> { %v1885_v54 = vsel %vm392_vm6, %v14827_v55, %v6774_v29  ;;  %v3005_v18 = vsel %vm392_vm6, %v6779_v0, %v14829_v7  ;;  %v3009_v5 = vsel %vm392_vm6, %v14832_v44, %v6779_v0  ;;  %v3184_v0 = vld [vmem:[%s14658_s3 + $0x3b8] sm:$0xff]  ;;  %v15179_v44 = vmax.f32 %v9408_v30, 0.0 }
 0x3bd   : >> { %v1893_v15 = vmax.f32 %v9810_v63, %v1885_v54  ;;  %v3017_v32 = vmax.f32 %v9814_v51, %v3009_v5  ;;  %v10210_v62 = vpop.permute.xlu0 %6782  ;;  %v3018_v29 = vmax.f32 %v9783_v24, %v3005_v18  ;;  %v3223_v51 = vld [vmem:[%s14658_s3 + $0x4f0] sm:$0xff]  ;;  %3386 = vmatprep.subr.mxu1 %v3184_v0  ;;  %v3182_v24 = vld [vmem:[%s14658_s3 + $0x3a8] sm:$0xff]  ;;  %v3221_v18 = vld [vmem:[%s14658_s3 + $0x4e0] sm:$0xff]  ;;  %v15176_v0 = vmax.f32 %v9732_v39, 0.0 }
 0x3be   : >> { %v14834_v55 = vunpack.i.h.bf16 %v10210_v62  ;;  %v6784_v11 = vunpack.i.l.bf16 %v10210_v62  ;;  %3387 = vmatpush2.msra.mxu1 %v3183_v17  ;;  %v3179_v39 = vld [vmem:[%s14658_s3 + $0x390] sm:$0xff] }
 0x3bf   : >> { %v3041_v7 = vmax.f32 %v1893_v15, %v3017_v32  ;;  %v3042_v53 = vmax.f32 %v1894_v33, %v3018_v29  ;;  %v3222_v33 = vld [vmem:[%s14658_s3 + $0x4e8] sm:$0xff]  ;;  %3388 = vmatprep.subr.mxu1 %v3182_v24  ;;  %v3180_v24 = vld [vmem:[%s14658_s3 + $0x398] sm:$0xff] }
 0x3c0   : >> { %v1774_v32 = vsel %vm354_vm0, %v6784_v11, %v14834_v55  ;;  %v1778_v54 = vsel %vm354_vm0, %v15174_v27, %v6784_v11  ;;  %v3181_v11 = vld [vmem:[%s14658_s3 + $0x3a0] sm:$0xff]  ;;  %v6735_v27 = vunpack.i.h.bf16 %v9875_v58 }
 0x3c1   : >> { %v10228_v63 = vpop.permute.xlu0 %6797  ;;  %3321 = vmatprep.mubr.f32.mxu0 %v3042_v53  ;;  %v6715_v53 = vunpack.i.h.bf16 %v9773_v31  ;;  %v10259_v17 = vmax.f32 %v15176_v0, %v1774_v32  ;;  %v15177_v32 = vunpack.i.l.bf16 %v9906_v35  ;;  %3389 = vmatpush2.msra.mxu1 %v3181_v11  ;;  %v10294_v35 = vmax.f32 %v15179_v44, %v9894_v59  ;;  %v3178_v59 = vld [vmem:[%s14658_s3 + $0x388] sm:$0xff] }
 0x3c2   : >> { %3322 = vmatmul.mubr.f32.vlgmr.msra.gmra.mxu0 %v3041_v7  ;;  %v14833_v5 = vunpack.i.h.bf16 %v10228_v63  ;;  %v6799_v15 = vunpack.i.l.bf16 %v10228_v63  ;;  %v15175_v7 = vmax.f32 %v9378_v34, 0.0  ;;  %v3218_v34 = vld [vmem:[%s14658_s3 + $0x4c8] sm:$0xff]  ;;  %3390 = vmatprep.subr.mxu1 %v3180_v24  ;;  %v15181_v11 = vmax.f32 %v9436_v40, 0.0 }
 0x3c3   : >> { %3436 = vmatpush1.msra.mxu0 %v3223_v51  ;;  %v3219_v51 = vld [vmem:[%s14658_s3 + $0x4d0] sm:$0xff]  ;;  %3391 = vmatpush2.msra.mxu1 %v3179_v39  ;;  %v15183_v40 = vunpack.i.l.bf16 %v9875_v58  ;;  %v14835_v44 = vunpack.i.l.bf16 %v10176_v13  ;;  %v15184_v24 = vmax.f32 %v9365_v36, 0.0  ;;  %v15185_v39 = vmax.f32 %v9420_v38, 0.0 }
 0x3c4   : >> { %v10255_v29 = vmax.f32 %v15175_v7, %v1778_v54  ;;  %3437 = vmatprep.subr.mxu0 %v3222_v33  ;;  %v1775_v33 = vsel %vm354_vm0, %v6799_v15, %v14833_v5  ;;  %v1779_v54 = vsel %vm354_vm0, %v15177_v32, %v6799_v15  ;;  %v15178_v7 = vunpack.i.l.bf16 %v9773_v31  ;;  %3392 = vmatprep.subr.mxu1 %v3178_v59 }
 0x3c5   : >> { %3438 = vmatpush1.msra.mxu0 %v3221_v18  ;;  %v3217_v18 = vld [vmem:[%s14658_s3 + $0x4c0] sm:$0xff]  ;;  %v15180_v15 = vmax.f32 %v9398_v9, 0.0  ;;  %v10303_v32 = vmax.f32 %v15181_v11, %v1779_v54  ;;  %v15182_v5 = vmax.f32 %v9789_v50, 0.0  ;;  %v3216_v9 = vld [vmem:[%s14658_s3 + $0x4b8] sm:$0xff]  ;;  %v2907_v50 = vsel %vm354_vm0, %v15183_v40, %v6735_v27  ;;  %v10341_v54 = vpop.permute.xlu1 %6792 }
 0x3c6   : >> { %3439 = vmatprep.subr.mxu0 %v3220_v10  ;;  %v2906_v0 = vsel %vm354_vm0, %v15178_v7, %v6715_v53  ;;  %v6836_v30 = vpack.i.bf16 %v10259_v17, %v10255_v29  ;;  %v15186_v7 = vmax.f32 %v9332_v6, 0.0  ;;  %v6770_v36 = vunpack.i.h.bf16 %v10178_v42  ;;  %v3213_v6 = vld [vmem:[%s14658_s3 + $0x4a0] sm:$0xff]  ;;  %v3212_v40 = vld [vmem:[%s14658_s3 + $0x498] sm:$0xff] }
 0x3c7   : >> { %v10299_v10 = vmax.f32 %v15180_v15, %v9900_v37  ;;  %3440 = vmatpush1.msra.mxu0 %v3219_v51  ;;  %v10307_v55 = vmax.f32 %v15182_v5, %v1775_v33  ;;  %v6760_v37 = vunpack.i.h.bf16 %v10176_v13  ;;  %v3215_v5 = vld [vmem:[%s14658_s3 + $0x4b0] sm:$0xff]  ;;  %v3177_v51 = vld [vmem:[%s14658_s3 + $0x380] sm:$0xff]  ;;  %v10339_v33 = vmax.f32 %v15185_v39, %v9930_v43  ;;  %v3174_v39 = vld [vmem:[%s14658_s3 + $0x368] sm:$0xff] }
 0x3c8   : >> { %3441 = vmatprep.subr.mxu0 %v3218_v34  ;;  %v10334_v34 = vmax.f32 %v15184_v24, %v9856_v60  ;;  %6837 = vrot.lane.b32.xlu0 %v6836_v30, %s6999_s21  ;;  %v10349_v15 = vmax.f32 %v15186_v7, %v2906_v0  ;;  %v6769_v60 = vunpack.i.l.bf16 %v10178_v42  ;;  %v15187_v38 = vmax.f32 %v9387_v49, 0.0  ;;  %v3176_v42 = vld [vmem:[%s14658_s3 + $0x378] sm:$0xff]  ;;  %v3211_v24 = vld [vmem:[%s14658_s3 + $0x490] sm:$0xff] }
 0x3c9   : >> { %3442 = vmatpush1.msra.mxu0 %v3217_v18  ;;  %v3214_v18 = vld [vmem:[%s14658_s3 + $0x4a8] sm:$0xff]  ;;  %v6851_v11 = vpack.i.bf16 %v10299_v10, %v10294_v35  ;;  %v6841_v30 = vpack.i.bf16 %v10307_v55, %v10303_v32  ;;  %3393 = vmatpush2.msra.mxu1 %v3177_v51  ;;  %v15188_v49 = vunpack.i.l.bf16 %v9912_v48  ;;  %v3175_v48 = vld [vmem:[%s14658_s3 + $0x370] sm:$0xff] }
 0x3ca   : >> { %3443 = vmatprep.subr.mxu0 %v3216_v9  ;;  %v10355_v43 = vmax.f32 %v15187_v38, %v2907_v50  ;;  %v15189_v9 = vunpack.i.h.bf16 %v9986_v26  ;;  %v6755_v50 = vunpack.i.h.bf16 %v9954_v61  ;;  %v6846_v51 = vpack.i.bf16 %v10349_v15, %v10334_v34  ;;  %3394 = vmatprep.subr.mxu1 %v3176_v42 }
 0x3cb   : >> { %3444 = vmatpush1.msra.mxu0 %v3215_v5  ;;  %v1792_v0 = vsel %vm354_vm0, %v14835_v44, %v15188_v49  ;;  %6842 = vrot.lane.b32.xlu1 %v6841_v30, %s6999_s21  ;;  %v15191_v38 = vmax.f32 %v9450_v8, 0.0  ;;  %v2897_v30 = vsel %vm354_vm0, %v6769_v60, %v6770_v36  ;;  %v15192_v49 = vunpack.i.h.bf16 %v9706_v57  ;;  %v10422_v8 = vpop.permute.xlu1 %6802  ;;  %v3173_v57 = vld [vmem:[%s14658_s3 + $0x360] sm:$0xff] }
 0x3cc   : >> { %v2916_v59 = vsel %vm354_vm0, %v6760_v37, %v15189_v9  ;;  %3445 = vmatprep.subr.mxu0 %v3214_v18  ;;  %6852 = vrot.lane.b32.xlu0 %v6851_v11, %s6999_s21  ;;  %v6856_v5 = vpack.i.bf16 %v10355_v43, %v10339_v33  ;;  %v15190_v18 = vmax.f32 %v9461_v14, 0.0  ;;  %v15193_v44 = vmax.f32 %v9517_v1, 0.0 }
 0x3cd   : >> { %v10406_v11 = vmax.f32 %v15191_v38, %v9980_v22  ;;  %3446 = vmatpush1.msra.mxu0 %v3213_v6  ;;  %v2901_v9 = vsel %vm354_vm0, %v15192_v49, %v6769_v60  ;;  %v3210_v22 = vld [vmem:[%s14658_s3 + $0x488] sm:$0xff]  ;;  %3395 = vmatpush2.msra.mxu1 %v3175_v48  ;;  %v6795_v1 = vunpack.i.h.bf16 %v10341_v54  ;;  %v15195_v60 = vunpack.i.l.bf16 %v9954_v61 }
 0x3ce   : >> { %v10401_v7 = vmax.f32 %v15190_v18, %v9974_v4  ;;  %v10416_v14 = vmax.f32 %v15193_v44, %v1792_v0  ;;  %v15194_v4 = vmax.f32 %v9502_v16, 0.0  ;;  %3447 = vmatprep.subr.mxu0 %v3212_v40  ;;  %v3209_v16 = vld [vmem:[%s14658_s3 + $0x480] sm:$0xff]  ;;  %3396 = vmatprep.subr.mxu1 %v3174_v39  ;;  %v3172_v44 = vld [vmem:[%s14658_s3 + $0x358] sm:$0xff]  ;;  %v15196_v42 = vmax.f32 %v9474_v46, 0.0  ;;  %v3171_v40 = vld [vmem:[%s14658_s3 + $0x350] sm:$0xff] }
 0x3cf   : >> { %3448 = vmatpush1.msra.mxu0 %v3211_v24  ;;  %v2908_v6 = vsel %vm354_vm0, %v15195_v60, %v6755_v50  ;;  %6847 = vrot.lane.b32.xlu1 %v6846_v51, %s6999_s21  ;;  %v15197_v48 = vunpack.i.h.bf16 %v9755_v12  ;;  %v15198_v46 = vmax.f32 %v9325_v52, 0.0  ;;  %v6804_v39 = vunpack.i.l.bf16 %v10422_v8  ;;  %v3207_v52 = vld [vmem:[%s14658_s3 + $0x470] sm:$0xff]  ;;  %v3198_v61 = vld [vmem:[%s14658_s3 + $0x428] sm:$0xff] }
 0x3d0   : >> { %v10420_v18 = vmax.f32 %v15194_v4, %v2916_v59  ;;  %v10446_v0 = vmax.f32 %v15196_v42, %v10009_v2  ;;  %6857 = vrot.lane.b32.xlu0 %v6856_v5, %s6999_s21  ;;  %v3208_v59 = vld [vmem:[%s14658_s3 + $0x478] sm:$0xff]  ;;  %v15199_v5 = vmax.f32 %v9521_v25, 0.0  ;;  %3449 = vmatprep.subr.mxu0 %v3210_v22  ;;  %v6805_v38 = vunpack.i.h.bf16 %v10422_v8  ;;  %v3170_v25 = vld [vmem:[%s14658_s3 + $0x348] sm:$0xff]  ;;  %v3169_v42 = vld [vmem:[%s14658_s3 + $0x340] sm:$0xff] }
 0x3d1   : >> { %v2917_v24 = vsel %vm354_vm0, %v6770_v36, %v15197_v48  ;;  %v10462_v2 = vmax.f32 %v15198_v46, %v2901_v9  ;;  %3397 = vmatpush2.msra.mxu1 %v3173_v57  ;;  %v6861_v36 = vpack.i.bf16 %v10406_v11, %v10401_v7  ;;  %3450 = vmatpush1.msra.mxu0 %v3209_v16  ;;  %v15203_v4 = vld [vmem:[#allocation54_spill] sm:$0xff]  ;;  %v6794_v57 = vunpack.i.l.bf16 %v10341_v54 }
 0x3d2   : >> { %v10466_v51 = vmax.f32 %v15199_v5, %v2897_v30  ;;  %v6871_v12 = vpack.i.bf16 %v10420_v18, %v10416_v14  ;;  %3398 = vmatprep.subr.mxu1 %v3172_v44  ;;  %v15200_v30 = vld [vmem:[#allocation37_spill] sm:$0xff]  ;;  %v15204_v8 = vunpack.i.h.bf16 %v15203_v4  ;;  %v15205_v16 = vunpack.i.l.bf16 %v15203_v4  ;;  %3451 = vmatprep.subr.mxu0 %v3208_v59  ;;  %v15207_v48 = vld [vmem:[#allocation38_spill] sm:$0xff]  ;;  %v3205_v59 = vld [vmem:[%s14658_s3 + $0x460] sm:$0xff] }
 0x3d3   : >> { %v15201_v49 = vmax.f32 %v15200_v30, 0.0  ;;  %v15206_v60 = vunpack.i.h.bf16 %v10210_v62  ;;  %3399 = vmatpush2.msra.mxu1 %v3171_v40  ;;  %v15208_v54 = vmax.f32 %v15207_v48, 0.0  ;;  %v15209_v5 = vld [vmem:[#allocation45_spill] sm:$0xff]  ;;  %6862 = vrot.lane.b32.xlu1 %v6861_v36, %s6999_s21  ;;  %v3168_v40 = vld [vmem:[%s14658_s3 + $0x338] sm:$0xff]  ;;  %v15211_v36 = vld [vmem:[#allocation64_spill] sm:$0xff]  ;;  %v2899_v58 = vsel %vm354_vm0, %v6804_v39, %v6805_v38 }
 0x3d4   : >> { %v2918_v22 = vsel %vm354_vm0, %v6795_v1, %v15204_v8  ;;  %v15210_v62 = vmax.f32 %v15209_v5, 0.0  ;;  %6872 = vrot.lane.b32.xlu0 %v6871_v12, %s6999_s21  ;;  %3452 = vmatpush1.msra.mxu0 %v3207_v52  ;;  %v15212_v4 = vmax.f32 %v15211_v36, 0.0  ;;  %v3167_v52 = vld [vmem:[%s14658_s3 + $0x330] sm:$0xff] }
 0x3d5   : >> { %v10482_v9 = vmax.f32 %v15201_v49, %v2908_v6  ;;  %v1794_v44 = vsel %vm354_vm0, %v15206_v60, %v15205_v16  ;;  %v3206_v6 = vld [vmem:[%s14658_s3 + $0x468] sm:$0xff]  ;;  %v10504_v46 = vmax.f32 %v15208_v54, %v10027_v23  ;;  %v10510_v49 = vpop.permute.xlu0 %6807  ;;  %v2903_v23 = vsel %vm354_vm0, %v6735_v27, %v6804_v39  ;;  %3400 = vmatprep.subr.mxu1 %v3170_v25  ;;  %v15213_v16 = vld [vmem:[#allocation47_spill] sm:$0xff]  ;;  %v6813_v27 = vpop.permute.xlu1 %6812  ;;  %v3204_v54 = vld [vmem:[%s14658_s3 + $0x458] sm:$0xff] }
 0x3d6   : >> { %v10508_v30 = vmax.f32 %v15210_v62, %v2917_v24  ;;  %v6876_v24 = vpack.i.bf16 %v10466_v51, %v10462_v2  ;;  %v10530_v8 = vmax.f32 %v15212_v4, %v2918_v22  ;;  %v15214_v60 = vmax.f32 %v15213_v16, 0.0  ;;  %3453 = vmatprep.subr.mxu0 %v3206_v6  ;;  %3401 = vmatpush2.msra.mxu1 %v3169_v42  ;;  %v3203_v6 = vld [vmem:[%s14658_s3 + $0x450] sm:$0xff]  ;;  %v3166_v42 = vld [vmem:[%s14658_s3 + $0x328] sm:$0xff]  ;;  %v15222_v16 = vld [vmem:[#allocation30_spill] sm:$0xff] }
 0x3d7   : >> { %15202 = vst [vmem:[#allocation26_spill] sm:$0xff] %v10482_v9  ;;  %v6866_v12 = vpack.i.bf16 %v10482_v9, %v10446_v0  ;;  %v2898_v25 = vsel %vm354_vm0, %v6794_v57, %v6795_v1  ;;  %v2902_v22 = vsel %vm354_vm0, %v6715_v53, %v6794_v57  ;;  %v6810_v39 = vunpack.i.h.bf16 %v10510_v49  ;;  %3454 = vmatpush1.msra.mxu0 %v3205_v59  ;;  %v15216_v53 = vld [vmem:[#allocation21_spill] sm:$0xff]  ;;  %v3165_v59 = vld [vmem:[%s14658_s3 + $0x320] sm:$0xff] }
 0x3d8   : >> { %v10534_v48 = vmax.f32 %v15214_v60, %v1794_v44  ;;  %v6809_v44 = vunpack.i.l.bf16 %v10510_v49  ;;  %3402 = vmatprep.subr.mxu1 %v3168_v40  ;;  %v15215_v1 = vunpack.i.h.bf16 %v9944_v56  ;;  %v15217_v57 = vmax.f32 %v15216_v53, 0.0  ;;  %6877 = vrot.lane.b32.xlu0 %v6876_v24, %s6999_s21  ;;  %v3202_v49 = vld [vmem:[%s14658_s3 + $0x448] sm:$0xff]  ;;  %v15224_v53 = vld [vmem:[#allocation9_spill] sm:$0xff] }
 0x3d9   : >> { %6867 = vrot.lane.b32.xlu1 %v6866_v12, %s6999_s21  ;;  %v6881_v62 = vpack.i.bf16 %v10508_v30, %v10504_v46  ;;  %v15221_v24 = vunpack.i.h.bf16 %v10228_v63  ;;  %v6815_v36 = vunpack.i.h.bf16 %v6813_v27  ;;  %v6814_v4 = vunpack.i.l.bf16 %v6813_v27  ;;  %3455 = vmatprep.subr.mxu0 %v3204_v54  ;;  %v3201_v63 = vld [vmem:[%s14658_s3 + $0x440] sm:$0xff] }
 0x3da   : >> { %v2919_v31 = vsel %vm354_vm0, %v6805_v38, %v15215_v1  ;;  %v10564_v5 = vmax.f32 %v15217_v57, %v2903_v23  ;;  %v15218_v38 = vmax.f32 %v9836_v19, 0.0  ;;  %v15220_v23 = vunpack.i.l.bf16 %v9944_v56  ;;  %3403 = vmatpush2.msra.mxu1 %v3167_v52  ;;  %3456 = vmatpush1.msra.mxu0 %v3203_v6  ;;  %v15227_v6 = vld [vmem:[#allocation16_spill] sm:$0xff] }
 0x3db   : >> { %v15223_v60 = vmax.f32 %v15222_v16, 0.0  ;;  %v15225_v57 = vmax.f32 %v15224_v53, 0.0  ;;  %v6891_v56 = vpack.i.bf16 %v10530_v8, %v10534_v48  ;;  %3404 = vmatprep.subr.mxu1 %v3166_v42  ;;  %v1776_v27 = vsel %vm354_vm0, %v6809_v44, %v6810_v39  ;;  %3457 = vmatprep.subr.mxu0 %v3202_v49  ;;  %v3162_v49 = vld [vmem:[%s14658_s3 + $0x308] sm:$0xff]  ;;  %v15234_v53 = vld [vmem:[#allocation14_spill] sm:$0xff] }
 0x3dc   : >> { %v10578_v40 = vmax.f32 %v15218_v38, %v2899_v58  ;;  %v1795_v12 = vsel %vm354_vm0, %v15221_v24, %v15220_v23  ;;  %v3164_v58 = vld [vmem:[%s14658_s3 + $0x318] sm:$0xff]  ;;  %v15226_v54 = vunpack.i.l.bf16 %v9986_v26  ;;  %3405 = vmatpush2.msra.mxu1 %v3165_v59  ;;  %v15228_v42 = vmax.f32 %v15227_v6, 0.0  ;;  %v15229_v23 = vld [vmem:[#allocation11_spill] sm:$0xff]  ;;  %3458 = vmatpush1.msra.mxu0 %v3201_v63  ;;  %v15244_v6 = vld [vmem:[#allocation69_spill] sm:$0xff] }
 0x3dd   : >> { %v10588_v1 = vmax.f32 %v15223_v60, %v2902_v22  ;;  %v10592_v19 = vmax.f32 %v15225_v57, %v2898_v25  ;;  %v3200_v25 = vld [vmem:[%s14658_s3 + $0x438] sm:$0xff]  ;;  %v3163_v22 = vld [vmem:[%s14658_s3 + $0x310] sm:$0xff]  ;;  %v15230_v24 = vmax.f32 %v15229_v23, 0.0  ;;  %6892 = vrot.lane.b32.xlu0 %v6891_v56, %s6999_s21  ;;  %6882 = vrot.lane.b32.xlu1 %v6881_v62, %s6999_s21  ;;  %v2904_v59 = vsel %vm354_vm0, %v6755_v50, %v6814_v4 }
 0x3de   : >> { %15219 = vst [vmem:[#allocation68_spill] sm:$0xff] %v10578_v40  ;;  %v1780_v52 = vsel %vm354_vm0, %v15226_v54, %v6809_v44  ;;  %v10616_v38 = vmax.f32 %v15228_v42, %v2919_v31  ;;  %v3199_v44 = vld [vmem:[%s14658_s3 + $0x430] sm:$0xff]  ;;  %v2920_v31 = vsel %vm354_vm0, %v6815_v36, %v6760_v37  ;;  %v6896_v62 = vpack.i.bf16 %v10578_v40, %v10564_v5  ;;  %v3161_v50 = vld [vmem:[%s14658_s3 + $0x300] sm:$0xff] }
 0x3df   : >> { %v10620_v26 = vmax.f32 %v15230_v24, %v1795_v12  ;;  %3406 = vmatprep.subr.mxu1 %v3164_v58  ;;  %v15231_v12 = vld [vmem:[#allocation13_spill] sm:$0xff]  ;;  %v15235_v57 = vmax.f32 %v15234_v53, 0.0  ;;  %v6886_v37 = vpack.i.bf16 %v10592_v19, %v10588_v1  ;;  %3459 = vmatprep.subr.mxu0 %v3200_v25  ;;  %v2900_v63 = vsel %vm354_vm0, %v6814_v4, %v6815_v36  ;;  %v3197_v54 = vld [vmem:[%s14658_s3 + $0x420] sm:$0xff] }
 0x3e0   : >> { %v15232_v16 = vmax.f32 %v15231_v12, 0.0  ;;  %3407 = vmatpush2.msra.mxu1 %v3163_v22  ;;  %v15237_v58 = vunpack.i.l.bf16 %v10176_v13  ;;  %3460 = vmatpush1.msra.mxu0 %v3199_v44  ;;  %v15238_v36 = vld [vmem:[#allocation63_spill] sm:$0xff]  ;;  %v15245_v42 = vmax.f32 %v15244_v6, 0.0  ;;  %v15247_v24 = vld [vmem:[#allocation17_spill] sm:$0xff]  ;;  %v3194_v12 = vld [vmem:[%s14658_s3 + $0x408] sm:$0xff] }
 0x3e1   : >> { %v10646_v56 = vmax.f32 %v15235_v57, %v1776_v27  ;;  %3408 = vmatprep.subr.mxu1 %v3162_v49  ;;  %6897 = vrot.lane.b32.xlu0 %v6896_v62, %s6999_s21  ;;  %v15239_v4 = vmax.f32 %v15238_v36, 0.0  ;;  %v15241_v25 = vld [vmem:[#allocation35_spill] sm:$0xff]  ;;  %v15248_v44 = vmax.f32 %v15247_v24, 0.0  ;;  %v3248_v36 = vld [vmem:[%s14658_s3 + $0x5b8] sm:$0xff]  ;;  %v3242_v24 = vld [vmem:[%s14658_s3 + $0x588] sm:$0xff] }
 0x3e2   : >> { %v10642_v60 = vmax.f32 %v15232_v16, %v1780_v52  ;;  %v1796_v27 = vsel %vm354_vm0, %v6810_v39, %v15237_v58  ;;  %6887 = vrot.lane.b32.xlu1 %v6886_v37, %s6999_s21  ;;  %v3196_v52 = vld [vmem:[%s14658_s3 + $0x418] sm:$0xff]  ;;  %v15242_v39 = vmax.f32 %v15241_v25, 0.0  ;;  %3461 = vmatprep.subr.mxu0 %v3198_v61  ;;  %v10680_v23 = vmax.f32 %v15245_v42, %v2900_v63  ;;  %v3193_v16 = vld [vmem:[%s14658_s3 + $0x400] sm:$0xff]  ;;  %v3255_v61 = vld [vmem:[%s14658_s3 + $0x5f0] sm:$0xff] }
 0x3e3   : >> { %15236 = vst [vmem:[#allocation22_spill] sm:$0xff] %v10646_v56  ;;  %v10672_v13 = vmax.f32 %v15239_v4, %v2920_v31  ;;  %3409 = vmatpush2.msra.mxu1 %v3161_v50  ;;  %v10684_v49 = vmax.f32 %v15248_v44, %v1796_v27  ;;  %v6906_v31 = vpack.i.bf16 %v10616_v38, %v10620_v26  ;;  %v3256_v37 = vld [vmem:[%s14658_s3 + $0x5f8] sm:$0xff]  ;;  %v3254_v50 = vld [vmem:[%s14658_s3 + $0x5e8] sm:$0xff]  ;;  %v3253_v63 = vld [vmem:[%s14658_s3 + $0x5e0] sm:$0xff] }
 0x3e4   : >> { %15233 = vst [vmem:[#allocation65_spill] sm:$0xff] %v10642_v60  ;;  %v10676_v22 = vmax.f32 %v15242_v39, %v2904_v59  ;;  %15246 = vst [vmem:[#allocation57_spill] sm:$0xff] %v10680_v23  ;;  %v6901_v62 = vpack.i.bf16 %v10646_v56, %v10642_v60  ;;  %3462 = vmatpush1.msra.mxu0 %v3197_v54  ;;  %v3195_v59 = vld [vmem:[%s14658_s3 + $0x410] sm:$0xff]  ;;  %v3252_v58 = vld [vmem:[%s14658_s3 + $0x5d8] sm:$0xff] }
 0x3e5   : >> { %15240 = vst [vmem:[#allocation28_spill] sm:$0xff] %v10672_v13  ;;  %15249 = vst [vmem:[#allocation33_spill] sm:$0xff] %v10684_v49  ;;  %3463 = vmatprep.subr.mxu0 %v3196_v52  ;;  %v6916_v53 = vpack.i.bf16 %v10672_v13, %v10684_v49  ;;  %v3251_v27 = vld [vmem:[%s14658_s3 + $0x5d0] sm:$0xff]  ;;  %v3250_v54 = vld [vmem:[%s14658_s3 + $0x5c8] sm:$0xff] }
 0x3e6   : >> { %15243 = vst [vmem:[#allocation31_spill] sm:$0xff] %v10676_v22  ;;  %6902 = vrot.lane.b32.xlu0 %v6901_v62, %s6999_s21  ;;  %6907 = vrot.lane.b32.xlu1 %v6906_v31, %s6999_s21  ;;  %v6911_v57 = vpack.i.bf16 %v10680_v23, %v10676_v22  ;;  %v3249_v52 = vld [vmem:[%s14658_s3 + $0x5c0] sm:$0xff]  ;;  %v3247_v4 = vld [vmem:[%s14658_s3 + $0x5b0] sm:$0xff] }
 0x3e7   : >> { %3464 = vmatpush1.msra.mxu0 %v3195_v59  ;;  %v3246_v25 = vld [vmem:[%s14658_s3 + $0x5a8] sm:$0xff]  ;;  %v3245_v39 = vld [vmem:[%s14658_s3 + $0x5a0] sm:$0xff]  ;;  %v3244_v6 = vld [vmem:[%s14658_s3 + $0x598] sm:$0xff] }
 0x3e8   : >> { %3465 = vmatprep.subr.mxu0 %v3194_v12  ;;  %v3243_v42 = vld [vmem:[%s14658_s3 + $0x590] sm:$0xff]  ;;  %v3241_v44 = vld [vmem:[%s14658_s3 + $0x580] sm:$0xff]  ;;  %v3240_v62 = vld [vmem:[%s14658_s3 + $0x578] sm:$0xff] }
 0x3e9   : >> { %3466 = vmatpush1.msra.mxu0 %v3193_v16  ;;  %v3239_v31 = vld [vmem:[%s14658_s3 + $0x570] sm:$0xff]  ;;  %v3238_v59 = vld [vmem:[%s14658_s3 + $0x568] sm:$0xff]  ;;  %v3237_v12 = vld [vmem:[%s14658_s3 + $0x560] sm:$0xff] }
 0x3ea   : >> { %6917 = vrot.lane.b32.xlu0 %v6916_v53, %s6999_s21  ;;  %6912 = vrot.lane.b32.xlu1 %v6911_v57, %s6999_s21  ;;  %v3236_v16 = vld [vmem:[%s14658_s3 + $0x558] sm:$0xff]  ;;  %v3235_v53 = vld [vmem:[%s14658_s3 + $0x550] sm:$0xff] }
 0x3eb   : >> { %3467 = vmatprep.subr.mxu0 %v3256_v37  ;;  %v3234_v57 = vld [vmem:[%s14658_s3 + $0x548] sm:$0xff]  ;;  %v3233_v37 = vld [vmem:[%s14658_s3 + $0x540] sm:$0xff] }
 0x3ec   : >> { %3468 = vmatpush2.msra.mxu0 %v3255_v61  ;;  %v3232_v61 = vld [vmem:[%s14658_s3 + $0x538] sm:$0xff] }
 0x3ed   : >> { %3469 = vmatprep.subr.mxu0 %v3254_v50  ;;  %v3231_v50 = vld [vmem:[%s14658_s3 + $0x530] sm:$0xff] }
 0x3ee   : >> { %3470 = vmatpush2.msra.mxu0 %v3253_v63  ;;  %v3230_v63 = vld [vmem:[%s14658_s3 + $0x528] sm:$0xff] }
 0x3ef   : >> { %3471 = vmatprep.subr.mxu0 %v3252_v58  ;;  %v3229_v58 = vld [vmem:[%s14658_s3 + $0x520] sm:$0xff] }
 0x3f0   : >> { %3472 = vmatpush2.msra.mxu0 %v3251_v27  ;;  %v3228_v27 = vld [vmem:[%s14658_s3 + $0x518] sm:$0xff] }
 0x3f1   : >> { %3473 = vmatprep.subr.mxu0 %v3250_v54  ;;  %v3227_v54 = vld [vmem:[%s14658_s3 + $0x510] sm:$0xff] }
 0x3f2   : >> { %3474 = vmatpush2.msra.mxu0 %v3249_v52  ;;  %v3226_v52 = vld [vmem:[%s14658_s3 + $0x508] sm:$0xff] }
 0x3f3   : >> { %3475 = vmatprep.subr.mxu0 %v3248_v36  ;;  %v3225_v36 = vld [vmem:[%s14658_s3 + $0x500] sm:$0xff] }
 0x3f4   : >> { %3476 = vmatpush2.msra.mxu0 %v3247_v4  ;;  %v6818_v4 = vpop.permute.xlu0 %6817 }
 0x3f5   : >> { %3477 = vmatprep.subr.mxu0 %v3246_v25  ;;  %v6823_v25 = vpop.permute.xlu1 %6822 }
 0x3f6   : >> { %3478 = vmatpush2.msra.mxu0 %v3245_v39 }
 0x3f7   : >> { %3479 = vmatprep.subr.mxu0 %v3244_v6 }
 0x3f8   : >> { %3480 = vmatpush2.msra.mxu0 %v3243_v42  ;;  %v10803_v39 = vpop.permute.xlu0 %6827  ;;  %v6825_v42 = vunpack.i.h.bf16 %v6823_v25 }
 0x3f9   : >> { %3481 = vmatprep.subr.mxu0 %v3242_v24  ;;  %v10805_v6 = vpop.permute.xlu1 %6832  ;;  %v6824_v24 = vunpack.i.l.bf16 %v6823_v25 }
 0x3fa   : >> { %3482 = vmatpush2.msra.mxu0 %v3241_v44  ;;  %v6820_v44 = vunpack.i.h.bf16 %v6818_v4 }
 0x3fb   : >> { %3483 = vmatprep.subr.mxu0 %v3240_v62  ;;  %v6819_v62 = vunpack.i.l.bf16 %v6818_v4 }
 0x3fc   : >> { %3484 = vmatpush2.msra.mxu0 %v3239_v31 }
 0x3fd   : >> { %3485 = vmatprep.subr.mxu0 %v3238_v59  ;;  %v14836_v59 = vunpack.i.h.bf16 %v10803_v39 }
 0x3fe   : >> { %3486 = vmatpush2.msra.mxu0 %v3237_v12  ;;  %v6829_v12 = vunpack.i.l.bf16 %v10803_v39 }
 0x3ff   : >> { %3487 = vmatprep.subr.mxu0 %v3236_v16  ;;  %v6834_v16 = vunpack.i.l.bf16 %v10805_v6 }
 0x400   : >> { %3488 = vmatpush2.msra.mxu0 %v3235_v53  ;;  %v14840_v53 = vunpack.i.h.bf16 %v10805_v6 }
 0x401   : >> { %3489 = vmatprep.subr.mxu0 %v3234_v57  ;;  %v1883_v57 = vsel %vm392_vm6, %v6824_v24, %v6825_v42 }
 0x402   : >> { %3490 = vmatpush2.msra.mxu0 %v3233_v37  ;;  %v1882_v37 = vsel %vm392_vm6, %v6819_v62, %v6820_v44  ;;  %v10840_v4 = vsel %vm392_vm6, %v6834_v16, %v14840_v53 }
 0x403   : >> { %3491 = vmatprep.subr.mxu0 %v3232_v61  ;;  %v1900_v25 = vmax.f32 %v9992_v28, %v1882_v37 }
 0x404   : >> { %3492 = vmatpush2.msra.mxu0 %v3231_v50 }
 0x405   : >> { %3493 = vmatprep.subr.mxu0 %v3230_v63  ;;  %v10825_v63 = vsel %vm392_vm6, %v6829_v12, %v14836_v59  ;;  %v15251_v59 = vld [vmem:[#allocation10_spill] sm:$0xff] }
 0x406   : >> { %3494 = vmatpush2.msra.mxu0 %v3229_v58  ;;  %v15250_v58 = vunpack.i.h.bf16 %v10180_v3  ;;  %v1906_v3 = vmax.f32 %v9984_v20, %v1883_v57 }
 0x407   : >> { %3495 = vmatprep.subr.mxu0 %v3228_v27 }
 0x408   : >> { %3496 = vmatpush2.msra.mxu0 %v3227_v54  ;;  %v10831_v27 = vsel %vm392_vm6, %v15250_v58, %v6834_v16  ;;  %v1896_v16 = vmax.f32 %v10036_v47, %v10840_v4 }
 0x409   : >> { %3497 = vmatprep.subr.mxu0 %v3226_v52 }
 0x40a   : >> { %3498 = vmatpush2.msra.mxu0 %v3225_v36 }
 0x43a   : >> { %v10807_v31 = vpop.permute.xlu0 %6837 }
 0x43b   : >> { %v6839_v36 = vunpack.i.l.bf16 %v10807_v31  ;;  %v15252_v53 = vunpack.i.h.bf16 %v10807_v31 }
 0x43d   : >> { %v10819_v50 = vpop.permute.xlu1 %6842  ;;  %v10873_v23 = vsel %vm392_vm6, %v6820_v44, %v6839_v36 }
 0x43e   : >> { %v10817_v61 = vpop.permute.xlu0 %6852  ;;  %v6844_v58 = vunpack.i.l.bf16 %v10819_v50 }
 0x43f   : >> { %v14841_v54 = vunpack.i.l.bf16 %v10817_v61 }
 0x441   : >> { %v1886_v52 = vsel %vm392_vm6, %v14841_v54, %v6819_v62  ;;  %v10853_v9 = vpop.permute.xlu1 %6847  ;;  %v10865_v62 = vsel %vm392_vm6, %v6839_v36, %v15252_v53  ;;  %v15254_v54 = vunpack.i.h.bf16 %v10817_v61 }
 0x442   : >> { %v10851_v56 = vpop.permute.xlu0 %6857  ;;  %v6849_v37 = vunpack.i.l.bf16 %v10853_v9  ;;  %v15253_v13 = vunpack.i.h.bf16 %v10853_v9  ;;  %v1899_v36 = vmax.f32 %v10294_v35, %v1886_v52 }
 0x443   : >> { %v14844_v28 = vunpack.i.h.bf16 %v10851_v56  ;;  %v6859_v20 = vunpack.i.l.bf16 %v10851_v56 }
 0x444   : >> { %v3006_v53 = vsel %vm392_vm6, %v6849_v37, %v15253_v13  ;;  %v3010_v49 = vsel %vm392_vm6, %v15254_v54, %v6849_v37  ;;  %v15255_v37 = vunpack.i.h.bf16 %v10819_v50 }
 0x445   : >> { %v3007_v57 = vsel %vm392_vm6, %v6859_v20, %v14844_v28  ;;  %v10889_v4 = vpop.permute.xlu1 %6862  ;;  %v3024_v44 = vmax.f32 %v10334_v34, %v3006_v53  ;;  %v3023_v28 = vmax.f32 %v10299_v10, %v3010_v49  ;;  %v15256_v10 = vld [vmem:[#allocation24_spill] sm:$0xff]  ;;  %v10910_v49 = vsel %vm392_vm6, %v6825_v42, %v6844_v58 }
 0x446   : >> { %v10887_v47 = vpop.permute.xlu0 %6872  ;;  %v3030_v22 = vmax.f32 %v10339_v33, %v3007_v57  ;;  %v14849_v13 = vunpack.i.h.bf16 %v10889_v4  ;;  %v14851_v40 = vunpack.i.l.bf16 %v10889_v4  ;;  %v10904_v34 = vsel %vm392_vm6, %v6844_v58, %v15255_v37 }
 0x447   : >> { %v14848_v60 = vunpack.i.l.bf16 %v10887_v47  ;;  %v3048_v35 = vmax.f32 %v1900_v25, %v3024_v44  ;;  %v3047_v52 = vmax.f32 %v1899_v36, %v3023_v28  ;;  %v14852_v28 = vunpack.i.h.bf16 %v10887_v47 }
 0x448   : >> { %v3011_v53 = vsel %vm392_vm6, %v14849_v13, %v6859_v20  ;;  %v1887_v25 = vsel %vm392_vm6, %v14851_v40, %v6824_v24  ;;  %v3054_v58 = vmax.f32 %v1906_v3, %v3030_v22  ;;  %v15257_v22 = vld [vmem:[#allocation67_spill] sm:$0xff] }
 0x449   : >> { %v1888_v57 = vsel %vm392_vm6, %v14848_v60, %v6829_v12  ;;  %3327 = vmatprep.mubr.f32.mxu0 %v3048_v35  ;;  %v1905_v36 = vmax.f32 %v10401_v7, %v1887_v25  ;;  %v3029_v12 = vmax.f32 %v10406_v11, %v3011_v53  ;;  %v15258_v11 = vld [vmem:[#allocation19_spill] sm:$0xff] }
 0x44a   : >> { %v6878_v44 = vpop.permute.xlu0 %6877  ;;  %3328 = vmatmul.mubr.f32.gmra.mxu0 %v3047_v52  ;;  %v1911_v54 = vmax.f32 %v10416_v14, %v1888_v57  ;;  %v15259_v35 = vunpack.i.h.bf16 %v15258_v11  ;;  %v15260_v57 = vld [vmem:[#allocation66_spill] sm:$0xff] }
 0x44b   : >> { %v10925_v42 = vpop.permute.xlu1 %6867  ;;  %v6880_v37 = vunpack.i.h.bf16 %v6878_v44  ;;  %v6879_v60 = vunpack.i.l.bf16 %v6878_v44  ;;  %3333 = vmatprep.mubr.f32.mxu0 %v3054_v58  ;;  %v3053_v24 = vmax.f32 %v1905_v36, %v3029_v12 }
 0x44c   : >> { %v14850_v20 = vunpack.i.h.bf16 %v10925_v42  ;;  %v6869_v33 = vunpack.i.l.bf16 %v10925_v42 }
 0x44d   : >> { %v2997_v7 = vsel %vm392_vm6, %v6879_v60, %v6880_v37  ;;  %v3001_v53 = vsel %vm392_vm6, %v15259_v35, %v6879_v60 }
 0x44e   : >> { %v3008_v52 = vsel %vm392_vm6, %v6869_v33, %v14850_v20  ;;  %v3012_v14 = vsel %vm392_vm6, %v14852_v28, %v6869_v33  ;;  %v3019_v25 = vmax.f32 %v15260_v57, %v3001_v53  ;;  %v3020_v12 = vmax.f32 %v10462_v2, %v2997_v7  ;;  %3334 = vmatmul.mubr.f32.gmra.mxu0 %v3053_v24 }
 0x44f   : >> { %v6893_v44 = vpop.permute.xlu0 %6892  ;;  %v6883_v58 = vpop.permute.xlu1 %6882  ;;  %v3036_v36 = vmax.f32 %v10446_v0, %v3008_v52  ;;  %v3035_v60 = vmax.f32 %v10420_v18, %v3012_v14  ;;  %v15261_v20 = vmax.f32 %v15251_v59, %v10831_v27  ;;  %v15262_v33 = vmax.f32 %v10032_v45, %v10825_v63 }
 0x450   : >> { %v6895_v11 = vunpack.i.h.bf16 %v6893_v44  ;;  %v6894_v35 = vunpack.i.l.bf16 %v6893_v44  ;;  %v6885_v3 = vunpack.i.h.bf16 %v6883_v58  ;;  %v6884_v13 = vunpack.i.l.bf16 %v6883_v58 }
 0x451   : >> { %v3043_v40 = vmax.f32 %v15261_v20, %v3019_v25  ;;  %v3060_v53 = vmax.f32 %v15262_v33, %v3036_v36  ;;  %v3044_v57 = vmax.f32 %v1896_v16, %v3020_v12  ;;  %v3059_v28 = vmax.f32 %v1911_v54, %v3035_v60 }
 0x452   : >> { %v15263_v0 = vunpack.i.h.bf16 %v10807_v31  ;;  %v15264_v2 = vunpack.i.l.bf16 %v10817_v61  ;;  %v15265_v59 = vunpack.i.h.bf16 %v10817_v61  ;;  %v2993_v45 = vsel %vm392_vm6, %v6880_v37, %v6885_v3  ;;  %v15269_v37 = vld [vmem:[#allocation23_spill] sm:$0xff] }
 0x453   : >> { %v15266_v63 = vunpack.i.h.bf16 %v10188_v41  ;;  %v3021_v16 = vmax.f32 %v10466_v51, %v2993_v45  ;;  %v15267_v54 = vunpack.i.h.bf16 %v10805_v6  ;;  %v15268_v61 = vunpack.i.l.bf16 %v10188_v41  ;;  %v6898_v52 = vpop.permute.xlu0 %6897  ;;  %3339 = vmatprep.mubr.f32.mxu0 %v3060_v53  ;;  %3410 = vmatprep.mubr.f32.mxu1 %v3044_v57 }
 0x454   : >> { %v10964_v18 = vsel %vm392_vm6, %v15263_v0, %v6894_v35  ;;  %v1890_v24 = vsel %vm392_vm6, %v6894_v35, %v15264_v2  ;;  %v3014_v27 = vsel %vm392_vm6, %v6895_v11, %v15265_v59  ;;  %v6888_v14 = vpop.permute.xlu1 %6887  ;;  %v6900_v44 = vunpack.i.h.bf16 %v6898_v52  ;;  %3340 = vmatmul.mubr.f32.gmra.mxu0 %v3059_v28  ;;  %3411 = vmatmul.mubr.f32.vlgmr.msra.gmra.mxu1 %v3043_v40 }
 0x455   : >> { %v3013_v31 = vsel %vm392_vm6, %v6885_v3, %v15266_v63  ;;  %v1869_v20 = vsel %vm392_vm6, %v15267_v54, %v6884_v13  ;;  %v1889_v7 = vsel %vm392_vm6, %v6884_v13, %v15268_v61  ;;  %v6899_v58 = vunpack.i.l.bf16 %v6898_v52 }
 0x456   : >> { %v1897_v25 = vmax.f32 %v15269_v37, %v1869_v20  ;;  %v6890_v3 = vunpack.i.h.bf16 %v6888_v14  ;;  %v6889_v51 = vunpack.i.l.bf16 %v6888_v14  ;;  %v1898_v6 = vmax.f32 %v10504_v46, %v1889_v7 }
 0x457   : >> { %v3022_v36 = vmax.f32 %v10508_v30, %v3013_v31  ;;  %v1904_v41 = vmax.f32 %v10534_v48, %v1890_v24  ;;  %v2999_v13 = vsel %vm392_vm6, %v6899_v58, %v6900_v44  ;;  %v15270_v60 = vunpack.i.h.bf16 %v10851_v56 }
 0x458   : >> { %v3045_v12 = vmax.f32 %v1897_v25, %v3021_v16  ;;  %v2994_v28 = vsel %vm392_vm6, %v6890_v3, %v6895_v11  ;;  %v2998_v40 = vsel %vm392_vm6, %v6889_v51, %v6890_v3  ;;  %v15271_v46 = vunpack.i.h.bf16 %v10853_v9  ;;  %v6903_v48 = vpop.permute.xlu0 %6902  ;;  %v6908_v33 = vpop.permute.xlu1 %6907 }
 0x459   : >> { %v3003_v35 = vsel %vm392_vm6, %v15270_v60, %v6899_v58  ;;  %v3046_v53 = vmax.f32 %v1898_v6, %v3022_v36  ;;  %v3028_v57 = vmax.f32 %v10530_v8, %v3014_v27  ;;  %v6905_v56 = vunpack.i.h.bf16 %v6903_v48 }
 0x45a   : >> { %v3002_v30 = vsel %vm392_vm6, %v15271_v46, %v6889_v51  ;;  %v6904_v0 = vunpack.i.l.bf16 %v6903_v48  ;;  %v6910_v2 = vunpack.i.h.bf16 %v6908_v33  ;;  %v6909_v24 = vunpack.i.l.bf16 %v6908_v33  ;;  %v15283_v46 = vld [vmem:[#allocation65_spill] sm:$0xff] }
 0x45b   : >> { %3499 = vmatprep.mubr.f32.mxu0 %v3046_v53  ;;  %v3052_v59 = vmax.f32 %v1904_v41, %v3028_v57  ;;  %v3026_v11 = vmax.f32 %v10588_v1, %v2998_v40  ;;  %v3025_v45 = vmax.f32 %v10349_v15, %v3002_v30  ;;  %v1903_v9 = vmax.f32 %v10259_v17, %v10964_v18  ;;  %v15285_v33 = vld [vmem:[#allocation33_spill] sm:$0xff] }
 0x45c   : >> { %v1876_v63 = vsel %vm392_vm6, %v6904_v0, %v6905_v56  ;;  %v15272_v31 = vunpack.i.h.bf16 %v10803_v39  ;;  %v2995_v27 = vsel %vm392_vm6, %v6900_v44, %v6910_v2  ;;  %v15273_v16 = vunpack.i.h.bf16 %v10819_v50  ;;  %3500 = vmatmul.mubr.f32.vlgmr.msra.gmra.mxu0 %v3045_v12  ;;  %v6918_v54 = vpop.permute.xlu0 %6917  ;;  %v6913_v20 = vpop.permute.xlu1 %6912 }
 0x45d   : >> { %v15274_v15 = vunpack.i.l.bf16 %v10889_v4  ;;  %v15275_v18 = vunpack.i.h.bf16 %v10889_v4  ;;  %3505 = vmatprep.mubr.f32.mxu0 %v3052_v59  ;;  %v15276_v50 = vmax.f32 %v10255_v29, %v10865_v62  ;;  %v15277_v7 = vmax.f32 %v15256_v10, %v10873_v23  ;;  %v15290_v59 = vld [vmem:[#allocation22_spill] sm:$0xff] }
 0x45e   : >> { %v1880_v8 = vsel %vm392_vm6, %v15272_v31, %v6904_v0  ;;  %v1871_v1 = vsel %vm392_vm6, %v15273_v16, %v6909_v24  ;;  %v6920_v14 = vunpack.i.h.bf16 %v6918_v54  ;;  %v6919_v37 = vunpack.i.l.bf16 %v6918_v54 }
 0x45f   : >> { %v1891_v17 = vsel %vm392_vm6, %v6909_v24, %v15274_v15  ;;  %v3015_v39 = vsel %vm392_vm6, %v6910_v2, %v15275_v18  ;;  %v3050_v61 = vmax.f32 %v15276_v50, %v3026_v11  ;;  %v3049_v52 = vmax.f32 %v15277_v7, %v3025_v45  ;;  %v15289_v2 = vld [vmem:[#allocation26_spill] sm:$0xff]  ;;  %v15291_v45 = vld [vmem:[#allocation57_spill] sm:$0xff] }
 0x460   : >> { %v6915_v25 = vunpack.i.h.bf16 %v6913_v20  ;;  %v6914_v44 = vunpack.i.l.bf16 %v6913_v20  ;;  %v3027_v4 = vmax.f32 %v10592_v19, %v2994_v28  ;;  %v3032_v58 = vmax.f32 %v10564_v5, %v2999_v13  ;;  %v15282_v28 = vld [vmem:[#allocation68_spill] sm:$0xff] }
 0x461   : >> { %3416 = vmatprep.mubr.f32.mxu1 %v3050_v61  ;;  %v1910_v3 = vmax.f32 %v10620_v26, %v1891_v17  ;;  %v3034_v51 = vmax.f32 %v10616_v38, %v3015_v39  ;;  %v1872_v29 = vsel %vm392_vm6, %v6905_v56, %v6919_v37  ;;  %v15278_v62 = vunpack.i.l.bf16 %v10887_v47  ;;  %v15287_v56 = vld [vmem:[#allocation28_spill] sm:$0xff] }
 0x462   : >> { %v15279_v10 = vunpack.i.h.bf16 %v10887_v47  ;;  %v2996_v5 = vsel %vm392_vm6, %v6915_v25, %v6920_v14  ;;  %3417 = vmatmul.mubr.f32.gmra.mxu1 %v3049_v52  ;;  %v3000_v19 = vsel %vm392_vm6, %v6914_v44, %v6915_v25  ;;  %v15280_v38 = vunpack.i.h.bf16 %v10925_v42  ;;  %v15284_v42 = vld [vmem:[#allocation31_spill] sm:$0xff] }
 0x463   : >> { %v1892_v23 = vsel %vm392_vm6, %v6919_v37, %v15278_v62  ;;  %v3051_v36 = vmax.f32 %v1903_v9, %v3027_v4  ;;  %v15281_v41 = vmax.f32 %v10303_v32, %v10904_v34  ;;  %v3058_v12 = vmax.f32 %v1910_v3, %v3034_v51 }
 0x464   : >> { %v3016_v6 = vsel %vm392_vm6, %v6920_v14, %v15279_v10  ;;  %v3004_v26 = vsel %vm392_vm6, %v15280_v38, %v6914_v44  ;;  %v3031_v13 = vmax.f32 %v10355_v43, %v3003_v35  ;;  %v1909_v60 = vmax.f32 %v10307_v55, %v1871_v1  ;;  %v15288_v35 = vld [vmem:[#allocation58_spill] sm:$0xff] }
 0x465   : >> { %v3056_v47 = vmax.f32 %v15281_v41, %v3032_v58  ;;  %v3033_v40 = vmax.f32 %v15282_v28, %v2995_v27  ;;  %3506 = vmatmul.mubr.f32.gmra.mxu0 %v3051_v36  ;;  %v1914_v30 = vmax.f32 %v15283_v46, %v1876_v63  ;;  %v3038_v48 = vmax.f32 %v15284_v42, %v3000_v19 }
 0x466   : >> { %v1916_v53 = vmax.f32 %v15285_v33, %v1892_v23  ;;  %3511 = vmatprep.mubr.f32.mxu0 %v3058_v12  ;;  %v15286_v32 = vmax.f32 %v15257_v22, %v10910_v49  ;;  %v3040_v43 = vmax.f32 %v15287_v56, %v3016_v6  ;;  %v1913_v55 = vmax.f32 %v15288_v35, %v1880_v8 }
 0x467   : >> { %3422 = vmatprep.mubr.f32.mxu1 %v3056_v47  ;;  %v3057_v57 = vmax.f32 %v1909_v60, %v3033_v40  ;;  %v3062_v0 = vmax.f32 %v1914_v30, %v3038_v48  ;;  %v3037_v24 = vmax.f32 %v15289_v2, %v3004_v26  ;;  %v1915_v11 = vmax.f32 %v15290_v59, %v1872_v29 }
 0x468   : >> { %v3055_v34 = vmax.f32 %v15286_v32, %v3031_v13  ;;  %v3039_v9 = vmax.f32 %v15291_v45, %v2996_v5  ;;  %v3064_v63 = vmax.f32 %v1916_v53, %v3040_v43  ;;  %v11091_v46 = vmov (%p301_p4), 0.0  }
 0x469   : >> { %3512 = vmatmul.mubr.f32.gmra.mxu0 %v3057_v57  ;;  %v3061_v31 = vmax.f32 %v1913_v55, %v3037_v24 }
 0x46a   : >> { %3423 = vmatmul.mubr.f32.gmra.mxu1 %v3055_v34  ;;  %v3063_v49 = vmax.f32 %v1915_v11, %v3039_v9  ;;  %3517 = vmatprep.mubr.f32.mxu0 %v3064_v63 }
 0x46b   : >> { %3428 = vmatprep.mubr.f32.mxu1 %v3062_v0 }
 0x46d   : >> { %3518 = vmatmul.mubr.f32.gmra.mxu0 %v3063_v49 }
 0x46e   : >> { %3429 = vmatmul.mubr.f32.gmra.mxu1 %v3061_v31 }
 0x482   : >> { %v3323_v22 = vpop.f32.mrf.mxu0 }
 0x484   : >> { %v3325_v27 = vpop.f32.mrf.mxu0 }
 0x50a   : >> { %v3329_v8 = vpop.f32.mrf.mxu0 }
 0x50c   : >> { %v3331_v16 = vpop.f32.mrf.mxu0 }
 0x50e   : >> { %v3335_v1 = vpop.f32.mrf.mxu0 }
 0x510   : >> { %v3337_v15 = vpop.f32.mrf.mxu0 }
 0x514   : >> { %v3341_v17 = vpop.f32.mrf.mxu0  ;;  %v3412_v18 = vpop.f32.mrf.mxu1 }
 0x515   : >> { %v3413_v20 = vadd.f32 %v3412_v18, %v3323_v22 }
 0x516   : >> { %v3343_v39 = vpop.f32.mrf.mxu0  ;;  %v3414_v54 = vpop.f32.mrf.mxu1 }
 0x517   : >> { %v3415_v61 = vadd.f32 %v3414_v54, %v3325_v27 }
 0x51c   : >> { %v3501_v50 = vpop.f32.mrf.mxu0 }
 0x51d   : >> { %v3502_v7 = vadd.f32 %v3501_v50, %v3413_v20 }
 0x51e   : >> { %v3503_v52 = vpop.f32.mrf.mxu0 }
 0x51f   : >> { %3527 = vst [vmem:[%s11078_s24] sm:$0xff] %v3502_v7  ;;  %v3504_v14 = vadd.f32 %v3503_v52, %v3415_v61 }
 0x521   : >> { %3528 = vst [vmem:[%s11078_s24 + $0x8] sm:$0xff] %v3504_v14 }
 0x522   : >> { %v3418_v37 = vpop.f32.mrf.mxu1 }
 0x523   : >> { %v3419_v25 = vadd.f32 %v3418_v37, %v3329_v8 }
 0x524   : >> { %v3420_v44 = vpop.f32.mrf.mxu1 }
 0x525   : >> { %v3507_v4 = vpop.f32.mrf.mxu0  ;;  %v3421_v58 = vadd.f32 %v3420_v44, %v3331_v16 }
 0x526   : >> { %v3508_v3 = vadd.f32 %v3507_v4, %v3419_v25 }
 0x527   : >> { %v3509_v51 = vpop.f32.mrf.mxu0 }
 0x528   : >> { %3529 = vst [vmem:[%s11078_s24 + $0x10] sm:$0xff] %v3508_v3  ;;  %v3510_v29 = vadd.f32 %v3509_v51, %v3421_v58 }
 0x529   : >> { %v3513_v10 = vpop.f32.mrf.mxu0 }
 0x52a   : >> { %v3424_v62 = vpop.f32.mrf.mxu1  ;;  %3530 = vst [vmem:[%s11078_s24 + $0x18] sm:$0xff] %v3510_v29 }
 0x52b   : >> { %v3425_v23 = vadd.f32 %v3424_v62, %v3335_v1  ;;  %v3515_v38 = vpop.f32.mrf.mxu0 }
 0x52c   : >> { %v3426_v6 = vpop.f32.mrf.mxu1 }
 0x52d   : >> { %v3514_v5 = vadd.f32 %v3513_v10, %v3425_v23  ;;  %v3427_v19 = vadd.f32 %v3426_v6, %v3337_v15  ;;  %v3519_v47 = vpop.f32.mrf.mxu0 }
 0x52e   : >> { %v3430_v26 = vpop.f32.mrf.mxu1 }
 0x52f   : >> { %3531 = vst [vmem:[%s11078_s24 + $0x20] sm:$0xff] %v3514_v5  ;;  %v3516_v36 = vadd.f32 %v3515_v38, %v3427_v19  ;;  %v3431_v41 = vadd.f32 %v3430_v26, %v3341_v17  ;;  %v3521_v28 = vpop.f32.mrf.mxu0 }
 0x530   : >> { %v3432_v12 = vpop.f32.mrf.mxu1 }
 0x531   : >> { %3532 = vst [vmem:[%s11078_s24 + $0x28] sm:$0xff] %v3516_v36  ;;  %v3520_v13 = vadd.f32 %v3519_v47, %v3431_v41  ;;  %v3433_v60 = vadd.f32 %v3432_v12, %v3343_v39  ;;  %303 = sbr.rel (!%p301_p4) target bundleno = 15 (0xf), region = 106 }
 0x533   : >> { %3533 = vst [vmem:[%s11078_s24 + $0x30] sm:$0xff] %v3520_v13  ;;  %v3522_v40 = vadd.f32 %v3521_v28, %v3433_v60 }
 0x535   : >> { %3534 = vst [vmem:[%s11078_s24 + $0x38] sm:$0xff] %v3522_v40 }
 0x536 LB: >> { %15292 = vst [vmem:[#allocation70_spill] sm:$0xff] %v6989_v46  ;;  %s6621_s26 = sshll.u32 %s6993_s25, 7  ;;  %s7005_s13 = smov 127   ;;  %vm3622_vm1 = vcmp.lt.s32.totalorder %v7275_v21, 116  ;;  %vm3722_vm2 = vcmp.lt.s32.totalorder %v7275_v21, 103  ;;  %vm3697_vm3 = vcmp.lt.s32.totalorder %v7275_v21, 104  ;;  %s6993_s25 = sphi %s11093_s25, %s3540_s25   ;;  %v6989_v46 = vphi %v11091_v46, %v15471_v46  }
 0x537   : >> { %s11102_s19 = scalar_lea.vmem [#allocation2], %s6621_s26  ;;  %s7006_s14 = smov 126   ;;  %vm3672_vm5 = vcmp.lt.s32.totalorder %v7275_v21, 114  ;;  %vm3647_vm6 = vcmp.lt.s32.totalorder %v7275_v21, 115  ;;  %vm3747_vm7 = vcmp.lt.s32.totalorder %v7275_v21, 102  ;;  %v4173_v46 = vld [vmem:[%s14659_s4 + $0x48] sm:$0xff] }
 0x538   : >> { %s7007_s29 = smov 116   ;;  %s7008_s30 = smov 115   ;;  %vm4268_vm8 = vcmask 785408   ;;  %vm6398_vm9 = vcmask 7168   ;;  %vm6400_vm10 = vcmask 15360   ;;  %vm6402_vm11 = vcmask 23552  }
 0x539   : >> { %s7009_s9 = smov 114   ;;  %s7010_s11 = smov 104   ;;  %vm6404_vm12 = vcmask 31744   ;;  %vm6406_vm13 = vcmask 39936   ;;  %vm6408_vm14 = vcmask 48128   ;;  %vm6410_vm15 = vcmask 56320  }
 0x53a   : >> { %s7011_s12 = smov 103   ;;  %s7012_s15 = smov 102  }
 0x53c   : >> { %v11105_v30 = vld [vmem:[%s11102_s19 + $0x20] sm:$0xff]  ;;  %v11115_v48 = vld [vmem:[%s11102_s19 + $0x30] sm:$0xff]  ;;  %v11125_v53 = vld [vmem:[%s11102_s19 + $0x18] sm:$0xff] }
 0x53d   : >> { %v11108_v42 = vld [vmem:[%s11102_s19] sm:$0xff]  ;;  %3558 = vrot.lane.b32.xlu1 %v11105_v30, %s7005_s13  ;;  %v11118_v33 = vld [vmem:[%s11102_s19 + $0x10] sm:$0xff]  ;;  %v11128_v32 = vld [vmem:[%s11102_s19 + $0x8] sm:$0xff] }
 0x53e   : >> { %3554 = vrot.lane.b32.xlu0 %v11108_v42, %s7005_s13  ;;  %v11135_v34 = vld [vmem:[%s11102_s19 + $0x38] sm:$0xff]  ;;  %v11138_v57 = vld [vmem:[%s11102_s19 + $0x28] sm:$0xff]  ;;  %v11241_v56 = vld [vmem:[%s11102_s19 + $0x70] sm:$0xff] }
 0x53f   : >> { %v11248_v43 = vld [vmem:[%s11102_s19 + $0x60] sm:$0xff]  ;;  %v11251_v35 = vld [vmem:[%s11102_s19 + $0x78] sm:$0xff]  ;;  %v11262_v2 = vld [vmem:[%s11102_s19 + $0x50] sm:$0xff] }
 0x540   : >> { %v11265_v24 = vld [vmem:[%s11102_s19 + $0x68] sm:$0xff]  ;;  %v11276_v45 = vld [vmem:[%s11102_s19 + $0x40] sm:$0xff]  ;;  %v11279_v9 = vld [vmem:[%s11102_s19 + $0x58] sm:$0xff] }
 0x541   : >> { %3560 = vrot.lane.b32.xlu1 %v11115_v48, %s7005_s13  ;;  %v11290_v49 = vld [vmem:[%s11102_s19 + $0x48] sm:$0xff] }
 0x542   : >> { %3556 = vrot.lane.b32.xlu0 %v11118_v33, %s7005_s13 }
 0x545   : >> { %3564 = vrot.lane.b32.xlu1 %v11125_v53, %s7005_s13 }
 0x546   : >> { %3562 = vrot.lane.b32.xlu0 %v11128_v32, %s7005_s13 }
 0x549   : >> { %3568 = vrot.lane.b32.xlu1 %v11135_v34, %s7005_s13 }
 0x54a   : >> { %3566 = vrot.lane.b32.xlu0 %v11138_v57, %s7005_s13 }
 0x54d   : >> { %3583 = vrot.lane.b32.xlu1 %v11118_v33, %s7006_s14 }
 0x54e   : >> { %3581 = vrot.lane.b32.xlu0 %v11108_v42, %s7006_s14 }
 0x551   : >> { %3587 = vrot.lane.b32.xlu1 %v11115_v48, %s7006_s14 }
 0x552   : >> { %3585 = vrot.lane.b32.xlu0 %v11105_v30, %s7006_s14 }
 0x555   : >> { %3591 = vrot.lane.b32.xlu1 %v11125_v53, %s7006_s14 }
 0x556   : >> { %3589 = vrot.lane.b32.xlu0 %v11128_v32, %s7006_s14 }
 0x559   : >> { %3595 = vrot.lane.b32.xlu1 %v11135_v34, %s7006_s14 }
 0x55a   : >> { %3593 = vrot.lane.b32.xlu0 %v11138_v57, %s7006_s14 }
 0x55d   : >> { %3608 = vrot.lane.b32.xlu1 %v11118_v33, %s7007_s29 }
 0x55e   : >> { %3606 = vrot.lane.b32.xlu0 %v11108_v42, %s7007_s29 }
 0x561   : >> { %3612 = vrot.lane.b32.xlu1 %v11115_v48, %s7007_s29 }
 0x562   : >> { %3610 = vrot.lane.b32.xlu0 %v11105_v30, %s7007_s29 }
 0x565   : >> { %3616 = vrot.lane.b32.xlu1 %v11125_v53, %s7007_s29 }
 0x566   : >> { %3614 = vrot.lane.b32.xlu0 %v11128_v32, %s7007_s29 }
 0x569   : >> { %3620 = vrot.lane.b32.xlu1 %v11135_v34, %s7007_s29 }
 0x56a   : >> { %3618 = vrot.lane.b32.xlu0 %v11138_v57, %s7007_s29 }
 0x56d   : >> { %3633 = vrot.lane.b32.xlu1 %v11118_v33, %s7008_s30 }
 0x56e   : >> { %3631 = vrot.lane.b32.xlu0 %v11108_v42, %s7008_s30 }
 0x571   : >> { %3637 = vrot.lane.b32.xlu1 %v11115_v48, %s7008_s30 }
 0x572   : >> { %3635 = vrot.lane.b32.xlu0 %v11105_v30, %s7008_s30 }
 0x575   : >> { %3641 = vrot.lane.b32.xlu1 %v11125_v53, %s7008_s30 }
 0x576   : >> { %3639 = vrot.lane.b32.xlu0 %v11128_v32, %s7008_s30 }
 0x579   : >> { %3645 = vrot.lane.b32.xlu1 %v11135_v34, %s7008_s30 }
 0x57a   : >> { %3643 = vrot.lane.b32.xlu0 %v11138_v57, %s7008_s30 }
 0x57d   : >> { %3658 = vrot.lane.b32.xlu1 %v11118_v33, %s7009_s9 }
 0x57e   : >> { %3656 = vrot.lane.b32.xlu0 %v11108_v42, %s7009_s9 }
 0x581   : >> { %3662 = vrot.lane.b32.xlu1 %v11115_v48, %s7009_s9 }
 0x582   : >> { %3660 = vrot.lane.b32.xlu0 %v11105_v30, %s7009_s9 }
 0x585   : >> { %3666 = vrot.lane.b32.xlu1 %v11125_v53, %s7009_s9 }
 0x586   : >> { %3664 = vrot.lane.b32.xlu0 %v11128_v32, %s7009_s9 }
 0x589   : >> { %3670 = vrot.lane.b32.xlu1 %v11135_v34, %s7009_s9 }
 0x58a   : >> { %3668 = vrot.lane.b32.xlu0 %v11138_v57, %s7009_s9 }
 0x58d   : >> { %3683 = vrot.lane.b32.xlu1 %v11118_v33, %s7010_s11 }
 0x58e   : >> { %3681 = vrot.lane.b32.xlu0 %v11108_v42, %s7010_s11 }
 0x591   : >> { %3687 = vrot.lane.b32.xlu1 %v11115_v48, %s7010_s11 }
 0x592   : >> { %3685 = vrot.lane.b32.xlu0 %v11105_v30, %s7010_s11 }
 0x595   : >> { %3691 = vrot.lane.b32.xlu1 %v11125_v53, %s7010_s11 }
 0x596   : >> { %3689 = vrot.lane.b32.xlu0 %v11128_v32, %s7010_s11 }
 0x599   : >> { %3695 = vrot.lane.b32.xlu1 %v11135_v34, %s7010_s11 }
 0x59a   : >> { %3693 = vrot.lane.b32.xlu0 %v11138_v57, %s7010_s11 }
 0x59d   : >> { %3708 = vrot.lane.b32.xlu1 %v11118_v33, %s7011_s12 }
 0x59e   : >> { %3706 = vrot.lane.b32.xlu0 %v11108_v42, %s7011_s12 }
 0x5a1   : >> { %3712 = vrot.lane.b32.xlu1 %v11115_v48, %s7011_s12 }
 0x5a2   : >> { %3710 = vrot.lane.b32.xlu0 %v11105_v30, %s7011_s12 }
 0x5a5   : >> { %3716 = vrot.lane.b32.xlu1 %v11125_v53, %s7011_s12 }
 0x5a6   : >> { %3714 = vrot.lane.b32.xlu0 %v11128_v32, %s7011_s12 }
 0x5a9   : >> { %3720 = vrot.lane.b32.xlu1 %v11135_v34, %s7011_s12 }
 0x5aa   : >> { %3718 = vrot.lane.b32.xlu0 %v11138_v57, %s7011_s12 }
 0x5ad   : >> { %3798 = vrot.lane.b32.xlu1 %v11241_v56, %s7006_s14 }
 0x5ae   : >> { %3731 = vrot.lane.b32.xlu0 %v11108_v42, %s7012_s15 }
 0x5af   : >> { %v11253_v55 = vpop.permute.xlu1 %3558 }
 0x5b0   : >> { %v11255_v0 = vpop.permute.xlu0 %3554 }
 0x5b1   : >> { %3796 = vrot.lane.b32.xlu1 %v11248_v43, %s7006_s14 }
 0x5b2   : >> { %3806 = vrot.lane.b32.xlu0 %v11251_v35, %s7006_s14 }
 0x5b3   : >> { %v11267_v59 = vpop.permute.xlu1 %3560 }
 0x5b4   : >> { %v11269_v11 = vpop.permute.xlu0 %3556 }
 0x5b5   : >> { %3794 = vrot.lane.b32.xlu1 %v11262_v2, %s7006_s14 }
 0x5b6   : >> { %3804 = vrot.lane.b32.xlu0 %v11265_v24, %s7006_s14 }
 0x5b7   : >> { %v11281_v63 = vpop.permute.xlu1 %3564 }
 0x5b8   : >> { %v11283_v31 = vpop.permute.xlu0 %3562 }
 0x5b9   : >> { %3792 = vrot.lane.b32.xlu1 %v11276_v45, %s7006_s14 }
 0x5ba   : >> { %3802 = vrot.lane.b32.xlu0 %v11279_v9, %s7006_s14 }
 0x5bb   : >> { %v11292_v22 = vpop.permute.xlu1 %3568 }
 0x5bc   : >> { %v11294_v27 = vpop.permute.xlu0 %3566 }
 0x5bd   : >> { %3774 = vrot.lane.b32.xlu1 %v11241_v56, %s7005_s13 }
 0x5be   : >> { %3800 = vrot.lane.b32.xlu0 %v11290_v49, %s7006_s14 }
 0x5bf   : >> { %v11300_v8 = vpop.permute.xlu1 %3583 }
 0x5c0   : >> { %v11302_v16 = vpop.permute.xlu0 %3581 }
 0x5c1   : >> { %3772 = vrot.lane.b32.xlu1 %v11248_v43, %s7005_s13 }
 0x5c2   : >> { %3782 = vrot.lane.b32.xlu0 %v11251_v35, %s7005_s13 }
 0x5c3   : >> { %v3588_v1 = vpop.permute.xlu1 %3587 }
 0x5c4   : >> { %v3586_v15 = vpop.permute.xlu0 %3585 }
 0x5c5   : >> { %3770 = vrot.lane.b32.xlu1 %v11262_v2, %s7005_s13 }
 0x5c6   : >> { %3780 = vrot.lane.b32.xlu0 %v11265_v24, %s7005_s13 }
 0x5c7   : >> { %v11312_v17 = vpop.permute.xlu1 %3591 }
 0x5c8   : >> { %v11314_v18 = vpop.permute.xlu0 %3589  ;;  %v3603_v13 = vsel %vm373_vm4, %v11312_v17, %v11300_v8  ;;  %v3599_v60 = vsel %vm373_vm4, %v11300_v8, %v11312_v17  ;;  %v3580_v8 = vsel %vm354_vm0, %v11292_v22, %v11267_v59  ;;  %v3576_v17 = vsel %vm354_vm0, %v11267_v59, %v11292_v22 }
 0x5c9   : >> { %3768 = vrot.lane.b32.xlu1 %v11276_v45, %s7005_s13  ;;  %v3602_v28 = vsel %vm373_vm4, %v11314_v18, %v11302_v16  ;;  %v3578_v59 = vsel %vm354_vm0, %v11281_v63, %v11269_v11  ;;  %v3574_v22 = vsel %vm354_vm0, %v11269_v11, %v11281_v63 }
 0x5ca   : >> { %3778 = vrot.lane.b32.xlu0 %v11279_v9, %s7005_s13 }
 0x5cb   : >> { %v3596_v39 = vpop.permute.xlu1 %3595 }
 0x5cc   : >> { %v3594_v54 = vpop.permute.xlu0 %3593  ;;  %v3605_v38 = vsel %vm373_vm4, %v3596_v39, %v3588_v1  ;;  %v3601_v26 = vsel %vm373_vm4, %v3588_v1, %v3596_v39 }
 0x5cd   : >> { %3737 = vrot.lane.b32.xlu1 %v11115_v48, %s7012_s15  ;;  %v3604_v36 = vsel %vm373_vm4, %v3594_v54, %v3586_v15  ;;  %v3600_v12 = vsel %vm373_vm4, %v3586_v15, %v3594_v54  ;;  %v3598_v15 = vsel %vm373_vm4, %v11302_v16, %v11314_v18  ;;  %v3579_v16 = vsel %vm354_vm0, %v11294_v27, %v11253_v55 }
 0x5ce   : >> { %3776 = vrot.lane.b32.xlu0 %v11290_v49, %s7005_s13  ;;  %v3575_v54 = vsel %vm354_vm0, %v11253_v55, %v11294_v27  ;;  %v3577_v55 = vsel %vm354_vm0, %v11283_v31, %v11255_v0 }
 0x5cf   : >> { %v3609_v20 = vpop.permute.xlu1 %3608 }
 0x5d0   : >> { %v3607_v50 = vpop.permute.xlu0 %3606 }
 0x5d1   : >> { %3735 = vrot.lane.b32.xlu1 %v11105_v30, %s7012_s15 }
 0x5d2   : >> { %3745 = vrot.lane.b32.xlu0 %v11135_v34, %s7012_s15 }
 0x5d3   : >> { %v3613_v61 = vpop.permute.xlu1 %3612 }
 0x5d4   : >> { %v3611_v7 = vpop.permute.xlu0 %3610 }
 0x5d5   : >> { %3733 = vrot.lane.b32.xlu1 %v11118_v33, %s7012_s15 }
 0x5d6   : >> { %3743 = vrot.lane.b32.xlu0 %v11138_v57, %s7012_s15 }
 0x5d7   : >> { %v3617_v52 = vpop.permute.xlu1 %3616 }
 0x5d8   : >> { %v3615_v14 = vpop.permute.xlu0 %3614  ;;  %v3628_v62 = vsel %vm3622_vm1, %v3617_v52, %v3609_v20  ;;  %v3624_v23 = vsel %vm3622_vm1, %v3609_v20, %v3617_v52  ;;  %v4165_v52 = vld [vmem:[%s14659_s4 + $0x8] sm:$0xff] }
 0x5d9   : >> { %3739 = vrot.lane.b32.xlu1 %v11128_v32, %s7012_s15  ;;  %v3627_v10 = vsel %vm3622_vm1, %v3615_v14, %v3607_v50  ;;  %v3623_v19 = vsel %vm3622_vm1, %v3607_v50, %v3615_v14  ;;  %v3573_v50 = vsel %vm354_vm0, %v11255_v0, %v11283_v31  ;;  %4357 = vmatprep.mubr.f32.mxu0 %v4165_v52  ;;  %v11599_v52 = vld [vmem:[%s11102_s19 + $0x88] sm:$0xff] }
 0x5da   : >> { %3741 = vrot.lane.b32.xlu0 %v11125_v53, %s7012_s15 }
 0x5db   : >> { %v3621_v37 = vpop.permute.xlu1 %3620 }
 0x5dc   : >> { %v3619_v25 = vpop.permute.xlu0 %3618  ;;  %v3630_v44 = vsel %vm3622_vm1, %v3621_v37, %v3613_v61  ;;  %v3626_v4 = vsel %vm3622_vm1, %v3613_v61, %v3621_v37 }
 0x5dd   : >> { %4293 = vmatprep.subr.mxu0 %v3630_v44  ;;  %3902 = vrot.lane.b32.xlu1 %v11251_v35, %s7010_s11  ;;  %v3629_v58 = vsel %vm3622_vm1, %v3619_v25, %v3611_v7  ;;  %v3625_v29 = vsel %vm3622_vm1, %v3611_v7, %v3619_v25 }
 0x5de   : >> { %3894 = vrot.lane.b32.xlu0 %v11241_v56, %s7010_s11  ;;  %4294 = vmatpush1.msra.mxu0 %v3626_v4  ;;  %v11531_v4 = vld [vmem:[%s11102_s19 + $0xb8] sm:$0xff] }
 0x5df   : >> { %v11347_v3 = vpop.permute.xlu1 %3633  ;;  %4295 = vmatprep.subr.mxu0 %v3629_v58 }
 0x5e0   : >> { %v11349_v51 = vpop.permute.xlu0 %3631  ;;  %4296 = vmatpush1.msra.mxu0 %v3625_v29 }
 0x5e1   : >> { %3900 = vrot.lane.b32.xlu1 %v11265_v24, %s7010_s11  ;;  %4297 = vmatprep.subr.mxu0 %v3628_v62  ;;  %v11534_v62 = vld [vmem:[%s11102_s19 + $0xb0] sm:$0xff] }
 0x5e2   : >> { %3892 = vrot.lane.b32.xlu0 %v11248_v43, %s7010_s11  ;;  %4298 = vmatpush1.msra.mxu0 %v3624_v23 }
 0x5e3   : >> { %v11363_v6 = vpop.permute.xlu1 %3637  ;;  %4299 = vmatprep.subr.mxu0 %v3627_v10 }
 0x5e4   : >> { %v11365_v5 = vpop.permute.xlu0 %3635  ;;  %4300 = vmatpush1.msra.mxu0 %v3623_v19 }
 0x5e5   : >> { %3898 = vrot.lane.b32.xlu1 %v11279_v9, %s7010_s11  ;;  %4301 = vmatprep.subr.mxu0 %v3605_v38  ;;  %v11548_v38 = vld [vmem:[%s11102_s19 + $0xa8] sm:$0xff] }
 0x5e6   : >> { %3890 = vrot.lane.b32.xlu0 %v11262_v2, %s7010_s11  ;;  %4302 = vmatpush1.msra.mxu0 %v3601_v26 }
 0x5e7   : >> { %v11379_v41 = vpop.permute.xlu1 %3641  ;;  %4303 = vmatprep.subr.mxu0 %v3604_v36 }
 0x5e8   : >> { %v11381_v47 = vpop.permute.xlu0 %3639  ;;  %4304 = vmatpush1.msra.mxu0 %v3600_v12 }
 0x5e9   : >> { %3896 = vrot.lane.b32.xlu1 %v11290_v49, %s7010_s11  ;;  %4305 = vmatprep.subr.mxu0 %v3603_v13  ;;  %v11555_v13 = vld [vmem:[%s11102_s19 + $0xa0] sm:$0xff] }
 0x5ea   : >> { %3888 = vrot.lane.b32.xlu0 %v11276_v45, %s7010_s11  ;;  %4306 = vmatpush1.msra.mxu0 %v3599_v60 }
 0x5eb   : >> { %v11401_v40 = vpop.permute.xlu1 %3645  ;;  %4307 = vmatprep.subr.mxu0 %v3602_v28  ;;  %v4167_v28 = vld [vmem:[%s14659_s4 + $0x18] sm:$0xff] }
 0x5ec   : >> { %v11403_v1 = vpop.permute.xlu0 %3643  ;;  %4308 = vmatpush1.msra.mxu0 %v3598_v15  ;;  %4470 = vmatprep.mubr.f32.mxu1 %v4167_v28 }
 0x5ed   : >> { %3878 = vrot.lane.b32.xlu1 %v11251_v35, %s7009_s9  ;;  %4309 = vmatprep.subr.mxu0 %v3580_v8 }
 0x5ee   : >> { %3870 = vrot.lane.b32.xlu0 %v11241_v56, %s7009_s9  ;;  %4310 = vmatpush1.msra.mxu0 %v3576_v17  ;;  %v11571_v17 = vld [vmem:[%s11102_s19 + $0x98] sm:$0xff] }
 0x5ef   : >> { %v11425_v18 = vpop.permute.xlu1 %3658  ;;  %4311 = vmatprep.subr.mxu0 %v3579_v16 }
 0x5f0   : >> { %v11427_v39 = vpop.permute.xlu0 %3656  ;;  %4312 = vmatpush1.msra.mxu0 %v3575_v54 }
 0x5f1   : >> { %3876 = vrot.lane.b32.xlu1 %v11265_v24, %s7009_s9  ;;  %4313 = vmatprep.subr.mxu0 %v3578_v59 }
 0x5f2   : >> { %3868 = vrot.lane.b32.xlu0 %v11248_v43, %s7009_s9  ;;  %4314 = vmatpush1.msra.mxu0 %v3574_v22  ;;  %v11576_v22 = vld [vmem:[%s11102_s19 + $0x90] sm:$0xff] }
 0x5f3   : >> { %v11449_v27 = vpop.permute.xlu1 %3662  ;;  %4315 = vmatprep.subr.mxu0 %v3577_v55 }
 0x5f4   : >> { %v11451_v20 = vpop.permute.xlu0 %3660  ;;  %4316 = vmatpush1.msra.mxu0 %v3573_v50 }
 0x5f5   : >> { %3874 = vrot.lane.b32.xlu1 %v11279_v9, %s7009_s9  ;;  %4317 = vmatprep.subr.mxu0 %v11135_v34 }
 0x5f6   : >> { %3866 = vrot.lane.b32.xlu0 %v11262_v2, %s7009_s9  ;;  %4318 = vmatpush1.msra.mxu0 %v11115_v48 }
 0x5f7   : >> { %v11463_v11 = vpop.permute.xlu1 %3666  ;;  %4319 = vmatprep.subr.mxu0 %v11138_v57 }
 0x5f8   : >> { %v11465_v63 = vpop.permute.xlu0 %3664  ;;  %4320 = vmatpush1.msra.mxu0 %v11105_v30 }
 0x5f9   : >> { %3872 = vrot.lane.b32.xlu1 %v11290_v49, %s7009_s9  ;;  %4321 = vmatprep.subr.mxu0 %v11125_v53 }
 0x5fa   : >> { %3864 = vrot.lane.b32.xlu0 %v11276_v45, %s7009_s9  ;;  %4322 = vmatpush1.msra.mxu0 %v11118_v33 }
 0x5fb   : >> { %v11475_v34 = vpop.permute.xlu1 %3670  ;;  %4323 = vmatprep.subr.mxu0 %v11128_v32 }
 0x5fc   : >> { %v11477_v48 = vpop.permute.xlu0 %3668  ;;  %4324 = vmatpush1.msra.mxu0 %v11108_v42 }
 0x5fd   : >> { %3854 = vrot.lane.b32.xlu1 %v11251_v35, %s7008_s30  ;;  %v3675_v28 = vsel %vm3672_vm5, %v11451_v20, %v11477_v48 }
 0x5fe   : >> { %3846 = vrot.lane.b32.xlu0 %v11241_v56, %s7008_s30 }
 0x5ff   : >> { %v11485_v30 = vpop.permute.xlu1 %3683 }
 0x600   : >> { %v11487_v53 = vpop.permute.xlu0 %3681 }
 0x601   : >> { %3852 = vrot.lane.b32.xlu1 %v11265_v24, %s7008_s30 }
 0x602   : >> { %3844 = vrot.lane.b32.xlu0 %v11248_v43, %s7008_s30 }
 0x603   : >> { %v11493_v33 = vpop.permute.xlu1 %3687 }
 0x604   : >> { %v11495_v32 = vpop.permute.xlu0 %3685 }
 0x605   : >> { %3850 = vrot.lane.b32.xlu1 %v11279_v9, %s7008_s30 }
 0x606   : >> { %3842 = vrot.lane.b32.xlu0 %v11262_v2, %s7008_s30 }
 0x607   : >> { %v11501_v42 = vpop.permute.xlu1 %3691 }
 0x608   : >> { %v11503_v57 = vpop.permute.xlu0 %3689 }
 0x609   : >> { %3848 = vrot.lane.b32.xlu1 %v11290_v49, %s7008_s30 }
 0x60a   : >> { %3840 = vrot.lane.b32.xlu0 %v11276_v45, %s7008_s30 }
 0x60b   : >> { %v3696_v0 = vpop.permute.xlu1 %3695 }
 0x60c   : >> { %v11509_v31 = vpop.permute.xlu0 %3693  ;;  %v3705_v55 = vsel %vm3697_vm3, %v3696_v0, %v11493_v33 }
 0x60d   : >> { %3830 = vrot.lane.b32.xlu1 %v11251_v35, %s7007_s29 }
 0x60e   : >> { %3822 = vrot.lane.b32.xlu0 %v11241_v56, %s7007_s29 }
 0x60f   : >> { %v3709_v61 = vpop.permute.xlu1 %3708 }
 0x610   : >> { %v3707_v7 = vpop.permute.xlu0 %3706 }
 0x611   : >> { %3828 = vrot.lane.b32.xlu1 %v11265_v24, %s7007_s29 }
 0x612   : >> { %3820 = vrot.lane.b32.xlu0 %v11248_v43, %s7007_s29 }
 0x613   : >> { %v3713_v14 = vpop.permute.xlu1 %3712 }
 0x614   : >> { %v3711_v37 = vpop.permute.xlu0 %3710 }
 0x615   : >> { %3826 = vrot.lane.b32.xlu1 %v11279_v9, %s7007_s29 }
 0x616   : >> { %3818 = vrot.lane.b32.xlu0 %v11262_v2, %s7007_s29 }
 0x617   : >> { %v3717_v25 = vpop.permute.xlu1 %3716 }
 0x618   : >> { %v3715_v44 = vpop.permute.xlu0 %3714  ;;  %v3728_v60 = vsel %vm3722_vm2, %v3717_v25, %v3709_v61  ;;  %v3724_v15 = vsel %vm3722_vm2, %v3709_v61, %v3717_v25 }
 0x619   : >> { %3824 = vrot.lane.b32.xlu1 %v11290_v49, %s7007_s29  ;;  %v3727_v8 = vsel %vm3722_vm2, %v3715_v44, %v3707_v7  ;;  %v3723_v59 = vsel %vm3722_vm2, %v3707_v7, %v3715_v44  ;;  %v3701_v7 = vsel %vm3697_vm3, %v11493_v33, %v3696_v0  ;;  %v11607_v44 = vld [vmem:[%s11102_s19 + $0x80] sm:$0xff]  ;;  %v3700_v33 = vsel %vm3697_vm3, %v11495_v32, %v11509_v31 }
 0x61a   : >> { %3816 = vrot.lane.b32.xlu0 %v11276_v45, %s7007_s29 }
 0x61b   : >> { %v3721_v58 = vpop.permute.xlu1 %3720 }
 0x61c   : >> { %v3719_v29 = vpop.permute.xlu0 %3718  ;;  %v3730_v23 = vsel %vm3722_vm2, %v3721_v58, %v3713_v14  ;;  %v3726_v10 = vsel %vm3722_vm2, %v3713_v14, %v3721_v58  ;;  %v3703_v58 = vsel %vm3697_vm3, %v11501_v42, %v11485_v30 }
 0x61d   : >> { %3986 = vrot.lane.b32.xlu1 %v11531_v4, %s7005_s13  ;;  %4325 = vmatprep.subr.mxu0 %v3730_v23  ;;  %v3729_v19 = vsel %vm3722_vm2, %v3719_v29, %v3711_v37  ;;  %v3725_v12 = vsel %vm3722_vm2, %v3711_v37, %v3719_v29  ;;  %v3704_v37 = vsel %vm3697_vm3, %v11509_v31, %v11495_v32 }
 0x61e   : >> { %3978 = vrot.lane.b32.xlu0 %v11534_v62, %s7005_s13  ;;  %4326 = vmatpush2.msra.mxu0 %v3726_v10  ;;  %v3699_v32 = vsel %vm3697_vm3, %v11485_v30, %v11501_v42  ;;  %v3702_v23 = vsel %vm3697_vm3, %v11503_v57, %v11487_v53  ;;  %v3680_v42 = vsel %vm3672_vm5, %v11475_v34, %v11449_v27 }
 0x61f   : >> { %v3799_v26 = vpop.permute.xlu1 %3798  ;;  %4327 = vmatprep.subr.mxu0 %v3729_v19  ;;  %v3698_v19 = vsel %vm3697_vm3, %v11487_v53, %v11503_v57  ;;  %v3676_v53 = vsel %vm3672_vm5, %v11449_v27, %v11475_v34  ;;  %v3678_v34 = vsel %vm3672_vm5, %v11463_v11, %v11425_v18 }
 0x620   : >> { %v11550_v36 = vpop.permute.xlu0 %3731  ;;  %4328 = vmatpush2.msra.mxu0 %v3725_v12  ;;  %v3679_v12 = vsel %vm3672_vm5, %v11477_v48, %v11451_v20  ;;  %v3674_v20 = vsel %vm3672_vm5, %v11425_v18, %v11463_v11  ;;  %v3655_v11 = vsel %vm3647_vm6, %v11401_v40, %v11363_v6 }
 0x621   : >> { %3984 = vrot.lane.b32.xlu1 %v11548_v38, %s7005_s13  ;;  %4329 = vmatprep.subr.mxu0 %v3728_v60 }
 0x622   : >> { %3976 = vrot.lane.b32.xlu0 %v11555_v13, %s7005_s13  ;;  %4330 = vmatpush2.msra.mxu0 %v3724_v15 }
 0x623   : >> { %v3797_v16 = vpop.permute.xlu1 %3796  ;;  %4331 = vmatprep.subr.mxu0 %v3727_v8  ;;  %v3677_v8 = vsel %vm3672_vm5, %v11465_v63, %v11427_v39 }
 0x624   : >> { %v3807_v54 = vpop.permute.xlu0 %3806  ;;  %4332 = vmatpush2.msra.mxu0 %v3723_v59 }
 0x625   : >> { %v11584_v50 = vsel %vm373_vm4, %v3807_v54, %v3799_v26  ;;  %v11588_v61 = vsel %vm373_vm4, %v3799_v26, %v3807_v54  ;;  %3982 = vrot.lane.b32.xlu1 %v11571_v17, %s7005_s13  ;;  %4333 = vmatprep.subr.mxu0 %v3705_v55  ;;  %v3673_v54 = vsel %vm3672_vm5, %v11427_v39, %v11465_v63 }
 0x626   : >> { %3974 = vrot.lane.b32.xlu0 %v11576_v22, %s7005_s13  ;;  %4406 = vmatprep.subr.mxu1 %v11584_v50  ;;  %v3651_v39 = vsel %vm3647_vm6, %v11363_v6, %v11401_v40  ;;  %v3654_v55 = vsel %vm3647_vm6, %v11403_v1, %v11365_v5  ;;  %v3653_v40 = vsel %vm3647_vm6, %v11379_v41, %v11347_v3 }
 0x627   : >> { %4334 = vmatpush2.msra.mxu0 %v3701_v7  ;;  %4407 = vmatpush1.msra.mxu1 %v11588_v61  ;;  %v3795_v14 = vpop.permute.xlu1 %3794 }
 0x628   : >> { %v3805_v25 = vpop.permute.xlu0 %3804  ;;  %4335 = vmatprep.subr.mxu0 %v3704_v37 }
 0x629   : >> { %v11615_v0 = vsel %vm373_vm4, %v3805_v25, %v3797_v16  ;;  %4336 = vmatpush2.msra.mxu0 %v3700_v33  ;;  %3980 = vrot.lane.b32.xlu1 %v11599_v52, %s7005_s13  ;;  %v11625_v29 = vsel %vm373_vm4, %v3797_v16, %v3805_v25  ;;  %v3652_v25 = vsel %vm3647_vm6, %v11381_v47, %v11349_v51 }
 0x62a   : >> { %3972 = vrot.lane.b32.xlu0 %v11607_v44, %s7005_s13  ;;  %4337 = vmatprep.subr.mxu0 %v3703_v58  ;;  %v3648_v58 = vsel %vm3647_vm6, %v11349_v51, %v11381_v47 }
 0x62b   : >> { %4408 = vmatprep.subr.mxu1 %v11615_v0  ;;  %4338 = vmatpush2.msra.mxu0 %v3699_v32  ;;  %v3793_v31 = vpop.permute.xlu1 %3792  ;;  %v4164_v32 = vld [vmem:[%s14659_s4] sm:$0xff] }
 0x62c   : >> { %v3803_v10 = vpop.permute.xlu0 %3802  ;;  %4409 = vmatpush1.msra.mxu1 %v11625_v29  ;;  %4339 = vmatprep.subr.mxu0 %v3702_v23 }
 0x62d   : >> { %v11646_v30 = vsel %vm373_vm4, %v3803_v10, %v3795_v14  ;;  %4340 = vmatpush2.msra.mxu0 %v3698_v19  ;;  %4154 = vrot.lane.b32.xlu1 %v11531_v4, %s7012_s15  ;;  %v11656_v26 = vsel %vm373_vm4, %v3795_v14, %v3803_v10  ;;  %v3650_v14 = vsel %vm3647_vm6, %v11365_v5, %v11403_v1 }
 0x62e   : >> { %4146 = vrot.lane.b32.xlu0 %v11534_v62, %s7012_s15  ;;  %4341 = vmatprep.subr.mxu0 %v3680_v42  ;;  %v3649_v5 = vsel %vm3647_vm6, %v11347_v3, %v11379_v41 }
 0x62f   : >> { %4410 = vmatprep.subr.mxu1 %v11646_v30  ;;  %4342 = vmatpush2.msra.mxu0 %v3676_v53  ;;  %v3775_v57 = vpop.permute.xlu1 %3774 }
 0x630   : >> { %v3801_v60 = vpop.permute.xlu0 %3800  ;;  %4411 = vmatpush1.msra.mxu1 %v11656_v26  ;;  %4343 = vmatprep.subr.mxu0 %v3679_v12 }
 0x631   : >> { %v11676_v27 = vsel %vm373_vm4, %v3801_v60, %v3793_v31  ;;  %4344 = vmatpush2.msra.mxu0 %v3675_v28  ;;  %4152 = vrot.lane.b32.xlu1 %v11548_v38, %s7012_s15  ;;  %v11686_v15 = vsel %vm373_vm4, %v3793_v31, %v3801_v60 }
 0x632   : >> { %4144 = vrot.lane.b32.xlu0 %v11555_v13, %s7012_s15  ;;  %4345 = vmatprep.subr.mxu0 %v3678_v34 }
 0x633   : >> { %4412 = vmatprep.subr.mxu1 %v11676_v27  ;;  %4346 = vmatpush2.msra.mxu0 %v3674_v20  ;;  %v3773_v48 = vpop.permute.xlu1 %3772 }
 0x634   : >> { %v3783_v16 = vpop.permute.xlu0 %3782  ;;  %4413 = vmatpush1.msra.mxu1 %v11686_v15  ;;  %4347 = vmatprep.subr.mxu0 %v3677_v8 }
 0x635   : >> { %v11707_v18 = vsel %vm354_vm0, %v3783_v16, %v3775_v57  ;;  %4348 = vmatpush2.msra.mxu0 %v3673_v54  ;;  %4150 = vrot.lane.b32.xlu1 %v11571_v17, %s7012_s15  ;;  %v11717_v59 = vsel %vm354_vm0, %v3775_v57, %v3783_v16 }
 0x636   : >> { %4142 = vrot.lane.b32.xlu0 %v11576_v22, %s7012_s15  ;;  %4349 = vmatprep.subr.mxu0 %v3655_v11 }
 0x637   : >> { %4414 = vmatprep.subr.mxu1 %v11707_v18  ;;  %4350 = vmatpush2.msra.mxu0 %v3651_v39  ;;  %v3771_v63 = vpop.permute.xlu1 %3770 }
 0x638   : >> { %v3781_v7 = vpop.permute.xlu0 %3780  ;;  %4415 = vmatpush1.msra.mxu1 %v11717_v59  ;;  %4351 = vmatprep.subr.mxu0 %v3654_v55 }
 0x639   : >> { %v11737_v6 = vsel %vm354_vm0, %v3781_v7, %v3773_v48  ;;  %4352 = vmatpush2.msra.mxu0 %v3650_v14  ;;  %4148 = vrot.lane.b32.xlu1 %v11599_v52, %s7012_s15  ;;  %v11747_v37 = vsel %vm354_vm0, %v3773_v48, %v3781_v7 }
 0x63a   : >> { %4140 = vrot.lane.b32.xlu0 %v11607_v44, %s7012_s15  ;;  %4353 = vmatprep.subr.mxu0 %v3653_v40 }
 0x63b   : >> { %4416 = vmatprep.subr.mxu1 %v11737_v6  ;;  %4354 = vmatpush2.msra.mxu0 %v3649_v5  ;;  %v3769_v1 = vpop.permute.xlu1 %3768 }
 0x63c   : >> { %v3779_v33 = vpop.permute.xlu0 %3778  ;;  %4417 = vmatpush1.msra.mxu1 %v11747_v37  ;;  %4355 = vmatprep.subr.mxu0 %v3652_v25 }
 0x63d   : >> { %v11767_v3 = vsel %vm354_vm0, %v3779_v33, %v3771_v63  ;;  %v11771_v41 = vsel %vm354_vm0, %v3771_v63, %v3779_v33  ;;  %4356 = vmatpush2.msra.mxu0 %v3648_v58  ;;  %4130 = vrot.lane.b32.xlu1 %v11531_v4, %s7011_s12 }
 0x63e   : >> { %4122 = vrot.lane.b32.xlu0 %v11534_v62, %s7011_s12  ;;  %4418 = vmatprep.subr.mxu1 %v11767_v3 }
 0x63f   : >> { %4419 = vmatpush1.msra.mxu1 %v11771_v41  ;;  %v3738_v51 = vpop.permute.xlu1 %3737  ;;  %4358 = vmatmul.mubr.f32.vlgmr.msra.gmra.mxu0 %v4164_v32 }
 0x640   : >> { %v3777_v47 = vpop.permute.xlu0 %3776 }
 0x641   : >> { %v11784_v31 = vsel %vm354_vm0, %v3777_v47, %v3769_v1  ;;  %v11788_v23 = vsel %vm354_vm0, %v3769_v1, %v3777_v47  ;;  %3950 = vrot.lane.b32.xlu1 %v11251_v35, %s7012_s15 }
 0x642   : >> { %4420 = vmatprep.subr.mxu1 %v11784_v31  ;;  %3942 = vrot.lane.b32.xlu0 %v11241_v56, %s7012_s15 }
 0x643   : >> { %4421 = vmatpush1.msra.mxu1 %v11788_v23  ;;  %v3736_v10 = vpop.permute.xlu1 %3735 }
 0x644   : >> { %4422 = vmatprep.subr.mxu1 %v11251_v35  ;;  %v3746_v19 = vpop.permute.xlu0 %3745 }
 0x645   : >> { %4423 = vmatpush1.msra.mxu1 %v11241_v56  ;;  %4128 = vrot.lane.b32.xlu1 %v11548_v38, %s7011_s12  ;;  %v3755_v57 = vsel %vm3747_vm7, %v3746_v19, %v3738_v51  ;;  %v3751_v28 = vsel %vm3747_vm7, %v3738_v51, %v3746_v19 }
 0x646   : >> { %4424 = vmatprep.subr.mxu1 %v11265_v24  ;;  %4120 = vrot.lane.b32.xlu0 %v11555_v13, %s7011_s12 }
 0x647   : >> { %4425 = vmatpush1.msra.mxu1 %v11248_v43  ;;  %v3734_v42 = vpop.permute.xlu1 %3733 }
 0x648   : >> { %4426 = vmatprep.subr.mxu1 %v11279_v9  ;;  %v3744_v53 = vpop.permute.xlu0 %3743 }
 0x649   : >> { %4427 = vmatpush1.msra.mxu1 %v11262_v2  ;;  %3948 = vrot.lane.b32.xlu1 %v11265_v24, %s7012_s15  ;;  %v3754_v34 = vsel %vm3747_vm7, %v3744_v53, %v3736_v10  ;;  %v3750_v20 = vsel %vm3747_vm7, %v3736_v10, %v3744_v53 }
 0x64a   : >> { %4428 = vmatprep.subr.mxu1 %v11290_v49  ;;  %3940 = vrot.lane.b32.xlu0 %v11248_v43, %s7012_s15 }
 0x64b   : >> { %4429 = vmatpush1.msra.mxu1 %v11276_v45  ;;  %v3740_v12 = vpop.permute.xlu1 %3739 }
 0x64c   : >> { %4430 = vmatprep.subr.mxu1 %v3755_v57  ;;  %v3742_v60 = vpop.permute.xlu0 %3741  ;;  %v3752_v11 = vsel %vm3747_vm7, %v3740_v12, %v11550_v36  ;;  %v3748_v39 = vsel %vm3747_vm7, %v11550_v36, %v3740_v12 }
 0x64d   : >> { %4431 = vmatpush1.msra.mxu1 %v3751_v28  ;;  %4126 = vrot.lane.b32.xlu1 %v11571_v17, %s7011_s12  ;;  %v3753_v48 = vsel %vm3747_vm7, %v3742_v60, %v3734_v42  ;;  %v3749_v16 = vsel %vm3747_vm7, %v3734_v42, %v3742_v60 }
 0x64e   : >> { %4432 = vmatprep.subr.mxu1 %v3754_v34  ;;  %4118 = vrot.lane.b32.xlu0 %v11576_v22, %s7011_s12 }
 0x64f   : >> { %4433 = vmatpush1.msra.mxu1 %v3750_v20  ;;  %v3903_v8 = vpop.permute.xlu1 %3902 }
 0x650   : >> { %4434 = vmatprep.subr.mxu1 %v3753_v48  ;;  %v3895_v54 = vpop.permute.xlu0 %3894 }
 0x651   : >> { %4435 = vmatpush1.msra.mxu1 %v3749_v16  ;;  %3946 = vrot.lane.b32.xlu1 %v11279_v9, %s7012_s15  ;;  %v11841_v63 = vsel %vm3697_vm3, %v3903_v8, %v3895_v54  ;;  %v11846_v7 = vsel %vm3697_vm3, %v3895_v54, %v3903_v8 }
 0x652   : >> { %4436 = vmatprep.subr.mxu1 %v3752_v11  ;;  %3938 = vrot.lane.b32.xlu0 %v11262_v2, %s7012_s15 }
 0x653   : >> { %4437 = vmatpush1.msra.mxu1 %v3748_v39  ;;  %v3901_v55 = vpop.permute.xlu1 %3900 }
 0x654   : >> { %4438 = vmatprep.subr.mxu1 %v11841_v63  ;;  %v3893_v14 = vpop.permute.xlu0 %3892 }
 0x655   : >> { %4439 = vmatpush2.msra.mxu1 %v11846_v7  ;;  %4124 = vrot.lane.b32.xlu1 %v11599_v52, %s7011_s12  ;;  %v11853_v36 = vsel %vm3697_vm3, %v3901_v55, %v3893_v14  ;;  %v11857_v40 = vsel %vm3697_vm3, %v3893_v14, %v3901_v55 }
 0x656   : >> { %4116 = vrot.lane.b32.xlu0 %v11607_v44, %s7011_s12  ;;  %4440 = vmatprep.subr.mxu1 %v11853_v36 }
 0x657   : >> { %4441 = vmatpush2.msra.mxu1 %v11857_v40  ;;  %v3899_v5 = vpop.permute.xlu1 %3898 }
 0x658   : >> { %v3891_v1 = vpop.permute.xlu0 %3890 }
 0x659   : >> { %3944 = vrot.lane.b32.xlu1 %v11290_v49, %s7012_s15  ;;  %v11867_v25 = vsel %vm3697_vm3, %v3899_v5, %v3891_v1  ;;  %v11871_v33 = vsel %vm3697_vm3, %v3891_v1, %v3899_v5 }
 0x65a   : >> { %3936 = vrot.lane.b32.xlu0 %v11276_v45, %s7012_s15  ;;  %4442 = vmatprep.subr.mxu1 %v11867_v25 }
 0x65b   : >> { %4443 = vmatpush2.msra.mxu1 %v11871_v33  ;;  %v3897_v58 = vpop.permute.xlu1 %3896 }
 0x65c   : >> { %v3889_v32 = vpop.permute.xlu0 %3888 }
 0x65d   : >> { %4106 = vrot.lane.b32.xlu1 %v11531_v4, %s7010_s11  ;;  %v11881_v51 = vsel %vm3697_vm3, %v3897_v58, %v3889_v32  ;;  %v11885_v47 = vsel %vm3697_vm3, %v3889_v32, %v3897_v58 }
 0x65e   : >> { %4098 = vrot.lane.b32.xlu0 %v11534_v62, %s7010_s11  ;;  %4444 = vmatprep.subr.mxu1 %v11881_v51 }
 0x65f   : >> { %4445 = vmatpush2.msra.mxu1 %v11885_v47  ;;  %v3879_v10 = vpop.permute.xlu1 %3878 }
 0x660   : >> { %v3871_v19 = vpop.permute.xlu0 %3870 }
 0x661   : >> { %3926 = vrot.lane.b32.xlu1 %v11251_v35, %s7011_s12  ;;  %v11895_v42 = vsel %vm3672_vm5, %v3879_v10, %v3871_v19  ;;  %v11899_v53 = vsel %vm3672_vm5, %v3871_v19, %v3879_v10 }
 0x662   : >> { %3918 = vrot.lane.b32.xlu0 %v11241_v56, %s7011_s12  ;;  %4446 = vmatprep.subr.mxu1 %v11895_v42 }
 0x663   : >> { %4447 = vmatpush2.msra.mxu1 %v11899_v53  ;;  %v3877_v57 = vpop.permute.xlu1 %3876 }
 0x664   : >> { %v3869_v12 = vpop.permute.xlu0 %3868 }
 0x665   : >> { %4104 = vrot.lane.b32.xlu1 %v11548_v38, %s7010_s11  ;;  %v11909_v35 = vsel %vm3672_vm5, %v3877_v57, %v3869_v12  ;;  %v11913_v60 = vsel %vm3672_vm5, %v3869_v12, %v3877_v57 }
 0x666   : >> { %4096 = vrot.lane.b32.xlu0 %v11555_v13, %s7010_s11  ;;  %4448 = vmatprep.subr.mxu1 %v11909_v35 }
 0x667   : >> { %4449 = vmatpush2.msra.mxu1 %v11913_v60  ;;  %v3875_v56 = vpop.permute.xlu1 %3874 }
 0x668   : >> { %v3867_v28 = vpop.permute.xlu0 %3866 }
 0x669   : >> { %3924 = vrot.lane.b32.xlu1 %v11265_v24, %s7011_s12  ;;  %v11923_v34 = vsel %vm3672_vm5, %v3875_v56, %v3867_v28  ;;  %v11927_v20 = vsel %vm3672_vm5, %v3867_v28, %v3875_v56 }
 0x66a   : >> { %3916 = vrot.lane.b32.xlu0 %v11248_v43, %s7011_s12  ;;  %4450 = vmatprep.subr.mxu1 %v11923_v34 }
 0x66b   : >> { %4451 = vmatpush2.msra.mxu1 %v11927_v20  ;;  %v3873_v48 = vpop.permute.xlu1 %3872 }
 0x66c   : >> { %v3865_v8 = vpop.permute.xlu0 %3864 }
 0x66d   : >> { %4102 = vrot.lane.b32.xlu1 %v11571_v17, %s7010_s11  ;;  %v11937_v24 = vsel %vm3672_vm5, %v3873_v48, %v3865_v8  ;;  %v11941_v16 = vsel %vm3672_vm5, %v3865_v8, %v3873_v48 }
 0x66e   : >> { %4094 = vrot.lane.b32.xlu0 %v11576_v22, %s7010_s11  ;;  %4452 = vmatprep.subr.mxu1 %v11937_v24 }
 0x66f   : >> { %4453 = vmatpush2.msra.mxu1 %v11941_v16  ;;  %v3855_v43 = vpop.permute.xlu1 %3854 }
 0x670   : >> { %v3847_v54 = vpop.permute.xlu0 %3846 }
 0x671   : >> { %3922 = vrot.lane.b32.xlu1 %v11279_v9, %s7011_s12  ;;  %v11951_v11 = vsel %vm3647_vm6, %v3855_v43, %v3847_v54  ;;  %v11955_v39 = vsel %vm3647_vm6, %v3847_v54, %v3855_v43 }
 0x672   : >> { %3914 = vrot.lane.b32.xlu0 %v11262_v2, %s7011_s12  ;;  %4454 = vmatprep.subr.mxu1 %v11951_v11 }
 0x673   : >> { %4455 = vmatpush2.msra.mxu1 %v11955_v39  ;;  %v3853_v55 = vpop.permute.xlu1 %3852 }
 0x674   : >> { %v3845_v14 = vpop.permute.xlu0 %3844 }
 0x675   : >> { %4100 = vrot.lane.b32.xlu1 %v11599_v52, %s7010_s11  ;;  %v11965_v9 = vsel %vm3647_vm6, %v3853_v55, %v3845_v14  ;;  %v11969_v5 = vsel %vm3647_vm6, %v3845_v14, %v3853_v55 }
 0x676   : >> { %15293 = vst [vmem:[#allocation71_spill] sm:$0xff] %v11965_v9  ;;  %15294 = vst [vmem:[#allocation72_spill] sm:$0xff] %v11969_v5  ;;  %4092 = vrot.lane.b32.xlu0 %v11607_v44, %s7010_s11  ;;  %4456 = vmatprep.subr.mxu1 %v11965_v9 }
 0x677   : >> { %4457 = vmatpush2.msra.mxu1 %v11969_v5  ;;  %v3851_v2 = vpop.permute.xlu1 %3850 }
 0x678   : >> { %v3843_v1 = vpop.permute.xlu0 %3842 }
 0x679   : >> { %3920 = vrot.lane.b32.xlu1 %v11290_v49, %s7011_s12  ;;  %v11979_v58 = vsel %vm3647_vm6, %v3851_v2, %v3843_v1  ;;  %v11983_v32 = vsel %vm3647_vm6, %v3843_v1, %v3851_v2 }
 0x67a   : >> { %15295 = vst [vmem:[#allocation73_spill] sm:$0xff] %v11979_v58  ;;  %15296 = vst [vmem:[#allocation74_spill] sm:$0xff] %v11983_v32  ;;  %3912 = vrot.lane.b32.xlu0 %v11276_v45, %s7011_s12  ;;  %4458 = vmatprep.subr.mxu1 %v11979_v58 }
 0x67b   : >> { %4459 = vmatpush2.msra.mxu1 %v11983_v32  ;;  %v3849_v10 = vpop.permute.xlu1 %3848 }
 0x67c   : >> { %v3841_v19 = vpop.permute.xlu0 %3840 }
 0x67d   : >> { %4082 = vrot.lane.b32.xlu1 %v11531_v4, %s7009_s9  ;;  %v11993_v49 = vsel %vm3647_vm6, %v3849_v10, %v3841_v19  ;;  %v11997_v57 = vsel %vm3647_vm6, %v3841_v19, %v3849_v10 }
 0x67e   : >> { %15297 = vst [vmem:[#allocation75_spill] sm:$0xff] %v11993_v49  ;;  %15298 = vst [vmem:[#allocation76_spill] sm:$0xff] %v11997_v57  ;;  %4074 = vrot.lane.b32.xlu0 %v11534_v62, %s7009_s9  ;;  %4460 = vmatprep.subr.mxu1 %v11993_v49 }
 0x67f   : >> { %4461 = vmatpush2.msra.mxu1 %v11997_v57  ;;  %v3831_v45 = vpop.permute.xlu1 %3830 }
 0x680   : >> { %v3823_v12 = vpop.permute.xlu0 %3822 }
 0x681   : >> { %4080 = vrot.lane.b32.xlu1 %v11548_v38, %s7009_s9  ;;  %v12007_v56 = vsel %vm3622_vm1, %v3831_v45, %v3823_v12  ;;  %v12011_v28 = vsel %vm3622_vm1, %v3823_v12, %v3831_v45 }
 0x682   : >> { %4072 = vrot.lane.b32.xlu0 %v11555_v13, %s7009_s9  ;;  %4462 = vmatprep.subr.mxu1 %v12007_v56 }
 0x683   : >> { %4463 = vmatpush2.msra.mxu1 %v12011_v28  ;;  %v3829_v48 = vpop.permute.xlu1 %3828 }
 0x684   : >> { %v3821_v8 = vpop.permute.xlu0 %3820 }
 0x685   : >> { %4078 = vrot.lane.b32.xlu1 %v11571_v17, %s7009_s9  ;;  %v12021_v43 = vsel %vm3622_vm1, %v3829_v48, %v3821_v8  ;;  %v12025_v54 = vsel %vm3622_vm1, %v3821_v8, %v3829_v48  ;;  %v4166_v48 = vld [vmem:[%s14659_s4 + $0x10] sm:$0xff] }
 0x686   : >> { %4070 = vrot.lane.b32.xlu0 %v11576_v22, %s7009_s9  ;;  %4464 = vmatprep.subr.mxu1 %v12021_v43  ;;  %v4174_v8 = vld [vmem:[%s14659_s4 + $0x50] sm:$0xff] }
 0x687   : >> { %4465 = vmatpush2.msra.mxu1 %v12025_v54  ;;  %v3827_v55 = vpop.permute.xlu1 %3826 }
 0x688   : >> { %v3819_v14 = vpop.permute.xlu0 %3818 }
 0x689   : >> { %4076 = vrot.lane.b32.xlu1 %v11599_v52, %s7009_s9  ;;  %v12035_v2 = vsel %vm3622_vm1, %v3827_v55, %v3819_v14  ;;  %v12039_v1 = vsel %vm3622_vm1, %v3819_v14, %v3827_v55 }
 0x68a   : >> { %4068 = vrot.lane.b32.xlu0 %v11607_v44, %s7009_s9  ;;  %4466 = vmatprep.subr.mxu1 %v12035_v2 }
 0x68b   : >> { %4467 = vmatpush2.msra.mxu1 %v12039_v1  ;;  %v3825_v10 = vpop.permute.xlu1 %3824 }
 0x68c   : >> { %v3817_v19 = vpop.permute.xlu0 %3816 }
 0x68d   : >> { %4058 = vrot.lane.b32.xlu1 %v11531_v4, %s7008_s30  ;;  %v12049_v45 = vsel %vm3622_vm1, %v3825_v10, %v3817_v19  ;;  %v12053_v12 = vsel %vm3622_vm1, %v3817_v19, %v3825_v10 }
 0x68e   : >> { %4050 = vrot.lane.b32.xlu0 %v11534_v62, %s7008_s30  ;;  %4468 = vmatprep.subr.mxu1 %v12049_v45 }
 0x68f   : >> { %4469 = vmatpush2.msra.mxu1 %v12053_v12  ;;  %v3987_v55 = vpop.permute.xlu1 %3986 }
 0x690   : >> { %v3979_v14 = vpop.permute.xlu0 %3978  ;;  %4471 = vmatmul.mubr.f32.vlgmr.msra.gmra.mxu1 %v4166_v48  ;;  %v12081_v48 = vld [vmem:[%s14659_s4 + $0x40] sm:$0xff] }
 0x691   : >> { %4056 = vrot.lane.b32.xlu1 %v11548_v38, %s7008_s30  ;;  %v12069_v10 = vsel %vm354_vm0, %v3987_v55, %v3979_v14  ;;  %v12073_v19 = vsel %vm354_vm0, %v3979_v14, %v3987_v55  ;;  %4476 = vmatprep.mubr.f32.mxu1 %v4174_v8  ;;  %15301 = vst [vmem:[#allocation79_spill] sm:$0xff] %v12081_v48  ;;  %v4181_v55 = vld [vmem:[%s14659_s4 + $0x88] sm:$0xff]  ;;  %v12092_v8 = vld [vmem:[%s14659_s4 + $0x38] sm:$0xff] }
 0x692   : >> { %15299 = vst [vmem:[#allocation77_spill] sm:$0xff] %v12069_v10  ;;  %15300 = vst [vmem:[#allocation78_spill] sm:$0xff] %v12073_v19  ;;  %4048 = vrot.lane.b32.xlu0 %v11555_v13, %s7008_s30  ;;  %4519 = vmatprep.subr.mxu0 %v12069_v10 }
 0x693   : >> { %15302 = vst [vmem:[#allocation80_spill] sm:$0xff] %v12092_v8  ;;  %4520 = vmatpush1.msra.mxu0 %v12073_v19  ;;  %v3985_v14 = vpop.permute.xlu1 %3984  ;;  %4363 = vmatprep.mubr.f32.mxu0 %v12081_v48  ;;  %v4180_v19 = vld [vmem:[%s14659_s4 + $0x80] sm:$0xff]  ;;  %v12246_v48 = vld [vmem:[%s14659_s4 + $0xe8] sm:$0xff] }
 0x694   : >> { %v3977_v57 = vpop.permute.xlu0 %3976  ;;  %4477 = vmatmul.mubr.f32.gmra.mxu1 %v4173_v46  ;;  %4364 = vmatmul.mubr.f32.gmra.mxu0 %v12092_v8  ;;  %v4188_v46 = vld [vmem:[%s14659_s4 + $0xc0] sm:$0xff]  ;;  %v12119_v8 = vld [vmem:[%s14659_s4 + $0x78] sm:$0xff]  ;;  %15319 = vst [vmem:[#allocation97_spill] sm:$0xff] %v12246_v48 }
 0x695   : >> { %4054 = vrot.lane.b32.xlu1 %v11571_v17, %s7008_s30  ;;  %v12101_v10 = vsel %vm354_vm0, %v3985_v14, %v3977_v57  ;;  %v12105_v49 = vsel %vm354_vm0, %v3977_v57, %v3985_v14  ;;  %4482 = vmatprep.mubr.f32.mxu1 %v4181_v55  ;;  %15305 = vst [vmem:[#allocation83_spill] sm:$0xff] %v12119_v8  ;;  %v12126_v55 = vld [vmem:[%s14659_s4 + $0x70] sm:$0xff] }
 0x696   : >> { %15303 = vst [vmem:[#allocation81_spill] sm:$0xff] %v12101_v10  ;;  %15304 = vst [vmem:[#allocation82_spill] sm:$0xff] %v12105_v49  ;;  %4046 = vrot.lane.b32.xlu0 %v11576_v22, %s7008_s30  ;;  %4521 = vmatprep.subr.mxu0 %v12101_v10 }
 0x697   : >> { %4522 = vmatpush1.msra.mxu0 %v12105_v49  ;;  %v3983_v57 = vpop.permute.xlu1 %3982  ;;  %4369 = vmatprep.mubr.f32.mxu0 %v12119_v8  ;;  %15306 = vst [vmem:[#allocation84_spill] sm:$0xff] %v12126_v55  ;;  %v4187_v8 = vld [vmem:[%s14659_s4 + $0xb8] sm:$0xff] }
 0x698   : >> { %v3975_v14 = vpop.permute.xlu0 %3974  ;;  %4483 = vmatmul.mubr.f32.gmra.mxu1 %v4180_v19  ;;  %4370 = vmatmul.mubr.f32.gmra.mxu0 %v12126_v55  ;;  %v4195_v19 = vld [vmem:[%s14659_s4 + $0xf8] sm:$0xff] }
 0x699   : >> { %4052 = vrot.lane.b32.xlu1 %v11599_v52, %s7008_s30  ;;  %v12133_v10 = vsel %vm354_vm0, %v3983_v57, %v3975_v14  ;;  %v12137_v49 = vsel %vm354_vm0, %v3975_v14, %v3983_v57  ;;  %4488 = vmatprep.mubr.f32.mxu1 %v4188_v46  ;;  %v12152_v46 = vld [vmem:[%s14659_s4 + $0xb0] sm:$0xff] }
 0x69a   : >> { %15307 = vst [vmem:[#allocation85_spill] sm:$0xff] %v12133_v10  ;;  %15308 = vst [vmem:[#allocation86_spill] sm:$0xff] %v12137_v49  ;;  %4044 = vrot.lane.b32.xlu0 %v11607_v44, %s7008_s30  ;;  %4523 = vmatprep.subr.mxu0 %v12133_v10  ;;  %v4194_v10 = vld [vmem:[%s14659_s4 + $0xf0] sm:$0xff] }
 0x69b   : >> { %4524 = vmatpush1.msra.mxu0 %v12137_v49  ;;  %v3981_v55 = vpop.permute.xlu1 %3980  ;;  %15309 = vst [vmem:[#allocation87_spill] sm:$0xff] %v12152_v46  ;;  %4375 = vmatprep.mubr.f32.mxu0 %v12152_v46 }
 0x69c   : >> { %v3973_v57 = vpop.permute.xlu0 %3972  ;;  %4489 = vmatmul.mubr.f32.gmra.mxu1 %v4187_v8 }
 0x69d   : >> { %4034 = vrot.lane.b32.xlu1 %v11531_v4, %s7007_s29  ;;  %v12159_v14 = vsel %vm354_vm0, %v3981_v55, %v3973_v57  ;;  %v12163_v49 = vsel %vm354_vm0, %v3973_v57, %v3981_v55  ;;  %4494 = vmatprep.mubr.f32.mxu1 %v4195_v19  ;;  %v4202_v57 = vld [vmem:[%s14659_s4 + $0x130] sm:$0xff] }
 0x69e   : >> { %15310 = vst [vmem:[#allocation88_spill] sm:$0xff] %v12159_v14  ;;  %15311 = vst [vmem:[#allocation89_spill] sm:$0xff] %v12163_v49  ;;  %4026 = vrot.lane.b32.xlu0 %v11534_v62, %s7007_s29  ;;  %4525 = vmatprep.subr.mxu0 %v12159_v14 }
 0x69f   : >> { %4526 = vmatpush1.msra.mxu0 %v12163_v49  ;;  %v4155_v8 = vpop.permute.xlu1 %4154 }
 0x6a0   : >> { %v4147_v46 = vpop.permute.xlu0 %4146  ;;  %4527 = vmatprep.subr.mxu0 %v11531_v4  ;;  %4495 = vmatmul.mubr.f32.gmra.mxu1 %v4194_v10 }
 0x6a1   : >> { %4032 = vrot.lane.b32.xlu1 %v11548_v38, %s7007_s29  ;;  %v12177_v55 = vsel %vm3747_vm7, %v4155_v8, %v4147_v46  ;;  %v12181_v19 = vsel %vm3747_vm7, %v4147_v46, %v4155_v8  ;;  %4528 = vmatpush1.msra.mxu0 %v11534_v62 }
 0x6a2   : >> { %15312 = vst [vmem:[#allocation90_spill] sm:$0xff] %v12177_v55  ;;  %15313 = vst [vmem:[#allocation91_spill] sm:$0xff] %v12181_v19  ;;  %4024 = vrot.lane.b32.xlu0 %v11555_v13, %s7007_s29  ;;  %4640 = vmatprep.subr.mxu1 %v12177_v55 }
 0x6a3   : >> { %4641 = vmatpush1.msra.mxu1 %v12181_v19  ;;  %v4153_v10 = vpop.permute.xlu1 %4152  ;;  %4529 = vmatprep.subr.mxu0 %v11548_v38  ;;  %v4201_v19 = vld [vmem:[%s14659_s4 + $0x128] sm:$0xff] }
 0x6a4   : >> { %v4145_v49 = vpop.permute.xlu0 %4144  ;;  %4530 = vmatpush1.msra.mxu0 %v11555_v13  ;;  %4500 = vmatprep.mubr.f32.mxu1 %v4202_v57 }
 0x6a5   : >> { %4030 = vrot.lane.b32.xlu1 %v11571_v17, %s7007_s29  ;;  %v12197_v46 = vsel %vm3747_vm7, %v4153_v10, %v4145_v49  ;;  %v12201_v8 = vsel %vm3747_vm7, %v4145_v49, %v4153_v10  ;;  %4531 = vmatprep.subr.mxu0 %v11571_v17  ;;  %v4209_v49 = vld [vmem:[%s14659_s4 + $0x168] sm:$0xff] }
 0x6a6   : >> { %15314 = vst [vmem:[#allocation92_spill] sm:$0xff] %v12197_v46  ;;  %15315 = vst [vmem:[#allocation93_spill] sm:$0xff] %v12201_v8  ;;  %4022 = vrot.lane.b32.xlu0 %v11576_v22, %s7007_s29  ;;  %4642 = vmatprep.subr.mxu1 %v12197_v46  ;;  %v12233_v46 = vld [vmem:[%s14659_s4 + $0xa8] sm:$0xff] }
 0x6a7   : >> { %4643 = vmatpush1.msra.mxu1 %v12201_v8  ;;  %v4151_v57 = vpop.permute.xlu1 %4150  ;;  %4532 = vmatpush1.msra.mxu0 %v11576_v22  ;;  %15318 = vst [vmem:[#allocation96_spill] sm:$0xff] %v12233_v46 }
 0x6a8   : >> { %v4143_v55 = vpop.permute.xlu0 %4142  ;;  %4533 = vmatprep.subr.mxu0 %v11599_v52  ;;  %4501 = vmatmul.mubr.f32.gmra.mxu1 %v4201_v19  ;;  %v4208_v19 = vld [vmem:[%s14659_s4 + $0x160] sm:$0xff] }
 0x6a9   : >> { %4028 = vrot.lane.b32.xlu1 %v11599_v52, %s7007_s29  ;;  %v12220_v10 = vsel %vm3747_vm7, %v4151_v57, %v4143_v55  ;;  %v12224_v8 = vsel %vm3747_vm7, %v4143_v55, %v4151_v57  ;;  %4534 = vmatpush1.msra.mxu0 %v11607_v44  ;;  %v4216_v55 = vld [vmem:[%s14659_s4 + $0x1a0] sm:$0xff] }
 0x6aa   : >> { %15316 = vst [vmem:[#allocation94_spill] sm:$0xff] %v12220_v10  ;;  %15317 = vst [vmem:[#allocation95_spill] sm:$0xff] %v12224_v8  ;;  %4020 = vrot.lane.b32.xlu0 %v11607_v44, %s7007_s29  ;;  %4644 = vmatprep.subr.mxu1 %v12220_v10 }
 0x6ab   : >> { %4645 = vmatpush1.msra.mxu1 %v12224_v8  ;;  %v4149_v57 = vpop.permute.xlu1 %4148  ;;  %4506 = vmatprep.mubr.f32.mxu1 %v4209_v49  ;;  %v4215_v49 = vld [vmem:[%s14659_s4 + $0x198] sm:$0xff] }
 0x6ac   : >> { %v4141_v14 = vpop.permute.xlu0 %4140  ;;  %4507 = vmatmul.mubr.f32.gmra.mxu1 %v4208_v19  ;;  %4376 = vmatmul.mubr.f32.gmra.mxu0 %v12233_v46  ;;  %v12264_v19 = vld [vmem:[%s14659_s4 + $0xe0] sm:$0xff] }
 0x6ad   : >> { %4010 = vrot.lane.b32.xlu1 %v11531_v4, %s7006_s14  ;;  %v12252_v10 = vsel %vm3747_vm7, %v4149_v57, %v4141_v14  ;;  %v12256_v8 = vsel %vm3747_vm7, %v4141_v14, %v4149_v57  ;;  %4512 = vmatprep.mubr.f32.mxu1 %v4216_v55  ;;  %15322 = vst [vmem:[#allocation100_spill] sm:$0xff] %v12264_v19  ;;  %v12275_v55 = vld [vmem:[%s14659_s4 + $0x120] sm:$0xff] }
 0x6ae   : >> { %15320 = vst [vmem:[#allocation98_spill] sm:$0xff] %v12252_v10  ;;  %15321 = vst [vmem:[#allocation99_spill] sm:$0xff] %v12256_v8  ;;  %4002 = vrot.lane.b32.xlu0 %v11534_v62, %s7006_s14  ;;  %4646 = vmatprep.subr.mxu1 %v12252_v10  ;;  %v12344_v10 = vld [vmem:[%s14659_s4 + $0x188] sm:$0xff] }
 0x6af   : >> { %4647 = vmatpush1.msra.mxu1 %v12256_v8  ;;  %v4131_v4 = vpop.permute.xlu1 %4130  ;;  %4381 = vmatprep.mubr.f32.mxu0 %v12246_v48  ;;  %15323 = vst [vmem:[#allocation101_spill] sm:$0xff] %v12275_v55  ;;  %v14875_v8 = vmov 0.0   ;;  %15334 = vst [vmem:[#allocation112_spill] sm:$0xff] %v12344_v10 }
 0x6b0   : >> { %v4123_v14 = vpop.permute.xlu0 %4122  ;;  %4513 = vmatmul.mubr.f32.gmra.mxu1 %v4215_v49  ;;  %4382 = vmatmul.mubr.f32.gmra.mxu0 %v12264_v19  ;;  %v12291_v49 = vld [vmem:[%s14659_s4 + $0x118] sm:$0xff] }
 0x6b1   : >> { %4008 = vrot.lane.b32.xlu1 %v11548_v38, %s7006_s14  ;;  %v12281_v62 = vsel %vm3722_vm2, %v4131_v4, %v4123_v14  ;;  %v12285_v57 = vsel %vm3722_vm2, %v4123_v14, %v4131_v4  ;;  %4696 = vmatprep.mubr.f32.mxu1 %v14875_v8  ;;  %15326 = vst [vmem:[#allocation104_spill] sm:$0xff] %v12291_v49  ;;  %v12299_v38 = vld [vmem:[%s14659_s4 + $0x158] sm:$0xff] }
 0x6b2   : >> { %15324 = vst [vmem:[#allocation102_spill] sm:$0xff] %v12281_v62  ;;  %15325 = vst [vmem:[#allocation103_spill] sm:$0xff] %v12285_v57  ;;  %4000 = vrot.lane.b32.xlu0 %v11555_v13, %s7006_s14  ;;  %4648 = vmatprep.subr.mxu1 %v12281_v62 }
 0x6b3   : >> { %15327 = vst [vmem:[#allocation105_spill] sm:$0xff] %v12299_v38  ;;  %4649 = vmatpush1.msra.mxu1 %v12285_v57  ;;  %v3951_v4 = vpop.permute.xlu1 %3950  ;;  %4387 = vmatprep.mubr.f32.mxu0 %v12275_v55  ;;  %v12318_v57 = vld [vmem:[%s14659_s4 + $0x150] sm:$0xff] }
 0x6b4   : >> { %v3943_v14 = vpop.permute.xlu0 %3942  ;;  %4388 = vmatmul.mubr.f32.gmra.mxu0 %v12291_v49  ;;  %15330 = vst [vmem:[#allocation108_spill] sm:$0xff] %v12318_v57  ;;  %v12418_v49 = vld [vmem:[%s11102_s19 + $0xc0] sm:$0xff] }
 0x6b5   : >> { %4006 = vrot.lane.b32.xlu1 %v11571_v17, %s7006_s14  ;;  %v12308_v13 = vsel %vm3747_vm7, %v3951_v4, %v3943_v14  ;;  %v12312_v8 = vsel %vm3747_vm7, %v3943_v14, %v3951_v4  ;;  %4393 = vmatprep.mubr.f32.mxu0 %v12299_v38  ;;  %v12326_v17 = vld [vmem:[%s14659_s4 + $0x190] sm:$0xff] }
 0x6b6   : >> { %15328 = vst [vmem:[#allocation106_spill] sm:$0xff] %v12308_v13  ;;  %15329 = vst [vmem:[#allocation107_spill] sm:$0xff] %v12312_v8  ;;  %3998 = vrot.lane.b32.xlu0 %v11576_v22, %s7006_s14  ;;  %4535 = vmatprep.subr.mxu0 %v12308_v13 }
 0x6b7   : >> { %15331 = vst [vmem:[#allocation109_spill] sm:$0xff] %v12326_v17  ;;  %4536 = vmatpush1.msra.mxu0 %v12312_v8  ;;  %v4129_v4 = vpop.permute.xlu1 %4128  ;;  %v12357_v8 = vld [vmem:[%s11102_s19 + $0xf0] sm:$0xff] }
 0x6b8   : >> { %v4121_v14 = vpop.permute.xlu0 %4120  ;;  %4394 = vmatmul.mubr.f32.gmra.mxu0 %v12318_v57 }
 0x6b9   : >> { %4004 = vrot.lane.b32.xlu1 %v11599_v52, %s7006_s14  ;;  %v12334_v22 = vsel %vm3722_vm2, %v4129_v4, %v4121_v14  ;;  %v12338_v62 = vsel %vm3722_vm2, %v4121_v14, %v4129_v4  ;;  %4399 = vmatprep.mubr.f32.mxu0 %v12326_v17  ;;  %v12350_v52 = vld [vmem:[%s11102_s19 + $0xf8] sm:$0xff]  ;;  %v4169_v4 = vld [vmem:[%s14659_s4 + $0x28] sm:$0xff]  ;;  %v12378_v17 = vld [vmem:[%s11102_s19 + $0xe0] sm:$0xff] }
 0x6ba   : >> { %15332 = vst [vmem:[#allocation110_spill] sm:$0xff] %v12334_v22  ;;  %15333 = vst [vmem:[#allocation111_spill] sm:$0xff] %v12338_v62  ;;  %3996 = vrot.lane.b32.xlu0 %v11607_v44, %s7006_s14  ;;  %4650 = vmatprep.subr.mxu1 %v12334_v22 }
 0x6bb   : >> { %4651 = vmatpush1.msra.mxu1 %v12338_v62  ;;  %v3949_v14 = vpop.permute.xlu1 %3948  ;;  %v12374_v62 = vld [vmem:[%s11102_s19 + $0xe8] sm:$0xff] }
 0x6bc   : >> { %v3941_v13 = vpop.permute.xlu0 %3940  ;;  %4400 = vmatmul.mubr.f32.gmra.mxu0 %v12344_v10 }
 0x6bd   : >> { %4915 = vrot.lane.b32.xlu1 %v12350_v52, %s7005_s13  ;;  %v12364_v44 = vsel %vm3747_vm7, %v3949_v14, %v3941_v13  ;;  %v12368_v22 = vsel %vm3747_vm7, %v3941_v13, %v3949_v14  ;;  %4583 = vmatprep.mubr.f32.mxu0 %v4169_v4  ;;  %v12394_v14 = vld [vmem:[%s11102_s19 + $0xd8] sm:$0xff] }
 0x6be   : >> { %15335 = vst [vmem:[#allocation113_spill] sm:$0xff] %v12364_v44  ;;  %15336 = vst [vmem:[#allocation114_spill] sm:$0xff] %v12368_v22  ;;  %4907 = vrot.lane.b32.xlu0 %v12357_v8, %s7005_s13  ;;  %4537 = vmatprep.subr.mxu0 %v12364_v44  ;;  %v12398_v44 = vld [vmem:[%s11102_s19 + $0xd0] sm:$0xff] }
 0x6bf   : >> { %4538 = vmatpush1.msra.mxu0 %v12368_v22  ;;  %v4127_v10 = vpop.permute.xlu1 %4126 }
 0x6c0   : >> { %v4119_v57 = vpop.permute.xlu0 %4118 }
 0x6c1   : >> { %4913 = vrot.lane.b32.xlu1 %v12374_v62, %s7005_s13  ;;  %v12384_v13 = vsel %vm3722_vm2, %v4127_v10, %v4119_v57  ;;  %v12388_v4 = vsel %vm3722_vm2, %v4119_v57, %v4127_v10 }
 0x6c2   : >> { %15337 = vst [vmem:[#allocation115_spill] sm:$0xff] %v12384_v13  ;;  %15338 = vst [vmem:[#allocation116_spill] sm:$0xff] %v12388_v4  ;;  %4905 = vrot.lane.b32.xlu0 %v12378_v17, %s7005_s13  ;;  %4652 = vmatprep.subr.mxu1 %v12384_v13 }
 0x6c3   : >> { %4653 = vmatpush1.msra.mxu1 %v12388_v4  ;;  %v3947_v22 = vpop.permute.xlu1 %3946  ;;  %v12414_v4 = vld [vmem:[%s11102_s19 + $0xc8] sm:$0xff] }
 0x6c4   : >> { %v3939_v38 = vpop.permute.xlu0 %3938 }
 0x6c5   : >> { %4911 = vrot.lane.b32.xlu1 %v12394_v14, %s7005_s13  ;;  %v12404_v10 = vsel %vm3747_vm7, %v3947_v22, %v3939_v38  ;;  %v12408_v57 = vsel %vm3747_vm7, %v3939_v38, %v3947_v22 }
 0x6c6   : >> { %15339 = vst [vmem:[#allocation117_spill] sm:$0xff] %v12404_v10  ;;  %15340 = vst [vmem:[#allocation118_spill] sm:$0xff] %v12408_v57  ;;  %4903 = vrot.lane.b32.xlu0 %v12398_v44, %s7005_s13  ;;  %4539 = vmatprep.subr.mxu0 %v12404_v10  ;;  %v7014_v10 = vmov 0  }
 0x6c7   : >> { %4540 = vmatpush1.msra.mxu0 %v12408_v57  ;;  %v4125_v13 = vpop.permute.xlu1 %4124  ;;  %6925 = vset.pattern.permute.xlu0 %v7014_v10 }
 0x6c8   : >> { %v4117_v55 = vpop.permute.xlu0 %4116  ;;  %6926 = vset.pattern.permute.xlu1 %v7014_v10 }
 0x6c9   : >> { %4909 = vrot.lane.b32.xlu1 %v12414_v4, %s7005_s13  ;;  %v12424_v38 = vsel %vm3722_vm2, %v4125_v13, %v4117_v55  ;;  %v12428_v22 = vsel %vm3722_vm2, %v4117_v55, %v4125_v13 }
 0x6ca   : >> { %15341 = vst [vmem:[#allocation119_spill] sm:$0xff] %v12424_v38  ;;  %15342 = vst [vmem:[#allocation120_spill] sm:$0xff] %v12428_v22  ;;  %4901 = vrot.lane.b32.xlu0 %v12418_v49, %s7005_s13  ;;  %4654 = vmatprep.subr.mxu1 %v12424_v38 }
 0x6cb   : >> { %4655 = vmatpush1.msra.mxu1 %v12428_v22  ;;  %v3945_v57 = vpop.permute.xlu1 %3944 }
 0x6cc   : >> { %v3937_v19 = vpop.permute.xlu0 %3936 }
 0x6cd   : >> { %5011 = vrot.lane.b32.xlu1 %v12350_v52, %s7009_s9  ;;  %v12438_v48 = vsel %vm3747_vm7, %v3945_v57, %v3937_v19  ;;  %v12442_v55 = vsel %vm3747_vm7, %v3937_v19, %v3945_v57 }
 0x6ce   : >> { %15343 = vst [vmem:[#allocation121_spill] sm:$0xff] %v12438_v48  ;;  %15344 = vst [vmem:[#allocation122_spill] sm:$0xff] %v12442_v55  ;;  %5003 = vrot.lane.b32.xlu0 %v12357_v8, %s7009_s9  ;;  %4541 = vmatprep.subr.mxu0 %v12438_v48 }
 0x6cf   : >> { %4542 = vmatpush1.msra.mxu0 %v12442_v55  ;;  %v4107_v13 = vpop.permute.xlu1 %4106 }
 0x6d0   : >> { %v4099_v10 = vpop.permute.xlu0 %4098 }
 0x6d1   : >> { %5009 = vrot.lane.b32.xlu1 %v12374_v62, %s7009_s9  ;;  %v12452_v22 = vsel %vm3697_vm3, %v4107_v13, %v4099_v10  ;;  %v12456_v19 = vsel %vm3697_vm3, %v4099_v10, %v4107_v13 }
 0x6d2   : >> { %15345 = vst [vmem:[#allocation123_spill] sm:$0xff] %v12452_v22  ;;  %15346 = vst [vmem:[#allocation124_spill] sm:$0xff] %v12456_v19  ;;  %5001 = vrot.lane.b32.xlu0 %v12378_v17, %s7009_s9  ;;  %4656 = vmatprep.subr.mxu1 %v12452_v22 }
 0x6d3   : >> { %4657 = vmatpush1.msra.mxu1 %v12456_v19  ;;  %v3927_v57 = vpop.permute.xlu1 %3926 }
 0x6d4   : >> { %v3919_v38 = vpop.permute.xlu0 %3918 }
 0x6d5   : >> { %5007 = vrot.lane.b32.xlu1 %v12394_v14, %s7009_s9  ;;  %v12466_v55 = vsel %vm3722_vm2, %v3927_v57, %v3919_v38  ;;  %v12470_v13 = vsel %vm3722_vm2, %v3919_v38, %v3927_v57 }
 0x6d6   : >> { %4999 = vrot.lane.b32.xlu0 %v12398_v44, %s7009_s9  ;;  %4543 = vmatprep.subr.mxu0 %v12466_v55 }
 0x6d7   : >> { %4544 = vmatpush1.msra.mxu0 %v12470_v13  ;;  %v4105_v10 = vpop.permute.xlu1 %4104 }
 0x6d8   : >> { %v4097_v19 = vpop.permute.xlu0 %4096 }
 0x6d9   : >> { %5005 = vrot.lane.b32.xlu1 %v12414_v4, %s7009_s9  ;;  %v12480_v22 = vsel %vm3697_vm3, %v4105_v10, %v4097_v19  ;;  %v12484_v38 = vsel %vm3697_vm3, %v4097_v19, %v4105_v10 }
 0x6da   : >> { %15347 = vst [vmem:[#allocation125_spill] sm:$0xff] %v12480_v22  ;;  %15348 = vst [vmem:[#allocation126_spill] sm:$0xff] %v12484_v38  ;;  %4997 = vrot.lane.b32.xlu0 %v12418_v49, %s7009_s9  ;;  %4658 = vmatprep.subr.mxu1 %v12480_v22 }
 0x6db   : >> { %4659 = vmatpush1.msra.mxu1 %v12484_v38  ;;  %v3925_v57 = vpop.permute.xlu1 %3924 }
 0x6dc   : >> { %v3917_v48 = vpop.permute.xlu0 %3916 }
 0x6dd   : >> { %4987 = vrot.lane.b32.xlu1 %v12350_v52, %s7008_s30  ;;  %v12494_v46 = vsel %vm3722_vm2, %v3925_v57, %v3917_v48  ;;  %v12498_v19 = vsel %vm3722_vm2, %v3917_v48, %v3925_v57 }
 0x6de   : >> { %4979 = vrot.lane.b32.xlu0 %v12357_v8, %s7008_s30  ;;  %4545 = vmatprep.subr.mxu0 %v12494_v46 }
 0x6df   : >> { %4546 = vmatpush1.msra.mxu0 %v12498_v19  ;;  %v4103_v10 = vpop.permute.xlu1 %4102 }
 0x6e0   : >> { %v4095_v38 = vpop.permute.xlu0 %4094 }
 0x6e1   : >> { %4985 = vrot.lane.b32.xlu1 %v12374_v62, %s7008_s30  ;;  %v12508_v22 = vsel %vm3697_vm3, %v4103_v10, %v4095_v38  ;;  %v12512_v48 = vsel %vm3697_vm3, %v4095_v38, %v4103_v10 }
 0x6e2   : >> { %15349 = vst [vmem:[#allocation127_spill] sm:$0xff] %v12508_v22  ;;  %15350 = vst [vmem:[#allocation128_spill] sm:$0xff] %v12512_v48  ;;  %4977 = vrot.lane.b32.xlu0 %v12378_v17, %s7008_s30  ;;  %4660 = vmatprep.subr.mxu1 %v12508_v22 }
 0x6e3   : >> { %4661 = vmatpush1.msra.mxu1 %v12512_v48  ;;  %v3923_v57 = vpop.permute.xlu1 %3922 }
 0x6e4   : >> { %v3915_v32 = vpop.permute.xlu0 %3914 }
 0x6e5   : >> { %5083 = vrot.lane.b32.xlu1 %v12350_v52, %s7012_s15  ;;  %v12522_v58 = vsel %vm3722_vm2, %v3923_v57, %v3915_v32  ;;  %v12526_v38 = vsel %vm3722_vm2, %v3915_v32, %v3923_v57  ;;  %v4170_v57 = vld [vmem:[%s14659_s4 + $0x30] sm:$0xff] }
 0x6e6   : >> { %5075 = vrot.lane.b32.xlu0 %v12357_v8, %s7012_s15  ;;  %4547 = vmatprep.subr.mxu0 %v12522_v58 }
 0x6e7   : >> { %4548 = vmatpush1.msra.mxu0 %v12526_v38  ;;  %v4101_v10 = vpop.permute.xlu1 %4100 }
 0x6e8   : >> { %v4093_v48 = vpop.permute.xlu0 %4092 }
 0x6e9   : >> { %4983 = vrot.lane.b32.xlu1 %v12394_v14, %s7008_s30  ;;  %v12536_v22 = vsel %vm3697_vm3, %v4101_v10, %v4093_v48  ;;  %v12540_v32 = vsel %vm3697_vm3, %v4093_v48, %v4101_v10 }
 0x6ea   : >> { %4975 = vrot.lane.b32.xlu0 %v12398_v44, %s7008_s30  ;;  %4662 = vmatprep.subr.mxu1 %v12536_v22 }
 0x6eb   : >> { %4663 = vmatpush1.msra.mxu1 %v12540_v32  ;;  %v3921_v5 = vpop.permute.xlu1 %3920 }
 0x6ec   : >> { %5093 = vmatprep.subr.mxu1 %v12007_v56  ;;  %v3913_v9 = vpop.permute.xlu0 %3912  ;;  %6590 = vmatmul.mubr.msk.f32.vlgmr.msra.gmra.mxu1 %vm4268_vm8, %v4170_v57  ;;  %v15351_v57 = vmov 0.0  }
 0x6ed   : >> { %5094 = vmatpush1.msra.mxu1 %v12011_v28  ;;  %5081 = vrot.lane.b32.xlu1 %v12374_v62, %s7012_s15  ;;  %v12556_v48 = vsel %vm3722_vm2, %v3921_v5, %v3913_v9  ;;  %v12560_v10 = vsel %vm3722_vm2, %v3913_v9, %v3921_v5 }
 0x6ee   : >> { %5073 = vrot.lane.b32.xlu0 %v12378_v17, %s7012_s15  ;;  %4549 = vmatprep.subr.mxu0 %v12556_v48 }
 0x6ef   : >> { %5095 = vmatprep.subr.mxu1 %v12021_v43  ;;  %4550 = vmatpush1.msra.mxu0 %v12560_v10  ;;  %v4083_v56 = vpop.permute.xlu1 %4082 }
 0x6f0   : >> { %5096 = vmatpush1.msra.mxu1 %v12025_v54  ;;  %v4075_v28 = vpop.permute.xlu0 %4074  ;;  %4702 = vmatprep.mubr.f32.mxu1 %v15351_v57 }
 0x6f1   : >> { %5097 = vmatprep.subr.mxu1 %v12035_v2  ;;  %4981 = vrot.lane.b32.xlu1 %v12414_v4, %s7008_s30  ;;  %v12574_v9 = vsel %vm3672_vm5, %v4083_v56, %v4075_v28  ;;  %v12578_v5 = vsel %vm3672_vm5, %v4075_v28, %v4083_v56  ;;  %v6928_v56 = vld [vmem:[%s11102_s19 + $0x70] sm:$0xff] }
 0x6f2   : >> { %5098 = vmatpush1.msra.mxu1 %v12039_v1  ;;  %4973 = vrot.lane.b32.xlu0 %v12418_v49, %s7008_s30 }
 0x6f3   : >> { %4551 = vmatprep.subr.mxu0 %v12574_v9  ;;  %5099 = vmatprep.subr.mxu1 %v12049_v45  ;;  %v4081_v43 = vpop.permute.xlu1 %4080 }
 0x6f4   : >> { %4552 = vmatpush2.msra.mxu0 %v12578_v5  ;;  %5100 = vmatpush1.msra.mxu1 %v12053_v12  ;;  %v4073_v54 = vpop.permute.xlu0 %4072 }
 0x6f5   : >> { %5101 = vmatprep.subr.mxu1 %v11584_v50  ;;  %5079 = vrot.lane.b32.xlu1 %v12394_v14, %s7012_s15  ;;  %v12592_v2 = vsel %vm3672_vm5, %v4081_v43, %v4073_v54  ;;  %v12596_v1 = vsel %vm3672_vm5, %v4073_v54, %v4081_v43  ;;  %v6930_v43 = vld [vmem:[%s11102_s19 + $0x60] sm:$0xff] }
 0x6f6   : >> { %5102 = vmatpush1.msra.mxu1 %v11588_v61  ;;  %5071 = vrot.lane.b32.xlu0 %v12398_v44, %s7012_s15 }
 0x6f7   : >> { %4553 = vmatprep.subr.mxu0 %v12592_v2  ;;  %5103 = vmatprep.subr.mxu1 %v11615_v0  ;;  %v4079_v50 = vpop.permute.xlu1 %4078 }
 0x6f8   : >> { %4554 = vmatpush2.msra.mxu0 %v12596_v1  ;;  %5104 = vmatpush1.msra.mxu1 %v11625_v29  ;;  %v4071_v45 = vpop.permute.xlu0 %4070 }
 0x6f9   : >> { %5105 = vmatprep.subr.mxu1 %v11646_v30  ;;  %4963 = vrot.lane.b32.xlu1 %v12350_v52, %s7007_s29  ;;  %v12610_v61 = vsel %vm3672_vm5, %v4079_v50, %v4071_v45  ;;  %v12614_v12 = vsel %vm3672_vm5, %v4071_v45, %v4079_v50  ;;  %v6931_v50 = vld [vmem:[%s11102_s19 + $0x58] sm:$0xff] }
 0x6fa   : >> { %5106 = vmatpush1.msra.mxu1 %v11656_v26  ;;  %4955 = vrot.lane.b32.xlu0 %v12357_v8, %s7007_s29 }
 0x6fb   : >> { %4555 = vmatprep.subr.mxu0 %v12610_v61  ;;  %5107 = vmatprep.subr.mxu1 %v11676_v27  ;;  %v4077_v0 = vpop.permute.xlu1 %4076 }
 0x6fc   : >> { %4556 = vmatpush2.msra.mxu0 %v12614_v12  ;;  %5108 = vmatpush1.msra.mxu1 %v11686_v15  ;;  %v4069_v29 = vpop.permute.xlu0 %4068 }
 0x6fd   : >> { %5109 = vmatprep.subr.mxu1 %v11707_v18  ;;  %5077 = vrot.lane.b32.xlu1 %v12414_v4, %s7012_s15  ;;  %v12628_v30 = vsel %vm3672_vm5, %v4077_v0, %v4069_v29  ;;  %v12632_v26 = vsel %vm3672_vm5, %v4069_v29, %v4077_v0  ;;  %v6932_v29 = vld [vmem:[%s11102_s19 + $0x50] sm:$0xff] }
 0x6fe   : >> { %5110 = vmatpush1.msra.mxu1 %v11717_v59  ;;  %5069 = vrot.lane.b32.xlu0 %v12418_v49, %s7012_s15 }
 0x6ff   : >> { %4557 = vmatprep.subr.mxu0 %v12628_v30  ;;  %5111 = vmatprep.subr.mxu1 %v11737_v6  ;;  %v4059_v27 = vpop.permute.xlu1 %4058 }
 0x700   : >> { %4558 = vmatpush2.msra.mxu0 %v12632_v26  ;;  %5112 = vmatpush1.msra.mxu1 %v11747_v37  ;;  %v4051_v15 = vpop.permute.xlu0 %4050 }
 0x701   : >> { %5113 = vmatprep.subr.mxu1 %v11767_v3  ;;  %4961 = vrot.lane.b32.xlu1 %v12374_v62, %s7007_s29  ;;  %v12646_v18 = vsel %vm3647_vm6, %v4059_v27, %v4051_v15  ;;  %v12650_v59 = vsel %vm3647_vm6, %v4051_v15, %v4059_v27  ;;  %v6927_v3 = vld [vmem:[%s11102_s19 + $0x78] sm:$0xff]  ;;  %v6933_v27 = vld [vmem:[%s11102_s19 + $0x48] sm:$0xff] }
 0x702   : >> { %5114 = vmatpush1.msra.mxu1 %v11771_v41  ;;  %4953 = vrot.lane.b32.xlu0 %v12378_v17, %s7007_s29 }
 0x703   : >> { %4559 = vmatprep.subr.mxu0 %v12646_v18  ;;  %5115 = vmatprep.subr.mxu1 %v11784_v31  ;;  %v4057_v6 = vpop.permute.xlu1 %4056 }
 0x704   : >> { %4560 = vmatpush2.msra.mxu0 %v12650_v59  ;;  %5116 = vmatpush1.msra.mxu1 %v11788_v23  ;;  %v4049_v37 = vpop.permute.xlu0 %4048  ;;  %v6929_v23 = vld [vmem:[%s11102_s19 + $0x68] sm:$0xff] }
 0x705   : >> { %5117 = vmatprep.subr.mxu1 %v6927_v3  ;;  %5059 = vrot.lane.b32.xlu1 %v12350_v52, %s7011_s12  ;;  %v12664_v41 = vsel %vm3647_vm6, %v4057_v6, %v4049_v37  ;;  %v12668_v31 = vsel %vm3647_vm6, %v4049_v37, %v4057_v6  ;;  %v6934_v6 = vld [vmem:[%s11102_s19 + $0x40] sm:$0xff] }
 0x706   : >> { %5118 = vmatpush1.msra.mxu1 %v6928_v56  ;;  %5051 = vrot.lane.b32.xlu0 %v12357_v8, %s7011_s12 }
 0x707   : >> { %4561 = vmatprep.subr.mxu0 %v12664_v41  ;;  %5119 = vmatprep.subr.mxu1 %v6929_v23  ;;  %v4055_v28 = vpop.permute.xlu1 %4054 }
 0x708   : >> { %4562 = vmatpush2.msra.mxu0 %v12668_v31  ;;  %5120 = vmatpush1.msra.mxu1 %v6930_v43  ;;  %v4047_v54 = vpop.permute.xlu0 %4046 }
 0x709   : >> { %5121 = vmatprep.subr.mxu1 %v6931_v50  ;;  %4959 = vrot.lane.b32.xlu1 %v12394_v14, %s7007_s29  ;;  %v12682_v45 = vsel %vm3647_vm6, %v4055_v28, %v4047_v54  ;;  %v12686_v0 = vsel %vm3647_vm6, %v4047_v54, %v4055_v28 }
 0x70a   : >> { %5122 = vmatpush1.msra.mxu1 %v6932_v29  ;;  %4951 = vrot.lane.b32.xlu0 %v12398_v44, %s7007_s29 }
 0x70b   : >> { %4563 = vmatprep.subr.mxu0 %v12682_v45  ;;  %5123 = vmatprep.subr.mxu1 %v6933_v27  ;;  %v4053_v15 = vpop.permute.xlu1 %4052 }
 0x70c   : >> { %4564 = vmatpush2.msra.mxu0 %v12686_v0  ;;  %5124 = vmatpush1.msra.mxu1 %v6934_v6  ;;  %v4045_v37 = vpop.permute.xlu0 %4044 }
 0x70d   : >> { %5125 = vmatprep.subr.mxu1 %v12466_v55  ;;  %5057 = vrot.lane.b32.xlu1 %v12374_v62, %s7011_s12  ;;  %v12700_v3 = vsel %vm3647_vm6, %v4053_v15, %v4045_v37  ;;  %v12704_v56 = vsel %vm3647_vm6, %v4045_v37, %v4053_v15  ;;  %v12712_v55 = vld [vmem:[%s14659_s4 + $0x68] sm:$0xff] }
 0x70e   : >> { %5126 = vmatpush2.msra.mxu1 %v12470_v13  ;;  %5049 = vrot.lane.b32.xlu0 %v12378_v17, %s7011_s12  ;;  %15352 = vst [vmem:[#allocation129_spill] sm:$0xff] %v12712_v55 }
 0x70f   : >> { %4565 = vmatprep.subr.mxu0 %v12700_v3  ;;  %5127 = vmatprep.subr.mxu1 %v12494_v46  ;;  %v4035_v23 = vpop.permute.xlu1 %4034 }
 0x710   : >> { %4566 = vmatpush2.msra.mxu0 %v12704_v56  ;;  %5128 = vmatpush2.msra.mxu1 %v12498_v19  ;;  %v4027_v28 = vpop.permute.xlu0 %4026 }
 0x711   : >> { %6591 = vmatmul.mubr.msk.f32.gmra.mxu1 %vm4268_vm8, %v12712_v55  ;;  %5129 = vmatprep.subr.mxu1 %v12522_v58  ;;  %v12723_v13 = vsel %vm3622_vm1, %v4035_v23, %v4027_v28  ;;  %v12727_v43 = vsel %vm3622_vm1, %v4027_v28, %v4035_v23  ;;  %v12738_v58 = vld [vmem:[%s14659_s4 + $0xa0] sm:$0xff]  ;;  %v15412_v55 = vld [vmem:[#allocation99_spill] sm:$0xff] }
 0x712   : >> { %5130 = vmatpush2.msra.mxu1 %v12526_v38  ;;  %4957 = vrot.lane.b32.xlu1 %v12414_v4, %s7007_s29  ;;  %15353 = vst [vmem:[#allocation130_spill] sm:$0xff] %v12738_v58 }
 0x713   : >> { %4949 = vrot.lane.b32.xlu0 %v12418_v49, %s7007_s29  ;;  %4567 = vmatprep.subr.mxu0 %v12723_v13  ;;  %v4033_v46 = vpop.permute.xlu1 %4032 }
 0x714   : >> { %5131 = vmatprep.subr.mxu1 %v12556_v48  ;;  %4568 = vmatpush2.msra.mxu0 %v12727_v43  ;;  %v4025_v19 = vpop.permute.xlu0 %4024 }
 0x715   : >> { %4708 = vmatprep.mubr.f32.mxu1 %v15351_v57  ;;  %5132 = vmatpush2.msra.mxu1 %v12560_v10  ;;  %v12746_v38 = vsel %vm3622_vm1, %v4033_v46, %v4025_v19  ;;  %v12753_v54 = vsel %vm3622_vm1, %v4025_v19, %v4033_v46  ;;  %v12764_v10 = vld [vmem:[%s14659_s4 + $0xd8] sm:$0xff] }
 0x716   : >> { %6592 = vmatmul.mubr.msk.f32.gmra.mxu1 %vm4268_vm8, %v12738_v58  ;;  %5133 = vmatprep.subr.mxu1 %v11841_v63  ;;  %15354 = vst [vmem:[#allocation131_spill] sm:$0xff] %v12764_v10  ;;  %v15361_v46 = vld [vmem:[#allocation73_spill] sm:$0xff]  ;;  %v15406_v58 = vld [vmem:[#allocation94_spill] sm:$0xff] }
 0x717   : >> { %5134 = vmatpush2.msra.mxu1 %v11846_v7  ;;  %5055 = vrot.lane.b32.xlu1 %v12394_v14, %s7011_s12  ;;  %v4031_v48 = vpop.permute.xlu1 %4030 }
 0x718   : >> { %5047 = vrot.lane.b32.xlu0 %v12398_v44, %s7011_s12  ;;  %4569 = vmatprep.subr.mxu0 %v12746_v38  ;;  %v4023_v63 = vpop.permute.xlu0 %4022 }
 0x719   : >> { %5135 = vmatprep.subr.mxu1 %v11853_v36  ;;  %4570 = vmatpush2.msra.mxu0 %v12753_v54  ;;  %v12772_v7 = vsel %vm3622_vm1, %v4031_v48, %v4023_v63  ;;  %v12779_v50 = vsel %vm3622_vm1, %v4023_v63, %v4031_v48  ;;  %v15362_v63 = vld [vmem:[#allocation74_spill] sm:$0xff] }
 0x71a   : >> { %4714 = vmatprep.mubr.f32.mxu1 %v15351_v57  ;;  %5136 = vmatpush2.msra.mxu1 %v11857_v40 }
 0x71b   : >> { %6593 = vmatmul.mubr.msk.f32.gmra.mxu1 %vm4268_vm8, %v12764_v10  ;;  %5137 = vmatprep.subr.mxu1 %v11867_v25  ;;  %v4029_v36 = vpop.permute.xlu1 %4028  ;;  %v12790_v25 = vld [vmem:[%s14659_s4 + $0x110] sm:$0xff] }
 0x71c   : >> { %5138 = vmatpush2.msra.mxu1 %v11871_v33  ;;  %4939 = vrot.lane.b32.xlu1 %v12350_v52, %s7006_s14  ;;  %v4021_v40 = vpop.permute.xlu0 %4020  ;;  %15355 = vst [vmem:[#allocation132_spill] sm:$0xff] %v12790_v25 }
 0x71d   : >> { %4931 = vrot.lane.b32.xlu0 %v12357_v8, %s7006_s14  ;;  %4571 = vmatprep.subr.mxu0 %v12772_v7  ;;  %v12798_v33 = vsel %vm3622_vm1, %v4029_v36, %v4021_v40  ;;  %v12805_v27 = vsel %vm3622_vm1, %v4021_v40, %v4029_v36  ;;  %v15363_v40 = vld [vmem:[#allocation75_spill] sm:$0xff] }
 0x71e   : >> { %5139 = vmatprep.subr.mxu1 %v11881_v51  ;;  %4572 = vmatpush2.msra.mxu0 %v12779_v50 }
 0x71f   : >> { %4720 = vmatprep.mubr.f32.mxu1 %v15351_v57  ;;  %5140 = vmatpush2.msra.mxu1 %v11885_v47  ;;  %v4011_v29 = vpop.permute.xlu1 %4010  ;;  %v12816_v47 = vld [vmem:[%s14659_s4 + $0x148] sm:$0xff] }
 0x720   : >> { %6594 = vmatmul.mubr.msk.f32.gmra.mxu1 %vm4268_vm8, %v12790_v25  ;;  %5141 = vmatprep.subr.mxu1 %v11895_v42  ;;  %v4003_v51 = vpop.permute.xlu0 %4002  ;;  %15356 = vst [vmem:[#allocation133_spill] sm:$0xff] %v12816_v47  ;;  %v6941_v25 = vld [vmem:[%s11102_s19 + $0x98] sm:$0xff] }
 0x721   : >> { %5142 = vmatpush2.msra.mxu1 %v11899_v53  ;;  %5053 = vrot.lane.b32.xlu1 %v12414_v4, %s7011_s12  ;;  %v4019_v53 = vsel %vm373_vm4, %v4011_v29, %v4003_v51  ;;  %v4015_v6 = vsel %vm373_vm4, %v4003_v51, %v4011_v29  ;;  %v15364_v51 = vld [vmem:[#allocation76_spill] sm:$0xff] }
 0x722   : >> { %5045 = vrot.lane.b32.xlu0 %v12418_v49, %s7011_s12  ;;  %4573 = vmatprep.subr.mxu0 %v12798_v33 }
 0x723   : >> { %5143 = vmatprep.subr.mxu1 %v11909_v35  ;;  %4574 = vmatpush2.msra.mxu0 %v12805_v27  ;;  %v4009_v42 = vpop.permute.xlu1 %4008  ;;  %v12837_v35 = vld [vmem:[%s14659_s4 + $0x180] sm:$0xff] }
 0x724   : >> { %4726 = vmatprep.mubr.f32.mxu1 %v15351_v57  ;;  %5144 = vmatpush2.msra.mxu1 %v11913_v60  ;;  %v4001_v15 = vpop.permute.xlu0 %4000  ;;  %15357 = vst [vmem:[#allocation134_spill] sm:$0xff] %v12837_v35 }
 0x725   : >> { %6595 = vmatmul.mubr.msk.f32.gmra.mxu1 %vm4268_vm8, %v12816_v47  ;;  %5145 = vmatprep.subr.mxu1 %v11923_v34  ;;  %v4014_v37 = vsel %vm373_vm4, %v4001_v15, %v4009_v42  ;;  %v15379_v47 = vld [vmem:[#allocation85_spill] sm:$0xff] }
 0x726   : >> { %5146 = vmatpush2.msra.mxu1 %v11927_v20  ;;  %4937 = vrot.lane.b32.xlu1 %v12374_v62, %s7006_s14  ;;  %v4018_v20 = vsel %vm373_vm4, %v4009_v42, %v4001_v15  ;;  %v6935_v42 = vld [vmem:[%s14659_s4 + $0x8] sm:$0xff] }
 0x727   : >> { %4929 = vrot.lane.b32.xlu0 %v12378_v17, %s7006_s14  ;;  %4575 = vmatprep.subr.mxu0 %v4019_v53  ;;  %v4007_v60 = vpop.permute.xlu1 %4006 }
 0x728   : >> { %5147 = vmatprep.subr.mxu1 %v11937_v24  ;;  %4576 = vmatpush2.msra.mxu0 %v4015_v6  ;;  %v3999_v34 = vpop.permute.xlu0 %3998 }
 0x729   : >> { %4732 = vmatprep.mubr.f32.mxu1 %v15351_v57  ;;  %5148 = vmatpush2.msra.mxu1 %v11941_v16  ;;  %v12857_v16 = vld [vmem:[%s14659_s4 + $0x1b8] sm:$0xff]  ;;  %v4017_v28 = vsel %vm373_vm4, %v4007_v60, %v3999_v34  ;;  %v4013_v19 = vsel %vm373_vm4, %v3999_v34, %v4007_v60  ;;  %v6936_v34 = vld [vmem:[%s14659_s4] sm:$0xff] }
 0x72a   : >> { %6596 = vmatmul.mubr.msk.f32.gmra.mxu1 %vm4268_vm8, %v12837_v35  ;;  %5149 = vmatprep.subr.mxu1 %v11951_v11  ;;  %15358 = vst [vmem:[#allocation135_spill] sm:$0xff] %v12857_v16  ;;  %v15359_v11 = vld [vmem:[#allocation71_spill] sm:$0xff]  ;;  %v15372_v35 = vld [vmem:[#allocation78_spill] sm:$0xff] }
 0x72b   : >> { %5150 = vmatpush2.msra.mxu1 %v11955_v39  ;;  %5035 = vrot.lane.b32.xlu1 %v12350_v52, %s7010_s11  ;;  %v4005_v24 = vpop.permute.xlu1 %4004  ;;  %v15360_v39 = vld [vmem:[#allocation72_spill] sm:$0xff] }
 0x72c   : >> { %5027 = vrot.lane.b32.xlu0 %v12357_v8, %s7010_s11  ;;  %4577 = vmatprep.subr.mxu0 %v4018_v20  ;;  %v3997_v23 = vpop.permute.xlu0 %3996 }
 0x72d   : >> { %5151 = vmatprep.subr.mxu1 %v15359_v11  ;;  %4578 = vmatpush2.msra.mxu0 %v4014_v37  ;;  %v4016_v29 = vsel %vm373_vm4, %v4005_v24, %v3997_v23  ;;  %v4012_v15 = vsel %vm373_vm4, %v3997_v23, %v4005_v24  ;;  %v12891_v11 = vld [vmem:[%s14659_s4 + $0x20] sm:$0xff]  ;;  %v15365_v24 = vld [vmem:[#allocation79_spill] sm:$0xff] }
 0x72e   : >> { %4738 = vmatprep.mubr.f32.mxu1 %v15351_v57  ;;  %5152 = vmatpush2.msra.mxu1 %v15360_v39  ;;  %v12900_v23 = vld [vmem:[%s14659_s4 + $0x60] sm:$0xff] }
 0x72f   : >> { %6597 = vmatmul.mubr.msk.f32.gmra.mxu1 %vm4268_vm8, %v12857_v16  ;;  %5153 = vmatprep.subr.mxu1 %v15361_v46  ;;  %v4916_v48 = vpop.permute.xlu1 %4915 }
 0x730   : >> { %5154 = vmatpush2.msra.mxu1 %v15362_v63  ;;  %4935 = vrot.lane.b32.xlu1 %v12394_v14, %s7006_s14  ;;  %v4908_v36 = vpop.permute.xlu0 %4907  ;;  %v15366_v63 = vld [vmem:[#allocation80_spill] sm:$0xff] }
 0x731   : >> { %4927 = vrot.lane.b32.xlu0 %v12398_v44, %s7006_s14  ;;  %4579 = vmatprep.subr.mxu0 %v4017_v28 }
 0x732   : >> { %5155 = vmatprep.subr.mxu1 %v15363_v40  ;;  %4580 = vmatpush2.msra.mxu0 %v4013_v19 }
 0x733   : >> { %5156 = vmatpush2.msra.mxu1 %v15364_v51  ;;  %5157 = vmatprep.mubr.f32.mxu1 %v6935_v42  ;;  %v4914_v60 = vpop.permute.xlu1 %4913  ;;  %v15367_v51 = vld [vmem:[#allocation83_spill] sm:$0xff] }
 0x734   : >> { %5158 = vmatmul.mubr.f32.vlgmr.msra.gmra.mxu1 %v6936_v34  ;;  %5033 = vrot.lane.b32.xlu1 %v12374_v62, %s7010_s11  ;;  %v4906_v39 = vpop.permute.xlu0 %4905  ;;  %v12919_v34 = vld [vmem:[%s14659_s4 + $0x98] sm:$0xff] }
 0x735   : >> { %5025 = vrot.lane.b32.xlu0 %v12378_v17, %s7010_s11  ;;  %4581 = vmatprep.subr.mxu0 %v4016_v29  ;;  %v4923_v16 = vsel %vm354_vm0, %v4914_v60, %v4906_v39 }
 0x736   : >> { %4582 = vmatpush2.msra.mxu0 %v4012_v15  ;;  %5163 = vmatprep.mubr.f32.mxu1 %v15365_v24 }
 0x737   : >> { %4584 = vmatmul.mubr.f32.vlgmr.msra.gmra.mxu0 %v12891_v11  ;;  %5206 = vmatprep.subr.mxu0 %v4019_v53  ;;  %v4912_v46 = vpop.permute.xlu1 %4911  ;;  %v12910_v53 = vld [vmem:[%s14659_s4 + $0x58] sm:$0xff] }
 0x738   : >> { %5164 = vmatmul.mubr.f32.gmra.mxu1 %v15366_v63  ;;  %5207 = vmatpush1.msra.mxu0 %v4015_v6  ;;  %v4904_v40 = vpop.permute.xlu0 %4903  ;;  %v15368_v6 = vld [vmem:[#allocation84_spill] sm:$0xff] }
 0x739   : >> { %4933 = vrot.lane.b32.xlu1 %v12414_v4, %s7006_s14  ;;  %4925 = vrot.lane.b32.xlu0 %v12418_v49, %s7006_s14 }
 0x73a   : >> { %5208 = vmatprep.subr.mxu0 %v4018_v20  ;;  %4589 = vmatprep.mubr.f32.mxu0 %v12900_v23  ;;  %v12928_v20 = vld [vmem:[%s14659_s4 + $0x90] sm:$0xff] }
 0x73b   : >> { %5169 = vmatprep.mubr.f32.mxu1 %v15367_v51  ;;  %5209 = vmatpush1.msra.mxu0 %v4014_v37  ;;  %v4910_v42 = vpop.permute.xlu1 %4909  ;;  %v4924_v37 = vsel %vm354_vm0, %v4916_v48, %v4908_v36 }
 0x73c   : >> { %4590 = vmatmul.mubr.f32.gmra.mxu0 %v12910_v53  ;;  %5170 = vmatmul.mubr.f32.gmra.mxu1 %v15368_v6  ;;  %v4902_v24 = vpop.permute.xlu0 %4901  ;;  %v15370_v6 = vld [vmem:[#allocation96_spill] sm:$0xff] }
 0x73d   : >> { %5210 = vmatprep.subr.mxu0 %v4017_v28  ;;  %5031 = vrot.lane.b32.xlu1 %v12394_v14, %s7010_s11  ;;  %v15369_v28 = vld [vmem:[#allocation87_spill] sm:$0xff] }
 0x73e   : >> { %5211 = vmatpush1.msra.mxu0 %v4013_v19  ;;  %5023 = vrot.lane.b32.xlu0 %v12398_v44, %s7010_s11  ;;  %v4920_v19 = vsel %vm354_vm0, %v4908_v36, %v4916_v48  ;;  %v4919_v36 = vsel %vm354_vm0, %v4906_v39, %v4914_v60  ;;  %v4918_v60 = vsel %vm354_vm0, %v4904_v40, %v4912_v46 }
 0x73f   : >> { %5212 = vmatprep.subr.mxu0 %v4016_v29  ;;  %4595 = vmatprep.mubr.f32.mxu0 %v12919_v34  ;;  %v12933_v63 = vpop.permute.xlu1 %5011  ;;  %v15371_v29 = vld [vmem:[#allocation77_spill] sm:$0xff] }
 0x740   : >> { %5175 = vmatprep.mubr.f32.mxu1 %v15369_v28  ;;  %5213 = vmatpush1.msra.mxu0 %v4012_v15  ;;  %v12938_v51 = vpop.permute.xlu0 %5003  ;;  %v12949_v15 = vld [vmem:[%s14659_s4 + $0xd0] sm:$0xff]  ;;  %v12965_v28 = vld [vmem:[%s14659_s4 + $0xc8] sm:$0xff] }
 0x741   : >> { %4596 = vmatmul.mubr.f32.gmra.mxu0 %v12928_v20  ;;  %5176 = vmatmul.mubr.f32.gmra.mxu1 %v15370_v6  ;;  %15373 = vst [vmem:[#allocation71_spill] sm:$0xff] %v12949_v15  ;;  %15375 = vst [vmem:[#allocation72_spill] sm:$0xff] %v12965_v28  ;;  %v4922_v6 = vsel %vm354_vm0, %v4912_v46, %v4904_v40  ;;  %v12989_v46 = vld [vmem:[%s14659_s4 + $0x108] sm:$0xff]  ;;  %v15381_v40 = vld [vmem:[#allocation86_spill] sm:$0xff] }
 0x742   : >> { %5214 = vmatprep.subr.mxu0 %v15371_v29  ;;  %5319 = vmatprep.subr.mxu1 %v4924_v37  ;;  %v15377_v29 = vld [vmem:[#allocation82_spill] sm:$0xff]  ;;  %15380 = vst [vmem:[#allocation73_spill] sm:$0xff] %v12989_v46 }
 0x743   : >> { %5215 = vmatpush1.msra.mxu0 %v15372_v35  ;;  %5320 = vmatpush1.msra.mxu1 %v4920_v19  ;;  %v12951_v48 = vpop.permute.xlu1 %5009  ;;  %v15374_v35 = vld [vmem:[#allocation81_spill] sm:$0xff] }
 0x744   : >> { %5029 = vrot.lane.b32.xlu1 %v12414_v4, %s7010_s11  ;;  %5021 = vrot.lane.b32.xlu0 %v12418_v49, %s7010_s11  ;;  %v12959_v37 = vpop.permute.xlu0 %5001  ;;  %v15376_v19 = vld [vmem:[#allocation97_spill] sm:$0xff] }
 0x745   : >> { %5216 = vmatprep.subr.mxu0 %v15374_v35  ;;  %5321 = vmatprep.subr.mxu1 %v4923_v16  ;;  %v15378_v16 = vld [vmem:[#allocation100_spill] sm:$0xff]  ;;  %v4220_v35 = vld [vmem:[%s14660_s5] sm:$0xff] }
 0x746   : >> { %4601 = vmatprep.mubr.f32.mxu0 %v12949_v15  ;;  %5181 = vmatprep.mubr.f32.mxu1 %v15376_v19  ;;  %v15422_v15 = vld [vmem:[#allocation115_spill] sm:$0xff] }
 0x747   : >> { %5217 = vmatpush1.msra.mxu0 %v15377_v29  ;;  %5322 = vmatpush1.msra.mxu1 %v4919_v36  ;;  %v12974_v39 = vpop.permute.xlu1 %5007  ;;  %v4921_v36 = vsel %vm354_vm0, %v4910_v42, %v4902_v24  ;;  %v15382_v29 = vld [vmem:[#allocation88_spill] sm:$0xff] }
 0x748   : >> { %4602 = vmatmul.mubr.f32.gmra.mxu0 %v12965_v28  ;;  %5182 = vmatmul.mubr.f32.gmra.mxu1 %v15378_v16  ;;  %v12981_v19 = vpop.permute.xlu0 %4999  ;;  %v4917_v16 = vsel %vm354_vm0, %v4902_v24, %v4910_v42  ;;  %v15386_v42 = vld [vmem:[#allocation104_spill] sm:$0xff]  ;;  %v6937_v24 = vld [vmem:[%s11102_s19 + $0xb8] sm:$0xff]  ;;  %v15420_v28 = vld [vmem:[#allocation111_spill] sm:$0xff] }
 0x749   : >> { %5218 = vmatprep.subr.mxu0 %v15379_v47  ;;  %5323 = vmatprep.subr.mxu1 %v4922_v6  ;;  %v12998_v47 = vld [vmem:[%s14659_s4 + $0x100] sm:$0xff] }
 0x74a   : >> { %5219 = vmatpush1.msra.mxu0 %v15381_v40  ;;  %5324 = vmatpush1.msra.mxu1 %v4918_v60  ;;  %15383 = vst [vmem:[#allocation74_spill] sm:$0xff] %v12998_v47  ;;  %v15384_v60 = vld [vmem:[#allocation101_spill] sm:$0xff] }
 0x74b   : >> { %4230 = vperm.xlu0 %6925, %v4220_v35   ;;  %5220 = vmatprep.subr.mxu0 %v15382_v29  ;;  %v13000_v6 = vpop.permute.xlu1 %5005  ;;  %v15385_v35 = vld [vmem:[#allocation89_spill] sm:$0xff] }
 0x74c   : >> { %5325 = vmatprep.subr.mxu1 %v4921_v36  ;;  %4607 = vmatprep.mubr.f32.mxu0 %v12989_v46  ;;  %v13003_v40 = vpop.permute.xlu0 %4997  ;;  %v13013_v36 = vld [vmem:[%s14659_s4 + $0x140] sm:$0xff] }
 0x74d   : >> { %5187 = vmatprep.mubr.f32.mxu1 %v15384_v60  ;;  %5221 = vmatpush1.msra.mxu0 %v15385_v35  ;;  %15387 = vst [vmem:[#allocation75_spill] sm:$0xff] %v13013_v36  ;;  %v6938_v60 = vld [vmem:[%s11102_s19 + $0xb0] sm:$0xff]  ;;  %v6939_v35 = vld [vmem:[%s11102_s19 + $0xa8] sm:$0xff]  ;;  %v15414_v46 = vld [vmem:[#allocation102_spill] sm:$0xff] }
 0x74e   : >> { %5326 = vmatpush1.msra.mxu1 %v4917_v16  ;;  %4608 = vmatmul.mubr.f32.gmra.mxu0 %v12998_v47  ;;  %v15408_v47 = vld [vmem:[#allocation95_spill] sm:$0xff] }
 0x74f   : >> { %5188 = vmatmul.mubr.f32.gmra.mxu1 %v15386_v42  ;;  %5222 = vmatprep.subr.mxu0 %v6937_v24  ;;  %v13015_v29 = vpop.permute.xlu1 %4987  ;;  %v13026_v42 = vld [vmem:[%s14659_s4 + $0x138] sm:$0xff]  ;;  %v6940_v24 = vld [vmem:[%s11102_s19 + $0xa0] sm:$0xff] }
 0x750   : >> { %5327 = vmatprep.subr.mxu1 %v12350_v52  ;;  %5223 = vmatpush1.msra.mxu0 %v6938_v60  ;;  %v13019_v16 = vpop.permute.xlu0 %4979  ;;  %15388 = vst [vmem:[#allocation76_spill] sm:$0xff] %v13026_v42  ;;  %v15389_v52 = vld [vmem:[#allocation105_spill] sm:$0xff] }
 0x751   : >> { %5328 = vmatpush1.msra.mxu1 %v12357_v8  ;;  %5224 = vmatprep.subr.mxu0 %v6939_v35  ;;  %v15390_v35 = vld [vmem:[#allocation108_spill] sm:$0xff] }
 0x752   : >> { %5329 = vmatprep.subr.mxu1 %v12374_v62  ;;  %4613 = vmatprep.mubr.f32.mxu0 %v13013_v36  ;;  %v13043_v62 = vld [vmem:[%s14659_s4 + $0x178] sm:$0xff]  ;;  %v15407_v36 = vld [vmem:[#allocation118_spill] sm:$0xff] }
 0x753   : >> { %5193 = vmatprep.mubr.f32.mxu1 %v15389_v52  ;;  %5225 = vmatpush1.msra.mxu0 %v6940_v24  ;;  %v13032_v60 = vpop.permute.xlu1 %4985  ;;  %15391 = vst [vmem:[#allocation79_spill] sm:$0xff] %v13043_v62  ;;  %v6942_v52 = vld [vmem:[%s11102_s19 + $0x90] sm:$0xff] }
 0x754   : >> { %5330 = vmatpush1.msra.mxu1 %v12378_v17  ;;  %4614 = vmatmul.mubr.f32.gmra.mxu0 %v13026_v42  ;;  %v13036_v8 = vpop.permute.xlu0 %4977  ;;  %v6943_v17 = vld [vmem:[%s11102_s19 + $0x88] sm:$0xff]  ;;  %v13052_v24 = vld [vmem:[%s14659_s4 + $0x170] sm:$0xff]  ;;  %v15403_v42 = vld [vmem:[#allocation114_spill] sm:$0xff] }
 0x755   : >> { %5194 = vmatmul.mubr.f32.gmra.mxu1 %v15390_v35  ;;  %5226 = vmatprep.subr.mxu0 %v6941_v25  ;;  %15392 = vst [vmem:[#allocation80_spill] sm:$0xff] %v13052_v24 }
 0x756   : >> { %5331 = vmatprep.subr.mxu1 %v12394_v14  ;;  %5227 = vmatpush1.msra.mxu0 %v6942_v52  ;;  %v15393_v14 = vld [vmem:[#allocation109_spill] sm:$0xff]  ;;  %v6944_v52 = vld [vmem:[%s11102_s19 + $0x80] sm:$0xff] }
 0x757   : >> { %5332 = vmatpush1.msra.mxu1 %v12398_v44  ;;  %5228 = vmatprep.subr.mxu0 %v6943_v17  ;;  %v13054_v35 = vpop.permute.xlu1 %5083  ;;  %v15394_v44 = vld [vmem:[#allocation112_spill] sm:$0xff]  ;;  %v15395_v17 = vld [vmem:[#allocation106_spill] sm:$0xff] }
 0x758   : >> { %5333 = vmatprep.subr.mxu1 %v12414_v4  ;;  %4619 = vmatprep.mubr.f32.mxu0 %v13043_v62  ;;  %v13058_v25 = vpop.permute.xlu0 %5075  ;;  %v13069_v4 = vld [vmem:[%s14659_s4 + $0x1b0] sm:$0xff]  ;;  %v15397_v62 = vld [vmem:[#allocation90_spill] sm:$0xff] }
 0x759   : >> { %5199 = vmatprep.mubr.f32.mxu1 %v15393_v14  ;;  %5229 = vmatpush1.msra.mxu0 %v6944_v52  ;;  %15396 = vst [vmem:[#allocation83_spill] sm:$0xff] %v13069_v4  ;;  %v15398_v14 = vld [vmem:[#allocation107_spill] sm:$0xff] }
 0x75a   : >> { %5334 = vmatpush1.msra.mxu1 %v12418_v49  ;;  %4620 = vmatmul.mubr.f32.gmra.mxu0 %v13052_v24  ;;  %v15399_v49 = vld [vmem:[#allocation91_spill] sm:$0xff]  ;;  %v15400_v24 = vld [vmem:[#allocation113_spill] sm:$0xff] }
 0x75b   : >> { %5200 = vmatmul.mubr.f32.gmra.mxu1 %v15394_v44  ;;  %5230 = vmatprep.subr.mxu0 %v15395_v17  ;;  %v13071_v10 = vpop.permute.xlu1 %4983  ;;  %v13082_v44 = vld [vmem:[%s14659_s4 + $0x1a8] sm:$0xff]  ;;  %v15402_v17 = vld [vmem:[#allocation92_spill] sm:$0xff] }
 0x75c   : >> { %5335 = vmatprep.subr.mxu1 %v15397_v62  ;;  %5231 = vmatpush1.msra.mxu0 %v15398_v14  ;;  %v13075_v52 = vpop.permute.xlu0 %4975  ;;  %15401 = vst [vmem:[#allocation84_spill] sm:$0xff] %v13082_v44  ;;  %v15404_v62 = vld [vmem:[#allocation93_spill] sm:$0xff] }
 0x75d   : >> { %5336 = vmatpush1.msra.mxu1 %v15399_v49  ;;  %5232 = vmatprep.subr.mxu0 %v15400_v24  ;;  %v15405_v49 = vld [vmem:[#allocation117_spill] sm:$0xff] }
 0x75e   : >> { %5337 = vmatprep.subr.mxu1 %v15402_v17  ;;  %4625 = vmatprep.mubr.f32.mxu0 %v13069_v4  ;;  %v15409_v17 = vld [vmem:[#allocation121_spill] sm:$0xff]  ;;  %v15410_v4 = vld [vmem:[#allocation98_spill] sm:$0xff] }
 0x75f   : >> { %5233 = vmatpush1.msra.mxu0 %v15403_v42  ;;  %5338 = vmatpush1.msra.mxu1 %v15404_v62  ;;  %v13088_v14 = vpop.permute.xlu1 %5081  ;;  %v15411_v42 = vld [vmem:[#allocation122_spill] sm:$0xff] }
 0x760   : >> { %4626 = vmatmul.mubr.f32.gmra.mxu0 %v13082_v44  ;;  %5234 = vmatprep.subr.mxu0 %v15405_v49  ;;  %v13092_v24 = vpop.permute.xlu0 %5073  ;;  %v15413_v44 = vld [vmem:[#allocation123_spill] sm:$0xff] }
 0x761   : >> { %5339 = vmatprep.subr.mxu1 %v15406_v58  ;;  %5235 = vmatpush1.msra.mxu0 %v15407_v36  ;;  %v15415_v58 = vld [vmem:[#allocation124_spill] sm:$0xff]  ;;  %v15416_v36 = vld [vmem:[#allocation103_spill] sm:$0xff] }
 0x762   : >> { %5340 = vmatpush1.msra.mxu1 %v15408_v47  ;;  %5236 = vmatprep.subr.mxu0 %v15409_v17  ;;  %v15417_v47 = vld [vmem:[#allocation125_spill] sm:$0xff]  ;;  %v15418_v17 = vld [vmem:[#allocation110_spill] sm:$0xff] }
 0x763   : >> { %5341 = vmatprep.subr.mxu1 %v15410_v4  ;;  %5237 = vmatpush1.msra.mxu0 %v15411_v42  ;;  %v13100_v62 = vpop.permute.xlu1 %4981  ;;  %v15419_v4 = vld [vmem:[#allocation126_spill] sm:$0xff] }
 0x764   : >> { %5342 = vmatpush1.msra.mxu1 %v15412_v55  ;;  %5238 = vmatprep.subr.mxu0 %v15413_v44  ;;  %v13104_v49 = vpop.permute.xlu0 %4973  ;;  %v15421_v55 = vld [vmem:[#allocation127_spill] sm:$0xff] }
 0x765   : >> { %5343 = vmatprep.subr.mxu1 %v15414_v46  ;;  %5239 = vmatpush2.msra.mxu0 %v15415_v58  ;;  %v15423_v46 = vld [vmem:[#allocation128_spill] sm:$0xff] }
 0x766   : >> { %5344 = vmatpush1.msra.mxu1 %v15416_v36  ;;  %5240 = vmatprep.subr.mxu0 %v15417_v47  ;;  %v15424_v58 = vld [vmem:[#allocation116_spill] sm:$0xff]  ;;  %v4221_v36 = vld [vmem:[%s14660_s5 + $0x8] sm:$0xff] }
 0x767   : >> { %5345 = vmatprep.subr.mxu1 %v15418_v17  ;;  %5241 = vmatpush2.msra.mxu0 %v15419_v4  ;;  %v13112_v42 = vpop.permute.xlu1 %5079  ;;  %v15425_v47 = vld [vmem:[#allocation119_spill] sm:$0xff]  ;;  %v15426_v17 = vld [vmem:[#allocation120_spill] sm:$0xff]  ;;  %v5015_v4 = vsel %vm3672_vm5, %v12959_v37, %v12951_v48 }
 0x768   : >> { %5346 = vmatpush1.msra.mxu1 %v15420_v28  ;;  %5242 = vmatprep.subr.mxu0 %v15421_v55  ;;  %v13116_v44 = vpop.permute.xlu0 %5071 }
 0x769   : >> { %5347 = vmatprep.subr.mxu1 %v15422_v15  ;;  %5243 = vmatpush2.msra.mxu0 %v15423_v46  ;;  %v5020_v15 = vsel %vm3672_vm5, %v12933_v63, %v12938_v51 }
 0x76a   : >> { %5348 = vmatpush1.msra.mxu1 %v15424_v58  ;;  %5244 = vmatprep.subr.mxu0 %v12536_v22  ;;  %v6947_v58 = vld [vmem:[%s14659_s4 + $0x50] sm:$0xff] }
 0x76b   : >> { %5349 = vmatprep.subr.mxu1 %v15425_v47  ;;  %5245 = vmatpush2.msra.mxu0 %v12540_v32  ;;  %v13127_v28 = vpop.permute.xlu1 %4963  ;;  %v5016_v32 = vsel %vm3672_vm5, %v12938_v51, %v12933_v63  ;;  %v4222_v63 = vld [vmem:[%s14660_s5 + $0x10] sm:$0xff]  ;;  %v6948_v47 = vld [vmem:[%s14659_s4 + $0x48] sm:$0xff] }
 0x76c   : >> { %5350 = vmatpush1.msra.mxu1 %v15426_v17  ;;  %5246 = vmatprep.subr.mxu0 %v12574_v9  ;;  %v13135_v22 = vpop.permute.xlu0 %4955  ;;  %v5019_v9 = vsel %vm3672_vm5, %v12951_v48, %v12959_v37  ;;  %v5017_v48 = vsel %vm3672_vm5, %v13000_v6, %v13003_v40  ;;  %v5013_v37 = vsel %vm3672_vm5, %v13003_v40, %v13000_v6  ;;  %v4225_v40 = vld [vmem:[%s14660_s5 + $0x28] sm:$0xff] }
 0x76d   : >> { %5351 = vmatprep.subr.mxu1 %v5020_v15  ;;  %4235 = vperm.xlu1 %6926, %v4221_v36   ;;  %v4991_v6 = vsel %vm3647_vm6, %v13036_v8, %v13032_v60  ;;  %v5090_v36 = vsel %vm3747_vm7, %v13112_v42, %v13116_v44  ;;  %v6949_v17 = vld [vmem:[%s14659_s4 + $0x88] sm:$0xff] }
 0x76e   : >> { %5247 = vmatpush2.msra.mxu0 %v12578_v5  ;;  %5352 = vmatpush2.msra.mxu1 %v5016_v32  ;;  %v5018_v5 = vsel %vm3672_vm5, %v12974_v39, %v12981_v19 }
 0x76f   : >> { %5248 = vmatprep.subr.mxu0 %v12592_v2  ;;  %5353 = vmatprep.subr.mxu1 %v5019_v9  ;;  %v13154_v51 = vpop.permute.xlu1 %5077 }
 0x770   : >> { %5249 = vmatpush2.msra.mxu0 %v12596_v1  ;;  %5354 = vmatpush2.msra.mxu1 %v5015_v4  ;;  %v13161_v2 = vpop.permute.xlu0 %5069  ;;  %v5014_v1 = vsel %vm3672_vm5, %v12981_v19, %v12974_v39  ;;  %v4992_v39 = vsel %vm3647_vm6, %v13019_v16, %v13015_v29  ;;  %v4995_v19 = vsel %vm3647_vm6, %v13032_v60, %v13036_v8  ;;  %v6950_v4 = vld [vmem:[%s14659_s4 + $0x80] sm:$0xff] }
 0x771   : >> { %5250 = vmatprep.subr.mxu0 %v12610_v61  ;;  %5355 = vmatprep.subr.mxu1 %v5018_v5  ;;  %v4996_v61 = vsel %vm3647_vm6, %v13015_v29, %v13019_v16  ;;  %v4968_v8 = vsel %vm3622_vm1, %v13135_v22, %v13127_v28  ;;  %v6951_v5 = vld [vmem:[%s14659_s4 + $0xc0] sm:$0xff] }
 0x772   : >> { %4240 = vperm.xlu1 %6926, %v4222_v63   ;;  %5251 = vmatpush2.msra.mxu0 %v12614_v12  ;;  %v4223_v12 = vld [vmem:[%s14660_s5 + $0x18] sm:$0xff] }
 0x773   : >> { %5356 = vmatpush2.msra.mxu1 %v5014_v1  ;;  %5252 = vmatprep.subr.mxu0 %v12628_v30  ;;  %v13185_v55 = vpop.permute.xlu1 %4961 }
 0x774   : >> { %5357 = vmatprep.subr.mxu1 %v5017_v48  ;;  %5253 = vmatpush2.msra.mxu0 %v12632_v26  ;;  %v4954_v30 = vpop.permute.xlu0 %4953  ;;  %v4224_v26 = vld [vmem:[%s14660_s5 + $0x20] sm:$0xff] }
 0x775   : >> { %5358 = vmatpush2.msra.mxu1 %v5013_v37  ;;  %5254 = vmatprep.subr.mxu0 %v12646_v18 }
 0x776   : >> { %5359 = vmatprep.subr.mxu1 %v4996_v61  ;;  %4245 = vperm.xlu0 %6925, %v4223_v12   ;;  %v6952_v12 = vld [vmem:[%s14659_s4 + $0xb8] sm:$0xff] }
 0x777   : >> { %5255 = vmatpush2.msra.mxu0 %v12650_v59  ;;  %5360 = vmatpush2.msra.mxu1 %v4992_v39  ;;  %v13205_v18 = vpop.permute.xlu1 %5059  ;;  %v4994_v59 = vsel %vm3647_vm6, %v13071_v10, %v13075_v52 }
 0x778   : >> { %5256 = vmatprep.subr.mxu0 %v12664_v41  ;;  %5361 = vmatprep.subr.mxu1 %v4995_v19  ;;  %v13211_v29 = vpop.permute.xlu0 %5051  ;;  %v4226_v41 = vld [vmem:[%s14660_s5 + $0x30] sm:$0xff]  ;;  %v6954_v19 = vld [vmem:[%s14659_s4 + $0x28] sm:$0xff] }
 0x779   : >> { %5257 = vmatpush2.msra.mxu0 %v12668_v31  ;;  %4250 = vperm.xlu1 %6926, %v4224_v26   ;;  %v4990_v31 = vsel %vm3647_vm6, %v13075_v52, %v13071_v10  ;;  %v5092_v52 = vsel %vm3747_vm7, %v13054_v35, %v13058_v25  ;;  %v5068_v15 = vsel %vm3722_vm2, %v13205_v18, %v13211_v29 }
 0x77a   : >> { %5258 = vmatprep.subr.mxu0 %v12682_v45  ;;  %5362 = vmatpush2.msra.mxu1 %v4991_v6  ;;  %v4227_v45 = vld [vmem:[%s14660_s5 + $0x38] sm:$0xff] }
 0x77b   : >> { %5259 = vmatpush2.msra.mxu0 %v12686_v0  ;;  %4255 = vperm.xlu0 %6925, %v4225_v40   ;;  %v4960_v16 = vpop.permute.xlu1 %4959  ;;  %v4993_v0 = vsel %vm3647_vm6, %v13100_v62, %v13104_v49  ;;  %v6956_v40 = vld [vmem:[%s14659_s4 + $0x130] sm:$0xff] }
 0x77c   : >> { %5260 = vmatprep.subr.mxu0 %v12700_v3  ;;  %5363 = vmatprep.subr.mxu1 %v4994_v59  ;;  %v4952_v60 = vpop.permute.xlu0 %4951  ;;  %v6945_v3 = vld [vmem:[%s14659_s4 + $0x18] sm:$0xff] }
 0x77d   : >> { %5261 = vmatpush2.msra.mxu0 %v12704_v56  ;;  %4260 = vperm.xlu1 %6926, %v4226_v41   ;;  %v4989_v56 = vsel %vm3647_vm6, %v13104_v49, %v13100_v62  ;;  %v5087_v49 = vsel %vm3747_vm7, %v13092_v24, %v13088_v14  ;;  %v4970_v46 = vsel %vm3622_vm1, %v4960_v16, %v4952_v60  ;;  %v6957_v41 = vld [vmem:[%s14659_s4 + $0x128] sm:$0xff] }
 0x77e   : >> { %5262 = vmatprep.subr.mxu0 %v12723_v13  ;;  %5364 = vmatpush2.msra.mxu1 %v4990_v31  ;;  %v4972_v13 = vsel %vm3622_vm1, %v13127_v28, %v13135_v22  ;;  %v5064_v22 = vsel %vm3722_vm2, %v13211_v29, %v13205_v18  ;;  %v6955_v18 = vld [vmem:[%s14659_s4 + $0xf0] sm:$0xff] }
 0x77f   : >> { %5263 = vmatpush2.msra.mxu0 %v12727_v43  ;;  %5270 = vmatprep.mubr.f32.mxu0 %v6945_v3  ;;  %v5058_v10 = vpop.permute.xlu1 %5057 }
 0x780   : >> { %5264 = vmatprep.subr.mxu0 %v12746_v38  ;;  %4265 = vperm.xlu0 %6925, %v4227_v45   ;;  %v5050_v43 = vpop.permute.xlu0 %5049  ;;  %v4971_v38 = vsel %vm3622_vm1, %v13185_v55, %v4954_v30 }
 0x781   : >> { %5265 = vmatpush2.msra.mxu0 %v12753_v54  ;;  %5365 = vmatprep.subr.mxu1 %v4993_v0  ;;  %v5067_v32 = vsel %vm3722_vm2, %v5058_v10, %v5050_v43  ;;  %v6959_v0 = vld [vmem:[%s14659_s4 + $0x160] sm:$0xff] }
 0x782   : >> { %5266 = vmatprep.subr.mxu0 %v12772_v7  ;;  %5366 = vmatpush2.msra.mxu1 %v4989_v56  ;;  %v5091_v7 = vsel %vm3747_vm7, %v13088_v14, %v13092_v24  ;;  %v4966_v24 = vsel %vm3622_vm1, %v4952_v60, %v4960_v16  ;;  %v6958_v60 = vld [vmem:[%s14659_s4 + $0x168] sm:$0xff]  ;;  %v6960_v56 = vld [vmem:[%s14659_s4 + $0x1a0] sm:$0xff] }
 0x783   : >> { %5267 = vmatpush2.msra.mxu0 %v12779_v50  ;;  %5367 = vmatprep.subr.mxu1 %v4972_v13  ;;  %v4967_v50 = vsel %vm3622_vm1, %v4954_v30, %v13185_v55  ;;  %v6953_v55 = vld [vmem:[%s14659_s4 + $0xf8] sm:$0xff] }
 0x784   : >> { %5268 = vmatprep.subr.mxu0 %v12798_v33  ;;  %5368 = vmatpush2.msra.mxu1 %v4968_v8  ;;  %v4958_v54 = vpop.permute.xlu1 %4957  ;;  %v6946_v33 = vld [vmem:[%s14659_s4 + $0x10] sm:$0xff] }
 0x785   : >> { %5269 = vmatpush2.msra.mxu0 %v12805_v27  ;;  %5369 = vmatprep.subr.mxu1 %v4971_v38  ;;  %v4950_v62 = vpop.permute.xlu0 %4949  ;;  %v5088_v27 = vsel %vm3747_vm7, %v13058_v25, %v13054_v35  ;;  %v5086_v35 = vsel %vm3747_vm7, %v13116_v44, %v13112_v42  ;;  %v5089_v25 = vsel %vm3747_vm7, %v13154_v51, %v13161_v2 }
 0x786   : >> { %5271 = vmatmul.mubr.f32.vlgmr.msra.gmra.mxu0 %v6946_v33  ;;  %5440 = vmatprep.subr.mxu0 %v5092_v52  ;;  %v5085_v42 = vsel %vm3747_vm7, %v13161_v2, %v13154_v51  ;;  %v4969_v28 = vsel %vm3622_vm1, %v4958_v54, %v4950_v62  ;;  %v4965_v9 = vsel %vm3622_vm1, %v4950_v62, %v4958_v54 }
 0x787   : >> { %5441 = vmatpush1.msra.mxu0 %v5088_v27  ;;  %5276 = vmatprep.mubr.f32.mxu0 %v6947_v58  ;;  %v5063_v51 = vsel %vm3722_vm2, %v5050_v43, %v5058_v10  ;;  %v6961_v43 = vld [vmem:[%s14659_s4 + $0x198] sm:$0xff] }
 0x788   : >> { %5442 = vmatprep.subr.mxu0 %v5091_v7  ;;  %5370 = vmatpush2.msra.mxu1 %v4967_v50  ;;  %v13390_v7 = vpop.f32.mrf.mxu1 }
 0x789   : >> { %5443 = vmatpush1.msra.mxu0 %v5087_v49  ;;  %v5056_v14 = vpop.permute.xlu1 %5055  ;;  %5371 = vmatprep.subr.mxu1 %v4970_v46 }
 0x78a   : >> { %5277 = vmatmul.mubr.f32.gmra.mxu0 %v6948_v47  ;;  %5444 = vmatprep.subr.mxu0 %v5090_v36  ;;  %v5048_v44 = vpop.permute.xlu0 %5047  ;;  %v4474_v49 = vpop.f32.mrf.mxu1 }
 0x78b   : >> { %5282 = vmatprep.mubr.f32.mxu0 %v6949_v17  ;;  %5445 = vmatpush1.msra.mxu0 %v5086_v35  ;;  %v5066_v48 = vsel %vm3722_vm2, %v5056_v14, %v5048_v44  ;;  %v5062_v1 = vsel %vm3722_vm2, %v5048_v44, %v5056_v14 }
 0x78c   : >> { %5446 = vmatprep.subr.mxu0 %v5089_v25  ;;  %5372 = vmatpush2.msra.mxu1 %v4966_v24  ;;  %v13400_v25 = vpop.f32.mrf.mxu1 }
 0x78d   : >> { %5447 = vmatpush1.msra.mxu0 %v5085_v42  ;;  %5373 = vmatprep.subr.mxu1 %v4969_v28 }
 0x78e   : >> { %5283 = vmatmul.mubr.f32.gmra.mxu0 %v6950_v4  ;;  %5448 = vmatprep.subr.mxu0 %v5068_v15  ;;  %v4940_v63 = vpop.permute.xlu1 %4939  ;;  %v13408_v44 = vpop.f32.mrf.mxu1  ;;  %v15429_v4 = vld [vmem:[#allocation73_spill] sm:$0xff] }
 0x78f   : >> { %5288 = vmatprep.mubr.f32.mxu0 %v6951_v5  ;;  %5449 = vmatpush1.msra.mxu0 %v5064_v22  ;;  %v4932_v2 = vpop.permute.xlu0 %4931  ;;  %v15427_v22 = vld [vmem:[#allocation71_spill] sm:$0xff]  ;;  %v15431_v5 = vld [vmem:[#allocation74_spill] sm:$0xff] }
 0x790   : >> { %5450 = vmatprep.subr.mxu0 %v5067_v32  ;;  %5374 = vmatpush2.msra.mxu1 %v4965_v9  ;;  %v4948_v37 = vsel %vm373_vm4, %v4940_v63, %v4932_v2  ;;  %v4944_v61 = vsel %vm373_vm4, %v4932_v2, %v4940_v63  ;;  %v13412_v28 = vpop.f32.mrf.mxu1  ;;  %v4359_v32 = vpop.f32.mrf.mxu0  ;;  %v15428_v9 = vld [vmem:[#allocation72_spill] sm:$0xff]  ;;  %v15432_v2 = vld [vmem:[#allocation75_spill] sm:$0xff] }
 0x791   : >> { %5451 = vmatpush1.msra.mxu0 %v5063_v51  ;;  %5375 = vmatprep.subr.mxu1 %v4948_v37 }
 0x792   : >> { %5289 = vmatmul.mubr.f32.gmra.mxu0 %v6952_v12  ;;  %5452 = vmatprep.subr.mxu0 %v5066_v48  ;;  %v4361_v51 = vpop.f32.mrf.mxu0  ;;  %v15435_v12 = vld [vmem:[#allocation79_spill] sm:$0xff] }
 0x793   : >> { %5294 = vmatprep.mubr.f32.mxu0 %v6953_v55  ;;  %v5054_v39 = vpop.permute.xlu1 %5053  ;;  %5453 = vmatpush1.msra.mxu0 %v5062_v1  ;;  %v15433_v1 = vld [vmem:[#allocation130_spill] sm:$0xff] }
 0x794   : >> { %v5046_v30 = vpop.permute.xlu0 %5045  ;;  %5376 = vmatpush2.msra.mxu1 %v4944_v61  ;;  %5383 = vmatprep.mubr.f32.mxu1 %v6954_v19  ;;  %v4365_v48 = vpop.f32.mrf.mxu0  ;;  %v15434_v61 = vld [vmem:[#allocation76_spill] sm:$0xff]  ;;  %v15436_v19 = vld [vmem:[#allocation131_spill] sm:$0xff] }
 0x795   : >> { %v5065_v26 = vsel %vm3722_vm2, %v5054_v39, %v5046_v30  ;;  %v5061_v6 = vsel %vm3722_vm2, %v5046_v30, %v5054_v39  ;;  %vm6414_vm2 = vcmask 72704  }
 0x796   : >> { %5295 = vmatmul.mubr.f32.gmra.mxu0 %v6955_v18  ;;  %5454 = vmatprep.subr.mxu0 %v5065_v26  ;;  %v13443_v55 = vpop.f32.mrf.mxu0  ;;  %v15437_v26 = vld [vmem:[#allocation80_spill] sm:$0xff]  ;;  %v15438_v18 = vld [vmem:[#allocation83_spill] sm:$0xff] }
 0x797   : >> { %5300 = vmatprep.mubr.f32.mxu0 %v6956_v40  ;;  %5455 = vmatpush1.msra.mxu0 %v5061_v6 }
 0x798   : >> { %v4938_v29 = vpop.permute.xlu1 %4937  ;;  %v4371_v40 = vpop.f32.mrf.mxu0 }
 0x799   : >> { %v4930_v59 = vpop.permute.xlu0 %4929 }
 0x79a   : >> { %5301 = vmatmul.mubr.f32.gmra.mxu0 %v6957_v41  ;;  %v4947_v31 = vsel %vm373_vm4, %v4938_v29, %v4930_v59  ;;  %v4943_v16 = vsel %vm373_vm4, %v4930_v59, %v4938_v29  ;;  %v15439_v41 = vld [vmem:[#allocation132_spill] sm:$0xff] }
 0x79b   : >> { %5306 = vmatprep.mubr.f32.mxu0 %v6958_v60  ;;  %5377 = vmatprep.subr.mxu1 %v4947_v31  ;;  %v15440_v31 = vld [vmem:[#allocation84_spill] sm:$0xff] }
 0x79c   : >> { %5378 = vmatpush2.msra.mxu1 %v4943_v16  ;;  %v13463_v16 = vpop.f32.mrf.mxu0 }
 0x79d   : >> { %v5036_v45 = vpop.permute.xlu1 %5035 }
 0x79e   : >> { %5307 = vmatmul.mubr.f32.gmra.mxu0 %v6959_v0  ;;  %v5028_v3 = vpop.permute.xlu0 %5027  ;;  %v4377_v0 = vpop.f32.mrf.mxu0 }
 0x79f   : >> { %5312 = vmatprep.mubr.f32.mxu0 %v6960_v56  ;;  %v5044_v10 = vsel %vm3697_vm3, %v5036_v45, %v5028_v3  ;;  %v5040_v13 = vsel %vm3697_vm3, %v5028_v3, %v5036_v45  ;;  %v15441_v45 = vld [vmem:[#allocation133_spill] sm:$0xff]  ;;  %v15442_v56 = vld [vmem:[#allocation134_spill] sm:$0xff] }
 0x7a0   : >> { %5456 = vmatprep.subr.mxu0 %v5044_v10  ;;  %v13475_v10 = vpop.f32.mrf.mxu0 }
 0x7a1   : >> { %5457 = vmatpush1.msra.mxu0 %v5040_v13 }
 0x7a2   : >> { %5313 = vmatmul.mubr.f32.gmra.mxu0 %v6961_v43  ;;  %v4936_v8 = vpop.permute.xlu1 %4935  ;;  %v15443_v43 = vld [vmem:[#allocation135_spill] sm:$0xff] }
 0x7a3   : >> { %v4928_v38 = vpop.permute.xlu0 %4927  ;;  %5496 = vmatprep.mubr.f32.mxu0 %v15351_v57 }
 0x7a4   : >> { %v4946_v54 = vsel %vm373_vm4, %v4936_v8, %v4928_v38  ;;  %v4942_v52 = vsel %vm373_vm4, %v4928_v38, %v4936_v8  ;;  %v4383_v8 = vpop.f32.mrf.mxu0 }
 0x7a5   : >> { %5379 = vmatprep.subr.mxu1 %v4946_v54 }
 0x7a6   : >> { %v5034_v62 = vpop.permute.xlu1 %5033  ;;  %5380 = vmatpush2.msra.mxu1 %v4942_v52  ;;  %v13483_v54 = vpop.f32.mrf.mxu0 }
 0x7a7   : >> { %v5026_v50 = vpop.permute.xlu0 %5025 }
 0x7a8   : >> { %v5043_v33 = vsel %vm3697_vm3, %v5034_v62, %v5026_v50  ;;  %v5039_v27 = vsel %vm3697_vm3, %v5026_v50, %v5034_v62  ;;  %v4389_v62 = vpop.f32.mrf.mxu0 }
 0x7a9   : >> { %5458 = vmatprep.subr.mxu0 %v5043_v33 }
 0x7aa   : >> { %5459 = vmatpush1.msra.mxu0 %v5039_v27  ;;  %v13489_v33 = vpop.f32.mrf.mxu0 }
 0x7ab   : >> { %v4934_v46 = vpop.permute.xlu1 %4933  ;;  %v4926_v58 = vpop.permute.xlu0 %4925 }
 0x7ac   : >> { %v4945_v36 = vsel %vm373_vm4, %v4934_v46, %v4926_v58  ;;  %v4941_v35 = vsel %vm373_vm4, %v4926_v58, %v4934_v46  ;;  %v13491_v27 = vpop.f32.mrf.mxu0 }
 0x7ad   : >> { %5381 = vmatprep.subr.mxu1 %v4945_v36 }
 0x7ae   : >> { %5382 = vmatpush2.msra.mxu1 %v4941_v35  ;;  %v13495_v46 = vpop.f32.mrf.mxu0 }
 0x7af   : >> { %5384 = vmatmul.mubr.f32.vlgmr.msra.gmra.mxu1 %v12891_v11  ;;  %v5032_v14 = vpop.permute.xlu1 %5031 }
 0x7b0   : >> { %v5024_v24 = vpop.permute.xlu0 %5023  ;;  %5389 = vmatprep.mubr.f32.mxu1 %v12900_v23  ;;  %v13497_v36 = vpop.f32.mrf.mxu0 }
 0x7b1   : >> { %v5042_v47 = vsel %vm3697_vm3, %v5032_v14, %v5024_v24  ;;  %v5038_v42 = vsel %vm3697_vm3, %v5024_v24, %v5032_v14 }
 0x7b2   : >> { %5460 = vmatprep.subr.mxu0 %v5042_v47  ;;  %v13504_v47 = vpop.f32.mrf.mxu0 }
 0x7b3   : >> { %5390 = vmatmul.mubr.f32.gmra.mxu1 %v12910_v53  ;;  %5461 = vmatpush1.msra.mxu0 %v5038_v42  ;;  %v6962_v53 = vld [vmem:[%s14659_s4 + $0x30] sm:$0xff] }
 0x7b4   : >> { %5395 = vmatprep.mubr.f32.mxu1 %v12919_v34  ;;  %v13424_v34 = vpop.f32.mrf.mxu1 }
 0x7b6   : >> { %v5030_v11 = vpop.permute.xlu1 %5029  ;;  %v5022_v17 = vpop.permute.xlu0 %5021 }
 0x7b7   : >> { %v5041_v23 = vsel %vm3697_vm3, %v5030_v11, %v5022_v17  ;;  %v5037_v15 = vsel %vm3697_vm3, %v5022_v17, %v5030_v11  ;;  %5396 = vmatmul.mubr.f32.gmra.mxu1 %v12928_v20  ;;  %v15430_v20 = vld [vmem:[#allocation129_spill] sm:$0xff]  ;;  %v13431_v63 = vpop.f32.mrf.mxu1 }
 0x7b8   : >> { %5462 = vmatprep.subr.mxu0 %v5041_v23  ;;  %5401 = vmatprep.mubr.f32.mxu1 %v15427_v22 }
 0x7b9   : >> { %5463 = vmatpush1.msra.mxu0 %v5037_v15  ;;  %v13438_v37 = vpop.f32.mrf.mxu1 }
 0x7ba   : >> { %6608 = vmatmul.mubr.msk.f32.vlgmr.msra.gmra.mxu0 %vm4268_vm8, %v6962_v53 }
 0x7bb   : >> { %5502 = vmatprep.mubr.f32.mxu0 %v15351_v57  ;;  %5402 = vmatmul.mubr.f32.gmra.mxu1 %v15428_v9  ;;  %v13447_v30 = vpop.f32.mrf.mxu1 }
 0x7bc   : >> { %5407 = vmatprep.mubr.f32.mxu1 %v15429_v4 }
 0x7bd   : >> { %v13457_v59 = vpop.f32.mrf.mxu1 }
 0x7be   : >> { %6609 = vmatmul.mubr.msk.f32.gmra.mxu0 %vm4268_vm8, %v15430_v20 }
 0x7bf   : >> { %5508 = vmatprep.mubr.f32.mxu0 %v15351_v57  ;;  %5408 = vmatmul.mubr.f32.gmra.mxu1 %v15431_v5  ;;  %v13465_v60 = vpop.f32.mrf.mxu1 }
 0x7c0   : >> { %5413 = vmatprep.mubr.f32.mxu1 %v15432_v2 }
 0x7c1   : >> { %v13470_v3 = vpop.f32.mrf.mxu1 }
 0x7c2   : >> { %6610 = vmatmul.mubr.msk.f32.gmra.mxu0 %vm4268_vm8, %v15433_v1 }
 0x7c3   : >> { %5514 = vmatprep.mubr.f32.mxu0 %v15351_v57  ;;  %5414 = vmatmul.mubr.f32.gmra.mxu1 %v15434_v61  ;;  %v13477_v13 = vpop.f32.mrf.mxu1 }
 0x7c4   : >> { %5419 = vmatprep.mubr.f32.mxu1 %v15435_v12 }
 0x7c5   : >> { %v13481_v38 = vpop.f32.mrf.mxu1 }
 0x7c6   : >> { %v13445_v39 = vpop.permute.xlu0 %4230  ;;  %6611 = vmatmul.mubr.msk.f32.gmra.mxu0 %vm4268_vm8, %v15436_v19 }
 0x7c7   : >> { %5520 = vmatprep.mubr.f32.mxu0 %v15351_v57  ;;  %5420 = vmatmul.mubr.f32.gmra.mxu1 %v15437_v26  ;;  %v4362_v6 = vadd.f32 %v4361_v51, %v13445_v39  ;;  %v13485_v52 = vpop.f32.mrf.mxu1  ;;  %v4360_v14 = vadd.f32 %v4359_v32, %v13445_v39 }
 0x7c8   : >> { %5425 = vmatprep.mubr.f32.mxu1 %v15438_v18 }
 0x7c9   : >> { %v13455_v29 = vadd.f32 %v4474_v49, %v4362_v6  ;;  %v13487_v50 = vpop.f32.mrf.mxu1  ;;  %v4473_v11 = vadd.f32 %v13390_v7, %v4360_v14 }
 0x7ca   : >> { %6612 = vmatmul.mubr.msk.f32.gmra.mxu0 %vm4268_vm8, %v15439_v41 }
 0x7cb   : >> { %5526 = vmatprep.mubr.f32.mxu0 %v15351_v57  ;;  %5426 = vmatmul.mubr.f32.gmra.mxu1 %v15440_v31 }
 0x7ce   : >> { %6613 = vmatmul.mubr.msk.f32.gmra.mxu0 %vm4268_vm8, %v15441_v45 }
 0x7cf   : >> { %5532 = vmatprep.mubr.f32.mxu0 %v15351_v57 }
 0x7d2   : >> { %6614 = vmatmul.mubr.msk.f32.gmra.mxu0 %vm4268_vm8, %v15442_v56 }
 0x7d3   : >> { %5538 = vmatprep.mubr.f32.mxu0 %v15351_v57  ;;  %v4698_v57 = vpop.f32.mrf.mxu1 }
 0x7d5   : >> { %v13493_v49 = vpop.f32.mrf.mxu1 }
 0x7d6   : >> { %6615 = vmatmul.mubr.msk.f32.gmra.mxu0 %vm4268_vm8, %v15443_v43 }
 0x7d7   : >> { %v4704_v58 = vpop.f32.mrf.mxu1 }
 0x7d9   : >> { %v13499_v35 = vpop.f32.mrf.mxu1 }
 0x7db   : >> { %v4710_v42 = vpop.f32.mrf.mxu1 }
 0x7dd   : >> { %v13510_v9 = vpop.f32.mrf.mxu1 }
 0x7df   : >> { %v4716_v7 = vpop.f32.mrf.mxu1 }
 0x7e1   : >> { %v13528_v26 = vpop.f32.mrf.mxu1 }
 0x7e3   : >> { %v4722_v31 = vpop.f32.mrf.mxu1 }
 0x7e5   : >> { %v13544_v14 = vpop.f32.mrf.mxu1 }
 0x7e8   : >> { %v13502_v24 = vpop.permute.xlu1 %4235 }
 0x7e9   : >> { %v4366_v23 = vadd.f32 %v4365_v48, %v13502_v24 }
 0x7eb   : >> { %v4479_v32 = vadd.f32 %v13400_v25, %v4366_v23 }
 0x7ed   : >> { %v13508_v22 = vpop.permute.xlu1 %4240 }
 0x7ee   : >> { %v4372_v5 = vadd.f32 %v4371_v40, %v13508_v22 }
 0x7f0   : >> { %v4485_v12 = vadd.f32 %v13412_v28, %v4372_v5 }
 0x7f1   : >> { %v13524_v61 = vpop.permute.xlu0 %4245 }
 0x7f2   : >> { %v4378_v18 = vadd.f32 %v4377_v0, %v13524_v61 }
 0x7f4   : >> { %v13536_v45 = vpop.permute.xlu1 %4250  ;;  %v4491_v56 = vadd.f32 %v13431_v63, %v4378_v18  ;;  %v4728_v63 = vpop.f32.mrf.mxu1 }
 0x7f7   : >> { %v4585_v17 = vpop.f32.mrf.mxu0 }
 0x7f8   : >> { %v4586_v15 = vadd.f32 %v4585_v17, %v4473_v11  ;;  %v13548_v11 = vpop.permute.xlu0 %4255 }
 0x7f9   : >> { %v4587_v53 = vpop.f32.mrf.mxu0 }
 0x7fa   : >> { %v13512_v4 = vadd.f32 %v4698_v57, %v4586_v15 }
 0x7fc   : >> { %v4745_v20 = vmax.f32 %v13512_v4, 0.0  ;;  %v4591_v51 = vpop.f32.mrf.mxu0 }
 0x7fd   : >> { %v4592_v2 = vadd.f32 %v4591_v51, %v4479_v32 }
 0x7fe   : >> { %v13517_v1 = vpop.f32.mrf.mxu0  ;;  %4761 = vrot.lane.b32.xlu1 %v4745_v20, %s7005_s13 }
 0x7ff   : >> { %v13522_v48 = vadd.f32 %v4704_v58, %v4592_v2  ;;  %v4384_v58 = vadd.f32 %v4383_v8, %v13536_v45  ;;  %v4390_v8 = vadd.f32 %v4389_v62, %v13548_v11  ;;  %v13558_v2 = vpop.f32.mrf.mxu1 }
 0x801   : >> { %v4747_v25 = vmax.f32 %v13522_v48, 0.0  ;;  %v4597_v19 = vpop.f32.mrf.mxu0  ;;  %v4497_v23 = vadd.f32 %v13447_v30, %v4384_v58  ;;  %v4503_v30 = vadd.f32 %v13465_v60, %v4390_v8  ;;  %v4734_v18 = vpop.f32.mrf.mxu1 }
 0x802   : >> { %v4598_v6 = vadd.f32 %v4597_v19, %v4485_v12 }
 0x803   : >> { %4763 = vrot.lane.b32.xlu0 %v4747_v25, %s7005_s13  ;;  %v4599_v41 = vpop.f32.mrf.mxu0 }
 0x804   : >> { %v13534_v40 = vadd.f32 %v4710_v42, %v4598_v6 }
 0x806   : >> { %v4749_v28 = vmax.f32 %v13534_v40, 0.0 }
 0x808   : >> { %v4603_v43 = vpop.f32.mrf.mxu0  ;;  %4765 = vrot.lane.b32.xlu1 %v4749_v28, %s7005_s13 }
 0x809   : >> { %v4604_v57 = vadd.f32 %v4603_v43, %v4491_v56  ;;  %v13571_v43 = vpop.permute.xlu0 %4265 }
 0x80a   : >> { %v4605_v0 = vpop.f32.mrf.mxu0 }
 0x80b   : >> { %v13546_v42 = vadd.f32 %v4716_v7, %v4604_v57  ;;  %v13560_v7 = vpop.permute.xlu1 %4260  ;;  %v4374_v57 = vadd.f32 %v13463_v16, %v13508_v22 }
 0x80c   : >> { %v4396_v62 = vadd.f32 %v13491_v27, %v13560_v7  ;;  %v4588_v27 = vadd.f32 %v4587_v53, %v13455_v29  ;;  %v4380_v29 = vadd.f32 %v13475_v10, %v13524_v61 }
 0x80d   : >> { %v4751_v17 = vmax.f32 %v13546_v42, 0.0 }
 0x80e   : >> { %v4609_v15 = vpop.f32.mrf.mxu0  ;;  %v4509_v58 = vadd.f32 %v13477_v13, %v4396_v62  ;;  %v4487_v13 = vadd.f32 %v13424_v34, %v4374_v57  ;;  %v13594_v53 = vadd.f32 %v13493_v49, %v4588_v27  ;;  %v4398_v34 = vadd.f32 %v13495_v46, %v13560_v7 }
 0x80f   : >> { %v4610_v32 = vadd.f32 %v4609_v15, %v4497_v23  ;;  %4767 = vrot.lane.b32.xlu0 %v4751_v17, %s7005_s13  ;;  %v4368_v23 = vadd.f32 %v13443_v55, %v13502_v24  ;;  %v4736_v15 = vpop.f32.mrf.mxu1  ;;  %v4493_v49 = vadd.f32 %v13438_v37, %v4380_v29 }
 0x810   : >> { %v4611_v51 = vpop.f32.mrf.mxu0  ;;  %v4600_v62 = vadd.f32 %v4599_v41, %v4487_v13  ;;  %v4392_v41 = vadd.f32 %v13489_v33, %v13548_v11  ;;  %v4511_v27 = vadd.f32 %v13481_v38, %v4398_v34 }
 0x811   : >> { %v13556_v5 = vadd.f32 %v4722_v31, %v4610_v32  ;;  %v4740_v55 = vpop.f32.mrf.mxu1 }
 0x812   : >> { %v13610_v57 = vadd.f32 %v13510_v9, %v4600_v62  ;;  %v4505_v33 = vadd.f32 %v13470_v3, %v4392_v41 }
 0x813   : >> { %v4753_v12 = vmax.f32 %v13556_v5, 0.0  ;;  %v4742_v10 = vpop.f32.mrf.mxu1 }
 0x814   : >> { %v4615_v19 = vpop.f32.mrf.mxu0  ;;  %v4750_v9 = vmax.f32 %v13610_v57, 0.0 }
 0x815   : >> { %v4616_v6 = vadd.f32 %v4615_v19, %v4503_v30  ;;  %4769 = vrot.lane.b32.xlu1 %v4753_v12, %s7005_s13  ;;  %v4386_v30 = vadd.f32 %v13483_v54, %v13536_v45  ;;  %v13622_v37 = vpop.f32.mrf.mxu1 }
 0x816   : >> { %v4617_v31 = vpop.f32.mrf.mxu0 }
 0x817   : >> { %v13569_v56 = vadd.f32 %v4728_v63, %v4616_v6  ;;  %v4402_v63 = vadd.f32 %v13497_v36, %v13571_v43  ;;  %v4481_v6 = vadd.f32 %v13408_v44, %v4368_v23  ;;  %v4606_v23 = vadd.f32 %v4605_v0, %v4493_v49  ;;  %v5161_v3 = vpop.f32.mrf.mxu1 }
 0x818   : >> { %v4404_v0 = vadd.f32 %v13504_v47, %v13571_v43 }
 0x819   : >> { %v4755_v60 = vmax.f32 %v13569_v56, 0.0  ;;  %v4594_v54 = vadd.f32 %v13517_v1, %v4481_v6  ;;  %v13655_v6 = vpop.f32.mrf.mxu1 }
 0x81a   : >> { %v4621_v32 = vpop.f32.mrf.mxu0  ;;  %v4517_v47 = vadd.f32 %v13487_v50, %v4404_v0 }
 0x81b   : >> { %v4622_v8 = vadd.f32 %v4621_v32, %v4509_v58  ;;  %4771 = vrot.lane.b32.xlu0 %v4755_v60, %s7005_s13  ;;  %v4515_v58 = vadd.f32 %v13485_v52, %v4402_v63  ;;  %v4746_v52 = vmax.f32 %v13594_v53, 0.0  ;;  %v13636_v63 = vadd.f32 %v13528_v26, %v4606_v23 }
 0x81c   : >> { %v4623_v16 = vpop.f32.mrf.mxu0 }
 0x81d   : >> { %v13588_v19 = vadd.f32 %v4734_v18, %v4622_v8  ;;  %v4499_v18 = vadd.f32 %v13457_v59, %v4386_v30  ;;  %v13615_v59 = vadd.f32 %v13499_v35, %v4594_v54  ;;  %v4624_v35 = vadd.f32 %v4623_v16, %v4511_v27 }
 0x81e   : >> { %v4618_v30 = vadd.f32 %v4617_v31, %v4505_v33  ;;  %v4752_v26 = vmax.f32 %v13636_v63, 0.0 }
 0x81f   : >> { %v14934_v36 = vmax.f32 %v13588_v19, 0.0  ;;  %v4612_v46 = vadd.f32 %v4611_v51, %v4499_v18  ;;  %v4748_v38 = vmax.f32 %v13615_v59, 0.0  ;;  %v13642_v13 = vadd.f32 %v4736_v15, %v4624_v35 }
 0x820   : >> { %v4627_v32 = vpop.f32.mrf.mxu0  ;;  %v13650_v31 = vadd.f32 %v13558_v2, %v4618_v30  ;;  %v5167_v2 = vpop.f32.mrf.mxu1 }
 0x821   : >> { %v4628_v44 = vadd.f32 %v4627_v32, %v4515_v58  ;;  %4773 = vrot.lane.b32.xlu1 %v14934_v36, %s7005_s13  ;;  %v13627_v51 = vadd.f32 %v13544_v14, %v4612_v46  ;;  %v14932_v15 = vmax.f32 %v13642_v13, 0.0  ;;  %v5168_v27 = vadd.f32 %v5167_v2, %v13502_v24 }
 0x822   : >> { %v4629_v14 = vpop.f32.mrf.mxu0  ;;  %v14933_v50 = vmax.f32 %v13650_v31, 0.0  ;;  %v5171_v58 = vpop.f32.mrf.mxu1 }
 0x823   : >> { %v13612_v1 = vadd.f32 %v4740_v55, %v4628_v44  ;;  %v4754_v16 = vmax.f32 %v13627_v51, 0.0  ;;  %v4630_v55 = vadd.f32 %v4629_v14, %v4517_v47  ;;  %v5172_v35 = vadd.f32 %v5171_v58, %v13508_v22 }
 0x824   : >> { %v5173_v32 = vpop.f32.mrf.mxu1 }
 0x825   : >> { %v14931_v8 = vmax.f32 %v13612_v1, 0.0  ;;  %4777 = vrot.lane.b32.xlu1 %v4746_v52, %s7005_s13  ;;  %v13662_v29 = vadd.f32 %v4742_v10, %v4630_v55  ;;  %v5162_v10 = vadd.f32 %v5161_v3, %v13445_v39  ;;  %v5174_v47 = vadd.f32 %v5173_v32, %v13508_v22 }
 0x826   : >> { %v5177_v34 = vpop.f32.mrf.mxu1 }
 0x827   : >> { %4775 = vrot.lane.b32.xlu0 %v14931_v8, %s7005_s13  ;;  %v14930_v62 = vmax.f32 %v13662_v29, 0.0  ;;  %v5178_v3 = vadd.f32 %v5177_v34, %v13524_v61 }
 0x828   : >> { %v5179_v54 = vpop.f32.mrf.mxu1 }
 0x829   : >> { %4781 = vrot.lane.b32.xlu1 %v4750_v9, %s7005_s13  ;;  %v5180_v2 = vadd.f32 %v5179_v54, %v13524_v61 }
 0x82a   : >> { %v5183_v18 = vpop.f32.mrf.mxu1 }
 0x82b   : >> { %4779 = vrot.lane.b32.xlu0 %v4748_v38, %s7005_s13 }
 0x82c   : >> { %v5185_v46 = vpop.f32.mrf.mxu1 }
 0x82d   : >> { %4785 = vrot.lane.b32.xlu1 %v4754_v16, %s7005_s13  ;;  %v5186_v32 = vadd.f32 %v5185_v46, %v13536_v45 }
 0x82e   : >> { %v5189_v30 = vpop.f32.mrf.mxu1 }
 0x82f   : >> { %4783 = vrot.lane.b32.xlu0 %v4752_v26, %s7005_s13 }
 0x831   : >> { %4789 = vrot.lane.b32.xlu1 %v14932_v15, %s7005_s13 }
 0x833   : >> { %4787 = vrot.lane.b32.xlu0 %v14933_v50, %s7005_s13 }
 0x837   : >> { %4791 = vrot.lane.b32.xlu0 %v14930_v62, %s7005_s13 }
 0x846   : >> { %v5272_v44 = vpop.f32.mrf.mxu0 }
 0x848   : >> { %v5274_v49 = vpop.f32.mrf.mxu0 }
 0x849   : >> { %v5275_v41 = vadd.f32 %v5274_v49, %v5162_v10  ;;  %v5191_v10 = vpop.f32.mrf.mxu1 }
 0x84a   : >> { %v5278_v23 = vpop.f32.mrf.mxu0  ;;  %v5192_v54 = vadd.f32 %v5191_v10, %v13548_v11 }
 0x84b   : >> { %v5195_v50 = vpop.f32.mrf.mxu1 }
 0x84c   : >> { %v5280_v33 = vpop.f32.mrf.mxu0 }
 0x84d   : >> { %v13677_v0 = vadd.f32 %v5280_v33, %v5168_v27  ;;  %v5184_v27 = vadd.f32 %v5183_v18, %v13536_v45 }
 0x84e   : >> { %v5284_v14 = vpop.f32.mrf.mxu0 }
 0x84f   : >> { %v13680_v55 = vadd.f32 %v5284_v14, %v5172_v35 }
 0x850   : >> { %v5286_v62 = vpop.f32.mrf.mxu0 }
 0x851   : >> { %v13683_v8 = vadd.f32 %v5286_v62, %v5174_v47  ;;  %v5190_v62 = vadd.f32 %v5189_v30, %v13548_v11  ;;  %v5197_v47 = vpop.f32.mrf.mxu1 }
 0x852   : >> { %v5290_v49 = vpop.f32.mrf.mxu0  ;;  %v5198_v46 = vadd.f32 %v5197_v47, %v13560_v7  ;;  %v5166_v47 = vadd.f32 %v13655_v6, %v13502_v24 }
 0x853   : >> { %v13686_v15 = vadd.f32 %v5290_v49, %v5178_v3  ;;  %v5196_v49 = vadd.f32 %v5195_v50, %v13560_v7 }
 0x854   : >> { %v5292_v58 = vpop.f32.mrf.mxu0 }
 0x855   : >> { %v13689_v33 = vadd.f32 %v5292_v58, %v5180_v2  ;;  %v5201_v58 = vpop.f32.mrf.mxu1 }
 0x856   : >> { %v5296_v22 = vpop.f32.mrf.mxu0 }
 0x857   : >> { %v13692_v35 = vadd.f32 %v5296_v22, %v5184_v27  ;;  %v5202_v22 = vadd.f32 %v5201_v58, %v13571_v43  ;;  %v13711_v10 = vpop.f32.mrf.mxu1 }
 0x858   : >> { %v5298_v34 = vpop.f32.mrf.mxu0 }
 0x859   : >> { %v13695_v14 = vadd.f32 %v5298_v34, %v5186_v32 }
 0x85a   : >> { %v5302_v61 = vpop.f32.mrf.mxu0 }
 0x85b   : >> { %v13698_v3 = vadd.f32 %v5302_v61, %v5190_v62 }
 0x85c   : >> { %v5304_v18 = vpop.f32.mrf.mxu0 }
 0x85d   : >> { %v13701_v2 = vadd.f32 %v5304_v18, %v5192_v54  ;;  %v5160_v54 = vadd.f32 %v13622_v37, %v13445_v39 }
 0x85e   : >> { %v5308_v45 = vpop.f32.mrf.mxu0 }
 0x85f   : >> { %v13704_v27 = vadd.f32 %v5308_v45, %v5196_v49  ;;  %v5273_v18 = vadd.f32 %v5272_v44, %v5160_v54 }
 0x860   : >> { %v5310_v30 = vpop.f32.mrf.mxu0 }
 0x861   : >> { %v13707_v32 = vadd.f32 %v5310_v30, %v5198_v46  ;;  %v5279_v46 = vadd.f32 %v5278_v23, %v5166_v47 }
 0x862   : >> { %v5314_v34 = vpop.f32.mrf.mxu0 }
 0x863   : >> { %v13709_v11 = vadd.f32 %v5314_v34, %v5202_v22 }
 0x864   : >> { %v13715_v7 = vpop.f32.mrf.mxu0 }
 0x86f   : >> { %v5385_v62 = vpop.f32.mrf.mxu1 }
 0x870   : >> { %v5386_v49 = vadd.f32 %v5385_v62, %v5273_v18  ;;  %v4762_v37 = vpop.permute.xlu1 %4761 }
 0x871   : >> { %v5387_v50 = vpop.f32.mrf.mxu1 }
 0x872   : >> { %v5388_v61 = vadd.f32 %v5387_v50, %v5275_v41 }
 0x873   : >> { %v5391_v58 = vpop.f32.mrf.mxu1 }
 0x874   : >> { %v5392_v34 = vadd.f32 %v5391_v58, %v5279_v46 }
 0x875   : >> { %v4764_v44 = vpop.permute.xlu0 %4763 }
 0x87a   : >> { %v5498_v45 = vpop.f32.mrf.mxu0  ;;  %v4766_v6 = vpop.permute.xlu1 %4765 }
 0x87b   : >> { %v13719_v30 = vadd.f32 %v5498_v45, %v5386_v49 }
 0x87c   : >> { %v5500_v22 = vpop.f32.mrf.mxu0 }
 0x87d   : >> { %v14935_v36 = vmax.f32 %v13719_v30, 0.0  ;;  %v13722_v41 = vadd.f32 %v5500_v22, %v5388_v61  ;;  %v5393_v22 = vpop.f32.mrf.mxu1 }
 0x87e   : >> { %v5504_v50 = vpop.f32.mrf.mxu0 }
 0x87f   : >> { %v13724_v39 = vadd.f32 %v5504_v50, %v5392_v34  ;;  %5561 = vrot.lane.b32.xlu1 %v14935_v36, %s7005_s13 }
 0x880   : >> { %v13749_v36 = vpop.f32.mrf.mxu0 }
 0x881   : >> { %v5547_v24 = vmax.f32 %v13724_v39, 0.0  ;;  %v4768_v62 = vpop.permute.xlu0 %4767 }
 0x883   : >> { %5563 = vrot.lane.b32.xlu0 %v5547_v24, %s7005_s13 }
 0x887   : >> { %v4770_v23 = vpop.permute.xlu1 %4769 }
 0x88d   : >> { %v4772_v54 = vpop.permute.xlu0 %4771 }
 0x893   : >> { %v4774_v61 = vpop.permute.xlu1 %4773 }
 0x897   : >> { %v4778_v18 = vpop.permute.xlu1 %4777 }
 0x898   : >> { %v4793_v47 = vsel %vm354_vm0, %v4762_v37, %v4778_v18  ;;  %v4801_v45 = vsel %vm354_vm0, %v4778_v18, %v4762_v37  ;;  %v5397_v18 = vpop.f32.mrf.mxu1 }
 0x899   : >> { %v13737_v49 = vmax.f32 %v4745_v20, %v4793_v47  ;;  %v13739_v58 = vpop.permute.xlu0 %4775  ;;  %v13747_v34 = vmax.f32 %v4746_v52, %v4801_v45  ;;  %v5510_v45 = vpop.f32.mrf.mxu0 }
 0x89b   : >> { %4825 = vrot.lane.b32.xlu1 %v13737_v49, %s7007_s29  ;;  %v4782_v46 = vpop.permute.xlu1 %4781 }
 0x89c   : >> { %v4795_v4 = vsel %vm354_vm0, %v4766_v6, %v4782_v46  ;;  %v4803_v48 = vsel %vm354_vm0, %v4782_v46, %v4766_v6  ;;  %v5512_v6 = vpop.f32.mrf.mxu0 }
 0x89d   : >> { %v4780_v50 = vpop.permute.xlu0 %4779  ;;  %v13765_v52 = vmax.f32 %v4749_v28, %v4795_v4  ;;  %v13781_v28 = vmax.f32 %v4750_v9, %v4803_v48 }
 0x89e   : >> { %v4794_v20 = vsel %vm354_vm0, %v4764_v44, %v4780_v50  ;;  %v4802_v53 = vsel %vm354_vm0, %v4780_v50, %v4764_v44  ;;  %v5399_v44 = vpop.f32.mrf.mxu1  ;;  %v5516_v4 = vpop.f32.mrf.mxu0 }
 0x89f   : >> { %v13757_v37 = vmax.f32 %v4747_v25, %v4794_v20  ;;  %4841 = vrot.lane.b32.xlu1 %v13747_v34, %s7007_s29  ;;  %v13773_v25 = vmax.f32 %v4748_v38, %v4802_v53  ;;  %v4786_v20 = vpop.permute.xlu1 %4785 }
 0x8a0   : >> { %v4797_v59 = vsel %vm354_vm0, %v4770_v23, %v4786_v20  ;;  %v5403_v46 = vpop.f32.mrf.mxu1  ;;  %v4805_v42 = vsel %vm354_vm0, %v4786_v20, %v4770_v23  ;;  %v5518_v23 = vpop.f32.mrf.mxu0 }
 0x8a1   : >> { %4827 = vrot.lane.b32.xlu0 %v13757_v37, %s7007_s29  ;;  %v4784_v47 = vpop.permute.xlu0 %4783  ;;  %v13797_v9 = vmax.f32 %v4753_v12, %v4797_v59  ;;  %v13813_v12 = vmax.f32 %v4754_v16, %v4805_v42  ;;  %v15444_v16 = vmax.f32 %v13588_v19, 0.0  ;;  %v15445_v59 = vmax.f32 %v13650_v31, 0.0 }
 0x8a2   : >> { %v4796_v40 = vsel %vm354_vm0, %v4768_v62, %v4784_v47  ;;  %v4804_v57 = vsel %vm354_vm0, %v4784_v47, %v4768_v62  ;;  %v5405_v62 = vpop.f32.mrf.mxu1  ;;  %v15446_v42 = vmax.f32 %v13642_v13, 0.0 }
 0x8a3   : >> { %4829 = vrot.lane.b32.xlu1 %v13765_v52, %s7007_s29  ;;  %v13789_v38 = vmax.f32 %v4751_v17, %v4796_v40  ;;  %v13805_v17 = vmax.f32 %v4752_v26, %v4804_v57  ;;  %v4790_v53 = vpop.permute.xlu1 %4789  ;;  %v5522_v40 = vpop.f32.mrf.mxu0 }
 0x8a4   : >> { %v4799_v63 = vsel %vm354_vm0, %v4774_v61, %v4790_v53  ;;  %v5409_v47 = vpop.f32.mrf.mxu1  ;;  %v4807_v56 = vsel %vm354_vm0, %v4790_v53, %v4774_v61  ;;  %v15447_v61 = vmax.f32 %v13612_v1, 0.0  ;;  %v5404_v1 = vadd.f32 %v5403_v46, %v13686_v15 }
 0x8a5   : >> { %4843 = vrot.lane.b32.xlu0 %v13773_v25, %s7007_s29  ;;  %v4788_v50 = vpop.permute.xlu0 %4787  ;;  %v13829_v48 = vmax.f32 %v15444_v16, %v4799_v63  ;;  %v5524_v31 = vpop.f32.mrf.mxu0  ;;  %v5546_v15 = vmax.f32 %v13722_v41, 0.0 }
 0x8a6   : >> { %v4798_v5 = vsel %vm354_vm0, %v4772_v54, %v4788_v50  ;;  %v4806_v51 = vsel %vm354_vm0, %v4788_v50, %v4772_v54  ;;  %v5411_v19 = vpop.f32.mrf.mxu1 }
 0x8a7   : >> { %4845 = vrot.lane.b32.xlu1 %v13781_v28, %s7007_s29  ;;  %v13821_v26 = vmax.f32 %v4755_v60, %v4798_v5  ;;  %v5398_v60 = vadd.f32 %v5397_v18, %v13680_v55  ;;  %v13838_v57 = vmax.f32 %v15445_v59, %v4806_v51  ;;  %v13849_v5 = vmax.f32 %v15446_v42, %v4807_v56 }
 0x8a8   : >> { %v5394_v55 = vadd.f32 %v5393_v22, %v13677_v0  ;;  %v5415_v53 = vpop.f32.mrf.mxu1  ;;  %v5528_v0 = vpop.f32.mrf.mxu0  ;;  %v15449_v22 = vmax.f32 %v13662_v29, 0.0  ;;  %v5410_v29 = vadd.f32 %v5409_v47, %v13692_v35 }
 0x8a9   : >> { %4831 = vrot.lane.b32.xlu0 %v13789_v38, %s7007_s29  ;;  %v4792_v20 = vpop.permute.xlu0 %4791  ;;  %v13845_v50 = vadd.f32 %v5510_v45, %v5398_v60 }
 0x8aa   : >> { %v4800_v54 = vsel %vm354_vm0, %v13739_v58, %v4792_v20  ;;  %v4808_v13 = vsel %vm354_vm0, %v4792_v20, %v13739_v58  ;;  %v13864_v45 = vadd.f32 %v13749_v36, %v5394_v55  ;;  %v5417_v58 = vpop.f32.mrf.mxu1  ;;  %v5400_v36 = vadd.f32 %v5399_v44, %v13683_v8  ;;  %v5530_v56 = vpop.f32.mrf.mxu0 }
 0x8ab   : >> { %4833 = vrot.lane.b32.xlu1 %v13797_v9, %s7007_s29  ;;  %v13856_v18 = vmax.f32 %v15447_v61, %v4800_v54  ;;  %v14947_v63 = vmax.f32 %v13845_v50, 0.0  ;;  %v13872_v51 = vmax.f32 %v15449_v22, %v4808_v13  ;;  %v13879_v20 = vadd.f32 %v5516_v4, %v5404_v1 }
 0x8ac   : >> { %v5548_v16 = vmax.f32 %v13864_v45, 0.0  ;;  %v13885_v46 = vadd.f32 %v5512_v6, %v5400_v36  ;;  %v5421_v60 = vpop.f32.mrf.mxu1  ;;  %v5406_v8 = vadd.f32 %v5405_v62, %v13689_v33  ;;  %v13892_v4 = vadd.f32 %v5522_v40, %v5410_v29  ;;  %v5534_v59 = vpop.f32.mrf.mxu0 }
 0x8ad   : >> { %4847 = vrot.lane.b32.xlu0 %v13805_v17, %s7007_s29  ;;  %15448 = vst [vmem:[#allocation87_spill] sm:$0xff] %v13856_v18  ;;  %15450 = vst [vmem:[#allocation96_spill] sm:$0xff] %v13872_v51  ;;  %v14946_v44 = vmax.f32 %v13879_v20, 0.0  ;;  %v5416_v6 = vadd.f32 %v5415_v53, %v13698_v3  ;;  %v5412_v62 = vadd.f32 %v5411_v19, %v13695_v14  ;;  %v15453_v41 = vmax.f32 %v13879_v20, 0.0 }
 0x8ae   : >> { %v14945_v35 = vmax.f32 %v13885_v46, 0.0  ;;  %v13899_v47 = vadd.f32 %v5518_v23, %v5406_v8  ;;  %v5423_v33 = vpop.f32.mrf.mxu1  ;;  %v14943_v40 = vmax.f32 %v13892_v4, 0.0  ;;  %v5536_v42 = vpop.f32.mrf.mxu0  ;;  %v5422_v23 = vadd.f32 %v5421_v60, %v13704_v27 }
 0x8af   : >> { %4849 = vrot.lane.b32.xlu1 %v13813_v12, %s7007_s29  ;;  %v13906_v54 = vadd.f32 %v5528_v0, %v5416_v6  ;;  %v13913_v55 = vadd.f32 %v5524_v31, %v5412_v62  ;;  %v5418_v19 = vadd.f32 %v5417_v58, %v13701_v2  ;;  %v5204_v2 = vadd.f32 %v13711_v10, %v13571_v43 }
 0x8b0   : >> { %v14944_v3 = vmax.f32 %v13899_v47, 0.0  ;;  %v5427_v14 = vpop.f32.mrf.mxu1  ;;  %v13920_v53 = vadd.f32 %v5534_v59, %v5422_v23  ;;  %v5540_v13 = vpop.f32.mrf.mxu0  ;;  %v5424_v1 = vadd.f32 %v5423_v33, %v13707_v32  ;;  %v15455_v20 = vmax.f32 %v13899_v47, 0.0 }
 0x8b1   : >> { %4835 = vrot.lane.b32.xlu0 %v13821_v26, %s7007_s29  ;;  %v14942_v61 = vmax.f32 %v13906_v54, 0.0  ;;  %v14941_v27 = vmax.f32 %v13913_v55, 0.0  ;;  %v5428_v31 = vadd.f32 %v5427_v14, %v13709_v11  ;;  %v13927_v0 = vadd.f32 %v5530_v56, %v5418_v19 }
 0x8b2   : >> { %v14939_v22 = vmax.f32 %v13920_v53, 0.0  ;;  %v5429_v11 = vpop.f32.mrf.mxu1  ;;  %v5317_v36 = vadd.f32 %v13715_v7, %v5204_v2  ;;  %v13943_v29 = vadd.f32 %v5536_v42, %v5424_v1  ;;  %v5542_v43 = vpop.f32.mrf.mxu0 }
 0x8b3   : >> { %4837 = vrot.lane.b32.xlu1 %v13829_v48, %s7007_s29  ;;  %v13936_v58 = vadd.f32 %v5540_v13, %v5428_v31  ;;  %v14940_v56 = vmax.f32 %v13927_v0, 0.0 }
 0x8b4   : >> { %v5430_v32 = vadd.f32 %v5429_v11, %v5317_v36  ;;  %v14937_v60 = vmax.f32 %v13943_v29, 0.0 }
 0x8b5   : >> { %4851 = vrot.lane.b32.xlu0 %v13838_v57, %s7007_s29  ;;  %v14938_v10 = vmax.f32 %v13936_v58, 0.0 }
 0x8b6   : >> { %v13953_v8 = vadd.f32 %v5542_v43, %v5430_v32 }
 0x8b7   : >> { %4853 = vrot.lane.b32.xlu1 %v13849_v5, %s7007_s29 }
 0x8b8   : >> { %v14936_v7 = vmax.f32 %v13953_v8, 0.0 }
 0x8b9   : >> { %4839 = vrot.lane.b32.xlu0 %v13856_v18, %s7007_s29 }
 0x8bb   : >> { %5565 = vrot.lane.b32.xlu1 %v14947_v63, %s7005_s13 }
 0x8bd   : >> { %4855 = vrot.lane.b32.xlu0 %v13872_v51, %s7007_s29 }
 0x8bf   : >> { %5579 = vrot.lane.b32.xlu1 %v5548_v16, %s7005_s13 }
 0x8c1   : >> { %5577 = vrot.lane.b32.xlu0 %v5546_v15, %s7005_s13 }
 0x8c3   : >> { %5567 = vrot.lane.b32.xlu1 %v14946_v44, %s7005_s13 }
 0x8c5   : >> { %5581 = vrot.lane.b32.xlu0 %v14945_v35, %s7005_s13  ;;  %v15451_v35 = vmax.f32 %v13719_v30, 0.0 }
 0x8c7   : >> { %5569 = vrot.lane.b32.xlu1 %v14943_v40, %s7005_s13 }
 0x8c9   : >> { %5583 = vrot.lane.b32.xlu0 %v14944_v3, %s7005_s13 }
 0x8cb   : >> { %5571 = vrot.lane.b32.xlu1 %v14942_v61, %s7005_s13 }
 0x8cd   : >> { %5585 = vrot.lane.b32.xlu0 %v14941_v27, %s7005_s13 }
 0x8cf   : >> { %5573 = vrot.lane.b32.xlu1 %v14939_v22, %s7005_s13 }
 0x8d1   : >> { %5587 = vrot.lane.b32.xlu0 %v14940_v56, %s7005_s13 }
 0x8d3   : >> { %5575 = vrot.lane.b32.xlu1 %v14938_v10, %s7005_s13 }
 0x8d5   : >> { %5589 = vrot.lane.b32.xlu0 %v14937_v60, %s7005_s13 }
 0x8d9   : >> { %5591 = vrot.lane.b32.xlu0 %v14936_v7, %s7005_s13  ;;  %s6625_s13 = smul.u32 1280, %s6993_s25  ;;  %s3540_s25 = sadd.s32 1, %s6993_s25  }
 0x8da   : >> { %p3537_p5 = scmp.ge.s32.totalorder %s3540_s25, 5  }
 0x8db   : >> { %s14129_s12 = scalar_lea.vmem %s14661_s6, %s6625_s13  ;;  %vm6419_vm3 = vcmask (%p3537_p5), 73728  }
 0x8dc   : >> { %v5772_v51 = vld [vmem:[%s14129_s12 + $0x200] sm:$0xff] }
 0x8f1   : >> { %v5562_v59 = vpop.permute.xlu1 %5561 }
 0x8f5   : >> { %v5564_v33 = vpop.permute.xlu0 %5563 }
 0x90d   : >> { %v13965_v6 = vpop.permute.xlu1 %4825 }
 0x911   : >> { %v13967_v62 = vpop.permute.xlu1 %4841 }
 0x913   : >> { %v13969_v42 = vpop.permute.xlu0 %4827 }
 0x915   : >> { %v13971_v23 = vpop.permute.xlu1 %4829 }
 0x917   : >> { %v13973_v14 = vpop.permute.xlu0 %4843 }
 0x919   : >> { %v13975_v19 = vpop.permute.xlu1 %4845 }
 0x91b   : >> { %v13977_v13 = vpop.permute.xlu0 %4831 }
 0x91d   : >> { %v13979_v31 = vpop.permute.xlu1 %4833 }
 0x91f   : >> { %v13981_v2 = vpop.permute.xlu0 %4847 }
 0x921   : >> { %v13983_v1 = vpop.permute.xlu1 %4849 }
 0x923   : >> { %v13985_v11 = vpop.permute.xlu0 %4835 }
 0x925   : >> { %v13987_v36 = vpop.permute.xlu1 %4837 }
 0x927   : >> { %v13989_v43 = vpop.permute.xlu0 %4851 }
 0x929   : >> { %v13991_v32 = vpop.permute.xlu1 %4853 }
 0x92b   : >> { %v13993_v7 = vpop.permute.xlu0 %4839 }
 0x92d   : >> { %v5566_v60 = vpop.permute.xlu1 %5565 }
 0x92f   : >> { %v13995_v10 = vpop.permute.xlu0 %4855 }
 0x931   : >> { %v5580_v22 = vpop.permute.xlu1 %5579 }
 0x932   : >> { %v5594_v56 = vsel %vm354_vm0, %v5564_v33, %v5580_v22  ;;  %v5602_v40 = vsel %vm354_vm0, %v5580_v22, %v5564_v33 }
 0x933   : >> { %v14001_v27 = vmax.f32 %v5547_v24, %v5594_v56  ;;  %v5578_v61 = vpop.permute.xlu0 %5577  ;;  %v14017_v24 = vmax.f32 %v5548_v16, %v5602_v40  ;;  %v15452_v40 = vmax.f32 %v13845_v50, 0.0 }
 0x934   : >> { %v5593_v3 = vsel %vm354_vm0, %v5562_v59, %v5578_v61  ;;  %v5601_v39 = vsel %vm354_vm0, %v5578_v61, %v5562_v59 }
 0x935   : >> { %v14009_v44 = vmax.f32 %v15451_v35, %v5593_v3  ;;  %v5568_v63 = vpop.permute.xlu1 %5567  ;;  %5627 = vrot.lane.b32.xlu0 %v14001_v27, %s7007_s29  ;;  %v14023_v30 = vmax.f32 %v5546_v15, %v5601_v39  ;;  %v15454_v39 = vmax.f32 %v13885_v46, 0.0  ;;  %v15456_v46 = vmax.f32 %v13892_v4, 0.0 }
 0x937   : >> { %5625 = vrot.lane.b32.xlu1 %v14009_v44, %s7007_s29  ;;  %v5582_v22 = vpop.permute.xlu0 %5581 }
 0x938   : >> { %v5595_v3 = vsel %vm354_vm0, %v5566_v60, %v5582_v22  ;;  %v5603_v56 = vsel %vm354_vm0, %v5582_v22, %v5566_v60 }
 0x939   : >> { %v5570_v35 = vpop.permute.xlu1 %5569  ;;  %5643 = vrot.lane.b32.xlu0 %v14017_v24, %s7007_s29  ;;  %v14035_v61 = vmax.f32 %v15452_v40, %v5595_v3  ;;  %v14051_v3 = vmax.f32 %v15454_v39, %v5603_v56  ;;  %v15457_v40 = vmax.f32 %v13906_v54, 0.0  ;;  %v15458_v39 = vmax.f32 %v13913_v55, 0.0 }
 0x93a   : >> { %v15459_v54 = vmax.f32 %v13927_v0, 0.0 }
 0x93b   : >> { %5641 = vrot.lane.b32.xlu1 %v14023_v30, %s7007_s29  ;;  %v5584_v45 = vpop.permute.xlu0 %5583 }
 0x93c   : >> { %v5596_v16 = vsel %vm354_vm0, %v5568_v63, %v5584_v45  ;;  %v5604_v59 = vsel %vm354_vm0, %v5584_v45, %v5568_v63 }
 0x93d   : >> { %v14039_v15 = vmax.f32 %v15453_v41, %v5596_v16  ;;  %v5572_v33 = vpop.permute.xlu1 %5571  ;;  %v14055_v16 = vmax.f32 %v15455_v20, %v5604_v59 }
 0x93f   : >> { %5629 = vrot.lane.b32.xlu1 %v14035_v61, %s7007_s29  ;;  %5631 = vrot.lane.b32.xlu0 %v14039_v15, %s7007_s29  ;;  %v5586_v50 = vpop.permute.xlu0 %5585 }
 0x940   : >> { %v5597_v60 = vsel %vm354_vm0, %v5570_v35, %v5586_v50  ;;  %v5605_v56 = vsel %vm354_vm0, %v5586_v50, %v5570_v35 }
 0x941   : >> { %v14067_v45 = vmax.f32 %v15456_v46, %v5597_v60  ;;  %v5574_v47 = vpop.permute.xlu1 %5573  ;;  %v14083_v20 = vmax.f32 %v15458_v39, %v5605_v56 }
 0x943   : >> { %5645 = vrot.lane.b32.xlu1 %v14051_v3, %s7007_s29  ;;  %5647 = vrot.lane.b32.xlu0 %v14055_v16, %s7007_s29  ;;  %v5588_v63 = vpop.permute.xlu0 %5587 }
 0x944   : >> { %v5598_v22 = vsel %vm354_vm0, %v5572_v33, %v5588_v63  ;;  %v5606_v59 = vsel %vm354_vm0, %v5588_v63, %v5572_v33  ;;  %v15460_v63 = vmax.f32 %v13920_v53, 0.0  ;;  %v15463_v53 = vmax.f32 %v13943_v29, 0.0 }
 0x945   : >> { %v14071_v41 = vmax.f32 %v15457_v40, %v5598_v22  ;;  %v14087_v60 = vmax.f32 %v15459_v54, %v5606_v59  ;;  %v5576_v33 = vpop.permute.xlu1 %5575  ;;  %v15461_v22 = vmax.f32 %v13936_v58, 0.0  ;;  %v15464_v58 = vmax.f32 %v13953_v8, 0.0 }
 0x946   : >> { %v4857_v29 = vsel %vm3622_vm1, %v13965_v6, %v13967_v62  ;;  %v4865_v8 = vsel %vm3622_vm1, %v13967_v62, %v13965_v6  ;;  %v5708_v6 = vld [vmem:[%s14129_s12] sm:$0xff]  ;;  %v5709_v62 = vld [vmem:[%s14129_s12 + $0x8] sm:$0xff] }
 0x947   : >> { %5633 = vrot.lane.b32.xlu1 %v14067_v45, %s7007_s29  ;;  %5635 = vrot.lane.b32.xlu0 %v14071_v41, %s7007_s29  ;;  %v5590_v4 = vpop.permute.xlu0 %5589 }
 0x948   : >> { %v5599_v35 = vsel %vm354_vm0, %v5574_v47, %v5590_v4  ;;  %v5607_v40 = vsel %vm354_vm0, %v5590_v4, %v5574_v47 }
 0x949   : >> { %v14099_v0 = vmax.f32 %v15460_v63, %v5599_v35  ;;  %v14115_v59 = vmax.f32 %v15463_v53, %v5607_v40  ;;  %v5724_v40 = vld [vmem:[%s14129_s12 + $0x80] sm:$0xff] }
 0x94b   : >> { %5649 = vrot.lane.b32.xlu1 %v14083_v20, %s7007_s29  ;;  %5651 = vrot.lane.b32.xlu0 %v14087_v60, %s7007_s29  ;;  %v5592_v50 = vpop.permute.xlu0 %5591 }
 0x94c   : >> { %v5600_v55 = vsel %vm354_vm0, %v5576_v33, %v5592_v50  ;;  %v5608_v56 = vsel %vm354_vm0, %v5592_v50, %v5576_v33  ;;  %v4873_v50 = vmax.f32 %v13737_v49, %v4857_v29 }
 0x94d   : >> { %v14103_v46 = vmax.f32 %v15461_v22, %v5600_v55  ;;  %v14119_v39 = vmax.f32 %v15464_v58, %v5608_v56  ;;  %v4874_v55 = vmax.f32 %v13747_v34, %v4865_v8  ;;  %v5725_v56 = vld [vmem:[%s14129_s12 + $0x88] sm:$0xff]  ;;  %v5740_v8 = vld [vmem:[%s14129_s12 + $0x100] sm:$0xff] }
 0x94f   : >> { %15462 = vst [vmem:[#allocation77_spill] sm:$0xff] %v14103_v46  ;;  %5637 = vrot.lane.b32.xlu1 %v14099_v0, %s7007_s29  ;;  %5639 = vrot.lane.b32.xlu0 %v14103_v46, %s7007_s29  ;;  %15465 = vst [vmem:[#allocation78_spill] sm:$0xff] %v14119_v39  ;;  %v5821_v46 = vld [vmem:[%s14129_s12 + $0x388] sm:$0xff] }
 0x953   : >> { %5653 = vrot.lane.b32.xlu1 %v14115_v59, %s7007_s29  ;;  %5655 = vrot.lane.b32.xlu0 %v14119_v39, %s7007_s29  ;;  %v5820_v39 = vld [vmem:[%s14129_s12 + $0x380] sm:$0xff] }
 0x9a7   : >> { %v5628_v4 = vpop.permute.xlu0 %5627 }
 0x9a9   : >> { %v5626_v47 = vpop.permute.xlu1 %5625 }
 0x9ab   : >> { %v5644_v49 = vpop.permute.xlu0 %5643 }
 0x9ad   : >> { %v5642_v54 = vpop.permute.xlu1 %5641 }
 0x9ae   : >> { %v5657_v35 = vsel %vm3622_vm1, %v5626_v47, %v5642_v54  ;;  %v5665_v33 = vsel %vm3622_vm1, %v5642_v54, %v5626_v47  ;;  %v5773_v47 = vld [vmem:[%s14129_s12 + $0x208] sm:$0xff] }
 0x9af   : >> { %v5673_v63 = vmax.f32 %v14009_v44, %v5657_v35  ;;  %v5674_v22 = vmax.f32 %v14023_v30, %v5665_v33  ;;  %v5741_v54 = vld [vmem:[%s14129_s12 + $0x108] sm:$0xff] }
 0x9b1   : >> { %v14151_v53 = vmax.f32 %v4873_v50, %v5673_v63  ;;  %v14153_v58 = vmax.f32 %v4874_v55, %v5674_v22  ;;  %v5658_v63 = vsel %vm3622_vm1, %v5628_v4, %v5644_v49 }
 0x9b3   : >> { %v5868_v34 = vmul.f32 %v5708_v6, %v14151_v53  ;;  %v5869_v44 = vmul.f32 %v5709_v62, %v14153_v58  ;;  %v5921_v30 = vmul.f32 %v5724_v40, %v14151_v53  ;;  %v5922_v29 = vmul.f32 %v5725_v56, %v14153_v58  ;;  %v5788_v62 = vld [vmem:[%s14129_s12 + $0x280] sm:$0xff]  ;;  %v5789_v40 = vld [vmem:[%s14129_s12 + $0x288] sm:$0xff] }
 0x9b4   : >> { %v6080_v50 = vmul.f32 %v5772_v51, %v14151_v53  ;;  %v6081_v55 = vmul.f32 %v5773_v47, %v14153_v58  ;;  %v5974_v22 = vmul.f32 %v5740_v8, %v14151_v53  ;;  %v5975_v6 = vmul.f32 %v5741_v54, %v14153_v58 }
 0x9b5   : >> { %v5884_v35 = vadd.f32 %v5869_v44, %v5868_v34  ;;  %v5937_v33 = vadd.f32 %v5922_v29, %v5921_v30  ;;  %v5666_v56 = vsel %vm3622_vm1, %v5644_v49, %v5628_v4  ;;  %v5756_v34 = vld [vmem:[%s14129_s12 + $0x180] sm:$0xff]  ;;  %v5757_v44 = vld [vmem:[%s14129_s12 + $0x188] sm:$0xff]  ;;  %v4858_v51 = vsel %vm3622_vm1, %v13969_v42, %v13973_v14 }
 0x9b6   : >> { %v4866_v47 = vsel %vm3622_vm1, %v13973_v14, %v13969_v42  ;;  %v5675_v30 = vmax.f32 %v14001_v27, %v5658_v63  ;;  %v6096_v4 = vadd.f32 %v6081_v55, %v6080_v50  ;;  %v6133_v49 = vmul.f32 %v5788_v62, %v14151_v53  ;;  %v5804_v27 = vld [vmem:[%s14129_s12 + $0x300] sm:$0xff]  ;;  %v5805_v14 = vld [vmem:[%s14129_s12 + $0x308] sm:$0xff] }
 0x9b7   : >> { %5885 = vadd.xlane.f32.xlu1 %v5884_v35  ;;  %5938 = vadd.xlane.f32.xlu0 %v5937_v33  ;;  %v6134_v29 = vmul.f32 %v5789_v40, %v14153_v58  ;;  %v5676_v8 = vmax.f32 %v14017_v24, %v5666_v56  ;;  %v5990_v54 = vadd.f32 %v5975_v6, %v5974_v22  ;;  %v5836_v40 = vld [vmem:[%s14129_s12 + $0x400] sm:$0xff]  ;;  %v5710_v56 = vld [vmem:[%s14129_s12 + $0x10] sm:$0xff] }
 0x9b8   : >> { %v6027_v35 = vmul.f32 %v5756_v34, %v14151_v53  ;;  %v6028_v18 = vmul.f32 %v5757_v44, %v14153_v58  ;;  %v4875_v42 = vmax.f32 %v13757_v37, %v4858_v51  ;;  %v4876_v33 = vmax.f32 %v13773_v25, %v4866_v47  ;;  %v5837_v25 = vld [vmem:[%s14129_s12 + $0x408] sm:$0xff]  ;;  %v5711_v34 = vld [vmem:[%s14129_s12 + $0x18] sm:$0xff] }
 0x9b9   : >> { %v6149_v50 = vadd.f32 %v6134_v29, %v6133_v49  ;;  %v6239_v55 = vmul.f32 %v5820_v39, %v14151_v53  ;;  %v6240_v63 = vmul.f32 %v5821_v46, %v14153_v58  ;;  %v6186_v37 = vmul.f32 %v5804_v27, %v14151_v53  ;;  %v5774_v49 = vld [vmem:[%s14129_s12 + $0x210] sm:$0xff]  ;;  %v5775_v29 = vld [vmem:[%s14129_s12 + $0x218] sm:$0xff] }
 0x9ba   : >> { %v14195_v24 = vmax.f32 %v4875_v42, %v5675_v30  ;;  %v14199_v22 = vmax.f32 %v4876_v33, %v5676_v8  ;;  %v6043_v6 = vadd.f32 %v6028_v18, %v6027_v35  ;;  %v6187_v62 = vmul.f32 %v5805_v14, %v14153_v58  ;;  %v5852_v30 = vld [vmem:[%s14129_s12 + $0x480] sm:$0xff]  ;;  %v5630_v8 = vpop.permute.xlu1 %5629 }
 0x9bb   : >> { %6097 = vadd.xlane.f32.xlu1 %v6096_v4  ;;  %5991 = vadd.xlane.f32.xlu0 %v5990_v54  ;;  %v6255_v39 = vadd.f32 %v6240_v63, %v6239_v55  ;;  %v6292_v46 = vmul.f32 %v5836_v40, %v14151_v53  ;;  %v6293_v44 = vmul.f32 %v5837_v25, %v14153_v58  ;;  %v5853_v4 = vld [vmem:[%s14129_s12 + $0x488] sm:$0xff]  ;;  %v5727_v55 = vld [vmem:[%s14129_s12 + $0x98] sm:$0xff]  ;;  %v5790_v63 = vld [vmem:[%s14129_s12 + $0x290] sm:$0xff] }
 0x9bc   : >> { %v6202_v51 = vadd.f32 %v6187_v62, %v6186_v37  ;;  %v5870_v18 = vmul.f32 %v5710_v56, %v14195_v24  ;;  %v5871_v47 = vmul.f32 %v5711_v34, %v14199_v22  ;;  %v6345_v35 = vmul.f32 %v5852_v30, %v14151_v53  ;;  %v5742_v34 = vld [vmem:[%s14129_s12 + $0x110] sm:$0xff] }
 0x9bd   : >> { %v6308_v54 = vadd.f32 %v6293_v44, %v6292_v46  ;;  %v6346_v42 = vmul.f32 %v5853_v4, %v14153_v58  ;;  %v6082_v14 = vmul.f32 %v5774_v49, %v14195_v24  ;;  %v6083_v33 = vmul.f32 %v5775_v29, %v14199_v22  ;;  %v5822_v46 = vld [vmem:[%s14129_s12 + $0x390] sm:$0xff]  ;;  %v5823_v44 = vld [vmem:[%s14129_s12 + $0x398] sm:$0xff] }
 0x9be   : >> { %v5887_v27 = vadd.f32 %v5871_v47, %v5870_v18  ;;  %v5924_v58 = vmul.f32 %v5727_v55, %v14199_v22  ;;  %v5646_v62 = vpop.permute.xlu1 %5645  ;;  %v6135_v25 = vmul.f32 %v5790_v63, %v14195_v24  ;;  %v5976_v47 = vmul.f32 %v5742_v34, %v14195_v24 }
 0x9bf   : >> { %6150 = vadd.xlane.f32.xlu1 %v6149_v50  ;;  %6044 = vadd.xlane.f32.xlu0 %v6043_v6  ;;  %v5726_v50 = vld [vmem:[%s14129_s12 + $0x90] sm:$0xff]  ;;  %v5791_v6 = vld [vmem:[%s14129_s12 + $0x298] sm:$0xff]  ;;  %v6361_v37 = vadd.f32 %v6346_v42, %v6345_v35  ;;  %v6099_v40 = vadd.f32 %v6083_v33, %v6082_v14  ;;  %v5667_v4 = vsel %vm3622_vm1, %v5646_v62, %v5630_v8 }
 0x9c0   : >> { %v5923_v53 = vmul.f32 %v5726_v50, %v14195_v24  ;;  %v6136_v56 = vmul.f32 %v5791_v6, %v14199_v22  ;;  %v6241_v29 = vmul.f32 %v5822_v46, %v14195_v24  ;;  %v5758_v35 = vld [vmem:[%s14129_s12 + $0x190] sm:$0xff]  ;;  %v5759_v42 = vld [vmem:[%s14129_s12 + $0x198] sm:$0xff]  ;;  %v5632_v50 = vpop.permute.xlu0 %5631  ;;  %v5678_v63 = vmax.f32 %v14051_v3, %v5667_v4  ;;  %v5777_v4 = vld [vmem:[%s14129_s12 + $0x228] sm:$0xff] }
 0x9c1   : >> { %v5838_v14 = vld [vmem:[%s14129_s12 + $0x410] sm:$0xff]  ;;  %v5839_v33 = vld [vmem:[%s14129_s12 + $0x418] sm:$0xff] }
 0x9c2   : >> { %v5940_v18 = vadd.f32 %v5924_v58, %v5923_v53  ;;  %v6152_v49 = vadd.f32 %v6136_v56, %v6135_v25  ;;  %v6030_v53 = vmul.f32 %v5759_v42, %v14199_v22  ;;  %v5807_v25 = vld [vmem:[%s14129_s12 + $0x318] sm:$0xff]  ;;  %v5854_v3 = vld [vmem:[%s14129_s12 + $0x490] sm:$0xff] }
 0x9c3   : >> { %6256 = vadd.xlane.f32.xlu1 %v6255_v39  ;;  %6203 = vadd.xlane.f32.xlu0 %v6202_v51  ;;  %v5743_v39 = vld [vmem:[%s14129_s12 + $0x118] sm:$0xff]  ;;  %v5659_v51 = vsel %vm3622_vm1, %v5630_v8, %v5646_v62  ;;  %v4867_v8 = vsel %vm3622_vm1, %v13975_v19, %v13971_v23 }
 0x9c4   : >> { %v5977_v30 = vmul.f32 %v5743_v39, %v14199_v22  ;;  %v5677_v55 = vmax.f32 %v14035_v61, %v5659_v51  ;;  %v4878_v61 = vmax.f32 %v13781_v28, %v4867_v8  ;;  %v5855_v56 = vld [vmem:[%s14129_s12 + $0x498] sm:$0xff]  ;;  %v5648_v51 = vpop.permute.xlu0 %5647  ;;  %v5840_v8 = vld [vmem:[%s14129_s12 + $0x420] sm:$0xff] }
 0x9c5   : >> { %v6348_v28 = vmul.f32 %v5855_v56, %v14199_v22  ;;  %v5745_v56 = vld [vmem:[%s14129_s12 + $0x128] sm:$0xff] }
 0x9c6   : >> { %v5993_v6 = vadd.f32 %v5977_v30, %v5976_v47  ;;  %v6347_v47 = vmul.f32 %v5854_v3, %v14195_v24  ;;  %v5776_v30 = vld [vmem:[%s14129_s12 + $0x220] sm:$0xff] }
 0x9c7   : >> { %6309 = vadd.xlane.f32.xlu1 %v6308_v54  ;;  %5888 = vadd.xlane.f32.xlu0 %v5887_v27  ;;  %v6242_v54 = vmul.f32 %v5823_v44, %v14199_v22  ;;  %v4859_v27 = vsel %vm3622_vm1, %v13971_v23, %v13975_v19  ;;  %v6295_v23 = vmul.f32 %v5839_v33, %v14199_v22  ;;  %v5806_v19 = vld [vmem:[%s14129_s12 + $0x310] sm:$0xff] }
 0x9c8   : >> { %v4877_v58 = vmax.f32 %v13765_v52, %v4859_v27  ;;  %v14265_v52 = vmax.f32 %v4878_v61, %v5678_v63  ;;  %v6188_v46 = vmul.f32 %v5806_v19, %v14195_v24  ;;  %v6189_v44 = vmul.f32 %v5807_v25, %v14199_v22 }
 0x9c9   : >> { %v6258_v62 = vadd.f32 %v6242_v54, %v6241_v29  ;;  %v5713_v29 = vld [vmem:[%s14129_s12 + $0x28] sm:$0xff]  ;;  %v5660_v54 = vsel %vm3622_vm1, %v5632_v50, %v5648_v51  ;;  %v5668_v22 = vsel %vm3622_vm1, %v5648_v51, %v5632_v50  ;;  %v6364_v27 = vadd.f32 %v6348_v28, %v6347_v47  ;;  %v5714_v28 = vld [vmem:[%s14129_s12 + $0x30] sm:$0xff] }
 0x9ca   : >> { %v14263_v34 = vmax.f32 %v4877_v58, %v5677_v55  ;;  %v5873_v33 = vmul.f32 %v5713_v29, %v14265_v52  ;;  %v5841_v55 = vld [vmem:[%s14129_s12 + $0x428] sm:$0xff]  ;;  %v4860_v63 = vsel %vm3622_vm1, %v13977_v13, %v13981_v2  ;;  %v4868_v50 = vsel %vm3622_vm1, %v13981_v2, %v13977_v13  ;;  %v5856_v13 = vld [vmem:[%s14129_s12 + $0x4a0] sm:$0xff] }
 0x9cb   : >> { %6362 = vadd.xlane.f32.xlu1 %v6361_v37  ;;  %6100 = vadd.xlane.f32.xlu0 %v6099_v40  ;;  %v6029_v37 = vmul.f32 %v5758_v35, %v14195_v24  ;;  %v6294_v40 = vmul.f32 %v5838_v14, %v14195_v24  ;;  %v6205_v35 = vadd.f32 %v6189_v44, %v6188_v46  ;;  %v5857_v2 = vld [vmem:[%s14129_s12 + $0x4a8] sm:$0xff] }
 0x9cc   : >> { %v6084_v42 = vmul.f32 %v5776_v30, %v14263_v34  ;;  %v6085_v24 = vmul.f32 %v5777_v4, %v14265_v52  ;;  %v5680_v58 = vmax.f32 %v14055_v16, %v5668_v22  ;;  %v4879_v19 = vmax.f32 %v13789_v38, %v4860_v63  ;;  %v5744_v16 = vld [vmem:[%s14129_s12 + $0x120] sm:$0xff]  ;;  %v5715_v30 = vld [vmem:[%s14129_s12 + $0x38] sm:$0xff] }
 0x9cd   : >> { %v6046_v39 = vadd.f32 %v6030_v53, %v6029_v37  ;;  %v5729_v37 = vld [vmem:[%s14129_s12 + $0xa8] sm:$0xff]  ;;  %v5679_v53 = vmax.f32 %v14039_v15, %v5660_v54  ;;  %v4880_v15 = vmax.f32 %v13805_v17, %v4868_v50  ;;  %v6349_v44 = vmul.f32 %v5856_v13, %v14263_v34  ;;  %v5760_v4 = vld [vmem:[%s14129_s12 + $0x1a0] sm:$0xff] }
 0x9ce   : >> { %v5926_v3 = vmul.f32 %v5729_v37, %v14265_v52  ;;  %v6350_v51 = vmul.f32 %v5857_v2, %v14265_v52  ;;  %v5978_v17 = vmul.f32 %v5744_v16, %v14263_v34  ;;  %v5979_v47 = vmul.f32 %v5745_v56, %v14265_v52  ;;  %v5762_v56 = vld [vmem:[%s14129_s12 + $0x1b0] sm:$0xff] }
 0x9cf   : >> { %5941 = vadd.xlane.f32.xlu1 %v5940_v18  ;;  %6153 = vadd.xlane.f32.xlu0 %v6152_v49  ;;  %v6311_v18 = vadd.f32 %v6295_v23, %v6294_v40  ;;  %v5712_v49 = vld [vmem:[%s14129_s12 + $0x20] sm:$0xff]  ;;  %v6296_v40 = vmul.f32 %v5840_v8, %v14263_v34  ;;  %v6297_v23 = vmul.f32 %v5841_v55, %v14265_v52  ;;  %v5793_v8 = vld [vmem:[%s14129_s12 + $0x2a8] sm:$0xff]  ;;  %v5634_v55 = vpop.permute.xlu1 %5633 }
 0x9d0   : >> { %v5872_v14 = vmul.f32 %v5712_v49, %v14263_v34  ;;  %v14309_v38 = vmax.f32 %v4880_v15, %v5680_v58  ;;  %v5761_v49 = vld [vmem:[%s14129_s12 + $0x1a8] sm:$0xff]  ;;  %v6367_v29 = vadd.f32 %v6350_v51, %v6349_v44  ;;  %v6138_v58 = vmul.f32 %v5793_v8, %v14265_v52  ;;  %v5824_v44 = vld [vmem:[%s14129_s12 + $0x3a0] sm:$0xff] }
 0x9d1   : >> { %v6314_v46 = vadd.f32 %v6297_v23, %v6296_v40  ;;  %v6032_v22 = vmul.f32 %v5761_v49, %v14265_v52  ;;  %v5747_v40 = vld [vmem:[%s14129_s12 + $0x138] sm:$0xff]  ;;  %v5808_v23 = vld [vmem:[%s14129_s12 + $0x320] sm:$0xff]  ;;  %v5825_v51 = vld [vmem:[%s14129_s12 + $0x3a8] sm:$0xff]  ;;  %v6243_v49 = vmul.f32 %v5824_v44, %v14263_v34 }
 0x9d2   : >> { %v5890_v25 = vadd.f32 %v5873_v33, %v5872_v14  ;;  %v5731_v14 = vld [vmem:[%s14129_s12 + $0xb8] sm:$0xff]  ;;  %v5792_v33 = vld [vmem:[%s14129_s12 + $0x2a0] sm:$0xff]  ;;  %v6190_v15 = vmul.f32 %v5808_v23, %v14263_v34 }
 0x9d3   : >> { %5994 = vadd.xlane.f32.xlu1 %v5993_v6  ;;  %6259 = vadd.xlane.f32.xlu0 %v6258_v62  ;;  %v5728_v6 = vld [vmem:[%s14129_s12 + $0xa0] sm:$0xff]  ;;  %v6102_v62 = vadd.f32 %v6085_v24, %v6084_v42  ;;  %v5996_v42 = vadd.f32 %v5979_v47, %v5978_v17  ;;  %v6031_v24 = vmul.f32 %v5760_v4, %v14263_v34  ;;  %v5650_v13 = vpop.permute.xlu1 %5649 }
 0x9d4   : >> { %v5925_v61 = vmul.f32 %v5728_v6, %v14263_v34  ;;  %v5928_v37 = vmul.f32 %v5731_v14, %v14309_v38 }
 0x9d5   : >> { %v6049_v50 = vadd.f32 %v6032_v22, %v6031_v24  ;;  %v5810_v24 = vld [vmem:[%s14129_s12 + $0x330] sm:$0xff]  ;;  %v5811_v22 = vld [vmem:[%s14129_s12 + $0x338] sm:$0xff] }
 0x9d7   : >> { %6047 = vadd.xlane.f32.xlu1 %v6046_v39  ;;  %6312 = vadd.xlane.f32.xlu0 %v6311_v18  ;;  %v14307_v39 = vmax.f32 %v4879_v19, %v5679_v53  ;;  %v5943_v18 = vadd.f32 %v5926_v3, %v5925_v61  ;;  %v6137_v53 = vmul.f32 %v5792_v33, %v14263_v34  ;;  %v5809_v19 = vld [vmem:[%s14129_s12 + $0x328] sm:$0xff] }
 0x9d8   : >> { %v5981_v3 = vmul.f32 %v5747_v40, %v14309_v38  ;;  %v6191_v16 = vmul.f32 %v5809_v19, %v14265_v52  ;;  %v4869_v34 = vsel %vm3622_vm1, %v13983_v1, %v13979_v31 }
 0x9d9   : >> { %v5874_v54 = vmul.f32 %v5714_v28, %v14307_v39  ;;  %v6155_v2 = vadd.f32 %v6138_v58, %v6137_v53  ;;  %v6033_v47 = vmul.f32 %v5762_v56, %v14307_v39 }
 0x9da   : >> { %v6208_v4 = vadd.f32 %v6191_v16, %v6190_v15 }
 0x9db   : >> { %6206 = vadd.xlane.f32.xlu1 %v6205_v35  ;;  %6365 = vadd.xlane.f32.xlu0 %v6364_v27  ;;  %v5875_v35 = vmul.f32 %v5715_v30, %v14309_v38  ;;  %v5730_v27 = vld [vmem:[%s14129_s12 + $0xb0] sm:$0xff]  ;;  %v5669_v30 = vsel %vm3622_vm1, %v5650_v13, %v5634_v55 }
 0x9dc   : >> { %v5927_v6 = vmul.f32 %v5730_v27, %v14307_v39  ;;  %v5682_v27 = vmax.f32 %v14083_v20, %v5669_v30  ;;  %v5826_v20 = vld [vmem:[%s14129_s12 + $0x3b0] sm:$0xff] }
 0x9dd   : >> { %v5893_v63 = vadd.f32 %v5875_v35, %v5874_v54  ;;  %v5778_v54 = vld [vmem:[%s14129_s12 + $0x230] sm:$0xff]  ;;  %v5779_v35 = vld [vmem:[%s14129_s12 + $0x238] sm:$0xff]  ;;  %v6245_v19 = vmul.f32 %v5826_v20, %v14307_v39  ;;  %v4870_v20 = vsel %vm3622_vm1, %v13989_v43, %v13985_v11 }
 0x9de   : >> { %v6086_v33 = vmul.f32 %v5778_v54, %v14307_v39  ;;  %v6087_v8 = vmul.f32 %v5779_v35, %v14309_v38 }
 0x9df   : >> { %6103 = vadd.xlane.f32.xlu1 %v6102_v62  ;;  %5891 = vadd.xlane.f32.xlu0 %v5890_v25  ;;  %v5746_v62 = vld [vmem:[%s14129_s12 + $0x130] sm:$0xff]  ;;  %v5946_v25 = vadd.f32 %v5928_v37, %v5927_v6  ;;  %v6192_v6 = vmul.f32 %v5810_v24, %v14307_v39  ;;  %v6193_v37 = vmul.f32 %v5811_v22, %v14309_v38  ;;  %v5812_v24 = vld [vmem:[%s14129_s12 + $0x340] sm:$0xff]  ;;  %v5813_v22 = vld [vmem:[%s14129_s12 + $0x348] sm:$0xff] }
 0x9e0   : >> { %v5980_v61 = vmul.f32 %v5746_v62, %v14307_v39  ;;  %v6105_v58 = vadd.f32 %v6087_v8, %v6086_v33 }
 0x9e1   : >> { %v6211_v23 = vadd.f32 %v6193_v37, %v6192_v6  ;;  %v5828_v6 = vld [vmem:[%s14129_s12 + $0x3c0] sm:$0xff]  ;;  %v5829_v37 = vld [vmem:[%s14129_s12 + $0x3c8] sm:$0xff] }
 0x9e2   : >> { %v5999_v17 = vadd.f32 %v5981_v3, %v5980_v61  ;;  %v5781_v61 = vld [vmem:[%s14129_s12 + $0x248] sm:$0xff]  ;;  %v5842_v3 = vld [vmem:[%s14129_s12 + $0x430] sm:$0xff] }
 0x9e3   : >> { %6315 = vadd.xlane.f32.xlu1 %v6314_v46  ;;  %5944 = vadd.xlane.f32.xlu0 %v5943_v18  ;;  %v5763_v46 = vld [vmem:[%s14129_s12 + $0x1b8] sm:$0xff]  ;;  %v5661_v18 = vsel %vm3622_vm1, %v5634_v55, %v5650_v13  ;;  %v6298_v44 = vmul.f32 %v5842_v3, %v14307_v39  ;;  %v4884_v3 = vmax.f32 %v13838_v57, %v4870_v20 }
 0x9e4   : >> { %v6034_v28 = vmul.f32 %v5763_v46, %v14309_v38  ;;  %v5843_v13 = vld [vmem:[%s14129_s12 + $0x438] sm:$0xff] }
 0x9e5   : >> { %v5751_v20 = vld [vmem:[%s14129_s12 + $0x158] sm:$0xff] }
 0x9e6   : >> { %v6052_v14 = vadd.f32 %v6034_v28, %v6033_v47  ;;  %v5858_v47 = vld [vmem:[%s14129_s12 + $0x4b0] sm:$0xff]  ;;  %v5859_v28 = vld [vmem:[%s14129_s12 + $0x4b8] sm:$0xff] }
 0x9e7   : >> { %6368 = vadd.xlane.f32.xlu1 %v6367_v29  ;;  %5997 = vadd.xlane.f32.xlu0 %v5996_v42  ;;  %v6244_v29 = vmul.f32 %v5825_v51, %v14265_v52  ;;  %v4861_v42 = vsel %vm3622_vm1, %v13979_v31, %v13983_v1  ;;  %v5681_v52 = vmax.f32 %v14067_v45, %v5661_v18  ;;  %v5794_v31 = vld [vmem:[%s14129_s12 + $0x2b0] sm:$0xff]  ;;  %v5795_v1 = vld [vmem:[%s14129_s12 + $0x2b8] sm:$0xff]  ;;  %v5796_v18 = vld [vmem:[%s14129_s12 + $0x2c0] sm:$0xff] }
 0x9e8   : >> { %v4881_v55 = vmax.f32 %v13797_v9, %v4861_v42  ;;  %v4882_v45 = vmax.f32 %v13813_v12, %v4869_v34  ;;  %v6139_v62 = vmul.f32 %v5794_v31, %v14307_v39  ;;  %v6140_v40 = vmul.f32 %v5795_v1, %v14309_v38  ;;  %v5716_v34 = vld [vmem:[%s14129_s12 + $0x40] sm:$0xff] }
 0x9e9   : >> { %v6299_v51 = vmul.f32 %v5843_v13, %v14309_v38  ;;  %v6351_v35 = vmul.f32 %v5858_v47, %v14307_v39  ;;  %v6352_v42 = vmul.f32 %v5859_v28, %v14309_v38  ;;  %v4862_v31 = vsel %vm3622_vm1, %v13985_v11, %v13989_v43  ;;  %v5732_v1 = vld [vmem:[%s14129_s12 + $0xc0] sm:$0xff]  ;;  %v5749_v13 = vld [vmem:[%s14129_s12 + $0x148] sm:$0xff] }
 0x9ea   : >> { %v14375_v53 = vmax.f32 %v4881_v55, %v5681_v52  ;;  %v14377_v9 = vmax.f32 %v4882_v45, %v5682_v27  ;;  %v6158_v15 = vadd.f32 %v6140_v40, %v6139_v62  ;;  %v5717_v52 = vld [vmem:[%s14129_s12 + $0x48] sm:$0xff]  ;;  %v5844_v43 = vld [vmem:[%s14129_s12 + $0x440] sm:$0xff] }
 0x9eb   : >> { %5894 = vadd.xlane.f32.xlu1 %v5893_v63  ;;  %6050 = vadd.xlane.f32.xlu0 %v6049_v50  ;;  %v6261_v63 = vadd.f32 %v6244_v29, %v6243_v49  ;;  %v5827_v50 = vld [vmem:[%s14129_s12 + $0x3b8] sm:$0xff]  ;;  %v6317_v54 = vadd.f32 %v6299_v51, %v6298_v44  ;;  %v6370_v8 = vadd.f32 %v6352_v42, %v6351_v35  ;;  %v5733_v45 = vld [vmem:[%s14129_s12 + $0xc8] sm:$0xff]  ;;  %v5764_v28 = vld [vmem:[%s14129_s12 + $0x1c0] sm:$0xff] }
 0x9ec   : >> { %v6246_v12 = vmul.f32 %v5827_v50, %v14309_v38  ;;  %v6089_v56 = vmul.f32 %v5781_v61, %v14377_v9  ;;  %v6194_v33 = vmul.f32 %v5812_v24, %v14375_v53  ;;  %v6195_v39 = vmul.f32 %v5813_v22, %v14377_v9 }
 0x9ed   : >> { %v5876_v55 = vmul.f32 %v5716_v34, %v14375_v53  ;;  %v5929_v61 = vmul.f32 %v5732_v1, %v14375_v53  ;;  %v5930_v11 = vmul.f32 %v5733_v45, %v14377_v9  ;;  %v5983_v57 = vmul.f32 %v5749_v13, %v14377_v9  ;;  %v5734_v34 = vld [vmem:[%s14129_s12 + $0xd0] sm:$0xff] }
 0x9ee   : >> { %v6264_v46 = vadd.f32 %v6246_v12, %v6245_v19  ;;  %v6214_v40 = vadd.f32 %v6195_v39, %v6194_v33  ;;  %v6248_v19 = vmul.f32 %v5829_v37, %v14377_v9  ;;  %v4883_v12 = vmax.f32 %v13821_v26, %v4862_v31  ;;  %v5767_v33 = vld [vmem:[%s14129_s12 + $0x1d8] sm:$0xff] }
 0x9ef   : >> { %5947 = vadd.xlane.f32.xlu1 %v5946_v25  ;;  %6156 = vadd.xlane.f32.xlu0 %v6155_v2  ;;  %v5780_v25 = vld [vmem:[%s14129_s12 + $0x240] sm:$0xff]  ;;  %v5636_v2 = vpop.permute.xlu0 %5635  ;;  %v5949_v44 = vadd.f32 %v5930_v11, %v5929_v61  ;;  %v6035_v24 = vmul.f32 %v5764_v28, %v14375_v53  ;;  %v4871_v39 = vsel %vm3622_vm1, %v13991_v32, %v13987_v36 }
 0x9f0   : >> { %v6088_v16 = vmul.f32 %v5780_v25, %v14375_v53  ;;  %v5768_v11 = vld [vmem:[%s14129_s12 + $0x1e0] sm:$0xff]  ;;  %v4872_v13 = vsel %vm3622_vm1, %v13995_v10, %v13993_v7 }
 0x9f2   : >> { %v6108_v30 = vadd.f32 %v6089_v56, %v6088_v16  ;;  %v6300_v16 = vmul.f32 %v5844_v43, %v14375_v53  ;;  %v5769_v43 = vld [vmem:[%s14129_s12 + $0x1e8] sm:$0xff] }
 0x9f3   : >> { %6000 = vadd.xlane.f32.xlu1 %v5999_v17  ;;  %6209 = vadd.xlane.f32.xlu0 %v6208_v4  ;;  %v5797_v17 = vld [vmem:[%s14129_s12 + $0x2c8] sm:$0xff]  ;;  %v6141_v4 = vmul.f32 %v5796_v18, %v14375_v53  ;;  %v5652_v29 = vpop.permute.xlu0 %5651  ;;  %v5718_v18 = vld [vmem:[%s14129_s12 + $0x50] sm:$0xff] }
 0x9f4   : >> { %v6142_v49 = vmul.f32 %v5797_v17, %v14377_v9  ;;  %v5662_v27 = vsel %vm3622_vm1, %v5636_v2, %v5652_v29  ;;  %v5670_v38 = vsel %vm3622_vm1, %v5652_v29, %v5636_v2  ;;  %v5719_v17 = vld [vmem:[%s14129_s12 + $0x58] sm:$0xff] }
 0x9f5   : >> { %v5683_v50 = vmax.f32 %v14071_v41, %v5662_v27  ;;  %v5684_v62 = vmax.f32 %v14087_v60, %v5670_v38  ;;  %v5845_v41 = vld [vmem:[%s14129_s12 + $0x448] sm:$0xff]  ;;  %v5748_v60 = vld [vmem:[%s14129_s12 + $0x140] sm:$0xff]  ;;  %v4863_v27 = vsel %vm3622_vm1, %v13987_v36, %v13991_v32  ;;  %v5750_v32 = vld [vmem:[%s14129_s12 + $0x150] sm:$0xff] }
 0x9f6   : >> { %v6301_v56 = vmul.f32 %v5845_v41, %v14377_v9  ;;  %v5982_v51 = vmul.f32 %v5748_v60, %v14375_v53  ;;  %v4885_v31 = vmax.f32 %v13829_v48, %v4863_v27  ;;  %v4864_v41 = vsel %vm3622_vm1, %v13993_v7, %v13995_v10  ;;  %v5799_v60 = vld [vmem:[%s14129_s12 + $0x2d8] sm:$0xff]  ;;  %v5784_v10 = vld [vmem:[%s14129_s12 + $0x260] sm:$0xff]  ;;  %v5785_v7 = vld [vmem:[%s14129_s12 + $0x268] sm:$0xff] }
 0x9f7   : >> { %6053 = vadd.xlane.f32.xlu1 %v6052_v14  ;;  %6262 = vadd.xlane.f32.xlu0 %v6261_v63  ;;  %v6161_v14 = vadd.f32 %v6142_v49, %v6141_v4  ;;  %v5877_v63 = vmul.f32 %v5717_v52, %v14377_v9  ;;  %v14435_v2 = vmax.f32 %v4883_v12, %v5683_v50  ;;  %v5640_v47 = vpop.permute.xlu0 %5639  ;;  %v5735_v52 = vld [vmem:[%s14129_s12 + $0xd8] sm:$0xff] }
 0x9f8   : >> { %v14437_v26 = vmax.f32 %v4884_v3, %v5684_v62  ;;  %v6320_v49 = vadd.f32 %v6301_v56, %v6300_v16  ;;  %v6002_v42 = vadd.f32 %v5983_v57, %v5982_v51  ;;  %v5783_v50 = vld [vmem:[%s14129_s12 + $0x258] sm:$0xff]  ;;  %v5798_v3 = vld [vmem:[%s14129_s12 + $0x2d0] sm:$0xff]  ;;  %v15467_v56 = vld [vmem:[#allocation78_spill] sm:$0xff] }
 0x9f9   : >> { %v5896_v25 = vadd.f32 %v5877_v63, %v5876_v55  ;;  %v5878_v29 = vmul.f32 %v5718_v18, %v14435_v2  ;;  %v15468_v18 = vld [vmem:[#allocation87_spill] sm:$0xff]  ;;  %v6143_v28 = vmul.f32 %v5798_v3, %v14435_v2 }
 0x9fa   : >> { %v5932_v37 = vmul.f32 %v5735_v52, %v14437_v26  ;;  %v6038_v36 = vmul.f32 %v5767_v33, %v14437_v26  ;;  %v6091_v61 = vmul.f32 %v5783_v50, %v14437_v26  ;;  %v5722_v33 = vld [vmem:[%s14129_s12 + $0x70] sm:$0xff] }
 0x9fb   : >> { %6106 = vadd.xlane.f32.xlu1 %v6105_v58  ;;  %6212 = vadd.xlane.f32.xlu0 %v6211_v23  ;;  %v5638_v58 = vpop.permute.xlu1 %5637  ;;  %v6247_v23 = vmul.f32 %v5828_v6, %v14375_v53  ;;  %v5656_v55 = vpop.permute.xlu0 %5655  ;;  %v5931_v6 = vmul.f32 %v5734_v34, %v14435_v2 }
 0x9fc   : >> { %v5664_v48 = vsel %vm3622_vm1, %v5640_v47, %v5656_v55 }
 0x9ff   : >> { %6159 = vadd.xlane.f32.xlu1 %v6158_v15  ;;  %6265 = vadd.xlane.f32.xlu0 %v6264_v46  ;;  %v6267_v15 = vadd.f32 %v6248_v19, %v6247_v23  ;;  %v5654_v46 = vpop.permute.xlu1 %5653  ;;  %v5984_v23 = vmul.f32 %v5750_v32, %v14435_v2  ;;  %v5985_v19 = vmul.f32 %v5751_v20, %v14437_v26  ;;  %v5736_v32 = vld [vmem:[%s14129_s12 + $0xe0] sm:$0xff]  ;;  %v5737_v20 = vld [vmem:[%s14129_s12 + $0xe8] sm:$0xff] }
 0xa00   : >> { %v5663_v4 = vsel %vm3622_vm1, %v5638_v58, %v5654_v46  ;;  %v5671_v35 = vsel %vm3622_vm1, %v5654_v46, %v5638_v58 }
 0xa01   : >> { %v5685_v38 = vmax.f32 %v14099_v0, %v5663_v4  ;;  %v4886_v0 = vmax.f32 %v13849_v5, %v4871_v39  ;;  %v5672_v5 = vsel %vm3622_vm1, %v5656_v55, %v5640_v47  ;;  %v15469_v4 = vld [vmem:[#allocation96_spill] sm:$0xff]  ;;  %v5723_v39 = vld [vmem:[%s14129_s12 + $0x78] sm:$0xff]  ;;  %vm6412_vm1 = vcmask 64512  }
 0xa02   : >> { %v5688_v46 = vmax.f32 %v15467_v56, %v5672_v5  ;;  %v5755_v5 = vld [vmem:[%s14129_s12 + $0x178] sm:$0xff] }
 0xa03   : >> { %6109 = vadd.xlane.f32.xlu1 %v6108_v30  ;;  %6318 = vadd.xlane.f32.xlu0 %v6317_v54  ;;  %v5765_v30 = vld [vmem:[%s14129_s12 + $0x1c8] sm:$0xff]  ;;  %v5879_v54 = vmul.f32 %v5719_v17, %v14437_v26  ;;  %v14479_v58 = vmax.f32 %v4885_v31, %v5685_v38  ;;  %v4887_v17 = vmax.f32 %v15468_v18, %v4864_v41  ;;  %v5720_v38 = vld [vmem:[%s14129_s12 + $0x60] sm:$0xff]  ;;  %v5771_v56 = vld [vmem:[%s14129_s12 + $0x1f8] sm:$0xff] }
 0xa04   : >> { %v6036_v22 = vmul.f32 %v5765_v30, %v14377_v9  ;;  %v6144_v30 = vmul.f32 %v5799_v60, %v14437_v26 }
 0xa05   : >> { %v5899_v63 = vadd.f32 %v5879_v54, %v5878_v29  ;;  %v6039_v51 = vmul.f32 %v5768_v11, %v14479_v58  ;;  %v5814_v29 = vld [vmem:[%s14129_s12 + $0x350] sm:$0xff]  ;;  %v5815_v54 = vld [vmem:[%s14129_s12 + $0x358] sm:$0xff]  ;;  %v5880_v31 = vmul.f32 %v5720_v38, %v14479_v58 }
 0xa06   : >> { %v6055_v1 = vadd.f32 %v6036_v22, %v6035_v24  ;;  %v6092_v22 = vmul.f32 %v5784_v10, %v14479_v58  ;;  %v6164_v52 = vadd.f32 %v6144_v30, %v6143_v28  ;;  %v6196_v27 = vmul.f32 %v5814_v29, %v14435_v2  ;;  %v5861_v28 = vld [vmem:[%s14129_s12 + $0x4c8] sm:$0xff]  ;;  %v5830_v30 = vld [vmem:[%s14129_s12 + $0x3d0] sm:$0xff]  ;;  %v5831_v10 = vld [vmem:[%s14129_s12 + $0x3d8] sm:$0xff] }
 0xa07   : >> { %6162 = vadd.xlane.f32.xlu1 %v6161_v14  ;;  %6371 = vadd.xlane.f32.xlu0 %v6370_v8  ;;  %v5766_v14 = vld [vmem:[%s14129_s12 + $0x1d0] sm:$0xff]  ;;  %v5686_v8 = vmax.f32 %v14115_v59, %v5671_v35 }
 0xa08   : >> { %v6037_v45 = vmul.f32 %v5766_v14, %v14435_v2  ;;  %v5782_v59 = vld [vmem:[%s14129_s12 + $0x250] sm:$0xff]  ;;  %v6197_v14 = vmul.f32 %v5815_v54, %v14437_v26  ;;  %v6249_v54 = vmul.f32 %v5830_v30, %v14435_v2 }
 0xa09   : >> { %v14483_v62 = vmax.f32 %v4886_v0, %v5686_v8  ;;  %v5721_v8 = vld [vmem:[%s14129_s12 + $0x68] sm:$0xff] }
 0xa0a   : >> { %v6058_v12 = vadd.f32 %v6038_v36, %v6037_v45  ;;  %v5738_v45 = vld [vmem:[%s14129_s12 + $0xf0] sm:$0xff]  ;;  %v5739_v36 = vld [vmem:[%s14129_s12 + $0xf8] sm:$0xff] }
 0xa0b   : >> { %6215 = vadd.xlane.f32.xlu1 %v6214_v40  ;;  %5897 = vadd.xlane.f32.xlu0 %v5896_v25  ;;  %v5952_v40 = vadd.f32 %v5932_v37, %v5931_v6  ;;  %v6090_v25 = vmul.f32 %v5782_v59, %v14435_v2  ;;  %v6040_v57 = vmul.f32 %v5769_v43, %v14483_v62 }
 0xa0c   : >> { %v6093_v34 = vmul.f32 %v5785_v7, %v14483_v62  ;;  %v6217_v37 = vadd.f32 %v6197_v14, %v6196_v27  ;;  %v5787_v27 = vld [vmem:[%s14129_s12 + $0x278] sm:$0xff] }
 0xa0d   : >> { %v6111_v47 = vadd.f32 %v6091_v61, %v6090_v25  ;;  %v6061_v24 = vadd.f32 %v6040_v57, %v6039_v51  ;;  %v5753_v25 = vld [vmem:[%s14129_s12 + $0x168] sm:$0xff] }
 0xa0e   : >> { %v6114_v55 = vadd.f32 %v6093_v34, %v6092_v22  ;;  %v5987_v60 = vmul.f32 %v5753_v25, %v14483_v62  ;;  %v5816_v22 = vld [vmem:[%s14129_s12 + $0x360] sm:$0xff]  ;;  %v5817_v34 = vld [vmem:[%s14129_s12 + $0x368] sm:$0xff] }
 0xa0f   : >> { %6268 = vadd.xlane.f32.xlu1 %v6267_v15  ;;  %5950 = vadd.xlane.f32.xlu0 %v5949_v44  ;;  %v15466_v15 = vld [vmem:[#allocation77_spill] sm:$0xff]  ;;  %v6005_v44 = vadd.f32 %v5985_v19, %v5984_v23  ;;  %v5934_v23 = vmul.f32 %v5737_v20, %v14483_v62  ;;  %v5754_v19 = vld [vmem:[%s14129_s12 + $0x170] sm:$0xff] }
 0xa10   : >> { %v5687_v16 = vmax.f32 %v15466_v15, %v5664_v48  ;;  %v5801_v15 = vld [vmem:[%s14129_s12 + $0x2e8] sm:$0xff]  ;;  %v5862_v20 = vld [vmem:[%s14129_s12 + $0x4d0] sm:$0xff] }
 0xa11   : >> { %v6146_v51 = vmul.f32 %v5801_v15, %v14483_v62 }
 0xa12   : >> { %v14515_v35 = vmax.f32 %v4887_v17, %v5687_v16  ;;  %v5770_v16 = vld [vmem:[%s14129_s12 + $0x1f0] sm:$0xff] }
 0xa13   : >> { %6321 = vadd.xlane.f32.xlu1 %v6320_v49  ;;  %6003 = vadd.xlane.f32.xlu0 %v6002_v42  ;;  %v4888_v49 = vmax.f32 %v15469_v4, %v4872_v13  ;;  %v5800_v13 = vld [vmem:[%s14129_s12 + $0x2e0] sm:$0xff] }
 0xa14   : >> { %v5935_v59 = vmul.f32 %v5738_v45, %v14515_v35  ;;  %v5988_v11 = vmul.f32 %v5754_v19, %v14515_v35  ;;  %v6041_v18 = vmul.f32 %v5770_v16, %v14515_v35  ;;  %v6355_v19 = vmul.f32 %v5862_v20, %v14435_v2 }
 0xa15   : >> { %v14517_v42 = vmax.f32 %v4888_v49, %v5688_v46  ;;  %v6354_v49 = vmul.f32 %v5861_v28, %v14377_v9  ;;  %v6199_v9 = vmul.f32 %v5817_v34, %v14483_v62 }
 0xa17   : >> { %5900 = vadd.xlane.f32.xlu1 %v5899_v63  ;;  %6056 = vadd.xlane.f32.xlu0 %v6055_v1  ;;  %v5882_v63 = vmul.f32 %v5722_v33, %v14515_v35  ;;  %v5883_v6 = vmul.f32 %v5723_v39, %v14517_v42  ;;  %v5881_v1 = vmul.f32 %v5721_v8, %v14483_v62  ;;  %v5802_v8 = vld [vmem:[%s14129_s12 + $0x2f0] sm:$0xff] }
 0xa18   : >> { %v5936_v50 = vmul.f32 %v5739_v36, %v14517_v42  ;;  %v5989_v43 = vmul.f32 %v5755_v5, %v14517_v42  ;;  %v6042_v17 = vmul.f32 %v5771_v56, %v14517_v42  ;;  %v6095_v38 = vmul.f32 %v5787_v27, %v14517_v42 }
 0xa19   : >> { %v5905_v0 = vadd.f32 %v5883_v6, %v5882_v63  ;;  %v5902_v48 = vadd.f32 %v5881_v1, %v5880_v31  ;;  %v5846_v63 = vld [vmem:[%s14129_s12 + $0x450] sm:$0xff]  ;;  %v5847_v6 = vld [vmem:[%s14129_s12 + $0x458] sm:$0xff]  ;;  %v6147_v31 = vmul.f32 %v5802_v8, %v14515_v35 }
 0xa1a   : >> { %v5958_v61 = vadd.f32 %v5936_v50, %v5935_v59  ;;  %v6011_v46 = vadd.f32 %v5989_v43, %v5988_v11  ;;  %v6064_v29 = vadd.f32 %v6042_v17, %v6041_v18  ;;  %v6302_v36 = vmul.f32 %v5846_v63, %v14435_v2  ;;  %v5832_v59 = vld [vmem:[%s14129_s12 + $0x3e0] sm:$0xff]  ;;  %v5833_v50 = vld [vmem:[%s14129_s12 + $0x3e8] sm:$0xff]  ;;  %v5835_v18 = vld [vmem:[%s14129_s12 + $0x3f8] sm:$0xff] }
 0xa1b   : >> { %5953 = vadd.xlane.f32.xlu1 %v5952_v40  ;;  %6059 = vadd.xlane.f32.xlu0 %v6058_v12  ;;  %v5933_v40 = vmul.f32 %v5736_v32, %v14479_v58  ;;  %v5752_v12 = vld [vmem:[%s14129_s12 + $0x160] sm:$0xff]  ;;  %v6303_v32 = vmul.f32 %v5847_v6, %v14437_v26  ;;  %v6251_v25 = vmul.f32 %v5832_v59, %v14479_v58  ;;  %v5849_v43 = vld [vmem:[%s14129_s12 + $0x468] sm:$0xff] }
 0xa1c   : >> { %v5986_v3 = vmul.f32 %v5752_v12, %v14479_v58  ;;  %v5848_v11 = vld [vmem:[%s14129_s12 + $0x460] sm:$0xff]  ;;  %v6305_v15 = vmul.f32 %v5849_v43, %v14483_v62 }
 0xa1d   : >> { %v5955_v41 = vadd.f32 %v5934_v23, %v5933_v40  ;;  %v6323_v12 = vadd.f32 %v6303_v32, %v6302_v36 }
 0xa1e   : >> { %v6008_v57 = vadd.f32 %v5987_v60, %v5986_v3  ;;  %v5819_v3 = vld [vmem:[%s14129_s12 + $0x378] sm:$0xff] }
 0xa1f   : >> { %6006 = vadd.xlane.f32.xlu1 %v6005_v44  ;;  %6112 = vadd.xlane.f32.xlu0 %v6111_v47  ;;  %v6145_v44 = vmul.f32 %v5800_v13, %v14479_v58  ;;  %v5860_v47 = vld [vmem:[%s14129_s12 + $0x4c0] sm:$0xff] }
 0xa20   : >> { %v6353_v4 = vmul.f32 %v5860_v47, %v14375_v53  ;;  %v6198_v53 = vmul.f32 %v5816_v22, %v14479_v58  ;;  %v5851_v22 = vld [vmem:[%s14129_s12 + $0x478] sm:$0xff] }
 0xa21   : >> { %v6167_v7 = vadd.f32 %v6146_v51, %v6145_v44  ;;  %v5864_v44 = vld [vmem:[%s14129_s12 + $0x4e0] sm:$0xff]  ;;  %v5865_v51 = vld [vmem:[%s14129_s12 + $0x4e8] sm:$0xff] }
 0xa22   : >> { %v6373_v14 = vadd.f32 %v6354_v49, %v6353_v4  ;;  %v6357_v30 = vmul.f32 %v5864_v44, %v14479_v58  ;;  %v6254_v49 = vmul.f32 %v5835_v18, %v14517_v42 }
 0xa23   : >> { %6062 = vadd.xlane.f32.xlu1 %v6061_v24  ;;  %6165 = vadd.xlane.f32.xlu0 %v6164_v52  ;;  %v6250_v24 = vmul.f32 %v5831_v10, %v14437_v26  ;;  %v5786_v52 = vld [vmem:[%s14129_s12 + $0x270] sm:$0xff]  ;;  %v6358_v10 = vmul.f32 %v5865_v51, %v14483_v62 }
 0xa24   : >> { %v6094_v39 = vmul.f32 %v5786_v52, %v14515_v35 }
 0xa25   : >> { %v6270_v33 = vadd.f32 %v6250_v24, %v6249_v54  ;;  %v5867_v54 = vld [vmem:[%s14129_s12 + $0x4f8] sm:$0xff]  ;;  %v5850_v24 = vld [vmem:[%s14129_s12 + $0x470] sm:$0xff]  ;;  %v6379_v27 = vadd.f32 %v6358_v10, %v6357_v30 }
 0xa26   : >> { %v6117_v45 = vadd.f32 %v6095_v38, %v6094_v39 }
 0xa27   : >> { %6115 = vadd.xlane.f32.xlu1 %v6114_v55  ;;  %6218 = vadd.xlane.f32.xlu0 %v6217_v37  ;;  %v5803_v55 = vld [vmem:[%s14129_s12 + $0x2f8] sm:$0xff]  ;;  %v6220_v37 = vadd.f32 %v6199_v9, %v6198_v53  ;;  %v6307_v9 = vmul.f32 %v5851_v22, %v14517_v42 }
 0xa28   : >> { %v6148_v1 = vmul.f32 %v5803_v55, %v14517_v42 }
 0xa2a   : >> { %v6170_v23 = vadd.f32 %v6148_v1, %v6147_v31 }
 0xa2b   : >> { %5906 = vadd.xlane.f32.xlu1 %v5905_v0  ;;  %5903 = vadd.xlane.f32.xlu0 %v5902_v48  ;;  %v5863_v0 = vld [vmem:[%s14129_s12 + $0x4d8] sm:$0xff] }
 0xa2c   : >> { %v6356_v5 = vmul.f32 %v5863_v0, %v14437_v26  ;;  %v6304_v26 = vmul.f32 %v5848_v11, %v14479_v58  ;;  %v6360_v58 = vmul.f32 %v5867_v54, %v14517_v42 }
 0xa2e   : >> { %v6376_v2 = vadd.f32 %v6356_v5, %v6355_v19  ;;  %v6326_v28 = vadd.f32 %v6305_v15, %v6304_v26 }
 0xa2f   : >> { %5959 = vadd.xlane.f32.xlu1 %v5958_v61  ;;  %5956 = vadd.xlane.f32.xlu0 %v5955_v41  ;;  %v6252_v61 = vmul.f32 %v5833_v50, %v14483_v62  ;;  %v5818_v41 = vld [vmem:[%s14129_s12 + $0x370] sm:$0xff]  ;;  %v6306_v62 = vmul.f32 %v5850_v24, %v14515_v35 }
 0xa30   : >> { %v6200_v56 = vmul.f32 %v5818_v41, %v14515_v35 }
 0xa31   : >> { %v6273_v16 = vadd.f32 %v6252_v61, %v6251_v25  ;;  %v6329_v55 = vadd.f32 %v6307_v9, %v6306_v62 }
 0xa33   : >> { %6012 = vadd.xlane.f32.xlu1 %v6011_v46  ;;  %6009 = vadd.xlane.f32.xlu0 %v6008_v57  ;;  %v6201_v46 = vmul.f32 %v5819_v3, %v14517_v42  ;;  %v5834_v57 = vld [vmem:[%s14129_s12 + $0x3f0] sm:$0xff] }
 0xa34   : >> { %v6253_v4 = vmul.f32 %v5834_v57, %v14515_v35 }
 0xa36   : >> { %v6276_v53 = vadd.f32 %v6254_v49, %v6253_v4 }
 0xa37   : >> { %6168 = vadd.xlane.f32.xlu1 %v6167_v7  ;;  %6065 = vadd.xlane.f32.xlu0 %v6064_v29  ;;  %v6223_v7 = vadd.f32 %v6201_v46, %v6200_v56  ;;  %v5866_v29 = vld [vmem:[%s14129_s12 + $0x4f0] sm:$0xff] }
 0xa3b   : >> { %6374 = vadd.xlane.f32.xlu1 %v6373_v14  ;;  %6271 = vadd.xlane.f32.xlu0 %v6270_v33  ;;  %v6359_v14 = vmul.f32 %v5866_v29, %v14515_v35 }
 0xa3d   : >> { %v6382_v38 = vadd.f32 %v6360_v58, %v6359_v14 }
 0xa3f   : >> { %6221 = vadd.xlane.f32.xlu1 %v6220_v37  ;;  %6118 = vadd.xlane.f32.xlu0 %v6117_v45 }
 0xa40   : >> { %v5886_v48 = vpop.xlane.xlu1 %5885  ;;  %v5939_v40 = vpop.xlane.xlu0 %5938 }
 0xa43   : >> { %6171 = vadd.xlane.f32.xlu1 %v6170_v23  ;;  %6324 = vadd.xlane.f32.xlu0 %v6323_v12 }
 0xa44   : >> { %v6098_v60 = vpop.xlane.xlu1 %6097  ;;  %v5992_v13 = vpop.xlane.xlu0 %5991 }
 0xa47   : >> { %6377 = vadd.xlane.f32.xlu1 %v6376_v2  ;;  %6274 = vadd.xlane.f32.xlu0 %v6273_v16 }
 0xa48   : >> { %v6151_v17 = vpop.xlane.xlu1 %6150  ;;  %v6045_v47 = vpop.xlane.xlu0 %6044 }
 0xa4b   : >> { %6327 = vadd.xlane.f32.xlu1 %v6326_v28  ;;  %6224 = vadd.xlane.f32.xlu0 %v6223_v7 }
 0xa4c   : >> { %v6257_v34 = vpop.xlane.xlu1 %6256  ;;  %v6204_v52 = vpop.xlane.xlu0 %6203 }
 0xa4f   : >> { %6380 = vadd.xlane.f32.xlu1 %v6379_v27  ;;  %6277 = vadd.xlane.f32.xlu0 %v6276_v53 }
 0xa50   : >> { %v6310_v33 = vpop.xlane.xlu1 %6309  ;;  %v5889_v39 = vpop.xlane.xlu0 %5888 }
 0xa51   : >> { %v5908_v8 = vadd.f32 %v5889_v39, %v5886_v48 }
 0xa53   : >> { %6383 = vadd.xlane.f32.xlu1 %v6382_v38  ;;  %6330 = vadd.xlane.f32.xlu0 %v6329_v55 }
 0xa54   : >> { %v6363_v63 = vpop.xlane.xlu1 %6362  ;;  %v6101_v6 = vpop.xlane.xlu0 %6100 }
 0xa55   : >> { %v6120_v37 = vadd.f32 %v6101_v6, %v6098_v60 }
 0xa58   : >> { %v5942_v31 = vpop.xlane.xlu1 %5941  ;;  %v6154_v45 = vpop.xlane.xlu0 %6153 }
 0xa59   : >> { %v5961_v1 = vadd.f32 %v5942_v31, %v5939_v40  ;;  %v6173_v36 = vadd.f32 %v6154_v45, %v6151_v17 }
 0xa5c   : >> { %v5995_v32 = vpop.xlane.xlu1 %5994  ;;  %v6260_v20 = vpop.xlane.xlu0 %6259 }
 0xa5d   : >> { %v6014_v35 = vadd.f32 %v5995_v32, %v5992_v13  ;;  %v6279_v42 = vadd.f32 %v6260_v20, %v6257_v34 }
 0xa60   : >> { %v6048_v0 = vpop.xlane.xlu1 %6047  ;;  %v6313_v50 = vpop.xlane.xlu0 %6312 }
 0xa61   : >> { %v6067_v59 = vadd.f32 %v6048_v0, %v6045_v47  ;;  %v6332_v23 = vadd.f32 %v6313_v50, %v6310_v33 }
 0xa64   : >> { %v6207_v19 = vpop.xlane.xlu1 %6206  ;;  %v6366_v5 = vpop.xlane.xlu0 %6365 }
 0xa65   : >> { %v6226_v48 = vadd.f32 %v6207_v19, %v6204_v52  ;;  %v6385_v12 = vadd.f32 %v6366_v5, %v6363_v63 }
 0xa68   : >> { %v6104_v25 = vpop.xlane.xlu1 %6103  ;;  %v5892_v11 = vpop.xlane.xlu0 %5891 }
 0xa69   : >> { %v6121_v61 = vadd.f32 %v6120_v37, %v6104_v25  ;;  %v5909_v43 = vadd.f32 %v5908_v8, %v5892_v11 }
 0xa6c   : >> { %v6316_v41 = vpop.xlane.xlu1 %6315  ;;  %v5945_v3 = vpop.xlane.xlu0 %5944 }
 0xa6d   : >> { %v6333_v40 = vadd.f32 %v6332_v23, %v6316_v41  ;;  %v5962_v60 = vadd.f32 %v5961_v1, %v5945_v3 }
 0xa70   : >> { %v6369_v2 = vpop.xlane.xlu1 %6368  ;;  %v5998_v26 = vpop.xlane.xlu0 %5997 }
 0xa71   : >> { %v6386_v13 = vadd.f32 %v6385_v12, %v6369_v2  ;;  %v6015_v15 = vadd.f32 %v6014_v35, %v5998_v26 }
 0xa74   : >> { %v5895_v16 = vpop.xlane.xlu1 %5894  ;;  %v6051_v46 = vpop.xlane.xlu0 %6050 }
 0xa75   : >> { %v5910_v56 = vadd.f32 %v5909_v43, %v5895_v16  ;;  %v6068_v44 = vadd.f32 %v6067_v59, %v6051_v46 }
 0xa78   : >> { %v5948_v51 = vpop.xlane.xlu1 %5947  ;;  %v6157_v18 = vpop.xlane.xlu0 %6156 }
 0xa79   : >> { %v5963_v57 = vadd.f32 %v5962_v60, %v5948_v51  ;;  %v6174_v17 = vadd.f32 %v6173_v36, %v6157_v18 }
 0xa7c   : >> { %v6001_v47 = vpop.xlane.xlu1 %6000  ;;  %v6210_v30 = vpop.xlane.xlu0 %6209 }
 0xa7d   : >> { %v6016_v28 = vadd.f32 %v6015_v15, %v6001_v47  ;;  %v6227_v10 = vadd.f32 %v6226_v48, %v6210_v30 }
 0xa80   : >> { %v6054_v7 = vpop.xlane.xlu1 %6053  ;;  %v6263_v49 = vpop.xlane.xlu0 %6262 }
 0xa81   : >> { %v6069_v4 = vadd.f32 %v6068_v44, %v6054_v7  ;;  %v6280_v29 = vadd.f32 %v6279_v42, %v6263_v49 }
 0xa84   : >> { %v6107_v54 = vpop.xlane.xlu1 %6106  ;;  %v6213_v22 = vpop.xlane.xlu0 %6212 }
 0xa85   : >> { %v6122_v24 = vadd.f32 %v6121_v61, %v6107_v54  ;;  %v14611_v34 = vadd.f32 %v6227_v10, %v6213_v22 }
 0xa88   : >> { %v6160_v52 = vpop.xlane.xlu1 %6159  ;;  %v6266_v14 = vpop.xlane.xlu0 %6265 }
 0xa89   : >> { %v6175_v27 = vadd.f32 %v6174_v17, %v6160_v52  ;;  %v14613_v58 = vadd.f32 %v6280_v29, %v6266_v14 }
 0xa8c   : >> { %v6110_v53 = vpop.xlane.xlu1 %6109  ;;  %v6319_v9 = vpop.xlane.xlu0 %6318 }
 0xa8d   : >> { %v6123_v62 = vadd.f32 %v6122_v24, %v6110_v53  ;;  %v14615_v33 = vadd.f32 %v6333_v40, %v6319_v9 }
 0xa90   : >> { %v6163_v39 = vpop.xlane.xlu1 %6162  ;;  %v6372_v8 = vpop.xlane.xlu0 %6371 }
 0xa91   : >> { %v14617_v38 = vadd.f32 %v6175_v27, %v6163_v39  ;;  %v14619_v55 = vadd.f32 %v6386_v13, %v6372_v8 }
 0xa94   : >> { %v14621_v63 = vpop.xlane.xlu1 %6215  ;;  %v5898_v6 = vpop.xlane.xlu0 %5897 }
 0xa95   : >> { %v5911_v48 = vadd.f32 %v5910_v56, %v5898_v6 }
 0xa98   : >> { %v14623_v37 = vpop.xlane.xlu1 %6268  ;;  %v5951_v31 = vpop.xlane.xlu0 %5950 }
 0xa99   : >> { %v5964_v61 = vadd.f32 %v5963_v57, %v5951_v31 }
 0xa9c   : >> { %v14625_v1 = vpop.xlane.xlu1 %6321  ;;  %v6004_v45 = vpop.xlane.xlu0 %6003 }
 0xa9d   : >> { %v6017_v60 = vadd.f32 %v6016_v28, %v6004_v45 }
 0xaa0   : >> { %v5901_v36 = vpop.xlane.xlu1 %5900  ;;  %v6057_v32 = vpop.xlane.xlu0 %6056 }
 0xaa1   : >> { %v5912_v5 = vadd.f32 %v5911_v48, %v5901_v36  ;;  %v6070_v26 = vadd.f32 %v6069_v4, %v6057_v32 }
 0xaa4   : >> { %v5954_v35 = vpop.xlane.xlu1 %5953  ;;  %v6060_v20 = vpop.xlane.xlu0 %6059 }
 0xaa5   : >> { %v5965_v43 = vadd.f32 %v5964_v61, %v5954_v35  ;;  %v6071_v18 = vadd.f32 %v6070_v26, %v6060_v20 }
 0xaa8   : >> { %v6007_v42 = vpop.xlane.xlu1 %6006  ;;  %v6113_v0 = vpop.xlane.xlu0 %6112 }
 0xaa9   : >> { %v6018_v15 = vadd.f32 %v6017_v60, %v6007_v42  ;;  %v6124_v53 = vadd.f32 %v6123_v62, %v6113_v0 }
 0xaac   : >> { %v6063_v59 = vpop.xlane.xlu1 %6062  ;;  %v6166_v50 = vpop.xlane.xlu0 %6165 }
 0xaad   : >> { %v6072_v30 = vadd.f32 %v6071_v18, %v6063_v59  ;;  %v6177_v42 = vadd.f32 %v14617_v38, %v6166_v50  ;;  %v6229_v38 = vadd.f32 %v14611_v34, %v14621_v63  ;;  %v6282_v18 = vadd.f32 %v14613_v58, %v14623_v37 }
 0xab0   : >> { %v6116_v23 = vpop.xlane.xlu1 %6115  ;;  %v14627_v19 = vpop.xlane.xlu0 %6218 }
 0xab1   : >> { %v6125_v31 = vadd.f32 %v6124_v53, %v6116_v23 }
 0xab4   : >> { %v5907_v12 = vpop.xlane.xlu1 %5906  ;;  %v5904_v25 = vpop.xlane.xlu0 %5903 }
 0xab5   : >> { %v5913_v11 = vadd.f32 %v5912_v5, %v5904_v25 }
 0xab7   : >> { %v5914_v41 = vadd.f32 %v5913_v11, %v5907_v12 }
 0xab8   : >> { %v5960_v40 = vpop.xlane.xlu1 %5959  ;;  %v5957_v3 = vpop.xlane.xlu0 %5956 }
 0xab9   : >> { %v5915_v2 = vrot.slane %v5914_v41, 4  ;;  %v5966_v13 = vadd.f32 %v5965_v43, %v5957_v3 }
 0xabb   : >> { %v5916_v16 = vadd.f32 %v5915_v2, %v5914_v41  ;;  %v5967_v46 = vadd.f32 %v5966_v13, %v5960_v40 }
 0xabc   : >> { %v6013_v44 = vpop.xlane.xlu1 %6012  ;;  %v6010_v51 = vpop.xlane.xlu0 %6009 }
 0xabd   : >> { %v5917_v56 = vrot.slane %v5916_v16, 2  ;;  %v5968_v17 = vrot.slane %v5967_v46, 4  ;;  %v6019_v47 = vadd.f32 %v6018_v15, %v6010_v51 }
 0xabf   : >> { %v5918_v57 = vadd.f32 %v5917_v56, %v5916_v16  ;;  %v5969_v10 = vadd.f32 %v5968_v17, %v5967_v46  ;;  %v6020_v7 = vadd.f32 %v6019_v47, %v6013_v44  ;;  %v6230_v46 = vadd.f32 %v6229_v38, %v14627_v19 }
 0xac0   : >> { %v6169_v49 = vpop.xlane.xlu1 %6168  ;;  %v6066_v29 = vpop.xlane.xlu0 %6065  ;;  %v6335_v19 = vadd.f32 %v14615_v33, %v14625_v1 }
 0xac1   : >> { %v5970_v54 = vrot.slane %v5969_v10, 2  ;;  %v6021_v28 = vrot.slane %v6020_v7, 4  ;;  %v6073_v24 = vadd.f32 %v6072_v30, %v6066_v29  ;;  %v5919_v22 = vrot.slane %v5918_v57, 1 }
 0xac2   : >> { %v6178_v62 = vadd.f32 %v6177_v42, %v6169_v49 }
 0xac3   : >> { %v5971_v4 = vadd.f32 %v5970_v54, %v5969_v10  ;;  %v6022_v52 = vadd.f32 %v6021_v28, %v6020_v7  ;;  %v6074_v27 = vrot.slane %v6073_v24, 4  ;;  %v5920_v45 = vadd.f32 %v5919_v22, %v5918_v57 }
 0xac4   : >> { %v6375_v14 = vpop.xlane.xlu1 %6374  ;;  %v6272_v9 = vpop.xlane.xlu0 %6271 }
 0xac5   : >> { %v5972_v39 = vrot.slane %v5971_v4, 1  ;;  %v6023_v8 = vrot.slane %v6022_v52, 2  ;;  %v6075_v6 = vadd.f32 %v6074_v27, %v6073_v24  ;;  %v6283_v10 = vadd.f32 %v6282_v18, %v6272_v9 }
 0xac6   : >> { %v6388_v7 = vadd.f32 %v14619_v55, %v6375_v14 }
 0xac7   : >> { %v5973_v36 = vadd.f32 %v5972_v39, %v5971_v4  ;;  %v6024_v32 = vadd.f32 %v6023_v8, %v6022_v52  ;;  %v6076_v35 = vrot.slane %v6075_v6, 2 }
 0xac8   : >> { %v6222_v20 = vpop.xlane.xlu1 %6221  ;;  %v6119_v59 = vpop.xlane.xlu0 %6118 }
 0xac9   : >> { %v6399_v48 = vsel %vm6398_vm9, %v5920_v45, %v5973_v36  ;;  %v6025_v5 = vrot.slane %v6024_v32, 1  ;;  %v6077_v12 = vadd.f32 %v6076_v35, %v6075_v6  ;;  %v6126_v25 = vadd.f32 %v6125_v31, %v6119_v59 }
 0xaca   : >> { %v6231_v56 = vadd.f32 %v6230_v46, %v6222_v20 }
 0xacb   : >> { %v6026_v0 = vadd.f32 %v6025_v5, %v6024_v32  ;;  %v6078_v61 = vrot.slane %v6077_v12, 1  ;;  %v6127_v11 = vrot.slane %v6126_v25, 4 }
 0xacc   : >> { %v6172_v43 = vpop.xlane.xlu1 %6171  ;;  %v6325_v41 = vpop.xlane.xlu0 %6324 }
 0xacd   : >> { %v6179_v23 = vadd.f32 %v6178_v62, %v6172_v43  ;;  %v6401_v40 = vsel %vm6400_vm10, %v6399_v48, %v6026_v0  ;;  %v6079_v3 = vadd.f32 %v6078_v61, %v6077_v12  ;;  %v6128_v60 = vadd.f32 %v6127_v11, %v6126_v25 }
 0xace   : >> { %v6336_v4 = vadd.f32 %v6335_v19, %v6325_v41 }
 0xacf   : >> { %v6180_v2 = vrot.slane %v6179_v23, 4  ;;  %v6403_v50 = vsel %vm6402_vm11, %v6401_v40, %v6079_v3  ;;  %v6129_v13 = vrot.slane %v6128_v60, 2 }
 0xad0   : >> { %v6378_v26 = vpop.xlane.xlu1 %6377  ;;  %v6275_v16 = vpop.xlane.xlu0 %6274 }
 0xad1   : >> { %v6181_v15 = vadd.f32 %v6180_v2, %v6179_v23  ;;  %v6130_v44 = vadd.f32 %v6129_v13, %v6128_v60  ;;  %v6284_v54 = vadd.f32 %v6283_v10, %v6275_v16  ;;  %v6389_v24 = vadd.f32 %v6388_v7, %v6378_v26  ;;  %v6417_v26 = vld [vmem:[%s14662_s7] sm:$0x1] (%p3537_p5) }
 0xad3   : >> { %v6182_v51 = vrot.slane %v6181_v15, 2  ;;  %v6131_v17 = vrot.slane %v6130_v44, 1 }
 0xad4   : >> { %v6328_v47 = vpop.xlane.xlu1 %6327  ;;  %v6225_v57 = vpop.xlane.xlu0 %6224 }
 0xad5   : >> { %v6183_v30 = vadd.f32 %v6182_v51, %v6181_v15  ;;  %v6132_v34 = vadd.f32 %v6131_v17, %v6130_v44  ;;  %v6232_v63 = vadd.f32 %v6231_v56, %v6225_v57  ;;  %v6337_v39 = vadd.f32 %v6336_v4, %v6328_v47 }
 0xad7   : >> { %v6184_v49 = vrot.slane %v6183_v30, 1  ;;  %v6405_v29 = vsel %vm6404_vm12, %v6403_v50, %v6132_v34  ;;  %v6233_v28 = vrot.slane %v6232_v63, 4  ;;  %v15470_v50 = vld [vmem:[#allocation70_spill] sm:$0xff] }
 0xad8   : >> { %v6381_v58 = vpop.xlane.xlu1 %6380  ;;  %v6278_v22 = vpop.xlane.xlu0 %6277 }
 0xad9   : >> { %v6185_v37 = vadd.f32 %v6184_v49, %v6183_v30  ;;  %v6234_v52 = vadd.f32 %v6233_v28, %v6232_v63  ;;  %v6285_v27 = vadd.f32 %v6284_v54, %v6278_v22  ;;  %v6390_v9 = vadd.f32 %v6389_v24, %v6381_v58 }
 0xadb   : >> { %v6407_v53 = vsel %vm6406_vm13, %v6405_v29, %v6185_v37  ;;  %v6235_v8 = vrot.slane %v6234_v52, 2  ;;  %v6286_v55 = vrot.slane %v6285_v27, 4 }
 0xadc   : >> { %v6384_v14 = vpop.xlane.xlu1 %6383  ;;  %v6331_v31 = vpop.xlane.xlu0 %6330 }
 0xadd   : >> { %v6391_v6 = vadd.f32 %v6390_v9, %v6384_v14  ;;  %v6236_v45 = vadd.f32 %v6235_v8, %v6234_v52  ;;  %v6287_v33 = vadd.f32 %v6286_v55, %v6285_v27  ;;  %v6338_v1 = vadd.f32 %v6337_v39, %v6331_v31 }
 0xadf   : >> { %v6392_v36 = vrot.slane %v6391_v6, 4  ;;  %v6237_v32 = vrot.slane %v6236_v45, 1  ;;  %v6288_v35 = vrot.slane %v6287_v33, 2  ;;  %v6339_v20 = vrot.slane %v6338_v1, 4 }
 0xae1   : >> { %v6393_v42 = vadd.f32 %v6392_v36, %v6391_v6  ;;  %v6238_v59 = vadd.f32 %v6237_v32, %v6236_v45  ;;  %v6289_v48 = vadd.f32 %v6288_v35, %v6287_v33  ;;  %v6340_v5 = vadd.f32 %v6339_v20, %v6338_v1 }
 0xae3   : >> { %v6394_v12 = vrot.slane %v6393_v42, 2  ;;  %v6409_v25 = vsel %vm6408_vm14, %v6407_v53, %v6238_v59  ;;  %v6290_v62 = vrot.slane %v6289_v48, 1  ;;  %v6341_v0 = vrot.slane %v6340_v5, 2 }
 0xae5   : >> { %v6395_v61 = vadd.f32 %v6394_v12, %v6393_v42  ;;  %v6291_v11 = vadd.f32 %v6290_v62, %v6289_v48  ;;  %v6342_v43 = vadd.f32 %v6341_v0, %v6340_v5 }
 0xae7   : >> { %v6396_v23 = vrot.slane %v6395_v61, 1  ;;  %v6411_v41 = vsel %vm6410_vm15, %v6409_v25, %v6291_v11  ;;  %v6343_v40 = vrot.slane %v6342_v43, 1 }
 0xae9   : >> { %v6397_v3 = vadd.f32 %v6396_v23, %v6395_v61  ;;  %v6344_v60 = vadd.f32 %v6343_v40, %v6342_v43 }
 0xaeb   : >> { %v6413_v2 = vsel %vm6412_vm1, %v6411_v41, %v6344_v60  ;;  %3539 = sbr.rel (!%p3537_p5) target bundleno = 1334 (0x536), region = 117 }
 0xaec   : >> { %v6415_v38 = vsel %vm6414_vm2, %v6413_v2, %v6397_v3 }
 0xaed   : >> { %v6416_v13 = vadd.f32 %v15470_v50, %v6415_v38  }
 0xaef   : >> { %v15471_v46 = vmov %v6416_v13  ;;  %v6418_v15 = vadd.f32 (%p3537_p5), %v6417_v26, %v6416_v13 }
 0xaf1   : > { %6420 = vst.msk [vmem:[%s298_s10] sm:$0x1] %vm6419_vm3, %v6418_v15 }
 0xaf2 PF: > { %s18_s27 = sadd.s32 1, %s6981_s27  }
 0xaf3   : > { %p15_p6 = scmp.ge.s32.totalorder %s18_s27, 8  }
 0xaf5   :  { %17 = sbr.rel (!%p15_p6) target bundleno = 1 (0x1), region = 128 }

</bundles_post_ra>
